<compile_context>
chip_gen: v6e
topology: v6e:2x2x1
jax: 0.10.0
libtpu: 0.0.40
codegen_flags: <defaults>
</compile_context>

<pallas_src>
import functools

import numpy as np
import jax
import jax.numpy as jnp
from jax.experimental import pallas as pl
from jax.experimental.pallas import tpu as pltpu


# ----------------------------------------------------------------------------
# Centered orthonormal DFT matrices:  A @ v == fftshift(fft(ifftshift(v), norm="ortho"))
# (matches direct.data.transforms.fft2 / ifft2 with centered=True, normalized=True)
# ----------------------------------------------------------------------------
def _centered_dft_mats(n, inverse):
    eye = np.eye(n)
    x = np.fft.ifftshift(eye, axes=0)
    if inverse:
        y = np.fft.ifft(x, axis=0, norm="ortho")
    else:
        y = np.fft.fft(x, axis=0, norm="ortho")
    y = np.fft.fftshift(y, axes=0)
    return (np.ascontiguousarray(y.real).astype(np.float32),
            np.ascontiguousarray(y.imag).astype(np.float32))


def _pick_vmem_limit_bytes():
    cap = None
    try:
        info = pltpu.get_tpu_info()
        cap = getattr(info, "vmem_capacity_bytes", None)
    except Exception:
        cap = None
    if not cap:
        cap = 64 * 1024 * 1024  # conservative fallback: v7x per-TensorCore VMEM
    # ~3/4 of physical: ~48 MiB on v7x (64 MiB), ~96 MiB on v5e/v6e (128 MiB).
    return int(min(cap * 3 // 4, 110 * 1024 * 1024))


# ----------------------------------------------------------------------------
# Pallas kernel: one full VarNet block update for one batch element.
# k-space / sensitivity layout: (1, 2, C, H, W)  (real/imag stacked on axis 1).
# ----------------------------------------------------------------------------
def _varnet_block_kernel(lr_ref, w1_ref, b1_ref, w2_ref, b2_ref,          # SMEM (scalar prefetch)
                         cur_ref, msk_ref, sens_ref, mask_ref,            # VMEM, batched
                         dfth_ref, dftw_ref, shf_ref,                     # VMEM, constants
                         out_ref, *, coil, height, width, hidden):
    f32 = jnp.float32
    bf16 = jnp.bfloat16
    C, H, W = coil, height, width

    def dot(a, b):
        return jnp.dot(a, b, preferred_element_type=f32)

    # Karatsuba (3-multiplication) complex matmul against a constant triple
    # (real, imag, real+imag) stored at m_ref[base : base + 3].  The data-side
    # pre-add is done in f32 before a single cast to bf16 (v5e has no bf16 VPU).
    def cmul_const_rhs(xr, xi, m_ref, base):
        t1 = dot(xr.astype(bf16), m_ref[base])
        t2 = dot(xi.astype(bf16), m_ref[base + 1])
        t3 = dot((xr + xi).astype(bf16), m_ref[base + 2])
        return t1 - t2, t3 - t1 - t2

    def cmul_const_lhs(m_ref, base, xr, xi):
        t1 = dot(m_ref[base], xr.astype(bf16))
        t2 = dot(m_ref[base + 1], xi.astype(bf16))
        t3 = dot(m_ref[base + 2], (xr + xi).astype(bf16))
        return t1 - t2, t3 - t1 - t2

    # ---- backward operator: centered orthonormal ifft2, per coil -------------
    # Width pass: coils stacked along rows -> single (C*H, W) @ (W, W) matmul.
    kr = cur_ref[0, 0].reshape(C * H, W)
    ki = cur_ref[0, 1].reshape(C * H, W)
    wr, wi = cmul_const_rhs(kr, ki, dftw_ref, 0)
    wr = wr.reshape(C, H, W)
    wi = wi.reshape(C, H, W)

    # Height pass per coil + coil combine (reduce_operator), accumulated in f32.
    comb_r = jnp.zeros((H, W), f32)
    comb_i = jnp.zeros((H, W), f32)
    for c in range(C):
        xr, xi = cmul_const_lhs(dfth_ref, 0, wr[c], wi[c])   # coil-c image (H, W)
        src = sens_ref[0, 0, c]
        sic = sens_ref[0, 1, c]
        comb_r = comb_r + src * xr + sic * xi                # conj(S_c) * X_c
        comb_i = comb_i + src * xi - sic * xr

    # ---- regularizer: Conv3x3(2->hidden) -> ReLU -> Conv3x3(hidden->2), SAME --
    def row_shift(x, ky):
        zrow = jnp.zeros((1, W), x.dtype)
        if ky == 0:                      # tap reads x[h-1, :]
            return jnp.concatenate([zrow, x[:-1, :]], axis=0)
        if ky == 2:                      # tap reads x[h+1, :]
            return jnp.concatenate([x[1:, :], zrow], axis=0)
        return x

    def conv3x3(in_planes, w_ref, b_ref, cin, cout, relu):
        accs = [jnp.zeros((H, W), f32) for _ in range(cout)]
        for i in range(cin):
            x = in_planes[i]
            for kx in range(3):
                if kx == 1:
                    xc = x
                else:
                    # column tap via tiny shifted-identity matmul: (H, W) @ (W, W)
                    xc = dot(x.astype(bf16), shf_ref[0 if kx == 0 else 1])
                for ky in range(3):
                    xs = row_shift(xc, ky)
                    for o in range(cout):
                        wv = w_ref[((o * cin + i) * 3 + ky) * 3 + kx]
                        accs[o] = accs[o] + wv * xs
        outs = []
        for o in range(cout):
            v = accs[o] + b_ref[o]
            outs.append(jnp.maximum(v, 0.0) if relu else v)
        return outs

    hid_planes = conv3x3((comb_r, comb_i), w1_ref, b1_ref, 2, hidden, relu=True)
    reg_r, reg_i = conv3x3(hid_planes, w2_ref, b2_ref, hidden, 2, relu=False)

    # ---- expand operator + forward operator (centered fft2), per coil --------
    ur_list, ui_list = [], []
    for c in range(C):
        src = sens_ref[0, 0, c]
        sic = sens_ref[0, 1, c]
        er = src * reg_r - sic * reg_i                       # S_c * image
        ei = src * reg_i + sic * reg_r
        u_r, u_i = cmul_const_lhs(dfth_ref, 3, er, ei)       # forward height pass
        ur_list.append(u_r)
        ui_list.append(u_i)
    ur = jnp.concatenate(ur_list, axis=0)                    # (C*H, W)
    ui = jnp.concatenate(ui_list, axis=0)
    fr, fi = cmul_const_rhs(ur, ui, dftw_ref, 3)             # forward width pass

    # ---- data-consistency update:  cur - where(mask==0, 0, lr)*(cur-msk) + reg_k
    dc = jnp.where(mask_ref[0] == 0, 0.0, lr_ref[0])         # (H, W) f32
    cr = cur_ref[0, 0]
    ci = cur_ref[0, 1]
    out_ref[0, 0] = cr - dc[None] * (cr - msk_ref[0, 0]) + fr.reshape(C, H, W)
    out_ref[0, 1] = ci - dc[None] * (ci - msk_ref[0, 1]) + fi.reshape(C, H, W)


# ----------------------------------------------------------------------------
# Wrapper: layout packing, constant construction, pallas_call.
# ----------------------------------------------------------------------------
def end_to_end_varnet_block(current_kspace, masked_kspace, sampling_mask,
                            sensitivity_map, w1, b1, w2, b2, learning_rate):
    f32 = jnp.float32
    bf16 = jnp.bfloat16
    N, C, H, W, _ = current_kspace.shape
    hidden = w1.shape[0]

    def to_planes(x):
        # (N, C, H, W, 2) -> (N, 2, C, H, W)
        return jnp.transpose(x.astype(f32), (0, 4, 1, 2, 3))

    cur_p = to_planes(current_kspace)
    msk_p = to_planes(masked_kspace)
    sens_p = to_planes(sensitivity_map)
    mask_p = sampling_mask[:, 0, :, :, 0].astype(f32)                    # (N, H, W)

    # Centered orthonormal DFT matrices (exact in f32; Karatsuba pre-adds done
    # on host in f32, single cast to bf16 for the MXU).
    bh_r, bh_i = _centered_dft_mats(H, inverse=True)
    ah_r, ah_i = _centered_dft_mats(H, inverse=False)
    bw_r, bw_i = _centered_dft_mats(W, inverse=True)
    aw_r, aw_i = _centered_dft_mats(W, inverse=False)
    dft_h = jnp.asarray(np.stack([bh_r, bh_i, bh_r + bh_i,
                                  ah_r, ah_i, ah_r + ah_i]), bf16)       # (6, H, H)
    dft_w = jnp.asarray(np.stack([bw_r.T, bw_i.T, (bw_r + bw_i).T,
                                  aw_r.T, aw_i.T, (aw_r + aw_i).T]), bf16)  # (6, W, W)
    # Column-tap shift matrices: right-multiply by eye(k=1) -> x[:, w-1],
    # eye(k=-1) -> x[:, w+1] (orientation identical to the validated v2 fold).
    shf = jnp.asarray(np.stack([np.eye(W, k=1), np.eye(W, k=-1)]).astype(np.float32),
                      bf16)                                              # (2, W, W)

    # Scalars / small weights -> SMEM via scalar prefetch.
    lr = jnp.asarray(learning_rate, f32).reshape(1)
    w1f = jnp.asarray(w1, f32).reshape(-1)                               # (hidden*2*9,)
    b1f = jnp.asarray(b1, f32).reshape(-1)
    w2f = jnp.asarray(w2, f32).reshape(-1)                               # (2*hidden*9,)
    b2f = jnp.asarray(b2, f32).reshape(-1)

    batched = pl.BlockSpec((1, 2, C, H, W), lambda n, *_: (n, 0, 0, 0, 0))

    # Advisory cost estimate (DFT matmuls dominate; ~9 f32 planes streamed/elem).
    flops_per_item = (12 * C * H * W * (H + W)
                      + (4 + 2 * hidden) * 2 * H * W * W
                      + 72 * hidden * H * W)
    cost = pl.CostEstimate(
        flops=int(N * flops_per_item),
        transcendentals=0,
        bytes_accessed=int(N * (32 * C * H * W + 4 * H * W)
                           + 2 * (6 * H * H + 8 * W * W)))

    kernel = functools.partial(_varnet_block_kernel,
                               coil=C, height=H, width=W, hidden=hidden)

    out_p = pl.pallas_call(
        kernel,
        out_shape=jax.ShapeDtypeStruct((N, 2, C, H, W), f32),
        grid_spec=pltpu.PrefetchScalarGridSpec(
            num_scalar_prefetch=5,
            grid=(N,),
            in_specs=[
                batched,                                                  # current k-space
                batched,                                                  # masked k-space
                batched,                                                  # sensitivity map
                pl.BlockSpec((1, H, W), lambda n, *_: (n, 0, 0)),         # sampling mask
                pl.BlockSpec((6, H, H), lambda n, *_: (0, 0, 0)),         # DFT mats (height)
                pl.BlockSpec((6, W, W), lambda n, *_: (0, 0, 0)),         # DFT mats (width, transposed)
                pl.BlockSpec((2, W, W), lambda n, *_: (0, 0, 0)),         # conv column-shift mats
            ],
            out_specs=batched),
        compiler_params=pltpu.CompilerParams(
            dimension_semantics=("parallel",),
            vmem_limit_bytes=_pick_vmem_limit_bytes()),
        cost_estimate=cost,
    )(lr, w1f, b1f, w2f, b2f, cur_p, msk_p, sens_p, mask_p, dft_h, dft_w, shf)

    # (N, 2, C, H, W) -> (N, C, H, W, 2)
    return jnp.transpose(out_p, (0, 2, 3, 4, 1))


# ----------------------------------------------------------------------------
# Pure-JAX reference (same math, using jnp.fft + lax.conv) for validation.
# ----------------------------------------------------------------------------
def _reference(current_kspace, masked_kspace, sampling_mask, sensitivity_map,
               w1, b1, w2, b2, learning_rate):
    def to_c(x):
        return (x[..., 0] + 1j * x[..., 1]).astype(jnp.complex64)

    def ifft2c(x):
        x = jnp.fft.ifftshift(x, axes=(-2, -1))
        x = jnp.fft.ifftn(x, axes=(-2, -1), norm="ortho")
        return jnp.fft.fftshift(x, axes=(-2, -1))

    def fft2c(x):
        x = jnp.fft.ifftshift(x, axes=(-2, -1))
        x = jnp.fft.fftn(x, axes=(-2, -1), norm="ortho")
        return jnp.fft.fftshift(x, axes=(-2, -1))

    cur_c = to_c(current_kspace)
    sens_c = to_c(sensitivity_map)
    err = jnp.where(sampling_mask == 0, 0.0, current_kspace - masked_kspace)
    err_c = to_c(err)

    img = ifft2c(cur_c)                                      # (N,C,H,W)
    comb = jnp.sum(jnp.conj(sens_c) * img, axis=1)           # (N,H,W)
    reg_in = jnp.stack([comb.real, comb.imag], axis=1)       # (N,2,H,W)

    dn = ("NCHW", "OIHW", "NCHW")
    h = jax.lax.conv_general_dilated(reg_in, w1, (1, 1), "SAME",
                                     dimension_numbers=dn,
                                     precision=jax.lax.Precision.HIGHEST)
    h = jnp.maximum(h + b1[None, :, None, None], 0.0)
    reg_out = jax.lax.conv_general_dilated(h, w2, (1, 1), "SAME",
                                           dimension_numbers=dn,
                                           precision=jax.lax.Precision.HIGHEST)
    reg_out = reg_out + b2[None, :, None, None]

    reg_c = (reg_out[:, 0] + 1j * reg_out[:, 1]).astype(jnp.complex64)
    expand = sens_c * reg_c[:, None]                         # (N,C,H,W)
    reg_k = fft2c(expand)

    out_c = cur_c - learning_rate[0] * err_c + reg_k
    return jnp.stack([out_c.real, out_c.imag], axis=-1).astype(jnp.float32)


if __name__ == "__main__":
    N, C, H, W, HID = 2, 4, 16, 16, 8
    key = jax.random.PRNGKey(0)
    ks = jax.random.split(key, 8)

    current_kspace = jax.random.normal(ks[0], (N, C, H, W, 2), jnp.float32)
    masked_kspace = jax.random.normal(ks[1], (N, C, H, W, 2), jnp.float32)
    sensitivity_map = jax.random.normal(ks[2], (N, C, H, W, 2), jnp.float32) * 0.5
    sampling_mask = jax.random.bernoulli(ks[3], 0.5, (N, 1, H, W, 1)).astype(jnp.float32)

    # Deterministic synthetic regularizer_model params: Conv3x3(2->HID) -> ReLU -> Conv3x3(HID->2)
    w1 = jax.random.normal(ks[4], (HID, 2, 3, 3), jnp.float32) * 0.1
    b1 = jax.random.normal(ks[5], (HID,), jnp.float32) * 0.1
    w2 = jax.random.normal(ks[6], (2, HID, 3, 3), jnp.float32) * 0.1
    b2 = jax.random.normal(ks[7], (2,), jnp.float32) * 0.1
    learning_rate = jnp.array([1.0], jnp.float32)   # nn.Parameter(torch.tensor([1.0]))

    out = end_to_end_varnet_block(current_kspace, masked_kspace, sampling_mask,
                                  sensitivity_map, w1, b1, w2, b2, learning_rate)
    out = jax.block_until_ready(out)

    ref = _reference(current_kspace, masked_kspace, sampling_mask,
                     sensitivity_map, w1, b1, w2, b2, learning_rate)

    assert out.shape == (N, C, H, W, 2)
    max_err = float(jnp.max(jnp.abs(out - ref)))
    scale = float(jnp.max(jnp.abs(ref))) + 1e-6
    # Loose tolerance: DFT / conv-shift matmuls run on the MXU with bf16 operands
    # (f32 pre-adds + f32 accumulation; coil reduce and DC fully in f32).
    assert max_err <= 5e-2 * scale + 5e-2, f"mismatch: max_err={max_err}, scale={scale}"

    print("KERNEL_OK")
</pallas_src>

<mosaic_0001>
module attributes {stable_mosaic.version = 11 : i64} {
  func.func @_varnet_block_kernel(%arg0: i32, %arg1: memref<1xf32, #tpu.memory_space<smem>>, %arg2: memref<144xf32, #tpu.memory_space<smem>>, %arg3: memref<8xf32, #tpu.memory_space<smem>>, %arg4: memref<144xf32, #tpu.memory_space<smem>>, %arg5: memref<2xf32, #tpu.memory_space<smem>>, %arg6: memref<1x2x4x16x16xf32, #tpu.memory_space<vmem>>, %arg7: memref<1x2x4x16x16xf32, #tpu.memory_space<vmem>>, %arg8: memref<1x2x4x16x16xf32, #tpu.memory_space<vmem>>, %arg9: memref<1x16x16xf32, #tpu.memory_space<vmem>>, %arg10: memref<6x16x16xbf16, #tpu.memory_space<vmem>>, %arg11: memref<6x16x16xbf16, #tpu.memory_space<vmem>>, %arg12: memref<2x16x16xbf16, #tpu.memory_space<vmem>>, %arg13: memref<1x2x4x16x16xf32, #tpu.memory_space<vmem>>) attributes {dimension_semantics = [#tpu.dimension_semantics<parallel>], iteration_bounds = array<i64: 2>, scalar_prefetch = 5 : i64, scratch_operands = 0 : i64, tpu.core_type = #tpu.core_type<tc>, window_params = [{transform_indices = @transform_0, window_bounds = array<i64: 1, 2, 4, 16, 16>}, {transform_indices = @transform_1, window_bounds = array<i64: 1, 2, 4, 16, 16>}, {transform_indices = @transform_2, window_bounds = array<i64: 1, 2, 4, 16, 16>}, {transform_indices = @transform_3, window_bounds = array<i64: 1, 16, 16>}, {pipeline_mode = #tpu.pipeline_mode<synchronous>, transform_indices = @transform_4, window_bounds = array<i64: 6, 16, 16>}, {pipeline_mode = #tpu.pipeline_mode<synchronous>, transform_indices = @transform_5, window_bounds = array<i64: 6, 16, 16>}, {pipeline_mode = #tpu.pipeline_mode<synchronous>, transform_indices = @transform_6, window_bounds = array<i64: 2, 16, 16>}, {transform_indices = @transform_7, window_bounds = array<i64: 1, 2, 4, 16, 16>}]} {
    %c0 = arith.constant 0 : index
    %c0_0 = arith.constant 0 : index
    %c0_1 = arith.constant 0 : index
    %c0_2 = arith.constant 0 : index
    %c0_3 = arith.constant 0 : index
    %0 = vector.load %arg6[%c0, %c0_0, %c0_1, %c0_2, %c0_3] : memref<1x2x4x16x16xf32, #tpu.memory_space<vmem>>, vector<1x1x4x16x16xf32>
    %1 = vector.shape_cast %0 : vector<1x1x4x16x16xf32> to vector<4x16x16xf32>
    %2 = vector.shape_cast %1 : vector<4x16x16xf32> to vector<64x16xf32>
    %c0_4 = arith.constant 0 : index
    %c1 = arith.constant 1 : index
    %c0_5 = arith.constant 0 : index
    %c0_6 = arith.constant 0 : index
    %c0_7 = arith.constant 0 : index
    %3 = vector.load %arg6[%c0_4, %c1, %c0_5, %c0_6, %c0_7] : memref<1x2x4x16x16xf32, #tpu.memory_space<vmem>>, vector<1x1x4x16x16xf32>
    %4 = vector.shape_cast %3 : vector<1x1x4x16x16xf32> to vector<4x16x16xf32>
    %5 = vector.shape_cast %4 : vector<4x16x16xf32> to vector<64x16xf32>
    %6 = arith.truncf %2 : vector<64x16xf32> to vector<64x16xbf16>
    %c0_8 = arith.constant 0 : index
    %c0_9 = arith.constant 0 : index
    %c0_10 = arith.constant 0 : index
    %7 = vector.load %arg11[%c0_8, %c0_9, %c0_10] : memref<6x16x16xbf16, #tpu.memory_space<vmem>>, vector<1x16x16xbf16>
    %8 = vector.shape_cast %7 : vector<1x16x16xbf16> to vector<16x16xbf16>
    %cst = arith.constant dense<0.000000e+00> : vector<64x16xf32>
    %9 = tpu.matmul %6, %8, %cst {dimension_numbers = #tpu.dot_dimension_numbers<[1], [0], [0], [1], [0, 0, 1, 1], [], []>} : vector<64x16xbf16>, vector<16x16xbf16>, vector<64x16xf32> -> vector<64x16xf32>
    %10 = arith.truncf %5 : vector<64x16xf32> to vector<64x16xbf16>
    %c1_11 = arith.constant 1 : index
    %c0_12 = arith.constant 0 : index
    %c0_13 = arith.constant 0 : index
    %11 = vector.load %arg11[%c1_11, %c0_12, %c0_13] : memref<6x16x16xbf16, #tpu.memory_space<vmem>>, vector<1x16x16xbf16>
    %12 = vector.shape_cast %11 : vector<1x16x16xbf16> to vector<16x16xbf16>
    %cst_14 = arith.constant dense<0.000000e+00> : vector<64x16xf32>
    %13 = tpu.matmul %10, %12, %cst_14 {dimension_numbers = #tpu.dot_dimension_numbers<[1], [0], [0], [1], [0, 0, 1, 1], [], []>} : vector<64x16xbf16>, vector<16x16xbf16>, vector<64x16xf32> -> vector<64x16xf32>
    %14 = arith.addf %2, %5 : vector<64x16xf32>
    %15 = arith.truncf %14 : vector<64x16xf32> to vector<64x16xbf16>
    %c2 = arith.constant 2 : index
    %c0_15 = arith.constant 0 : index
    %c0_16 = arith.constant 0 : index
    %16 = vector.load %arg11[%c2, %c0_15, %c0_16] : memref<6x16x16xbf16, #tpu.memory_space<vmem>>, vector<1x16x16xbf16>
    %17 = vector.shape_cast %16 : vector<1x16x16xbf16> to vector<16x16xbf16>
    %cst_17 = arith.constant dense<0.000000e+00> : vector<64x16xf32>
    %18 = tpu.matmul %15, %17, %cst_17 {dimension_numbers = #tpu.dot_dimension_numbers<[1], [0], [0], [1], [0, 0, 1, 1], [], []>} : vector<64x16xbf16>, vector<16x16xbf16>, vector<64x16xf32> -> vector<64x16xf32>
    %19 = arith.subf %9, %13 : vector<64x16xf32>
    %20 = arith.subf %18, %9 : vector<64x16xf32>
    %21 = arith.subf %20, %13 : vector<64x16xf32>
    %22 = vector.shape_cast %19 : vector<64x16xf32> to vector<4x16x16xf32>
    %23 = vector.shape_cast %21 : vector<64x16xf32> to vector<4x16x16xf32>
    %cst_18 = arith.constant 0.000000e+00 : f32
    %24 = vector.broadcast %cst_18 : f32 to vector<16x16xf32>
    %cst_19 = arith.constant 0.000000e+00 : f32
    %25 = vector.broadcast %cst_19 : f32 to vector<16x16xf32>
    %26 = vector.extract_strided_slice %22 {offsets = [0, 0, 0], sizes = [1, 16, 16], strides = [1, 1, 1]} : vector<4x16x16xf32> to vector<1x16x16xf32>
    %27 = vector.shape_cast %26 : vector<1x16x16xf32> to vector<16x16xf32>
    %28 = vector.extract_strided_slice %23 {offsets = [0, 0, 0], sizes = [1, 16, 16], strides = [1, 1, 1]} : vector<4x16x16xf32> to vector<1x16x16xf32>
    %29 = vector.shape_cast %28 : vector<1x16x16xf32> to vector<16x16xf32>
    %c0_20 = arith.constant 0 : index
    %c0_21 = arith.constant 0 : index
    %c0_22 = arith.constant 0 : index
    %30 = vector.load %arg10[%c0_20, %c0_21, %c0_22] : memref<6x16x16xbf16, #tpu.memory_space<vmem>>, vector<1x16x16xbf16>
    %31 = vector.shape_cast %30 : vector<1x16x16xbf16> to vector<16x16xbf16>
    %32 = arith.truncf %27 : vector<16x16xf32> to vector<16x16xbf16>
    %cst_23 = arith.constant dense<0.000000e+00> : vector<16x16xf32>
    %33 = tpu.matmul %31, %32, %cst_23 {dimension_numbers = #tpu.dot_dimension_numbers<[1], [0], [0], [1], [0, 0, 1, 1], [], []>} : vector<16x16xbf16>, vector<16x16xbf16>, vector<16x16xf32> -> vector<16x16xf32>
    %c1_24 = arith.constant 1 : index
    %c0_25 = arith.constant 0 : index
    %c0_26 = arith.constant 0 : index
    %34 = vector.load %arg10[%c1_24, %c0_25, %c0_26] : memref<6x16x16xbf16, #tpu.memory_space<vmem>>, vector<1x16x16xbf16>
    %35 = vector.shape_cast %34 : vector<1x16x16xbf16> to vector<16x16xbf16>
    %36 = arith.truncf %29 : vector<16x16xf32> to vector<16x16xbf16>
    %cst_27 = arith.constant dense<0.000000e+00> : vector<16x16xf32>
    %37 = tpu.matmul %35, %36, %cst_27 {dimension_numbers = #tpu.dot_dimension_numbers<[1], [0], [0], [1], [0, 0, 1, 1], [], []>} : vector<16x16xbf16>, vector<16x16xbf16>, vector<16x16xf32> -> vector<16x16xf32>
    %c2_28 = arith.constant 2 : index
    %c0_29 = arith.constant 0 : index
    %c0_30 = arith.constant 0 : index
    %38 = vector.load %arg10[%c2_28, %c0_29, %c0_30] : memref<6x16x16xbf16, #tpu.memory_space<vmem>>, vector<1x16x16xbf16>
    %39 = vector.shape_cast %38 : vector<1x16x16xbf16> to vector<16x16xbf16>
    %40 = arith.addf %27, %29 : vector<16x16xf32>
    %41 = arith.truncf %40 : vector<16x16xf32> to vector<16x16xbf16>
    %cst_31 = arith.constant dense<0.000000e+00> : vector<16x16xf32>
    %42 = tpu.matmul %39, %41, %cst_31 {dimension_numbers = #tpu.dot_dimension_numbers<[1], [0], [0], [1], [0, 0, 1, 1], [], []>} : vector<16x16xbf16>, vector<16x16xbf16>, vector<16x16xf32> -> vector<16x16xf32>
    %43 = arith.subf %33, %37 : vector<16x16xf32>
    %44 = arith.subf %42, %33 : vector<16x16xf32>
    %45 = arith.subf %44, %37 : vector<16x16xf32>
    %c0_32 = arith.constant 0 : index
    %c0_33 = arith.constant 0 : index
    %c0_34 = arith.constant 0 : index
    %c0_35 = arith.constant 0 : index
    %c0_36 = arith.constant 0 : index
    %46 = vector.load %arg8[%c0_32, %c0_33, %c0_34, %c0_35, %c0_36] : memref<1x2x4x16x16xf32, #tpu.memory_space<vmem>>, vector<1x1x1x16x16xf32>
    %47 = vector.shape_cast %46 : vector<1x1x1x16x16xf32> to vector<16x16xf32>
    %c0_37 = arith.constant 0 : index
    %c1_38 = arith.constant 1 : index
    %c0_39 = arith.constant 0 : index
    %c0_40 = arith.constant 0 : index
    %c0_41 = arith.constant 0 : index
    %48 = vector.load %arg8[%c0_37, %c1_38, %c0_39, %c0_40, %c0_41] : memref<1x2x4x16x16xf32, #tpu.memory_space<vmem>>, vector<1x1x1x16x16xf32>
    %49 = vector.shape_cast %48 : vector<1x1x1x16x16xf32> to vector<16x16xf32>
    %50 = arith.mulf %47, %43 : vector<16x16xf32>
    %51 = arith.addf %24, %50 : vector<16x16xf32>
    %52 = arith.mulf %49, %45 : vector<16x16xf32>
    %53 = arith.addf %51, %52 : vector<16x16xf32>
    %54 = arith.mulf %47, %45 : vector<16x16xf32>
    %55 = arith.addf %25, %54 : vector<16x16xf32>
    %56 = arith.mulf %49, %43 : vector<16x16xf32>
    %57 = arith.subf %55, %56 : vector<16x16xf32>
    %58 = vector.extract_strided_slice %22 {offsets = [1, 0, 0], sizes = [1, 16, 16], strides = [1, 1, 1]} : vector<4x16x16xf32> to vector<1x16x16xf32>
    %59 = vector.shape_cast %58 : vector<1x16x16xf32> to vector<16x16xf32>
    %60 = vector.extract_strided_slice %23 {offsets = [1, 0, 0], sizes = [1, 16, 16], strides = [1, 1, 1]} : vector<4x16x16xf32> to vector<1x16x16xf32>
    %61 = vector.shape_cast %60 : vector<1x16x16xf32> to vector<16x16xf32>
    %c0_42 = arith.constant 0 : index
    %c0_43 = arith.constant 0 : index
    %c0_44 = arith.constant 0 : index
    %62 = vector.load %arg10[%c0_42, %c0_43, %c0_44] : memref<6x16x16xbf16, #tpu.memory_space<vmem>>, vector<1x16x16xbf16>
    %63 = vector.shape_cast %62 : vector<1x16x16xbf16> to vector<16x16xbf16>
    %64 = arith.truncf %59 : vector<16x16xf32> to vector<16x16xbf16>
    %cst_45 = arith.constant dense<0.000000e+00> : vector<16x16xf32>
    %65 = tpu.matmul %63, %64, %cst_45 {dimension_numbers = #tpu.dot_dimension_numbers<[1], [0], [0], [1], [0, 0, 1, 1], [], []>} : vector<16x16xbf16>, vector<16x16xbf16>, vector<16x16xf32> -> vector<16x16xf32>
    %c1_46 = arith.constant 1 : index
    %c0_47 = arith.constant 0 : index
    %c0_48 = arith.constant 0 : index
    %66 = vector.load %arg10[%c1_46, %c0_47, %c0_48] : memref<6x16x16xbf16, #tpu.memory_space<vmem>>, vector<1x16x16xbf16>
    %67 = vector.shape_cast %66 : vector<1x16x16xbf16> to vector<16x16xbf16>
    %68 = arith.truncf %61 : vector<16x16xf32> to vector<16x16xbf16>
    %cst_49 = arith.constant dense<0.000000e+00> : vector<16x16xf32>
    %69 = tpu.matmul %67, %68, %cst_49 {dimension_numbers = #tpu.dot_dimension_numbers<[1], [0], [0], [1], [0, 0, 1, 1], [], []>} : vector<16x16xbf16>, vector<16x16xbf16>, vector<16x16xf32> -> vector<16x16xf32>
    %c2_50 = arith.constant 2 : index
    %c0_51 = arith.constant 0 : index
    %c0_52 = arith.constant 0 : index
    %70 = vector.load %arg10[%c2_50, %c0_51, %c0_52] : memref<6x16x16xbf16, #tpu.memory_space<vmem>>, vector<1x16x16xbf16>
    %71 = vector.shape_cast %70 : vector<1x16x16xbf16> to vector<16x16xbf16>
    %72 = arith.addf %59, %61 : vector<16x16xf32>
    %73 = arith.truncf %72 : vector<16x16xf32> to vector<16x16xbf16>
    %cst_53 = arith.constant dense<0.000000e+00> : vector<16x16xf32>
    %74 = tpu.matmul %71, %73, %cst_53 {dimension_numbers = #tpu.dot_dimension_numbers<[1], [0], [0], [1], [0, 0, 1, 1], [], []>} : vector<16x16xbf16>, vector<16x16xbf16>, vector<16x16xf32> -> vector<16x16xf32>
    %75 = arith.subf %65, %69 : vector<16x16xf32>
    %76 = arith.subf %74, %65 : vector<16x16xf32>
    %77 = arith.subf %76, %69 : vector<16x16xf32>
    %c0_54 = arith.constant 0 : index
    %c0_55 = arith.constant 0 : index
    %c1_56 = arith.constant 1 : index
    %c0_57 = arith.constant 0 : index
    %c0_58 = arith.constant 0 : index
    %78 = vector.load %arg8[%c0_54, %c0_55, %c1_56, %c0_57, %c0_58] : memref<1x2x4x16x16xf32, #tpu.memory_space<vmem>>, vector<1x1x1x16x16xf32>
    %79 = vector.shape_cast %78 : vector<1x1x1x16x16xf32> to vector<16x16xf32>
    %c0_59 = arith.constant 0 : index
    %c1_60 = arith.constant 1 : index
    %c1_61 = arith.constant 1 : index
    %c0_62 = arith.constant 0 : index
    %c0_63 = arith.constant 0 : index
    %80 = vector.load %arg8[%c0_59, %c1_60, %c1_61, %c0_62, %c0_63] : memref<1x2x4x16x16xf32, #tpu.memory_space<vmem>>, vector<1x1x1x16x16xf32>
    %81 = vector.shape_cast %80 : vector<1x1x1x16x16xf32> to vector<16x16xf32>
    %82 = arith.mulf %79, %75 : vector<16x16xf32>
    %83 = arith.addf %53, %82 : vector<16x16xf32>
    %84 = arith.mulf %81, %77 : vector<16x16xf32>
    %85 = arith.addf %83, %84 : vector<16x16xf32>
    %86 = arith.mulf %79, %77 : vector<16x16xf32>
    %87 = arith.addf %57, %86 : vector<16x16xf32>
    %88 = arith.mulf %81, %75 : vector<16x16xf32>
    %89 = arith.subf %87, %88 : vector<16x16xf32>
    %90 = vector.extract_strided_slice %22 {offsets = [2, 0, 0], sizes = [1, 16, 16], strides = [1, 1, 1]} : vector<4x16x16xf32> to vector<1x16x16xf32>
    %91 = vector.shape_cast %90 : vector<1x16x16xf32> to vector<16x16xf32>
    %92 = vector.extract_strided_slice %23 {offsets = [2, 0, 0], sizes = [1, 16, 16], strides = [1, 1, 1]} : vector<4x16x16xf32> to vector<1x16x16xf32>
    %93 = vector.shape_cast %92 : vector<1x16x16xf32> to vector<16x16xf32>
    %c0_64 = arith.constant 0 : index
    %c0_65 = arith.constant 0 : index
    %c0_66 = arith.constant 0 : index
    %94 = vector.load %arg10[%c0_64, %c0_65, %c0_66] : memref<6x16x16xbf16, #tpu.memory_space<vmem>>, vector<1x16x16xbf16>
    %95 = vector.shape_cast %94 : vector<1x16x16xbf16> to vector<16x16xbf16>
    %96 = arith.truncf %91 : vector<16x16xf32> to vector<16x16xbf16>
    %cst_67 = arith.constant dense<0.000000e+00> : vector<16x16xf32>
    %97 = tpu.matmul %95, %96, %cst_67 {dimension_numbers = #tpu.dot_dimension_numbers<[1], [0], [0], [1], [0, 0, 1, 1], [], []>} : vector<16x16xbf16>, vector<16x16xbf16>, vector<16x16xf32> -> vector<16x16xf32>
    %c1_68 = arith.constant 1 : index
    %c0_69 = arith.constant 0 : index
    %c0_70 = arith.constant 0 : index
    %98 = vector.load %arg10[%c1_68, %c0_69, %c0_70] : memref<6x16x16xbf16, #tpu.memory_space<vmem>>, vector<1x16x16xbf16>
    %99 = vector.shape_cast %98 : vector<1x16x16xbf16> to vector<16x16xbf16>
    %100 = arith.truncf %93 : vector<16x16xf32> to vector<16x16xbf16>
    %cst_71 = arith.constant dense<0.000000e+00> : vector<16x16xf32>
    %101 = tpu.matmul %99, %100, %cst_71 {dimension_numbers = #tpu.dot_dimension_numbers<[1], [0], [0], [1], [0, 0, 1, 1], [], []>} : vector<16x16xbf16>, vector<16x16xbf16>, vector<16x16xf32> -> vector<16x16xf32>
    %c2_72 = arith.constant 2 : index
    %c0_73 = arith.constant 0 : index
    %c0_74 = arith.constant 0 : index
    %102 = vector.load %arg10[%c2_72, %c0_73, %c0_74] : memref<6x16x16xbf16, #tpu.memory_space<vmem>>, vector<1x16x16xbf16>
    %103 = vector.shape_cast %102 : vector<1x16x16xbf16> to vector<16x16xbf16>
    %104 = arith.addf %91, %93 : vector<16x16xf32>
    %105 = arith.truncf %104 : vector<16x16xf32> to vector<16x16xbf16>
    %cst_75 = arith.constant dense<0.000000e+00> : vector<16x16xf32>
    %106 = tpu.matmul %103, %105, %cst_75 {dimension_numbers = #tpu.dot_dimension_numbers<[1], [0], [0], [1], [0, 0, 1, 1], [], []>} : vector<16x16xbf16>, vector<16x16xbf16>, vector<16x16xf32> -> vector<16x16xf32>
    %107 = arith.subf %97, %101 : vector<16x16xf32>
    %108 = arith.subf %106, %97 : vector<16x16xf32>
    %109 = arith.subf %108, %101 : vector<16x16xf32>
    %c0_76 = arith.constant 0 : index
    %c0_77 = arith.constant 0 : index
    %c2_78 = arith.constant 2 : index
    %c0_79 = arith.constant 0 : index
    %c0_80 = arith.constant 0 : index
    %110 = vector.load %arg8[%c0_76, %c0_77, %c2_78, %c0_79, %c0_80] : memref<1x2x4x16x16xf32, #tpu.memory_space<vmem>>, vector<1x1x1x16x16xf32>
    %111 = vector.shape_cast %110 : vector<1x1x1x16x16xf32> to vector<16x16xf32>
    %c0_81 = arith.constant 0 : index
    %c1_82 = arith.constant 1 : index
    %c2_83 = arith.constant 2 : index
    %c0_84 = arith.constant 0 : index
    %c0_85 = arith.constant 0 : index
    %112 = vector.load %arg8[%c0_81, %c1_82, %c2_83, %c0_84, %c0_85] : memref<1x2x4x16x16xf32, #tpu.memory_space<vmem>>, vector<1x1x1x16x16xf32>
    %113 = vector.shape_cast %112 : vector<1x1x1x16x16xf32> to vector<16x16xf32>
    %114 = arith.mulf %111, %107 : vector<16x16xf32>
    %115 = arith.addf %85, %114 : vector<16x16xf32>
    %116 = arith.mulf %113, %109 : vector<16x16xf32>
    %117 = arith.addf %115, %116 : vector<16x16xf32>
    %118 = arith.mulf %111, %109 : vector<16x16xf32>
    %119 = arith.addf %89, %118 : vector<16x16xf32>
    %120 = arith.mulf %113, %107 : vector<16x16xf32>
    %121 = arith.subf %119, %120 : vector<16x16xf32>
    %122 = vector.extract_strided_slice %22 {offsets = [3, 0, 0], sizes = [1, 16, 16], strides = [1, 1, 1]} : vector<4x16x16xf32> to vector<1x16x16xf32>
    %123 = vector.shape_cast %122 : vector<1x16x16xf32> to vector<16x16xf32>
    %124 = vector.extract_strided_slice %23 {offsets = [3, 0, 0], sizes = [1, 16, 16], strides = [1, 1, 1]} : vector<4x16x16xf32> to vector<1x16x16xf32>
    %125 = vector.shape_cast %124 : vector<1x16x16xf32> to vector<16x16xf32>
    %c0_86 = arith.constant 0 : index
    %c0_87 = arith.constant 0 : index
    %c0_88 = arith.constant 0 : index
    %126 = vector.load %arg10[%c0_86, %c0_87, %c0_88] : memref<6x16x16xbf16, #tpu.memory_space<vmem>>, vector<1x16x16xbf16>
    %127 = vector.shape_cast %126 : vector<1x16x16xbf16> to vector<16x16xbf16>
    %128 = arith.truncf %123 : vector<16x16xf32> to vector<16x16xbf16>
    %cst_89 = arith.constant dense<0.000000e+00> : vector<16x16xf32>
    %129 = tpu.matmul %127, %128, %cst_89 {dimension_numbers = #tpu.dot_dimension_numbers<[1], [0], [0], [1], [0, 0, 1, 1], [], []>} : vector<16x16xbf16>, vector<16x16xbf16>, vector<16x16xf32> -> vector<16x16xf32>
    %c1_90 = arith.constant 1 : index
    %c0_91 = arith.constant 0 : index
    %c0_92 = arith.constant 0 : index
    %130 = vector.load %arg10[%c1_90, %c0_91, %c0_92] : memref<6x16x16xbf16, #tpu.memory_space<vmem>>, vector<1x16x16xbf16>
    %131 = vector.shape_cast %130 : vector<1x16x16xbf16> to vector<16x16xbf16>
    %132 = arith.truncf %125 : vector<16x16xf32> to vector<16x16xbf16>
    %cst_93 = arith.constant dense<0.000000e+00> : vector<16x16xf32>
    %133 = tpu.matmul %131, %132, %cst_93 {dimension_numbers = #tpu.dot_dimension_numbers<[1], [0], [0], [1], [0, 0, 1, 1], [], []>} : vector<16x16xbf16>, vector<16x16xbf16>, vector<16x16xf32> -> vector<16x16xf32>
    %c2_94 = arith.constant 2 : index
    %c0_95 = arith.constant 0 : index
    %c0_96 = arith.constant 0 : index
    %134 = vector.load %arg10[%c2_94, %c0_95, %c0_96] : memref<6x16x16xbf16, #tpu.memory_space<vmem>>, vector<1x16x16xbf16>
    %135 = vector.shape_cast %134 : vector<1x16x16xbf16> to vector<16x16xbf16>
    %136 = arith.addf %123, %125 : vector<16x16xf32>
    %137 = arith.truncf %136 : vector<16x16xf32> to vector<16x16xbf16>
    %cst_97 = arith.constant dense<0.000000e+00> : vector<16x16xf32>
    %138 = tpu.matmul %135, %137, %cst_97 {dimension_numbers = #tpu.dot_dimension_numbers<[1], [0], [0], [1], [0, 0, 1, 1], [], []>} : vector<16x16xbf16>, vector<16x16xbf16>, vector<16x16xf32> -> vector<16x16xf32>
    %139 = arith.subf %129, %133 : vector<16x16xf32>
    %140 = arith.subf %138, %129 : vector<16x16xf32>
    %141 = arith.subf %140, %133 : vector<16x16xf32>
    %c0_98 = arith.constant 0 : index
    %c0_99 = arith.constant 0 : index
    %c3 = arith.constant 3 : index
    %c0_100 = arith.constant 0 : index
    %c0_101 = arith.constant 0 : index
    %142 = vector.load %arg8[%c0_98, %c0_99, %c3, %c0_100, %c0_101] : memref<1x2x4x16x16xf32, #tpu.memory_space<vmem>>, vector<1x1x1x16x16xf32>
    %143 = vector.shape_cast %142 : vector<1x1x1x16x16xf32> to vector<16x16xf32>
    %c0_102 = arith.constant 0 : index
    %c1_103 = arith.constant 1 : index
    %c3_104 = arith.constant 3 : index
    %c0_105 = arith.constant 0 : index
    %c0_106 = arith.constant 0 : index
    %144 = vector.load %arg8[%c0_102, %c1_103, %c3_104, %c0_105, %c0_106] : memref<1x2x4x16x16xf32, #tpu.memory_space<vmem>>, vector<1x1x1x16x16xf32>
    %145 = vector.shape_cast %144 : vector<1x1x1x16x16xf32> to vector<16x16xf32>
    %146 = arith.mulf %143, %139 : vector<16x16xf32>
    %147 = arith.addf %117, %146 : vector<16x16xf32>
    %148 = arith.mulf %145, %141 : vector<16x16xf32>
    %149 = arith.addf %147, %148 : vector<16x16xf32>
    %150 = arith.mulf %143, %141 : vector<16x16xf32>
    %151 = arith.addf %121, %150 : vector<16x16xf32>
    %152 = arith.mulf %145, %139 : vector<16x16xf32>
    %153 = arith.subf %151, %152 : vector<16x16xf32>
    %cst_107 = arith.constant 0.000000e+00 : f32
    %154 = vector.broadcast %cst_107 : f32 to vector<16x16xf32>
    %cst_108 = arith.constant 0.000000e+00 : f32
    %155 = vector.broadcast %cst_108 : f32 to vector<16x16xf32>
    %cst_109 = arith.constant 0.000000e+00 : f32
    %156 = vector.broadcast %cst_109 : f32 to vector<16x16xf32>
    %cst_110 = arith.constant 0.000000e+00 : f32
    %157 = vector.broadcast %cst_110 : f32 to vector<16x16xf32>
    %cst_111 = arith.constant 0.000000e+00 : f32
    %158 = vector.broadcast %cst_111 : f32 to vector<16x16xf32>
    %cst_112 = arith.constant 0.000000e+00 : f32
    %159 = vector.broadcast %cst_112 : f32 to vector<16x16xf32>
    %cst_113 = arith.constant 0.000000e+00 : f32
    %160 = vector.broadcast %cst_113 : f32 to vector<16x16xf32>
    %cst_114 = arith.constant 0.000000e+00 : f32
    %161 = vector.broadcast %cst_114 : f32 to vector<16x16xf32>
    %162 = arith.truncf %149 : vector<16x16xf32> to vector<16x16xbf16>
    %c0_115 = arith.constant 0 : index
    %c0_116 = arith.constant 0 : index
    %c0_117 = arith.constant 0 : index
    %163 = vector.load %arg12[%c0_115, %c0_116, %c0_117] : memref<2x16x16xbf16, #tpu.memory_space<vmem>>, vector<1x16x16xbf16>
    %164 = vector.shape_cast %163 : vector<1x16x16xbf16> to vector<16x16xbf16>
    %cst_118 = arith.constant dense<0.000000e+00> : vector<16x16xf32>
    %165 = tpu.matmul %162, %164, %cst_118 {dimension_numbers = #tpu.dot_dimension_numbers<[1], [0], [0], [1], [0, 0, 1, 1], [], []>} : vector<16x16xbf16>, vector<16x16xbf16>, vector<16x16xf32> -> vector<16x16xf32>
    %cst_119 = arith.constant 0.000000e+00 : f32
    %166 = vector.broadcast %cst_119 : f32 to vector<1x16xf32>
    %167 = vector.extract_strided_slice %165 {offsets = [0, 0], sizes = [15, 16], strides = [1, 1]} : vector<16x16xf32> to vector<15x16xf32>
    %168 = tpu.concatenate %166, %167 in 0 : vector<1x16xf32>, vector<15x16xf32> -> vector<16x16xf32>
    %c0_120 = arith.constant 0 : index
    %169 = memref.load %arg2[%c0_120] : memref<144xf32, #tpu.memory_space<smem>>
    %170 = vector.broadcast %169 : f32 to vector<16x16xf32>
    %171 = arith.mulf %170, %168 : vector<16x16xf32>
    %172 = arith.addf %154, %171 : vector<16x16xf32>
    %c18 = arith.constant 18 : index
    %173 = memref.load %arg2[%c18] : memref<144xf32, #tpu.memory_space<smem>>
    %174 = vector.broadcast %173 : f32 to vector<16x16xf32>
    %175 = arith.mulf %174, %168 : vector<16x16xf32>
    %176 = arith.addf %155, %175 : vector<16x16xf32>
    %c36 = arith.constant 36 : index
    %177 = memref.load %arg2[%c36] : memref<144xf32, #tpu.memory_space<smem>>
    %178 = vector.broadcast %177 : f32 to vector<16x16xf32>
    %179 = arith.mulf %178, %168 : vector<16x16xf32>
    %180 = arith.addf %156, %179 : vector<16x16xf32>
    %c54 = arith.constant 54 : index
    %181 = memref.load %arg2[%c54] : memref<144xf32, #tpu.memory_space<smem>>
    %182 = vector.broadcast %181 : f32 to vector<16x16xf32>
    %183 = arith.mulf %182, %168 : vector<16x16xf32>
    %184 = arith.addf %157, %183 : vector<16x16xf32>
    %c72 = arith.constant 72 : index
    %185 = memref.load %arg2[%c72] : memref<144xf32, #tpu.memory_space<smem>>
    %186 = vector.broadcast %185 : f32 to vector<16x16xf32>
    %187 = arith.mulf %186, %168 : vector<16x16xf32>
    %188 = arith.addf %158, %187 : vector<16x16xf32>
    %c90 = arith.constant 90 : index
    %189 = memref.load %arg2[%c90] : memref<144xf32, #tpu.memory_space<smem>>
    %190 = vector.broadcast %189 : f32 to vector<16x16xf32>
    %191 = arith.mulf %190, %168 : vector<16x16xf32>
    %192 = arith.addf %159, %191 : vector<16x16xf32>
    %c108 = arith.constant 108 : index
    %193 = memref.load %arg2[%c108] : memref<144xf32, #tpu.memory_space<smem>>
    %194 = vector.broadcast %193 : f32 to vector<16x16xf32>
    %195 = arith.mulf %194, %168 : vector<16x16xf32>
    %196 = arith.addf %160, %195 : vector<16x16xf32>
    %c126 = arith.constant 126 : index
    %197 = memref.load %arg2[%c126] : memref<144xf32, #tpu.memory_space<smem>>
    %198 = vector.broadcast %197 : f32 to vector<16x16xf32>
    %199 = arith.mulf %198, %168 : vector<16x16xf32>
    %200 = arith.addf %161, %199 : vector<16x16xf32>
    %c3_121 = arith.constant 3 : index
    %201 = memref.load %arg2[%c3_121] : memref<144xf32, #tpu.memory_space<smem>>
    %202 = vector.broadcast %201 : f32 to vector<16x16xf32>
    %203 = arith.mulf %202, %165 : vector<16x16xf32>
    %204 = arith.addf %172, %203 : vector<16x16xf32>
    %c21 = arith.constant 21 : index
    %205 = memref.load %arg2[%c21] : memref<144xf32, #tpu.memory_space<smem>>
    %206 = vector.broadcast %205 : f32 to vector<16x16xf32>
    %207 = arith.mulf %206, %165 : vector<16x16xf32>
    %208 = arith.addf %176, %207 : vector<16x16xf32>
    %c39 = arith.constant 39 : index
    %209 = memref.load %arg2[%c39] : memref<144xf32, #tpu.memory_space<smem>>
    %210 = vector.broadcast %209 : f32 to vector<16x16xf32>
    %211 = arith.mulf %210, %165 : vector<16x16xf32>
    %212 = arith.addf %180, %211 : vector<16x16xf32>
    %c57 = arith.constant 57 : index
    %213 = memref.load %arg2[%c57] : memref<144xf32, #tpu.memory_space<smem>>
    %214 = vector.broadcast %213 : f32 to vector<16x16xf32>
    %215 = arith.mulf %214, %165 : vector<16x16xf32>
    %216 = arith.addf %184, %215 : vector<16x16xf32>
    %c75 = arith.constant 75 : index
    %217 = memref.load %arg2[%c75] : memref<144xf32, #tpu.memory_space<smem>>
    %218 = vector.broadcast %217 : f32 to vector<16x16xf32>
    %219 = arith.mulf %218, %165 : vector<16x16xf32>
    %220 = arith.addf %188, %219 : vector<16x16xf32>
    %c93 = arith.constant 93 : index
    %221 = memref.load %arg2[%c93] : memref<144xf32, #tpu.memory_space<smem>>
    %222 = vector.broadcast %221 : f32 to vector<16x16xf32>
    %223 = arith.mulf %222, %165 : vector<16x16xf32>
    %224 = arith.addf %192, %223 : vector<16x16xf32>
    %c111 = arith.constant 111 : index
    %225 = memref.load %arg2[%c111] : memref<144xf32, #tpu.memory_space<smem>>
    %226 = vector.broadcast %225 : f32 to vector<16x16xf32>
    %227 = arith.mulf %226, %165 : vector<16x16xf32>
    %228 = arith.addf %196, %227 : vector<16x16xf32>
    %c129 = arith.constant 129 : index
    %229 = memref.load %arg2[%c129] : memref<144xf32, #tpu.memory_space<smem>>
    %230 = vector.broadcast %229 : f32 to vector<16x16xf32>
    %231 = arith.mulf %230, %165 : vector<16x16xf32>
    %232 = arith.addf %200, %231 : vector<16x16xf32>
    %cst_122 = arith.constant 0.000000e+00 : f32
    %233 = vector.broadcast %cst_122 : f32 to vector<1x16xf32>
    %234 = vector.extract_strided_slice %165 {offsets = [1, 0], sizes = [15, 16], strides = [1, 1]} : vector<16x16xf32> to vector<15x16xf32>
    %235 = tpu.concatenate %234, %233 in 0 : vector<15x16xf32>, vector<1x16xf32> -> vector<16x16xf32>
    %c6 = arith.constant 6 : index
    %236 = memref.load %arg2[%c6] : memref<144xf32, #tpu.memory_space<smem>>
    %237 = vector.broadcast %236 : f32 to vector<16x16xf32>
    %238 = arith.mulf %237, %235 : vector<16x16xf32>
    %239 = arith.addf %204, %238 : vector<16x16xf32>
    %c24 = arith.constant 24 : index
    %240 = memref.load %arg2[%c24] : memref<144xf32, #tpu.memory_space<smem>>
    %241 = vector.broadcast %240 : f32 to vector<16x16xf32>
    %242 = arith.mulf %241, %235 : vector<16x16xf32>
    %243 = arith.addf %208, %242 : vector<16x16xf32>
    %c42 = arith.constant 42 : index
    %244 = memref.load %arg2[%c42] : memref<144xf32, #tpu.memory_space<smem>>
    %245 = vector.broadcast %244 : f32 to vector<16x16xf32>
    %246 = arith.mulf %245, %235 : vector<16x16xf32>
    %247 = arith.addf %212, %246 : vector<16x16xf32>
    %c60 = arith.constant 60 : index
    %248 = memref.load %arg2[%c60] : memref<144xf32, #tpu.memory_space<smem>>
    %249 = vector.broadcast %248 : f32 to vector<16x16xf32>
    %250 = arith.mulf %249, %235 : vector<16x16xf32>
    %251 = arith.addf %216, %250 : vector<16x16xf32>
    %c78 = arith.constant 78 : index
    %252 = memref.load %arg2[%c78] : memref<144xf32, #tpu.memory_space<smem>>
    %253 = vector.broadcast %252 : f32 to vector<16x16xf32>
    %254 = arith.mulf %253, %235 : vector<16x16xf32>
    %255 = arith.addf %220, %254 : vector<16x16xf32>
    %c96 = arith.constant 96 : index
    %256 = memref.load %arg2[%c96] : memref<144xf32, #tpu.memory_space<smem>>
    %257 = vector.broadcast %256 : f32 to vector<16x16xf32>
    %258 = arith.mulf %257, %235 : vector<16x16xf32>
    %259 = arith.addf %224, %258 : vector<16x16xf32>
    %c114 = arith.constant 114 : index
    %260 = memref.load %arg2[%c114] : memref<144xf32, #tpu.memory_space<smem>>
    %261 = vector.broadcast %260 : f32 to vector<16x16xf32>
    %262 = arith.mulf %261, %235 : vector<16x16xf32>
    %263 = arith.addf %228, %262 : vector<16x16xf32>
    %c132 = arith.constant 132 : index
    %264 = memref.load %arg2[%c132] : memref<144xf32, #tpu.memory_space<smem>>
    %265 = vector.broadcast %264 : f32 to vector<16x16xf32>
    %266 = arith.mulf %265, %235 : vector<16x16xf32>
    %267 = arith.addf %232, %266 : vector<16x16xf32>
    %cst_123 = arith.constant 0.000000e+00 : f32
    %268 = vector.broadcast %cst_123 : f32 to vector<1x16xf32>
    %269 = vector.extract_strided_slice %149 {offsets = [0, 0], sizes = [15, 16], strides = [1, 1]} : vector<16x16xf32> to vector<15x16xf32>
    %270 = tpu.concatenate %268, %269 in 0 : vector<1x16xf32>, vector<15x16xf32> -> vector<16x16xf32>
    %c1_124 = arith.constant 1 : index
    %271 = memref.load %arg2[%c1_124] : memref<144xf32, #tpu.memory_space<smem>>
    %272 = vector.broadcast %271 : f32 to vector<16x16xf32>
    %273 = arith.mulf %272, %270 : vector<16x16xf32>
    %274 = arith.addf %239, %273 : vector<16x16xf32>
    %c19 = arith.constant 19 : index
    %275 = memref.load %arg2[%c19] : memref<144xf32, #tpu.memory_space<smem>>
    %276 = vector.broadcast %275 : f32 to vector<16x16xf32>
    %277 = arith.mulf %276, %270 : vector<16x16xf32>
    %278 = arith.addf %243, %277 : vector<16x16xf32>
    %c37 = arith.constant 37 : index
    %279 = memref.load %arg2[%c37] : memref<144xf32, #tpu.memory_space<smem>>
    %280 = vector.broadcast %279 : f32 to vector<16x16xf32>
    %281 = arith.mulf %280, %270 : vector<16x16xf32>
    %282 = arith.addf %247, %281 : vector<16x16xf32>
    %c55 = arith.constant 55 : index
    %283 = memref.load %arg2[%c55] : memref<144xf32, #tpu.memory_space<smem>>
    %284 = vector.broadcast %283 : f32 to vector<16x16xf32>
    %285 = arith.mulf %284, %270 : vector<16x16xf32>
    %286 = arith.addf %251, %285 : vector<16x16xf32>
    %c73 = arith.constant 73 : index
    %287 = memref.load %arg2[%c73] : memref<144xf32, #tpu.memory_space<smem>>
    %288 = vector.broadcast %287 : f32 to vector<16x16xf32>
    %289 = arith.mulf %288, %270 : vector<16x16xf32>
    %290 = arith.addf %255, %289 : vector<16x16xf32>
    %c91 = arith.constant 91 : index
    %291 = memref.load %arg2[%c91] : memref<144xf32, #tpu.memory_space<smem>>
    %292 = vector.broadcast %291 : f32 to vector<16x16xf32>
    %293 = arith.mulf %292, %270 : vector<16x16xf32>
    %294 = arith.addf %259, %293 : vector<16x16xf32>
    %c109 = arith.constant 109 : index
    %295 = memref.load %arg2[%c109] : memref<144xf32, #tpu.memory_space<smem>>
    %296 = vector.broadcast %295 : f32 to vector<16x16xf32>
    %297 = arith.mulf %296, %270 : vector<16x16xf32>
    %298 = arith.addf %263, %297 : vector<16x16xf32>
    %c127 = arith.constant 127 : index
    %299 = memref.load %arg2[%c127] : memref<144xf32, #tpu.memory_space<smem>>
    %300 = vector.broadcast %299 : f32 to vector<16x16xf32>
    %301 = arith.mulf %300, %270 : vector<16x16xf32>
    %302 = arith.addf %267, %301 : vector<16x16xf32>
    %c4 = arith.constant 4 : index
    %303 = memref.load %arg2[%c4] : memref<144xf32, #tpu.memory_space<smem>>
    %304 = vector.broadcast %303 : f32 to vector<16x16xf32>
    %305 = arith.mulf %304, %149 : vector<16x16xf32>
    %306 = arith.addf %274, %305 : vector<16x16xf32>
    %c22 = arith.constant 22 : index
    %307 = memref.load %arg2[%c22] : memref<144xf32, #tpu.memory_space<smem>>
    %308 = vector.broadcast %307 : f32 to vector<16x16xf32>
    %309 = arith.mulf %308, %149 : vector<16x16xf32>
    %310 = arith.addf %278, %309 : vector<16x16xf32>
    %c40 = arith.constant 40 : index
    %311 = memref.load %arg2[%c40] : memref<144xf32, #tpu.memory_space<smem>>
    %312 = vector.broadcast %311 : f32 to vector<16x16xf32>
    %313 = arith.mulf %312, %149 : vector<16x16xf32>
    %314 = arith.addf %282, %313 : vector<16x16xf32>
    %c58 = arith.constant 58 : index
    %315 = memref.load %arg2[%c58] : memref<144xf32, #tpu.memory_space<smem>>
    %316 = vector.broadcast %315 : f32 to vector<16x16xf32>
    %317 = arith.mulf %316, %149 : vector<16x16xf32>
    %318 = arith.addf %286, %317 : vector<16x16xf32>
    %c76 = arith.constant 76 : index
    %319 = memref.load %arg2[%c76] : memref<144xf32, #tpu.memory_space<smem>>
    %320 = vector.broadcast %319 : f32 to vector<16x16xf32>
    %321 = arith.mulf %320, %149 : vector<16x16xf32>
    %322 = arith.addf %290, %321 : vector<16x16xf32>
    %c94 = arith.constant 94 : index
    %323 = memref.load %arg2[%c94] : memref<144xf32, #tpu.memory_space<smem>>
    %324 = vector.broadcast %323 : f32 to vector<16x16xf32>
    %325 = arith.mulf %324, %149 : vector<16x16xf32>
    %326 = arith.addf %294, %325 : vector<16x16xf32>
    %c112 = arith.constant 112 : index
    %327 = memref.load %arg2[%c112] : memref<144xf32, #tpu.memory_space<smem>>
    %328 = vector.broadcast %327 : f32 to vector<16x16xf32>
    %329 = arith.mulf %328, %149 : vector<16x16xf32>
    %330 = arith.addf %298, %329 : vector<16x16xf32>
    %c130 = arith.constant 130 : index
    %331 = memref.load %arg2[%c130] : memref<144xf32, #tpu.memory_space<smem>>
    %332 = vector.broadcast %331 : f32 to vector<16x16xf32>
    %333 = arith.mulf %332, %149 : vector<16x16xf32>
    %334 = arith.addf %302, %333 : vector<16x16xf32>
    %cst_125 = arith.constant 0.000000e+00 : f32
    %335 = vector.broadcast %cst_125 : f32 to vector<1x16xf32>
    %336 = vector.extract_strided_slice %149 {offsets = [1, 0], sizes = [15, 16], strides = [1, 1]} : vector<16x16xf32> to vector<15x16xf32>
    %337 = tpu.concatenate %336, %335 in 0 : vector<15x16xf32>, vector<1x16xf32> -> vector<16x16xf32>
    %c7 = arith.constant 7 : index
    %338 = memref.load %arg2[%c7] : memref<144xf32, #tpu.memory_space<smem>>
    %339 = vector.broadcast %338 : f32 to vector<16x16xf32>
    %340 = arith.mulf %339, %337 : vector<16x16xf32>
    %341 = arith.addf %306, %340 : vector<16x16xf32>
    %c25 = arith.constant 25 : index
    %342 = memref.load %arg2[%c25] : memref<144xf32, #tpu.memory_space<smem>>
    %343 = vector.broadcast %342 : f32 to vector<16x16xf32>
    %344 = arith.mulf %343, %337 : vector<16x16xf32>
    %345 = arith.addf %310, %344 : vector<16x16xf32>
    %c43 = arith.constant 43 : index
    %346 = memref.load %arg2[%c43] : memref<144xf32, #tpu.memory_space<smem>>
    %347 = vector.broadcast %346 : f32 to vector<16x16xf32>
    %348 = arith.mulf %347, %337 : vector<16x16xf32>
    %349 = arith.addf %314, %348 : vector<16x16xf32>
    %c61 = arith.constant 61 : index
    %350 = memref.load %arg2[%c61] : memref<144xf32, #tpu.memory_space<smem>>
    %351 = vector.broadcast %350 : f32 to vector<16x16xf32>
    %352 = arith.mulf %351, %337 : vector<16x16xf32>
    %353 = arith.addf %318, %352 : vector<16x16xf32>
    %c79 = arith.constant 79 : index
    %354 = memref.load %arg2[%c79] : memref<144xf32, #tpu.memory_space<smem>>
    %355 = vector.broadcast %354 : f32 to vector<16x16xf32>
    %356 = arith.mulf %355, %337 : vector<16x16xf32>
    %357 = arith.addf %322, %356 : vector<16x16xf32>
    %c97 = arith.constant 97 : index
    %358 = memref.load %arg2[%c97] : memref<144xf32, #tpu.memory_space<smem>>
    %359 = vector.broadcast %358 : f32 to vector<16x16xf32>
    %360 = arith.mulf %359, %337 : vector<16x16xf32>
    %361 = arith.addf %326, %360 : vector<16x16xf32>
    %c115 = arith.constant 115 : index
    %362 = memref.load %arg2[%c115] : memref<144xf32, #tpu.memory_space<smem>>
    %363 = vector.broadcast %362 : f32 to vector<16x16xf32>
    %364 = arith.mulf %363, %337 : vector<16x16xf32>
    %365 = arith.addf %330, %364 : vector<16x16xf32>
    %c133 = arith.constant 133 : index
    %366 = memref.load %arg2[%c133] : memref<144xf32, #tpu.memory_space<smem>>
    %367 = vector.broadcast %366 : f32 to vector<16x16xf32>
    %368 = arith.mulf %367, %337 : vector<16x16xf32>
    %369 = arith.addf %334, %368 : vector<16x16xf32>
    %370 = arith.truncf %149 : vector<16x16xf32> to vector<16x16xbf16>
    %c1_126 = arith.constant 1 : index
    %c0_127 = arith.constant 0 : index
    %c0_128 = arith.constant 0 : index
    %371 = vector.load %arg12[%c1_126, %c0_127, %c0_128] : memref<2x16x16xbf16, #tpu.memory_space<vmem>>, vector<1x16x16xbf16>
    %372 = vector.shape_cast %371 : vector<1x16x16xbf16> to vector<16x16xbf16>
    %cst_129 = arith.constant dense<0.000000e+00> : vector<16x16xf32>
    %373 = tpu.matmul %370, %372, %cst_129 {dimension_numbers = #tpu.dot_dimension_numbers<[1], [0], [0], [1], [0, 0, 1, 1], [], []>} : vector<16x16xbf16>, vector<16x16xbf16>, vector<16x16xf32> -> vector<16x16xf32>
    %cst_130 = arith.constant 0.000000e+00 : f32
    %374 = vector.broadcast %cst_130 : f32 to vector<1x16xf32>
    %375 = vector.extract_strided_slice %373 {offsets = [0, 0], sizes = [15, 16], strides = [1, 1]} : vector<16x16xf32> to vector<15x16xf32>
    %376 = tpu.concatenate %374, %375 in 0 : vector<1x16xf32>, vector<15x16xf32> -> vector<16x16xf32>
    %c2_131 = arith.constant 2 : index
    %377 = memref.load %arg2[%c2_131] : memref<144xf32, #tpu.memory_space<smem>>
    %378 = vector.broadcast %377 : f32 to vector<16x16xf32>
    %379 = arith.mulf %378, %376 : vector<16x16xf32>
    %380 = arith.addf %341, %379 : vector<16x16xf32>
    %c20 = arith.constant 20 : index
    %381 = memref.load %arg2[%c20] : memref<144xf32, #tpu.memory_space<smem>>
    %382 = vector.broadcast %381 : f32 to vector<16x16xf32>
    %383 = arith.mulf %382, %376 : vector<16x16xf32>
    %384 = arith.addf %345, %383 : vector<16x16xf32>
    %c38 = arith.constant 38 : index
    %385 = memref.load %arg2[%c38] : memref<144xf32, #tpu.memory_space<smem>>
    %386 = vector.broadcast %385 : f32 to vector<16x16xf32>
    %387 = arith.mulf %386, %376 : vector<16x16xf32>
    %388 = arith.addf %349, %387 : vector<16x16xf32>
    %c56 = arith.constant 56 : index
    %389 = memref.load %arg2[%c56] : memref<144xf32, #tpu.memory_space<smem>>
    %390 = vector.broadcast %389 : f32 to vector<16x16xf32>
    %391 = arith.mulf %390, %376 : vector<16x16xf32>
    %392 = arith.addf %353, %391 : vector<16x16xf32>
    %c74 = arith.constant 74 : index
    %393 = memref.load %arg2[%c74] : memref<144xf32, #tpu.memory_space<smem>>
    %394 = vector.broadcast %393 : f32 to vector<16x16xf32>
    %395 = arith.mulf %394, %376 : vector<16x16xf32>
    %396 = arith.addf %357, %395 : vector<16x16xf32>
    %c92 = arith.constant 92 : index
    %397 = memref.load %arg2[%c92] : memref<144xf32, #tpu.memory_space<smem>>
    %398 = vector.broadcast %397 : f32 to vector<16x16xf32>
    %399 = arith.mulf %398, %376 : vector<16x16xf32>
    %400 = arith.addf %361, %399 : vector<16x16xf32>
    %c110 = arith.constant 110 : index
    %401 = memref.load %arg2[%c110] : memref<144xf32, #tpu.memory_space<smem>>
    %402 = vector.broadcast %401 : f32 to vector<16x16xf32>
    %403 = arith.mulf %402, %376 : vector<16x16xf32>
    %404 = arith.addf %365, %403 : vector<16x16xf32>
    %c128 = arith.constant 128 : index
    %405 = memref.load %arg2[%c128] : memref<144xf32, #tpu.memory_space<smem>>
    %406 = vector.broadcast %405 : f32 to vector<16x16xf32>
    %407 = arith.mulf %406, %376 : vector<16x16xf32>
    %408 = arith.addf %369, %407 : vector<16x16xf32>
    %c5 = arith.constant 5 : index
    %409 = memref.load %arg2[%c5] : memref<144xf32, #tpu.memory_space<smem>>
    %410 = vector.broadcast %409 : f32 to vector<16x16xf32>
    %411 = arith.mulf %410, %373 : vector<16x16xf32>
    %412 = arith.addf %380, %411 : vector<16x16xf32>
    %c23 = arith.constant 23 : index
    %413 = memref.load %arg2[%c23] : memref<144xf32, #tpu.memory_space<smem>>
    %414 = vector.broadcast %413 : f32 to vector<16x16xf32>
    %415 = arith.mulf %414, %373 : vector<16x16xf32>
    %416 = arith.addf %384, %415 : vector<16x16xf32>
    %c41 = arith.constant 41 : index
    %417 = memref.load %arg2[%c41] : memref<144xf32, #tpu.memory_space<smem>>
    %418 = vector.broadcast %417 : f32 to vector<16x16xf32>
    %419 = arith.mulf %418, %373 : vector<16x16xf32>
    %420 = arith.addf %388, %419 : vector<16x16xf32>
    %c59 = arith.constant 59 : index
    %421 = memref.load %arg2[%c59] : memref<144xf32, #tpu.memory_space<smem>>
    %422 = vector.broadcast %421 : f32 to vector<16x16xf32>
    %423 = arith.mulf %422, %373 : vector<16x16xf32>
    %424 = arith.addf %392, %423 : vector<16x16xf32>
    %c77 = arith.constant 77 : index
    %425 = memref.load %arg2[%c77] : memref<144xf32, #tpu.memory_space<smem>>
    %426 = vector.broadcast %425 : f32 to vector<16x16xf32>
    %427 = arith.mulf %426, %373 : vector<16x16xf32>
    %428 = arith.addf %396, %427 : vector<16x16xf32>
    %c95 = arith.constant 95 : index
    %429 = memref.load %arg2[%c95] : memref<144xf32, #tpu.memory_space<smem>>
    %430 = vector.broadcast %429 : f32 to vector<16x16xf32>
    %431 = arith.mulf %430, %373 : vector<16x16xf32>
    %432 = arith.addf %400, %431 : vector<16x16xf32>
    %c113 = arith.constant 113 : index
    %433 = memref.load %arg2[%c113] : memref<144xf32, #tpu.memory_space<smem>>
    %434 = vector.broadcast %433 : f32 to vector<16x16xf32>
    %435 = arith.mulf %434, %373 : vector<16x16xf32>
    %436 = arith.addf %404, %435 : vector<16x16xf32>
    %c131 = arith.constant 131 : index
    %437 = memref.load %arg2[%c131] : memref<144xf32, #tpu.memory_space<smem>>
    %438 = vector.broadcast %437 : f32 to vector<16x16xf32>
    %439 = arith.mulf %438, %373 : vector<16x16xf32>
    %440 = arith.addf %408, %439 : vector<16x16xf32>
    %cst_132 = arith.constant 0.000000e+00 : f32
    %441 = vector.broadcast %cst_132 : f32 to vector<1x16xf32>
    %442 = vector.extract_strided_slice %373 {offsets = [1, 0], sizes = [15, 16], strides = [1, 1]} : vector<16x16xf32> to vector<15x16xf32>
    %443 = tpu.concatenate %442, %441 in 0 : vector<15x16xf32>, vector<1x16xf32> -> vector<16x16xf32>
    %c8 = arith.constant 8 : index
    %444 = memref.load %arg2[%c8] : memref<144xf32, #tpu.memory_space<smem>>
    %445 = vector.broadcast %444 : f32 to vector<16x16xf32>
    %446 = arith.mulf %445, %443 : vector<16x16xf32>
    %447 = arith.addf %412, %446 : vector<16x16xf32>
    %c26 = arith.constant 26 : index
    %448 = memref.load %arg2[%c26] : memref<144xf32, #tpu.memory_space<smem>>
    %449 = vector.broadcast %448 : f32 to vector<16x16xf32>
    %450 = arith.mulf %449, %443 : vector<16x16xf32>
    %451 = arith.addf %416, %450 : vector<16x16xf32>
    %c44 = arith.constant 44 : index
    %452 = memref.load %arg2[%c44] : memref<144xf32, #tpu.memory_space<smem>>
    %453 = vector.broadcast %452 : f32 to vector<16x16xf32>
    %454 = arith.mulf %453, %443 : vector<16x16xf32>
    %455 = arith.addf %420, %454 : vector<16x16xf32>
    %c62 = arith.constant 62 : index
    %456 = memref.load %arg2[%c62] : memref<144xf32, #tpu.memory_space<smem>>
    %457 = vector.broadcast %456 : f32 to vector<16x16xf32>
    %458 = arith.mulf %457, %443 : vector<16x16xf32>
    %459 = arith.addf %424, %458 : vector<16x16xf32>
    %c80 = arith.constant 80 : index
    %460 = memref.load %arg2[%c80] : memref<144xf32, #tpu.memory_space<smem>>
    %461 = vector.broadcast %460 : f32 to vector<16x16xf32>
    %462 = arith.mulf %461, %443 : vector<16x16xf32>
    %463 = arith.addf %428, %462 : vector<16x16xf32>
    %c98 = arith.constant 98 : index
    %464 = memref.load %arg2[%c98] : memref<144xf32, #tpu.memory_space<smem>>
    %465 = vector.broadcast %464 : f32 to vector<16x16xf32>
    %466 = arith.mulf %465, %443 : vector<16x16xf32>
    %467 = arith.addf %432, %466 : vector<16x16xf32>
    %c116 = arith.constant 116 : index
    %468 = memref.load %arg2[%c116] : memref<144xf32, #tpu.memory_space<smem>>
    %469 = vector.broadcast %468 : f32 to vector<16x16xf32>
    %470 = arith.mulf %469, %443 : vector<16x16xf32>
    %471 = arith.addf %436, %470 : vector<16x16xf32>
    %c134 = arith.constant 134 : index
    %472 = memref.load %arg2[%c134] : memref<144xf32, #tpu.memory_space<smem>>
    %473 = vector.broadcast %472 : f32 to vector<16x16xf32>
    %474 = arith.mulf %473, %443 : vector<16x16xf32>
    %475 = arith.addf %440, %474 : vector<16x16xf32>
    %476 = arith.truncf %153 : vector<16x16xf32> to vector<16x16xbf16>
    %c0_133 = arith.constant 0 : index
    %c0_134 = arith.constant 0 : index
    %c0_135 = arith.constant 0 : index
    %477 = vector.load %arg12[%c0_133, %c0_134, %c0_135] : memref<2x16x16xbf16, #tpu.memory_space<vmem>>, vector<1x16x16xbf16>
    %478 = vector.shape_cast %477 : vector<1x16x16xbf16> to vector<16x16xbf16>
    %cst_136 = arith.constant dense<0.000000e+00> : vector<16x16xf32>
    %479 = tpu.matmul %476, %478, %cst_136 {dimension_numbers = #tpu.dot_dimension_numbers<[1], [0], [0], [1], [0, 0, 1, 1], [], []>} : vector<16x16xbf16>, vector<16x16xbf16>, vector<16x16xf32> -> vector<16x16xf32>
    %cst_137 = arith.constant 0.000000e+00 : f32
    %480 = vector.broadcast %cst_137 : f32 to vector<1x16xf32>
    %481 = vector.extract_strided_slice %479 {offsets = [0, 0], sizes = [15, 16], strides = [1, 1]} : vector<16x16xf32> to vector<15x16xf32>
    %482 = tpu.concatenate %480, %481 in 0 : vector<1x16xf32>, vector<15x16xf32> -> vector<16x16xf32>
    %c9 = arith.constant 9 : index
    %483 = memref.load %arg2[%c9] : memref<144xf32, #tpu.memory_space<smem>>
    %484 = vector.broadcast %483 : f32 to vector<16x16xf32>
    %485 = arith.mulf %484, %482 : vector<16x16xf32>
    %486 = arith.addf %447, %485 : vector<16x16xf32>
    %c27 = arith.constant 27 : index
    %487 = memref.load %arg2[%c27] : memref<144xf32, #tpu.memory_space<smem>>
    %488 = vector.broadcast %487 : f32 to vector<16x16xf32>
    %489 = arith.mulf %488, %482 : vector<16x16xf32>
    %490 = arith.addf %451, %489 : vector<16x16xf32>
    %c45 = arith.constant 45 : index
    %491 = memref.load %arg2[%c45] : memref<144xf32, #tpu.memory_space<smem>>
    %492 = vector.broadcast %491 : f32 to vector<16x16xf32>
    %493 = arith.mulf %492, %482 : vector<16x16xf32>
    %494 = arith.addf %455, %493 : vector<16x16xf32>
    %c63 = arith.constant 63 : index
    %495 = memref.load %arg2[%c63] : memref<144xf32, #tpu.memory_space<smem>>
    %496 = vector.broadcast %495 : f32 to vector<16x16xf32>
    %497 = arith.mulf %496, %482 : vector<16x16xf32>
    %498 = arith.addf %459, %497 : vector<16x16xf32>
    %c81 = arith.constant 81 : index
    %499 = memref.load %arg2[%c81] : memref<144xf32, #tpu.memory_space<smem>>
    %500 = vector.broadcast %499 : f32 to vector<16x16xf32>
    %501 = arith.mulf %500, %482 : vector<16x16xf32>
    %502 = arith.addf %463, %501 : vector<16x16xf32>
    %c99 = arith.constant 99 : index
    %503 = memref.load %arg2[%c99] : memref<144xf32, #tpu.memory_space<smem>>
    %504 = vector.broadcast %503 : f32 to vector<16x16xf32>
    %505 = arith.mulf %504, %482 : vector<16x16xf32>
    %506 = arith.addf %467, %505 : vector<16x16xf32>
    %c117 = arith.constant 117 : index
    %507 = memref.load %arg2[%c117] : memref<144xf32, #tpu.memory_space<smem>>
    %508 = vector.broadcast %507 : f32 to vector<16x16xf32>
    %509 = arith.mulf %508, %482 : vector<16x16xf32>
    %510 = arith.addf %471, %509 : vector<16x16xf32>
    %c135 = arith.constant 135 : index
    %511 = memref.load %arg2[%c135] : memref<144xf32, #tpu.memory_space<smem>>
    %512 = vector.broadcast %511 : f32 to vector<16x16xf32>
    %513 = arith.mulf %512, %482 : vector<16x16xf32>
    %514 = arith.addf %475, %513 : vector<16x16xf32>
    %c12 = arith.constant 12 : index
    %515 = memref.load %arg2[%c12] : memref<144xf32, #tpu.memory_space<smem>>
    %516 = vector.broadcast %515 : f32 to vector<16x16xf32>
    %517 = arith.mulf %516, %479 : vector<16x16xf32>
    %518 = arith.addf %486, %517 : vector<16x16xf32>
    %c30 = arith.constant 30 : index
    %519 = memref.load %arg2[%c30] : memref<144xf32, #tpu.memory_space<smem>>
    %520 = vector.broadcast %519 : f32 to vector<16x16xf32>
    %521 = arith.mulf %520, %479 : vector<16x16xf32>
    %522 = arith.addf %490, %521 : vector<16x16xf32>
    %c48 = arith.constant 48 : index
    %523 = memref.load %arg2[%c48] : memref<144xf32, #tpu.memory_space<smem>>
    %524 = vector.broadcast %523 : f32 to vector<16x16xf32>
    %525 = arith.mulf %524, %479 : vector<16x16xf32>
    %526 = arith.addf %494, %525 : vector<16x16xf32>
    %c66 = arith.constant 66 : index
    %527 = memref.load %arg2[%c66] : memref<144xf32, #tpu.memory_space<smem>>
    %528 = vector.broadcast %527 : f32 to vector<16x16xf32>
    %529 = arith.mulf %528, %479 : vector<16x16xf32>
    %530 = arith.addf %498, %529 : vector<16x16xf32>
    %c84 = arith.constant 84 : index
    %531 = memref.load %arg2[%c84] : memref<144xf32, #tpu.memory_space<smem>>
    %532 = vector.broadcast %531 : f32 to vector<16x16xf32>
    %533 = arith.mulf %532, %479 : vector<16x16xf32>
    %534 = arith.addf %502, %533 : vector<16x16xf32>
    %c102 = arith.constant 102 : index
    %535 = memref.load %arg2[%c102] : memref<144xf32, #tpu.memory_space<smem>>
    %536 = vector.broadcast %535 : f32 to vector<16x16xf32>
    %537 = arith.mulf %536, %479 : vector<16x16xf32>
    %538 = arith.addf %506, %537 : vector<16x16xf32>
    %c120 = arith.constant 120 : index
    %539 = memref.load %arg2[%c120] : memref<144xf32, #tpu.memory_space<smem>>
    %540 = vector.broadcast %539 : f32 to vector<16x16xf32>
    %541 = arith.mulf %540, %479 : vector<16x16xf32>
    %542 = arith.addf %510, %541 : vector<16x16xf32>
    %c138 = arith.constant 138 : index
    %543 = memref.load %arg2[%c138] : memref<144xf32, #tpu.memory_space<smem>>
    %544 = vector.broadcast %543 : f32 to vector<16x16xf32>
    %545 = arith.mulf %544, %479 : vector<16x16xf32>
    %546 = arith.addf %514, %545 : vector<16x16xf32>
    %cst_138 = arith.constant 0.000000e+00 : f32
    %547 = vector.broadcast %cst_138 : f32 to vector<1x16xf32>
    %548 = vector.extract_strided_slice %479 {offsets = [1, 0], sizes = [15, 16], strides = [1, 1]} : vector<16x16xf32> to vector<15x16xf32>
    %549 = tpu.concatenate %548, %547 in 0 : vector<15x16xf32>, vector<1x16xf32> -> vector<16x16xf32>
    %c15 = arith.constant 15 : index
    %550 = memref.load %arg2[%c15] : memref<144xf32, #tpu.memory_space<smem>>
    %551 = vector.broadcast %550 : f32 to vector<16x16xf32>
    %552 = arith.mulf %551, %549 : vector<16x16xf32>
    %553 = arith.addf %518, %552 : vector<16x16xf32>
    %c33 = arith.constant 33 : index
    %554 = memref.load %arg2[%c33] : memref<144xf32, #tpu.memory_space<smem>>
    %555 = vector.broadcast %554 : f32 to vector<16x16xf32>
    %556 = arith.mulf %555, %549 : vector<16x16xf32>
    %557 = arith.addf %522, %556 : vector<16x16xf32>
    %c51 = arith.constant 51 : index
    %558 = memref.load %arg2[%c51] : memref<144xf32, #tpu.memory_space<smem>>
    %559 = vector.broadcast %558 : f32 to vector<16x16xf32>
    %560 = arith.mulf %559, %549 : vector<16x16xf32>
    %561 = arith.addf %526, %560 : vector<16x16xf32>
    %c69 = arith.constant 69 : index
    %562 = memref.load %arg2[%c69] : memref<144xf32, #tpu.memory_space<smem>>
    %563 = vector.broadcast %562 : f32 to vector<16x16xf32>
    %564 = arith.mulf %563, %549 : vector<16x16xf32>
    %565 = arith.addf %530, %564 : vector<16x16xf32>
    %c87 = arith.constant 87 : index
    %566 = memref.load %arg2[%c87] : memref<144xf32, #tpu.memory_space<smem>>
    %567 = vector.broadcast %566 : f32 to vector<16x16xf32>
    %568 = arith.mulf %567, %549 : vector<16x16xf32>
    %569 = arith.addf %534, %568 : vector<16x16xf32>
    %c105 = arith.constant 105 : index
    %570 = memref.load %arg2[%c105] : memref<144xf32, #tpu.memory_space<smem>>
    %571 = vector.broadcast %570 : f32 to vector<16x16xf32>
    %572 = arith.mulf %571, %549 : vector<16x16xf32>
    %573 = arith.addf %538, %572 : vector<16x16xf32>
    %c123 = arith.constant 123 : index
    %574 = memref.load %arg2[%c123] : memref<144xf32, #tpu.memory_space<smem>>
    %575 = vector.broadcast %574 : f32 to vector<16x16xf32>
    %576 = arith.mulf %575, %549 : vector<16x16xf32>
    %577 = arith.addf %542, %576 : vector<16x16xf32>
    %c141 = arith.constant 141 : index
    %578 = memref.load %arg2[%c141] : memref<144xf32, #tpu.memory_space<smem>>
    %579 = vector.broadcast %578 : f32 to vector<16x16xf32>
    %580 = arith.mulf %579, %549 : vector<16x16xf32>
    %581 = arith.addf %546, %580 : vector<16x16xf32>
    %cst_139 = arith.constant 0.000000e+00 : f32
    %582 = vector.broadcast %cst_139 : f32 to vector<1x16xf32>
    %583 = vector.extract_strided_slice %153 {offsets = [0, 0], sizes = [15, 16], strides = [1, 1]} : vector<16x16xf32> to vector<15x16xf32>
    %584 = tpu.concatenate %582, %583 in 0 : vector<1x16xf32>, vector<15x16xf32> -> vector<16x16xf32>
    %c10 = arith.constant 10 : index
    %585 = memref.load %arg2[%c10] : memref<144xf32, #tpu.memory_space<smem>>
    %586 = vector.broadcast %585 : f32 to vector<16x16xf32>
    %587 = arith.mulf %586, %584 : vector<16x16xf32>
    %588 = arith.addf %553, %587 : vector<16x16xf32>
    %c28 = arith.constant 28 : index
    %589 = memref.load %arg2[%c28] : memref<144xf32, #tpu.memory_space<smem>>
    %590 = vector.broadcast %589 : f32 to vector<16x16xf32>
    %591 = arith.mulf %590, %584 : vector<16x16xf32>
    %592 = arith.addf %557, %591 : vector<16x16xf32>
    %c46 = arith.constant 46 : index
    %593 = memref.load %arg2[%c46] : memref<144xf32, #tpu.memory_space<smem>>
    %594 = vector.broadcast %593 : f32 to vector<16x16xf32>
    %595 = arith.mulf %594, %584 : vector<16x16xf32>
    %596 = arith.addf %561, %595 : vector<16x16xf32>
    %c64 = arith.constant 64 : index
    %597 = memref.load %arg2[%c64] : memref<144xf32, #tpu.memory_space<smem>>
    %598 = vector.broadcast %597 : f32 to vector<16x16xf32>
    %599 = arith.mulf %598, %584 : vector<16x16xf32>
    %600 = arith.addf %565, %599 : vector<16x16xf32>
    %c82 = arith.constant 82 : index
    %601 = memref.load %arg2[%c82] : memref<144xf32, #tpu.memory_space<smem>>
    %602 = vector.broadcast %601 : f32 to vector<16x16xf32>
    %603 = arith.mulf %602, %584 : vector<16x16xf32>
    %604 = arith.addf %569, %603 : vector<16x16xf32>
    %c100 = arith.constant 100 : index
    %605 = memref.load %arg2[%c100] : memref<144xf32, #tpu.memory_space<smem>>
    %606 = vector.broadcast %605 : f32 to vector<16x16xf32>
    %607 = arith.mulf %606, %584 : vector<16x16xf32>
    %608 = arith.addf %573, %607 : vector<16x16xf32>
    %c118 = arith.constant 118 : index
    %609 = memref.load %arg2[%c118] : memref<144xf32, #tpu.memory_space<smem>>
    %610 = vector.broadcast %609 : f32 to vector<16x16xf32>
    %611 = arith.mulf %610, %584 : vector<16x16xf32>
    %612 = arith.addf %577, %611 : vector<16x16xf32>
    %c136 = arith.constant 136 : index
    %613 = memref.load %arg2[%c136] : memref<144xf32, #tpu.memory_space<smem>>
    %614 = vector.broadcast %613 : f32 to vector<16x16xf32>
    %615 = arith.mulf %614, %584 : vector<16x16xf32>
    %616 = arith.addf %581, %615 : vector<16x16xf32>
    %c13 = arith.constant 13 : index
    %617 = memref.load %arg2[%c13] : memref<144xf32, #tpu.memory_space<smem>>
    %618 = vector.broadcast %617 : f32 to vector<16x16xf32>
    %619 = arith.mulf %618, %153 : vector<16x16xf32>
    %620 = arith.addf %588, %619 : vector<16x16xf32>
    %c31 = arith.constant 31 : index
    %621 = memref.load %arg2[%c31] : memref<144xf32, #tpu.memory_space<smem>>
    %622 = vector.broadcast %621 : f32 to vector<16x16xf32>
    %623 = arith.mulf %622, %153 : vector<16x16xf32>
    %624 = arith.addf %592, %623 : vector<16x16xf32>
    %c49 = arith.constant 49 : index
    %625 = memref.load %arg2[%c49] : memref<144xf32, #tpu.memory_space<smem>>
    %626 = vector.broadcast %625 : f32 to vector<16x16xf32>
    %627 = arith.mulf %626, %153 : vector<16x16xf32>
    %628 = arith.addf %596, %627 : vector<16x16xf32>
    %c67 = arith.constant 67 : index
    %629 = memref.load %arg2[%c67] : memref<144xf32, #tpu.memory_space<smem>>
    %630 = vector.broadcast %629 : f32 to vector<16x16xf32>
    %631 = arith.mulf %630, %153 : vector<16x16xf32>
    %632 = arith.addf %600, %631 : vector<16x16xf32>
    %c85 = arith.constant 85 : index
    %633 = memref.load %arg2[%c85] : memref<144xf32, #tpu.memory_space<smem>>
    %634 = vector.broadcast %633 : f32 to vector<16x16xf32>
    %635 = arith.mulf %634, %153 : vector<16x16xf32>
    %636 = arith.addf %604, %635 : vector<16x16xf32>
    %c103 = arith.constant 103 : index
    %637 = memref.load %arg2[%c103] : memref<144xf32, #tpu.memory_space<smem>>
    %638 = vector.broadcast %637 : f32 to vector<16x16xf32>
    %639 = arith.mulf %638, %153 : vector<16x16xf32>
    %640 = arith.addf %608, %639 : vector<16x16xf32>
    %c121 = arith.constant 121 : index
    %641 = memref.load %arg2[%c121] : memref<144xf32, #tpu.memory_space<smem>>
    %642 = vector.broadcast %641 : f32 to vector<16x16xf32>
    %643 = arith.mulf %642, %153 : vector<16x16xf32>
    %644 = arith.addf %612, %643 : vector<16x16xf32>
    %c139 = arith.constant 139 : index
    %645 = memref.load %arg2[%c139] : memref<144xf32, #tpu.memory_space<smem>>
    %646 = vector.broadcast %645 : f32 to vector<16x16xf32>
    %647 = arith.mulf %646, %153 : vector<16x16xf32>
    %648 = arith.addf %616, %647 : vector<16x16xf32>
    %cst_140 = arith.constant 0.000000e+00 : f32
    %649 = vector.broadcast %cst_140 : f32 to vector<1x16xf32>
    %650 = vector.extract_strided_slice %153 {offsets = [1, 0], sizes = [15, 16], strides = [1, 1]} : vector<16x16xf32> to vector<15x16xf32>
    %651 = tpu.concatenate %650, %649 in 0 : vector<15x16xf32>, vector<1x16xf32> -> vector<16x16xf32>
    %c16 = arith.constant 16 : index
    %652 = memref.load %arg2[%c16] : memref<144xf32, #tpu.memory_space<smem>>
    %653 = vector.broadcast %652 : f32 to vector<16x16xf32>
    %654 = arith.mulf %653, %651 : vector<16x16xf32>
    %655 = arith.addf %620, %654 : vector<16x16xf32>
    %c34 = arith.constant 34 : index
    %656 = memref.load %arg2[%c34] : memref<144xf32, #tpu.memory_space<smem>>
    %657 = vector.broadcast %656 : f32 to vector<16x16xf32>
    %658 = arith.mulf %657, %651 : vector<16x16xf32>
    %659 = arith.addf %624, %658 : vector<16x16xf32>
    %c52 = arith.constant 52 : index
    %660 = memref.load %arg2[%c52] : memref<144xf32, #tpu.memory_space<smem>>
    %661 = vector.broadcast %660 : f32 to vector<16x16xf32>
    %662 = arith.mulf %661, %651 : vector<16x16xf32>
    %663 = arith.addf %628, %662 : vector<16x16xf32>
    %c70 = arith.constant 70 : index
    %664 = memref.load %arg2[%c70] : memref<144xf32, #tpu.memory_space<smem>>
    %665 = vector.broadcast %664 : f32 to vector<16x16xf32>
    %666 = arith.mulf %665, %651 : vector<16x16xf32>
    %667 = arith.addf %632, %666 : vector<16x16xf32>
    %c88 = arith.constant 88 : index
    %668 = memref.load %arg2[%c88] : memref<144xf32, #tpu.memory_space<smem>>
    %669 = vector.broadcast %668 : f32 to vector<16x16xf32>
    %670 = arith.mulf %669, %651 : vector<16x16xf32>
    %671 = arith.addf %636, %670 : vector<16x16xf32>
    %c106 = arith.constant 106 : index
    %672 = memref.load %arg2[%c106] : memref<144xf32, #tpu.memory_space<smem>>
    %673 = vector.broadcast %672 : f32 to vector<16x16xf32>
    %674 = arith.mulf %673, %651 : vector<16x16xf32>
    %675 = arith.addf %640, %674 : vector<16x16xf32>
    %c124 = arith.constant 124 : index
    %676 = memref.load %arg2[%c124] : memref<144xf32, #tpu.memory_space<smem>>
    %677 = vector.broadcast %676 : f32 to vector<16x16xf32>
    %678 = arith.mulf %677, %651 : vector<16x16xf32>
    %679 = arith.addf %644, %678 : vector<16x16xf32>
    %c142 = arith.constant 142 : index
    %680 = memref.load %arg2[%c142] : memref<144xf32, #tpu.memory_space<smem>>
    %681 = vector.broadcast %680 : f32 to vector<16x16xf32>
    %682 = arith.mulf %681, %651 : vector<16x16xf32>
    %683 = arith.addf %648, %682 : vector<16x16xf32>
    %684 = arith.truncf %153 : vector<16x16xf32> to vector<16x16xbf16>
    %c1_141 = arith.constant 1 : index
    %c0_142 = arith.constant 0 : index
    %c0_143 = arith.constant 0 : index
    %685 = vector.load %arg12[%c1_141, %c0_142, %c0_143] : memref<2x16x16xbf16, #tpu.memory_space<vmem>>, vector<1x16x16xbf16>
    %686 = vector.shape_cast %685 : vector<1x16x16xbf16> to vector<16x16xbf16>
    %cst_144 = arith.constant dense<0.000000e+00> : vector<16x16xf32>
    %687 = tpu.matmul %684, %686, %cst_144 {dimension_numbers = #tpu.dot_dimension_numbers<[1], [0], [0], [1], [0, 0, 1, 1], [], []>} : vector<16x16xbf16>, vector<16x16xbf16>, vector<16x16xf32> -> vector<16x16xf32>
    %cst_145 = arith.constant 0.000000e+00 : f32
    %688 = vector.broadcast %cst_145 : f32 to vector<1x16xf32>
    %689 = vector.extract_strided_slice %687 {offsets = [0, 0], sizes = [15, 16], strides = [1, 1]} : vector<16x16xf32> to vector<15x16xf32>
    %690 = tpu.concatenate %688, %689 in 0 : vector<1x16xf32>, vector<15x16xf32> -> vector<16x16xf32>
    %c11 = arith.constant 11 : index
    %691 = memref.load %arg2[%c11] : memref<144xf32, #tpu.memory_space<smem>>
    %692 = vector.broadcast %691 : f32 to vector<16x16xf32>
    %693 = arith.mulf %692, %690 : vector<16x16xf32>
    %694 = arith.addf %655, %693 : vector<16x16xf32>
    %c29 = arith.constant 29 : index
    %695 = memref.load %arg2[%c29] : memref<144xf32, #tpu.memory_space<smem>>
    %696 = vector.broadcast %695 : f32 to vector<16x16xf32>
    %697 = arith.mulf %696, %690 : vector<16x16xf32>
    %698 = arith.addf %659, %697 : vector<16x16xf32>
    %c47 = arith.constant 47 : index
    %699 = memref.load %arg2[%c47] : memref<144xf32, #tpu.memory_space<smem>>
    %700 = vector.broadcast %699 : f32 to vector<16x16xf32>
    %701 = arith.mulf %700, %690 : vector<16x16xf32>
    %702 = arith.addf %663, %701 : vector<16x16xf32>
    %c65 = arith.constant 65 : index
    %703 = memref.load %arg2[%c65] : memref<144xf32, #tpu.memory_space<smem>>
    %704 = vector.broadcast %703 : f32 to vector<16x16xf32>
    %705 = arith.mulf %704, %690 : vector<16x16xf32>
    %706 = arith.addf %667, %705 : vector<16x16xf32>
    %c83 = arith.constant 83 : index
    %707 = memref.load %arg2[%c83] : memref<144xf32, #tpu.memory_space<smem>>
    %708 = vector.broadcast %707 : f32 to vector<16x16xf32>
    %709 = arith.mulf %708, %690 : vector<16x16xf32>
    %710 = arith.addf %671, %709 : vector<16x16xf32>
    %c101 = arith.constant 101 : index
    %711 = memref.load %arg2[%c101] : memref<144xf32, #tpu.memory_space<smem>>
    %712 = vector.broadcast %711 : f32 to vector<16x16xf32>
    %713 = arith.mulf %712, %690 : vector<16x16xf32>
    %714 = arith.addf %675, %713 : vector<16x16xf32>
    %c119 = arith.constant 119 : index
    %715 = memref.load %arg2[%c119] : memref<144xf32, #tpu.memory_space<smem>>
    %716 = vector.broadcast %715 : f32 to vector<16x16xf32>
    %717 = arith.mulf %716, %690 : vector<16x16xf32>
    %718 = arith.addf %679, %717 : vector<16x16xf32>
    %c137 = arith.constant 137 : index
    %719 = memref.load %arg2[%c137] : memref<144xf32, #tpu.memory_space<smem>>
    %720 = vector.broadcast %719 : f32 to vector<16x16xf32>
    %721 = arith.mulf %720, %690 : vector<16x16xf32>
    %722 = arith.addf %683, %721 : vector<16x16xf32>
    %c14 = arith.constant 14 : index
    %723 = memref.load %arg2[%c14] : memref<144xf32, #tpu.memory_space<smem>>
    %724 = vector.broadcast %723 : f32 to vector<16x16xf32>
    %725 = arith.mulf %724, %687 : vector<16x16xf32>
    %726 = arith.addf %694, %725 : vector<16x16xf32>
    %c32 = arith.constant 32 : index
    %727 = memref.load %arg2[%c32] : memref<144xf32, #tpu.memory_space<smem>>
    %728 = vector.broadcast %727 : f32 to vector<16x16xf32>
    %729 = arith.mulf %728, %687 : vector<16x16xf32>
    %730 = arith.addf %698, %729 : vector<16x16xf32>
    %c50 = arith.constant 50 : index
    %731 = memref.load %arg2[%c50] : memref<144xf32, #tpu.memory_space<smem>>
    %732 = vector.broadcast %731 : f32 to vector<16x16xf32>
    %733 = arith.mulf %732, %687 : vector<16x16xf32>
    %734 = arith.addf %702, %733 : vector<16x16xf32>
    %c68 = arith.constant 68 : index
    %735 = memref.load %arg2[%c68] : memref<144xf32, #tpu.memory_space<smem>>
    %736 = vector.broadcast %735 : f32 to vector<16x16xf32>
    %737 = arith.mulf %736, %687 : vector<16x16xf32>
    %738 = arith.addf %706, %737 : vector<16x16xf32>
    %c86 = arith.constant 86 : index
    %739 = memref.load %arg2[%c86] : memref<144xf32, #tpu.memory_space<smem>>
    %740 = vector.broadcast %739 : f32 to vector<16x16xf32>
    %741 = arith.mulf %740, %687 : vector<16x16xf32>
    %742 = arith.addf %710, %741 : vector<16x16xf32>
    %c104 = arith.constant 104 : index
    %743 = memref.load %arg2[%c104] : memref<144xf32, #tpu.memory_space<smem>>
    %744 = vector.broadcast %743 : f32 to vector<16x16xf32>
    %745 = arith.mulf %744, %687 : vector<16x16xf32>
    %746 = arith.addf %714, %745 : vector<16x16xf32>
    %c122 = arith.constant 122 : index
    %747 = memref.load %arg2[%c122] : memref<144xf32, #tpu.memory_space<smem>>
    %748 = vector.broadcast %747 : f32 to vector<16x16xf32>
    %749 = arith.mulf %748, %687 : vector<16x16xf32>
    %750 = arith.addf %718, %749 : vector<16x16xf32>
    %c140 = arith.constant 140 : index
    %751 = memref.load %arg2[%c140] : memref<144xf32, #tpu.memory_space<smem>>
    %752 = vector.broadcast %751 : f32 to vector<16x16xf32>
    %753 = arith.mulf %752, %687 : vector<16x16xf32>
    %754 = arith.addf %722, %753 : vector<16x16xf32>
    %cst_146 = arith.constant 0.000000e+00 : f32
    %755 = vector.broadcast %cst_146 : f32 to vector<1x16xf32>
    %756 = vector.extract_strided_slice %687 {offsets = [1, 0], sizes = [15, 16], strides = [1, 1]} : vector<16x16xf32> to vector<15x16xf32>
    %757 = tpu.concatenate %756, %755 in 0 : vector<15x16xf32>, vector<1x16xf32> -> vector<16x16xf32>
    %c17 = arith.constant 17 : index
    %758 = memref.load %arg2[%c17] : memref<144xf32, #tpu.memory_space<smem>>
    %759 = vector.broadcast %758 : f32 to vector<16x16xf32>
    %760 = arith.mulf %759, %757 : vector<16x16xf32>
    %761 = arith.addf %726, %760 : vector<16x16xf32>
    %c35 = arith.constant 35 : index
    %762 = memref.load %arg2[%c35] : memref<144xf32, #tpu.memory_space<smem>>
    %763 = vector.broadcast %762 : f32 to vector<16x16xf32>
    %764 = arith.mulf %763, %757 : vector<16x16xf32>
    %765 = arith.addf %730, %764 : vector<16x16xf32>
    %c53 = arith.constant 53 : index
    %766 = memref.load %arg2[%c53] : memref<144xf32, #tpu.memory_space<smem>>
    %767 = vector.broadcast %766 : f32 to vector<16x16xf32>
    %768 = arith.mulf %767, %757 : vector<16x16xf32>
    %769 = arith.addf %734, %768 : vector<16x16xf32>
    %c71 = arith.constant 71 : index
    %770 = memref.load %arg2[%c71] : memref<144xf32, #tpu.memory_space<smem>>
    %771 = vector.broadcast %770 : f32 to vector<16x16xf32>
    %772 = arith.mulf %771, %757 : vector<16x16xf32>
    %773 = arith.addf %738, %772 : vector<16x16xf32>
    %c89 = arith.constant 89 : index
    %774 = memref.load %arg2[%c89] : memref<144xf32, #tpu.memory_space<smem>>
    %775 = vector.broadcast %774 : f32 to vector<16x16xf32>
    %776 = arith.mulf %775, %757 : vector<16x16xf32>
    %777 = arith.addf %742, %776 : vector<16x16xf32>
    %c107 = arith.constant 107 : index
    %778 = memref.load %arg2[%c107] : memref<144xf32, #tpu.memory_space<smem>>
    %779 = vector.broadcast %778 : f32 to vector<16x16xf32>
    %780 = arith.mulf %779, %757 : vector<16x16xf32>
    %781 = arith.addf %746, %780 : vector<16x16xf32>
    %c125 = arith.constant 125 : index
    %782 = memref.load %arg2[%c125] : memref<144xf32, #tpu.memory_space<smem>>
    %783 = vector.broadcast %782 : f32 to vector<16x16xf32>
    %784 = arith.mulf %783, %757 : vector<16x16xf32>
    %785 = arith.addf %750, %784 : vector<16x16xf32>
    %c143 = arith.constant 143 : index
    %786 = memref.load %arg2[%c143] : memref<144xf32, #tpu.memory_space<smem>>
    %787 = vector.broadcast %786 : f32 to vector<16x16xf32>
    %788 = arith.mulf %787, %757 : vector<16x16xf32>
    %789 = arith.addf %754, %788 : vector<16x16xf32>
    %c0_147 = arith.constant 0 : index
    %790 = memref.load %arg3[%c0_147] : memref<8xf32, #tpu.memory_space<smem>>
    %791 = vector.broadcast %790 : f32 to vector<16x16xf32>
    %792 = arith.addf %761, %791 : vector<16x16xf32>
    %cst_148 = arith.constant 0.000000e+00 : f32
    %793 = vector.broadcast %cst_148 : f32 to vector<16x16xf32>
    %794 = arith.maximumf %792, %793 : vector<16x16xf32>
    %c1_149 = arith.constant 1 : index
    %795 = memref.load %arg3[%c1_149] : memref<8xf32, #tpu.memory_space<smem>>
    %796 = vector.broadcast %795 : f32 to vector<16x16xf32>
    %797 = arith.addf %765, %796 : vector<16x16xf32>
    %cst_150 = arith.constant 0.000000e+00 : f32
    %798 = vector.broadcast %cst_150 : f32 to vector<16x16xf32>
    %799 = arith.maximumf %797, %798 : vector<16x16xf32>
    %c2_151 = arith.constant 2 : index
    %800 = memref.load %arg3[%c2_151] : memref<8xf32, #tpu.memory_space<smem>>
    %801 = vector.broadcast %800 : f32 to vector<16x16xf32>
    %802 = arith.addf %769, %801 : vector<16x16xf32>
    %cst_152 = arith.constant 0.000000e+00 : f32
    %803 = vector.broadcast %cst_152 : f32 to vector<16x16xf32>
    %804 = arith.maximumf %802, %803 : vector<16x16xf32>
    %c3_153 = arith.constant 3 : index
    %805 = memref.load %arg3[%c3_153] : memref<8xf32, #tpu.memory_space<smem>>
    %806 = vector.broadcast %805 : f32 to vector<16x16xf32>
    %807 = arith.addf %773, %806 : vector<16x16xf32>
    %cst_154 = arith.constant 0.000000e+00 : f32
    %808 = vector.broadcast %cst_154 : f32 to vector<16x16xf32>
    %809 = arith.maximumf %807, %808 : vector<16x16xf32>
    %c4_155 = arith.constant 4 : index
    %810 = memref.load %arg3[%c4_155] : memref<8xf32, #tpu.memory_space<smem>>
    %811 = vector.broadcast %810 : f32 to vector<16x16xf32>
    %812 = arith.addf %777, %811 : vector<16x16xf32>
    %cst_156 = arith.constant 0.000000e+00 : f32
    %813 = vector.broadcast %cst_156 : f32 to vector<16x16xf32>
    %814 = arith.maximumf %812, %813 : vector<16x16xf32>
    %c5_157 = arith.constant 5 : index
    %815 = memref.load %arg3[%c5_157] : memref<8xf32, #tpu.memory_space<smem>>
    %816 = vector.broadcast %815 : f32 to vector<16x16xf32>
    %817 = arith.addf %781, %816 : vector<16x16xf32>
    %cst_158 = arith.constant 0.000000e+00 : f32
    %818 = vector.broadcast %cst_158 : f32 to vector<16x16xf32>
    %819 = arith.maximumf %817, %818 : vector<16x16xf32>
    %c6_159 = arith.constant 6 : index
    %820 = memref.load %arg3[%c6_159] : memref<8xf32, #tpu.memory_space<smem>>
    %821 = vector.broadcast %820 : f32 to vector<16x16xf32>
    %822 = arith.addf %785, %821 : vector<16x16xf32>
    %cst_160 = arith.constant 0.000000e+00 : f32
    %823 = vector.broadcast %cst_160 : f32 to vector<16x16xf32>
    %824 = arith.maximumf %822, %823 : vector<16x16xf32>
    %c7_161 = arith.constant 7 : index
    %825 = memref.load %arg3[%c7_161] : memref<8xf32, #tpu.memory_space<smem>>
    %826 = vector.broadcast %825 : f32 to vector<16x16xf32>
    %827 = arith.addf %789, %826 : vector<16x16xf32>
    %cst_162 = arith.constant 0.000000e+00 : f32
    %828 = vector.broadcast %cst_162 : f32 to vector<16x16xf32>
    %829 = arith.maximumf %827, %828 : vector<16x16xf32>
    %cst_163 = arith.constant 0.000000e+00 : f32
    %830 = vector.broadcast %cst_163 : f32 to vector<16x16xf32>
    %cst_164 = arith.constant 0.000000e+00 : f32
    %831 = vector.broadcast %cst_164 : f32 to vector<16x16xf32>
    %832 = arith.truncf %794 : vector<16x16xf32> to vector<16x16xbf16>
    %c0_165 = arith.constant 0 : index
    %c0_166 = arith.constant 0 : index
    %c0_167 = arith.constant 0 : index
    %833 = vector.load %arg12[%c0_165, %c0_166, %c0_167] : memref<2x16x16xbf16, #tpu.memory_space<vmem>>, vector<1x16x16xbf16>
    %834 = vector.shape_cast %833 : vector<1x16x16xbf16> to vector<16x16xbf16>
    %cst_168 = arith.constant dense<0.000000e+00> : vector<16x16xf32>
    %835 = tpu.matmul %832, %834, %cst_168 {dimension_numbers = #tpu.dot_dimension_numbers<[1], [0], [0], [1], [0, 0, 1, 1], [], []>} : vector<16x16xbf16>, vector<16x16xbf16>, vector<16x16xf32> -> vector<16x16xf32>
    %cst_169 = arith.constant 0.000000e+00 : f32
    %836 = vector.broadcast %cst_169 : f32 to vector<1x16xf32>
    %837 = vector.extract_strided_slice %835 {offsets = [0, 0], sizes = [15, 16], strides = [1, 1]} : vector<16x16xf32> to vector<15x16xf32>
    %838 = tpu.concatenate %836, %837 in 0 : vector<1x16xf32>, vector<15x16xf32> -> vector<16x16xf32>
    %c0_170 = arith.constant 0 : index
    %839 = memref.load %arg4[%c0_170] : memref<144xf32, #tpu.memory_space<smem>>
    %840 = vector.broadcast %839 : f32 to vector<16x16xf32>
    %841 = arith.mulf %840, %838 : vector<16x16xf32>
    %842 = arith.addf %830, %841 : vector<16x16xf32>
    %c72_171 = arith.constant 72 : index
    %843 = memref.load %arg4[%c72_171] : memref<144xf32, #tpu.memory_space<smem>>
    %844 = vector.broadcast %843 : f32 to vector<16x16xf32>
    %845 = arith.mulf %844, %838 : vector<16x16xf32>
    %846 = arith.addf %831, %845 : vector<16x16xf32>
    %c3_172 = arith.constant 3 : index
    %847 = memref.load %arg4[%c3_172] : memref<144xf32, #tpu.memory_space<smem>>
    %848 = vector.broadcast %847 : f32 to vector<16x16xf32>
    %849 = arith.mulf %848, %835 : vector<16x16xf32>
    %850 = arith.addf %842, %849 : vector<16x16xf32>
    %c75_173 = arith.constant 75 : index
    %851 = memref.load %arg4[%c75_173] : memref<144xf32, #tpu.memory_space<smem>>
    %852 = vector.broadcast %851 : f32 to vector<16x16xf32>
    %853 = arith.mulf %852, %835 : vector<16x16xf32>
    %854 = arith.addf %846, %853 : vector<16x16xf32>
    %cst_174 = arith.constant 0.000000e+00 : f32
    %855 = vector.broadcast %cst_174 : f32 to vector<1x16xf32>
    %856 = vector.extract_strided_slice %835 {offsets = [1, 0], sizes = [15, 16], strides = [1, 1]} : vector<16x16xf32> to vector<15x16xf32>
    %857 = tpu.concatenate %856, %855 in 0 : vector<15x16xf32>, vector<1x16xf32> -> vector<16x16xf32>
    %c6_175 = arith.constant 6 : index
    %858 = memref.load %arg4[%c6_175] : memref<144xf32, #tpu.memory_space<smem>>
    %859 = vector.broadcast %858 : f32 to vector<16x16xf32>
    %860 = arith.mulf %859, %857 : vector<16x16xf32>
    %861 = arith.addf %850, %860 : vector<16x16xf32>
    %c78_176 = arith.constant 78 : index
    %862 = memref.load %arg4[%c78_176] : memref<144xf32, #tpu.memory_space<smem>>
    %863 = vector.broadcast %862 : f32 to vector<16x16xf32>
    %864 = arith.mulf %863, %857 : vector<16x16xf32>
    %865 = arith.addf %854, %864 : vector<16x16xf32>
    %cst_177 = arith.constant 0.000000e+00 : f32
    %866 = vector.broadcast %cst_177 : f32 to vector<1x16xf32>
    %867 = vector.extract_strided_slice %794 {offsets = [0, 0], sizes = [15, 16], strides = [1, 1]} : vector<16x16xf32> to vector<15x16xf32>
    %868 = tpu.concatenate %866, %867 in 0 : vector<1x16xf32>, vector<15x16xf32> -> vector<16x16xf32>
    %c1_178 = arith.constant 1 : index
    %869 = memref.load %arg4[%c1_178] : memref<144xf32, #tpu.memory_space<smem>>
    %870 = vector.broadcast %869 : f32 to vector<16x16xf32>
    %871 = arith.mulf %870, %868 : vector<16x16xf32>
    %872 = arith.addf %861, %871 : vector<16x16xf32>
    %c73_179 = arith.constant 73 : index
    %873 = memref.load %arg4[%c73_179] : memref<144xf32, #tpu.memory_space<smem>>
    %874 = vector.broadcast %873 : f32 to vector<16x16xf32>
    %875 = arith.mulf %874, %868 : vector<16x16xf32>
    %876 = arith.addf %865, %875 : vector<16x16xf32>
    %c4_180 = arith.constant 4 : index
    %877 = memref.load %arg4[%c4_180] : memref<144xf32, #tpu.memory_space<smem>>
    %878 = vector.broadcast %877 : f32 to vector<16x16xf32>
    %879 = arith.mulf %878, %794 : vector<16x16xf32>
    %880 = arith.addf %872, %879 : vector<16x16xf32>
    %c76_181 = arith.constant 76 : index
    %881 = memref.load %arg4[%c76_181] : memref<144xf32, #tpu.memory_space<smem>>
    %882 = vector.broadcast %881 : f32 to vector<16x16xf32>
    %883 = arith.mulf %882, %794 : vector<16x16xf32>
    %884 = arith.addf %876, %883 : vector<16x16xf32>
    %cst_182 = arith.constant 0.000000e+00 : f32
    %885 = vector.broadcast %cst_182 : f32 to vector<1x16xf32>
    %886 = vector.extract_strided_slice %794 {offsets = [1, 0], sizes = [15, 16], strides = [1, 1]} : vector<16x16xf32> to vector<15x16xf32>
    %887 = tpu.concatenate %886, %885 in 0 : vector<15x16xf32>, vector<1x16xf32> -> vector<16x16xf32>
    %c7_183 = arith.constant 7 : index
    %888 = memref.load %arg4[%c7_183] : memref<144xf32, #tpu.memory_space<smem>>
    %889 = vector.broadcast %888 : f32 to vector<16x16xf32>
    %890 = arith.mulf %889, %887 : vector<16x16xf32>
    %891 = arith.addf %880, %890 : vector<16x16xf32>
    %c79_184 = arith.constant 79 : index
    %892 = memref.load %arg4[%c79_184] : memref<144xf32, #tpu.memory_space<smem>>
    %893 = vector.broadcast %892 : f32 to vector<16x16xf32>
    %894 = arith.mulf %893, %887 : vector<16x16xf32>
    %895 = arith.addf %884, %894 : vector<16x16xf32>
    %896 = arith.truncf %794 : vector<16x16xf32> to vector<16x16xbf16>
    %c1_185 = arith.constant 1 : index
    %c0_186 = arith.constant 0 : index
    %c0_187 = arith.constant 0 : index
    %897 = vector.load %arg12[%c1_185, %c0_186, %c0_187] : memref<2x16x16xbf16, #tpu.memory_space<vmem>>, vector<1x16x16xbf16>
    %898 = vector.shape_cast %897 : vector<1x16x16xbf16> to vector<16x16xbf16>
    %cst_188 = arith.constant dense<0.000000e+00> : vector<16x16xf32>
    %899 = tpu.matmul %896, %898, %cst_188 {dimension_numbers = #tpu.dot_dimension_numbers<[1], [0], [0], [1], [0, 0, 1, 1], [], []>} : vector<16x16xbf16>, vector<16x16xbf16>, vector<16x16xf32> -> vector<16x16xf32>
    %cst_189 = arith.constant 0.000000e+00 : f32
    %900 = vector.broadcast %cst_189 : f32 to vector<1x16xf32>
    %901 = vector.extract_strided_slice %899 {offsets = [0, 0], sizes = [15, 16], strides = [1, 1]} : vector<16x16xf32> to vector<15x16xf32>
    %902 = tpu.concatenate %900, %901 in 0 : vector<1x16xf32>, vector<15x16xf32> -> vector<16x16xf32>
    %c2_190 = arith.constant 2 : index
    %903 = memref.load %arg4[%c2_190] : memref<144xf32, #tpu.memory_space<smem>>
    %904 = vector.broadcast %903 : f32 to vector<16x16xf32>
    %905 = arith.mulf %904, %902 : vector<16x16xf32>
    %906 = arith.addf %891, %905 : vector<16x16xf32>
    %c74_191 = arith.constant 74 : index
    %907 = memref.load %arg4[%c74_191] : memref<144xf32, #tpu.memory_space<smem>>
    %908 = vector.broadcast %907 : f32 to vector<16x16xf32>
    %909 = arith.mulf %908, %902 : vector<16x16xf32>
    %910 = arith.addf %895, %909 : vector<16x16xf32>
    %c5_192 = arith.constant 5 : index
    %911 = memref.load %arg4[%c5_192] : memref<144xf32, #tpu.memory_space<smem>>
    %912 = vector.broadcast %911 : f32 to vector<16x16xf32>
    %913 = arith.mulf %912, %899 : vector<16x16xf32>
    %914 = arith.addf %906, %913 : vector<16x16xf32>
    %c77_193 = arith.constant 77 : index
    %915 = memref.load %arg4[%c77_193] : memref<144xf32, #tpu.memory_space<smem>>
    %916 = vector.broadcast %915 : f32 to vector<16x16xf32>
    %917 = arith.mulf %916, %899 : vector<16x16xf32>
    %918 = arith.addf %910, %917 : vector<16x16xf32>
    %cst_194 = arith.constant 0.000000e+00 : f32
    %919 = vector.broadcast %cst_194 : f32 to vector<1x16xf32>
    %920 = vector.extract_strided_slice %899 {offsets = [1, 0], sizes = [15, 16], strides = [1, 1]} : vector<16x16xf32> to vector<15x16xf32>
    %921 = tpu.concatenate %920, %919 in 0 : vector<15x16xf32>, vector<1x16xf32> -> vector<16x16xf32>
    %c8_195 = arith.constant 8 : index
    %922 = memref.load %arg4[%c8_195] : memref<144xf32, #tpu.memory_space<smem>>
    %923 = vector.broadcast %922 : f32 to vector<16x16xf32>
    %924 = arith.mulf %923, %921 : vector<16x16xf32>
    %925 = arith.addf %914, %924 : vector<16x16xf32>
    %c80_196 = arith.constant 80 : index
    %926 = memref.load %arg4[%c80_196] : memref<144xf32, #tpu.memory_space<smem>>
    %927 = vector.broadcast %926 : f32 to vector<16x16xf32>
    %928 = arith.mulf %927, %921 : vector<16x16xf32>
    %929 = arith.addf %918, %928 : vector<16x16xf32>
    %930 = arith.truncf %799 : vector<16x16xf32> to vector<16x16xbf16>
    %c0_197 = arith.constant 0 : index
    %c0_198 = arith.constant 0 : index
    %c0_199 = arith.constant 0 : index
    %931 = vector.load %arg12[%c0_197, %c0_198, %c0_199] : memref<2x16x16xbf16, #tpu.memory_space<vmem>>, vector<1x16x16xbf16>
    %932 = vector.shape_cast %931 : vector<1x16x16xbf16> to vector<16x16xbf16>
    %cst_200 = arith.constant dense<0.000000e+00> : vector<16x16xf32>
    %933 = tpu.matmul %930, %932, %cst_200 {dimension_numbers = #tpu.dot_dimension_numbers<[1], [0], [0], [1], [0, 0, 1, 1], [], []>} : vector<16x16xbf16>, vector<16x16xbf16>, vector<16x16xf32> -> vector<16x16xf32>
    %cst_201 = arith.constant 0.000000e+00 : f32
    %934 = vector.broadcast %cst_201 : f32 to vector<1x16xf32>
    %935 = vector.extract_strided_slice %933 {offsets = [0, 0], sizes = [15, 16], strides = [1, 1]} : vector<16x16xf32> to vector<15x16xf32>
    %936 = tpu.concatenate %934, %935 in 0 : vector<1x16xf32>, vector<15x16xf32> -> vector<16x16xf32>
    %c9_202 = arith.constant 9 : index
    %937 = memref.load %arg4[%c9_202] : memref<144xf32, #tpu.memory_space<smem>>
    %938 = vector.broadcast %937 : f32 to vector<16x16xf32>
    %939 = arith.mulf %938, %936 : vector<16x16xf32>
    %940 = arith.addf %925, %939 : vector<16x16xf32>
    %c81_203 = arith.constant 81 : index
    %941 = memref.load %arg4[%c81_203] : memref<144xf32, #tpu.memory_space<smem>>
    %942 = vector.broadcast %941 : f32 to vector<16x16xf32>
    %943 = arith.mulf %942, %936 : vector<16x16xf32>
    %944 = arith.addf %929, %943 : vector<16x16xf32>
    %c12_204 = arith.constant 12 : index
    %945 = memref.load %arg4[%c12_204] : memref<144xf32, #tpu.memory_space<smem>>
    %946 = vector.broadcast %945 : f32 to vector<16x16xf32>
    %947 = arith.mulf %946, %933 : vector<16x16xf32>
    %948 = arith.addf %940, %947 : vector<16x16xf32>
    %c84_205 = arith.constant 84 : index
    %949 = memref.load %arg4[%c84_205] : memref<144xf32, #tpu.memory_space<smem>>
    %950 = vector.broadcast %949 : f32 to vector<16x16xf32>
    %951 = arith.mulf %950, %933 : vector<16x16xf32>
    %952 = arith.addf %944, %951 : vector<16x16xf32>
    %cst_206 = arith.constant 0.000000e+00 : f32
    %953 = vector.broadcast %cst_206 : f32 to vector<1x16xf32>
    %954 = vector.extract_strided_slice %933 {offsets = [1, 0], sizes = [15, 16], strides = [1, 1]} : vector<16x16xf32> to vector<15x16xf32>
    %955 = tpu.concatenate %954, %953 in 0 : vector<15x16xf32>, vector<1x16xf32> -> vector<16x16xf32>
    %c15_207 = arith.constant 15 : index
    %956 = memref.load %arg4[%c15_207] : memref<144xf32, #tpu.memory_space<smem>>
    %957 = vector.broadcast %956 : f32 to vector<16x16xf32>
    %958 = arith.mulf %957, %955 : vector<16x16xf32>
    %959 = arith.addf %948, %958 : vector<16x16xf32>
    %c87_208 = arith.constant 87 : index
    %960 = memref.load %arg4[%c87_208] : memref<144xf32, #tpu.memory_space<smem>>
    %961 = vector.broadcast %960 : f32 to vector<16x16xf32>
    %962 = arith.mulf %961, %955 : vector<16x16xf32>
    %963 = arith.addf %952, %962 : vector<16x16xf32>
    %cst_209 = arith.constant 0.000000e+00 : f32
    %964 = vector.broadcast %cst_209 : f32 to vector<1x16xf32>
    %965 = vector.extract_strided_slice %799 {offsets = [0, 0], sizes = [15, 16], strides = [1, 1]} : vector<16x16xf32> to vector<15x16xf32>
    %966 = tpu.concatenate %964, %965 in 0 : vector<1x16xf32>, vector<15x16xf32> -> vector<16x16xf32>
    %c10_210 = arith.constant 10 : index
    %967 = memref.load %arg4[%c10_210] : memref<144xf32, #tpu.memory_space<smem>>
    %968 = vector.broadcast %967 : f32 to vector<16x16xf32>
    %969 = arith.mulf %968, %966 : vector<16x16xf32>
    %970 = arith.addf %959, %969 : vector<16x16xf32>
    %c82_211 = arith.constant 82 : index
    %971 = memref.load %arg4[%c82_211] : memref<144xf32, #tpu.memory_space<smem>>
    %972 = vector.broadcast %971 : f32 to vector<16x16xf32>
    %973 = arith.mulf %972, %966 : vector<16x16xf32>
    %974 = arith.addf %963, %973 : vector<16x16xf32>
    %c13_212 = arith.constant 13 : index
    %975 = memref.load %arg4[%c13_212] : memref<144xf32, #tpu.memory_space<smem>>
    %976 = vector.broadcast %975 : f32 to vector<16x16xf32>
    %977 = arith.mulf %976, %799 : vector<16x16xf32>
    %978 = arith.addf %970, %977 : vector<16x16xf32>
    %c85_213 = arith.constant 85 : index
    %979 = memref.load %arg4[%c85_213] : memref<144xf32, #tpu.memory_space<smem>>
    %980 = vector.broadcast %979 : f32 to vector<16x16xf32>
    %981 = arith.mulf %980, %799 : vector<16x16xf32>
    %982 = arith.addf %974, %981 : vector<16x16xf32>
    %cst_214 = arith.constant 0.000000e+00 : f32
    %983 = vector.broadcast %cst_214 : f32 to vector<1x16xf32>
    %984 = vector.extract_strided_slice %799 {offsets = [1, 0], sizes = [15, 16], strides = [1, 1]} : vector<16x16xf32> to vector<15x16xf32>
    %985 = tpu.concatenate %984, %983 in 0 : vector<15x16xf32>, vector<1x16xf32> -> vector<16x16xf32>
    %c16_215 = arith.constant 16 : index
    %986 = memref.load %arg4[%c16_215] : memref<144xf32, #tpu.memory_space<smem>>
    %987 = vector.broadcast %986 : f32 to vector<16x16xf32>
    %988 = arith.mulf %987, %985 : vector<16x16xf32>
    %989 = arith.addf %978, %988 : vector<16x16xf32>
    %c88_216 = arith.constant 88 : index
    %990 = memref.load %arg4[%c88_216] : memref<144xf32, #tpu.memory_space<smem>>
    %991 = vector.broadcast %990 : f32 to vector<16x16xf32>
    %992 = arith.mulf %991, %985 : vector<16x16xf32>
    %993 = arith.addf %982, %992 : vector<16x16xf32>
    %994 = arith.truncf %799 : vector<16x16xf32> to vector<16x16xbf16>
    %c1_217 = arith.constant 1 : index
    %c0_218 = arith.constant 0 : index
    %c0_219 = arith.constant 0 : index
    %995 = vector.load %arg12[%c1_217, %c0_218, %c0_219] : memref<2x16x16xbf16, #tpu.memory_space<vmem>>, vector<1x16x16xbf16>
    %996 = vector.shape_cast %995 : vector<1x16x16xbf16> to vector<16x16xbf16>
    %cst_220 = arith.constant dense<0.000000e+00> : vector<16x16xf32>
    %997 = tpu.matmul %994, %996, %cst_220 {dimension_numbers = #tpu.dot_dimension_numbers<[1], [0], [0], [1], [0, 0, 1, 1], [], []>} : vector<16x16xbf16>, vector<16x16xbf16>, vector<16x16xf32> -> vector<16x16xf32>
    %cst_221 = arith.constant 0.000000e+00 : f32
    %998 = vector.broadcast %cst_221 : f32 to vector<1x16xf32>
    %999 = vector.extract_strided_slice %997 {offsets = [0, 0], sizes = [15, 16], strides = [1, 1]} : vector<16x16xf32> to vector<15x16xf32>
    %1000 = tpu.concatenate %998, %999 in 0 : vector<1x16xf32>, vector<15x16xf32> -> vector<16x16xf32>
    %c11_222 = arith.constant 11 : index
    %1001 = memref.load %arg4[%c11_222] : memref<144xf32, #tpu.memory_space<smem>>
    %1002 = vector.broadcast %1001 : f32 to vector<16x16xf32>
    %1003 = arith.mulf %1002, %1000 : vector<16x16xf32>
    %1004 = arith.addf %989, %1003 : vector<16x16xf32>
    %c83_223 = arith.constant 83 : index
    %1005 = memref.load %arg4[%c83_223] : memref<144xf32, #tpu.memory_space<smem>>
    %1006 = vector.broadcast %1005 : f32 to vector<16x16xf32>
    %1007 = arith.mulf %1006, %1000 : vector<16x16xf32>
    %1008 = arith.addf %993, %1007 : vector<16x16xf32>
    %c14_224 = arith.constant 14 : index
    %1009 = memref.load %arg4[%c14_224] : memref<144xf32, #tpu.memory_space<smem>>
    %1010 = vector.broadcast %1009 : f32 to vector<16x16xf32>
    %1011 = arith.mulf %1010, %997 : vector<16x16xf32>
    %1012 = arith.addf %1004, %1011 : vector<16x16xf32>
    %c86_225 = arith.constant 86 : index
    %1013 = memref.load %arg4[%c86_225] : memref<144xf32, #tpu.memory_space<smem>>
    %1014 = vector.broadcast %1013 : f32 to vector<16x16xf32>
    %1015 = arith.mulf %1014, %997 : vector<16x16xf32>
    %1016 = arith.addf %1008, %1015 : vector<16x16xf32>
    %cst_226 = arith.constant 0.000000e+00 : f32
    %1017 = vector.broadcast %cst_226 : f32 to vector<1x16xf32>
    %1018 = vector.extract_strided_slice %997 {offsets = [1, 0], sizes = [15, 16], strides = [1, 1]} : vector<16x16xf32> to vector<15x16xf32>
    %1019 = tpu.concatenate %1018, %1017 in 0 : vector<15x16xf32>, vector<1x16xf32> -> vector<16x16xf32>
    %c17_227 = arith.constant 17 : index
    %1020 = memref.load %arg4[%c17_227] : memref<144xf32, #tpu.memory_space<smem>>
    %1021 = vector.broadcast %1020 : f32 to vector<16x16xf32>
    %1022 = arith.mulf %1021, %1019 : vector<16x16xf32>
    %1023 = arith.addf %1012, %1022 : vector<16x16xf32>
    %c89_228 = arith.constant 89 : index
    %1024 = memref.load %arg4[%c89_228] : memref<144xf32, #tpu.memory_space<smem>>
    %1025 = vector.broadcast %1024 : f32 to vector<16x16xf32>
    %1026 = arith.mulf %1025, %1019 : vector<16x16xf32>
    %1027 = arith.addf %1016, %1026 : vector<16x16xf32>
    %1028 = arith.truncf %804 : vector<16x16xf32> to vector<16x16xbf16>
    %c0_229 = arith.constant 0 : index
    %c0_230 = arith.constant 0 : index
    %c0_231 = arith.constant 0 : index
    %1029 = vector.load %arg12[%c0_229, %c0_230, %c0_231] : memref<2x16x16xbf16, #tpu.memory_space<vmem>>, vector<1x16x16xbf16>
    %1030 = vector.shape_cast %1029 : vector<1x16x16xbf16> to vector<16x16xbf16>
    %cst_232 = arith.constant dense<0.000000e+00> : vector<16x16xf32>
    %1031 = tpu.matmul %1028, %1030, %cst_232 {dimension_numbers = #tpu.dot_dimension_numbers<[1], [0], [0], [1], [0, 0, 1, 1], [], []>} : vector<16x16xbf16>, vector<16x16xbf16>, vector<16x16xf32> -> vector<16x16xf32>
    %cst_233 = arith.constant 0.000000e+00 : f32
    %1032 = vector.broadcast %cst_233 : f32 to vector<1x16xf32>
    %1033 = vector.extract_strided_slice %1031 {offsets = [0, 0], sizes = [15, 16], strides = [1, 1]} : vector<16x16xf32> to vector<15x16xf32>
    %1034 = tpu.concatenate %1032, %1033 in 0 : vector<1x16xf32>, vector<15x16xf32> -> vector<16x16xf32>
    %c18_234 = arith.constant 18 : index
    %1035 = memref.load %arg4[%c18_234] : memref<144xf32, #tpu.memory_space<smem>>
    %1036 = vector.broadcast %1035 : f32 to vector<16x16xf32>
    %1037 = arith.mulf %1036, %1034 : vector<16x16xf32>
    %1038 = arith.addf %1023, %1037 : vector<16x16xf32>
    %c90_235 = arith.constant 90 : index
    %1039 = memref.load %arg4[%c90_235] : memref<144xf32, #tpu.memory_space<smem>>
    %1040 = vector.broadcast %1039 : f32 to vector<16x16xf32>
    %1041 = arith.mulf %1040, %1034 : vector<16x16xf32>
    %1042 = arith.addf %1027, %1041 : vector<16x16xf32>
    %c21_236 = arith.constant 21 : index
    %1043 = memref.load %arg4[%c21_236] : memref<144xf32, #tpu.memory_space<smem>>
    %1044 = vector.broadcast %1043 : f32 to vector<16x16xf32>
    %1045 = arith.mulf %1044, %1031 : vector<16x16xf32>
    %1046 = arith.addf %1038, %1045 : vector<16x16xf32>
    %c93_237 = arith.constant 93 : index
    %1047 = memref.load %arg4[%c93_237] : memref<144xf32, #tpu.memory_space<smem>>
    %1048 = vector.broadcast %1047 : f32 to vector<16x16xf32>
    %1049 = arith.mulf %1048, %1031 : vector<16x16xf32>
    %1050 = arith.addf %1042, %1049 : vector<16x16xf32>
    %cst_238 = arith.constant 0.000000e+00 : f32
    %1051 = vector.broadcast %cst_238 : f32 to vector<1x16xf32>
    %1052 = vector.extract_strided_slice %1031 {offsets = [1, 0], sizes = [15, 16], strides = [1, 1]} : vector<16x16xf32> to vector<15x16xf32>
    %1053 = tpu.concatenate %1052, %1051 in 0 : vector<15x16xf32>, vector<1x16xf32> -> vector<16x16xf32>
    %c24_239 = arith.constant 24 : index
    %1054 = memref.load %arg4[%c24_239] : memref<144xf32, #tpu.memory_space<smem>>
    %1055 = vector.broadcast %1054 : f32 to vector<16x16xf32>
    %1056 = arith.mulf %1055, %1053 : vector<16x16xf32>
    %1057 = arith.addf %1046, %1056 : vector<16x16xf32>
    %c96_240 = arith.constant 96 : index
    %1058 = memref.load %arg4[%c96_240] : memref<144xf32, #tpu.memory_space<smem>>
    %1059 = vector.broadcast %1058 : f32 to vector<16x16xf32>
    %1060 = arith.mulf %1059, %1053 : vector<16x16xf32>
    %1061 = arith.addf %1050, %1060 : vector<16x16xf32>
    %cst_241 = arith.constant 0.000000e+00 : f32
    %1062 = vector.broadcast %cst_241 : f32 to vector<1x16xf32>
    %1063 = vector.extract_strided_slice %804 {offsets = [0, 0], sizes = [15, 16], strides = [1, 1]} : vector<16x16xf32> to vector<15x16xf32>
    %1064 = tpu.concatenate %1062, %1063 in 0 : vector<1x16xf32>, vector<15x16xf32> -> vector<16x16xf32>
    %c19_242 = arith.constant 19 : index
    %1065 = memref.load %arg4[%c19_242] : memref<144xf32, #tpu.memory_space<smem>>
    %1066 = vector.broadcast %1065 : f32 to vector<16x16xf32>
    %1067 = arith.mulf %1066, %1064 : vector<16x16xf32>
    %1068 = arith.addf %1057, %1067 : vector<16x16xf32>
    %c91_243 = arith.constant 91 : index
    %1069 = memref.load %arg4[%c91_243] : memref<144xf32, #tpu.memory_space<smem>>
    %1070 = vector.broadcast %1069 : f32 to vector<16x16xf32>
    %1071 = arith.mulf %1070, %1064 : vector<16x16xf32>
    %1072 = arith.addf %1061, %1071 : vector<16x16xf32>
    %c22_244 = arith.constant 22 : index
    %1073 = memref.load %arg4[%c22_244] : memref<144xf32, #tpu.memory_space<smem>>
    %1074 = vector.broadcast %1073 : f32 to vector<16x16xf32>
    %1075 = arith.mulf %1074, %804 : vector<16x16xf32>
    %1076 = arith.addf %1068, %1075 : vector<16x16xf32>
    %c94_245 = arith.constant 94 : index
    %1077 = memref.load %arg4[%c94_245] : memref<144xf32, #tpu.memory_space<smem>>
    %1078 = vector.broadcast %1077 : f32 to vector<16x16xf32>
    %1079 = arith.mulf %1078, %804 : vector<16x16xf32>
    %1080 = arith.addf %1072, %1079 : vector<16x16xf32>
    %cst_246 = arith.constant 0.000000e+00 : f32
    %1081 = vector.broadcast %cst_246 : f32 to vector<1x16xf32>
    %1082 = vector.extract_strided_slice %804 {offsets = [1, 0], sizes = [15, 16], strides = [1, 1]} : vector<16x16xf32> to vector<15x16xf32>
    %1083 = tpu.concatenate %1082, %1081 in 0 : vector<15x16xf32>, vector<1x16xf32> -> vector<16x16xf32>
    %c25_247 = arith.constant 25 : index
    %1084 = memref.load %arg4[%c25_247] : memref<144xf32, #tpu.memory_space<smem>>
    %1085 = vector.broadcast %1084 : f32 to vector<16x16xf32>
    %1086 = arith.mulf %1085, %1083 : vector<16x16xf32>
    %1087 = arith.addf %1076, %1086 : vector<16x16xf32>
    %c97_248 = arith.constant 97 : index
    %1088 = memref.load %arg4[%c97_248] : memref<144xf32, #tpu.memory_space<smem>>
    %1089 = vector.broadcast %1088 : f32 to vector<16x16xf32>
    %1090 = arith.mulf %1089, %1083 : vector<16x16xf32>
    %1091 = arith.addf %1080, %1090 : vector<16x16xf32>
    %1092 = arith.truncf %804 : vector<16x16xf32> to vector<16x16xbf16>
    %c1_249 = arith.constant 1 : index
    %c0_250 = arith.constant 0 : index
    %c0_251 = arith.constant 0 : index
    %1093 = vector.load %arg12[%c1_249, %c0_250, %c0_251] : memref<2x16x16xbf16, #tpu.memory_space<vmem>>, vector<1x16x16xbf16>
    %1094 = vector.shape_cast %1093 : vector<1x16x16xbf16> to vector<16x16xbf16>
    %cst_252 = arith.constant dense<0.000000e+00> : vector<16x16xf32>
    %1095 = tpu.matmul %1092, %1094, %cst_252 {dimension_numbers = #tpu.dot_dimension_numbers<[1], [0], [0], [1], [0, 0, 1, 1], [], []>} : vector<16x16xbf16>, vector<16x16xbf16>, vector<16x16xf32> -> vector<16x16xf32>
    %cst_253 = arith.constant 0.000000e+00 : f32
    %1096 = vector.broadcast %cst_253 : f32 to vector<1x16xf32>
    %1097 = vector.extract_strided_slice %1095 {offsets = [0, 0], sizes = [15, 16], strides = [1, 1]} : vector<16x16xf32> to vector<15x16xf32>
    %1098 = tpu.concatenate %1096, %1097 in 0 : vector<1x16xf32>, vector<15x16xf32> -> vector<16x16xf32>
    %c20_254 = arith.constant 20 : index
    %1099 = memref.load %arg4[%c20_254] : memref<144xf32, #tpu.memory_space<smem>>
    %1100 = vector.broadcast %1099 : f32 to vector<16x16xf32>
    %1101 = arith.mulf %1100, %1098 : vector<16x16xf32>
    %1102 = arith.addf %1087, %1101 : vector<16x16xf32>
    %c92_255 = arith.constant 92 : index
    %1103 = memref.load %arg4[%c92_255] : memref<144xf32, #tpu.memory_space<smem>>
    %1104 = vector.broadcast %1103 : f32 to vector<16x16xf32>
    %1105 = arith.mulf %1104, %1098 : vector<16x16xf32>
    %1106 = arith.addf %1091, %1105 : vector<16x16xf32>
    %c23_256 = arith.constant 23 : index
    %1107 = memref.load %arg4[%c23_256] : memref<144xf32, #tpu.memory_space<smem>>
    %1108 = vector.broadcast %1107 : f32 to vector<16x16xf32>
    %1109 = arith.mulf %1108, %1095 : vector<16x16xf32>
    %1110 = arith.addf %1102, %1109 : vector<16x16xf32>
    %c95_257 = arith.constant 95 : index
    %1111 = memref.load %arg4[%c95_257] : memref<144xf32, #tpu.memory_space<smem>>
    %1112 = vector.broadcast %1111 : f32 to vector<16x16xf32>
    %1113 = arith.mulf %1112, %1095 : vector<16x16xf32>
    %1114 = arith.addf %1106, %1113 : vector<16x16xf32>
    %cst_258 = arith.constant 0.000000e+00 : f32
    %1115 = vector.broadcast %cst_258 : f32 to vector<1x16xf32>
    %1116 = vector.extract_strided_slice %1095 {offsets = [1, 0], sizes = [15, 16], strides = [1, 1]} : vector<16x16xf32> to vector<15x16xf32>
    %1117 = tpu.concatenate %1116, %1115 in 0 : vector<15x16xf32>, vector<1x16xf32> -> vector<16x16xf32>
    %c26_259 = arith.constant 26 : index
    %1118 = memref.load %arg4[%c26_259] : memref<144xf32, #tpu.memory_space<smem>>
    %1119 = vector.broadcast %1118 : f32 to vector<16x16xf32>
    %1120 = arith.mulf %1119, %1117 : vector<16x16xf32>
    %1121 = arith.addf %1110, %1120 : vector<16x16xf32>
    %c98_260 = arith.constant 98 : index
    %1122 = memref.load %arg4[%c98_260] : memref<144xf32, #tpu.memory_space<smem>>
    %1123 = vector.broadcast %1122 : f32 to vector<16x16xf32>
    %1124 = arith.mulf %1123, %1117 : vector<16x16xf32>
    %1125 = arith.addf %1114, %1124 : vector<16x16xf32>
    %1126 = arith.truncf %809 : vector<16x16xf32> to vector<16x16xbf16>
    %c0_261 = arith.constant 0 : index
    %c0_262 = arith.constant 0 : index
    %c0_263 = arith.constant 0 : index
    %1127 = vector.load %arg12[%c0_261, %c0_262, %c0_263] : memref<2x16x16xbf16, #tpu.memory_space<vmem>>, vector<1x16x16xbf16>
    %1128 = vector.shape_cast %1127 : vector<1x16x16xbf16> to vector<16x16xbf16>
    %cst_264 = arith.constant dense<0.000000e+00> : vector<16x16xf32>
    %1129 = tpu.matmul %1126, %1128, %cst_264 {dimension_numbers = #tpu.dot_dimension_numbers<[1], [0], [0], [1], [0, 0, 1, 1], [], []>} : vector<16x16xbf16>, vector<16x16xbf16>, vector<16x16xf32> -> vector<16x16xf32>
    %cst_265 = arith.constant 0.000000e+00 : f32
    %1130 = vector.broadcast %cst_265 : f32 to vector<1x16xf32>
    %1131 = vector.extract_strided_slice %1129 {offsets = [0, 0], sizes = [15, 16], strides = [1, 1]} : vector<16x16xf32> to vector<15x16xf32>
    %1132 = tpu.concatenate %1130, %1131 in 0 : vector<1x16xf32>, vector<15x16xf32> -> vector<16x16xf32>
    %c27_266 = arith.constant 27 : index
    %1133 = memref.load %arg4[%c27_266] : memref<144xf32, #tpu.memory_space<smem>>
    %1134 = vector.broadcast %1133 : f32 to vector<16x16xf32>
    %1135 = arith.mulf %1134, %1132 : vector<16x16xf32>
    %1136 = arith.addf %1121, %1135 : vector<16x16xf32>
    %c99_267 = arith.constant 99 : index
    %1137 = memref.load %arg4[%c99_267] : memref<144xf32, #tpu.memory_space<smem>>
    %1138 = vector.broadcast %1137 : f32 to vector<16x16xf32>
    %1139 = arith.mulf %1138, %1132 : vector<16x16xf32>
    %1140 = arith.addf %1125, %1139 : vector<16x16xf32>
    %c30_268 = arith.constant 30 : index
    %1141 = memref.load %arg4[%c30_268] : memref<144xf32, #tpu.memory_space<smem>>
    %1142 = vector.broadcast %1141 : f32 to vector<16x16xf32>
    %1143 = arith.mulf %1142, %1129 : vector<16x16xf32>
    %1144 = arith.addf %1136, %1143 : vector<16x16xf32>
    %c102_269 = arith.constant 102 : index
    %1145 = memref.load %arg4[%c102_269] : memref<144xf32, #tpu.memory_space<smem>>
    %1146 = vector.broadcast %1145 : f32 to vector<16x16xf32>
    %1147 = arith.mulf %1146, %1129 : vector<16x16xf32>
    %1148 = arith.addf %1140, %1147 : vector<16x16xf32>
    %cst_270 = arith.constant 0.000000e+00 : f32
    %1149 = vector.broadcast %cst_270 : f32 to vector<1x16xf32>
    %1150 = vector.extract_strided_slice %1129 {offsets = [1, 0], sizes = [15, 16], strides = [1, 1]} : vector<16x16xf32> to vector<15x16xf32>
    %1151 = tpu.concatenate %1150, %1149 in 0 : vector<15x16xf32>, vector<1x16xf32> -> vector<16x16xf32>
    %c33_271 = arith.constant 33 : index
    %1152 = memref.load %arg4[%c33_271] : memref<144xf32, #tpu.memory_space<smem>>
    %1153 = vector.broadcast %1152 : f32 to vector<16x16xf32>
    %1154 = arith.mulf %1153, %1151 : vector<16x16xf32>
    %1155 = arith.addf %1144, %1154 : vector<16x16xf32>
    %c105_272 = arith.constant 105 : index
    %1156 = memref.load %arg4[%c105_272] : memref<144xf32, #tpu.memory_space<smem>>
    %1157 = vector.broadcast %1156 : f32 to vector<16x16xf32>
    %1158 = arith.mulf %1157, %1151 : vector<16x16xf32>
    %1159 = arith.addf %1148, %1158 : vector<16x16xf32>
    %cst_273 = arith.constant 0.000000e+00 : f32
    %1160 = vector.broadcast %cst_273 : f32 to vector<1x16xf32>
    %1161 = vector.extract_strided_slice %809 {offsets = [0, 0], sizes = [15, 16], strides = [1, 1]} : vector<16x16xf32> to vector<15x16xf32>
    %1162 = tpu.concatenate %1160, %1161 in 0 : vector<1x16xf32>, vector<15x16xf32> -> vector<16x16xf32>
    %c28_274 = arith.constant 28 : index
    %1163 = memref.load %arg4[%c28_274] : memref<144xf32, #tpu.memory_space<smem>>
    %1164 = vector.broadcast %1163 : f32 to vector<16x16xf32>
    %1165 = arith.mulf %1164, %1162 : vector<16x16xf32>
    %1166 = arith.addf %1155, %1165 : vector<16x16xf32>
    %c100_275 = arith.constant 100 : index
    %1167 = memref.load %arg4[%c100_275] : memref<144xf32, #tpu.memory_space<smem>>
    %1168 = vector.broadcast %1167 : f32 to vector<16x16xf32>
    %1169 = arith.mulf %1168, %1162 : vector<16x16xf32>
    %1170 = arith.addf %1159, %1169 : vector<16x16xf32>
    %c31_276 = arith.constant 31 : index
    %1171 = memref.load %arg4[%c31_276] : memref<144xf32, #tpu.memory_space<smem>>
    %1172 = vector.broadcast %1171 : f32 to vector<16x16xf32>
    %1173 = arith.mulf %1172, %809 : vector<16x16xf32>
    %1174 = arith.addf %1166, %1173 : vector<16x16xf32>
    %c103_277 = arith.constant 103 : index
    %1175 = memref.load %arg4[%c103_277] : memref<144xf32, #tpu.memory_space<smem>>
    %1176 = vector.broadcast %1175 : f32 to vector<16x16xf32>
    %1177 = arith.mulf %1176, %809 : vector<16x16xf32>
    %1178 = arith.addf %1170, %1177 : vector<16x16xf32>
    %cst_278 = arith.constant 0.000000e+00 : f32
    %1179 = vector.broadcast %cst_278 : f32 to vector<1x16xf32>
    %1180 = vector.extract_strided_slice %809 {offsets = [1, 0], sizes = [15, 16], strides = [1, 1]} : vector<16x16xf32> to vector<15x16xf32>
    %1181 = tpu.concatenate %1180, %1179 in 0 : vector<15x16xf32>, vector<1x16xf32> -> vector<16x16xf32>
    %c34_279 = arith.constant 34 : index
    %1182 = memref.load %arg4[%c34_279] : memref<144xf32, #tpu.memory_space<smem>>
    %1183 = vector.broadcast %1182 : f32 to vector<16x16xf32>
    %1184 = arith.mulf %1183, %1181 : vector<16x16xf32>
    %1185 = arith.addf %1174, %1184 : vector<16x16xf32>
    %c106_280 = arith.constant 106 : index
    %1186 = memref.load %arg4[%c106_280] : memref<144xf32, #tpu.memory_space<smem>>
    %1187 = vector.broadcast %1186 : f32 to vector<16x16xf32>
    %1188 = arith.mulf %1187, %1181 : vector<16x16xf32>
    %1189 = arith.addf %1178, %1188 : vector<16x16xf32>
    %1190 = arith.truncf %809 : vector<16x16xf32> to vector<16x16xbf16>
    %c1_281 = arith.constant 1 : index
    %c0_282 = arith.constant 0 : index
    %c0_283 = arith.constant 0 : index
    %1191 = vector.load %arg12[%c1_281, %c0_282, %c0_283] : memref<2x16x16xbf16, #tpu.memory_space<vmem>>, vector<1x16x16xbf16>
    %1192 = vector.shape_cast %1191 : vector<1x16x16xbf16> to vector<16x16xbf16>
    %cst_284 = arith.constant dense<0.000000e+00> : vector<16x16xf32>
    %1193 = tpu.matmul %1190, %1192, %cst_284 {dimension_numbers = #tpu.dot_dimension_numbers<[1], [0], [0], [1], [0, 0, 1, 1], [], []>} : vector<16x16xbf16>, vector<16x16xbf16>, vector<16x16xf32> -> vector<16x16xf32>
    %cst_285 = arith.constant 0.000000e+00 : f32
    %1194 = vector.broadcast %cst_285 : f32 to vector<1x16xf32>
    %1195 = vector.extract_strided_slice %1193 {offsets = [0, 0], sizes = [15, 16], strides = [1, 1]} : vector<16x16xf32> to vector<15x16xf32>
    %1196 = tpu.concatenate %1194, %1195 in 0 : vector<1x16xf32>, vector<15x16xf32> -> vector<16x16xf32>
    %c29_286 = arith.constant 29 : index
    %1197 = memref.load %arg4[%c29_286] : memref<144xf32, #tpu.memory_space<smem>>
    %1198 = vector.broadcast %1197 : f32 to vector<16x16xf32>
    %1199 = arith.mulf %1198, %1196 : vector<16x16xf32>
    %1200 = arith.addf %1185, %1199 : vector<16x16xf32>
    %c101_287 = arith.constant 101 : index
    %1201 = memref.load %arg4[%c101_287] : memref<144xf32, #tpu.memory_space<smem>>
    %1202 = vector.broadcast %1201 : f32 to vector<16x16xf32>
    %1203 = arith.mulf %1202, %1196 : vector<16x16xf32>
    %1204 = arith.addf %1189, %1203 : vector<16x16xf32>
    %c32_288 = arith.constant 32 : index
    %1205 = memref.load %arg4[%c32_288] : memref<144xf32, #tpu.memory_space<smem>>
    %1206 = vector.broadcast %1205 : f32 to vector<16x16xf32>
    %1207 = arith.mulf %1206, %1193 : vector<16x16xf32>
    %1208 = arith.addf %1200, %1207 : vector<16x16xf32>
    %c104_289 = arith.constant 104 : index
    %1209 = memref.load %arg4[%c104_289] : memref<144xf32, #tpu.memory_space<smem>>
    %1210 = vector.broadcast %1209 : f32 to vector<16x16xf32>
    %1211 = arith.mulf %1210, %1193 : vector<16x16xf32>
    %1212 = arith.addf %1204, %1211 : vector<16x16xf32>
    %cst_290 = arith.constant 0.000000e+00 : f32
    %1213 = vector.broadcast %cst_290 : f32 to vector<1x16xf32>
    %1214 = vector.extract_strided_slice %1193 {offsets = [1, 0], sizes = [15, 16], strides = [1, 1]} : vector<16x16xf32> to vector<15x16xf32>
    %1215 = tpu.concatenate %1214, %1213 in 0 : vector<15x16xf32>, vector<1x16xf32> -> vector<16x16xf32>
    %c35_291 = arith.constant 35 : index
    %1216 = memref.load %arg4[%c35_291] : memref<144xf32, #tpu.memory_space<smem>>
    %1217 = vector.broadcast %1216 : f32 to vector<16x16xf32>
    %1218 = arith.mulf %1217, %1215 : vector<16x16xf32>
    %1219 = arith.addf %1208, %1218 : vector<16x16xf32>
    %c107_292 = arith.constant 107 : index
    %1220 = memref.load %arg4[%c107_292] : memref<144xf32, #tpu.memory_space<smem>>
    %1221 = vector.broadcast %1220 : f32 to vector<16x16xf32>
    %1222 = arith.mulf %1221, %1215 : vector<16x16xf32>
    %1223 = arith.addf %1212, %1222 : vector<16x16xf32>
    %1224 = arith.truncf %814 : vector<16x16xf32> to vector<16x16xbf16>
    %c0_293 = arith.constant 0 : index
    %c0_294 = arith.constant 0 : index
    %c0_295 = arith.constant 0 : index
    %1225 = vector.load %arg12[%c0_293, %c0_294, %c0_295] : memref<2x16x16xbf16, #tpu.memory_space<vmem>>, vector<1x16x16xbf16>
    %1226 = vector.shape_cast %1225 : vector<1x16x16xbf16> to vector<16x16xbf16>
    %cst_296 = arith.constant dense<0.000000e+00> : vector<16x16xf32>
    %1227 = tpu.matmul %1224, %1226, %cst_296 {dimension_numbers = #tpu.dot_dimension_numbers<[1], [0], [0], [1], [0, 0, 1, 1], [], []>} : vector<16x16xbf16>, vector<16x16xbf16>, vector<16x16xf32> -> vector<16x16xf32>
    %cst_297 = arith.constant 0.000000e+00 : f32
    %1228 = vector.broadcast %cst_297 : f32 to vector<1x16xf32>
    %1229 = vector.extract_strided_slice %1227 {offsets = [0, 0], sizes = [15, 16], strides = [1, 1]} : vector<16x16xf32> to vector<15x16xf32>
    %1230 = tpu.concatenate %1228, %1229 in 0 : vector<1x16xf32>, vector<15x16xf32> -> vector<16x16xf32>
    %c36_298 = arith.constant 36 : index
    %1231 = memref.load %arg4[%c36_298] : memref<144xf32, #tpu.memory_space<smem>>
    %1232 = vector.broadcast %1231 : f32 to vector<16x16xf32>
    %1233 = arith.mulf %1232, %1230 : vector<16x16xf32>
    %1234 = arith.addf %1219, %1233 : vector<16x16xf32>
    %c108_299 = arith.constant 108 : index
    %1235 = memref.load %arg4[%c108_299] : memref<144xf32, #tpu.memory_space<smem>>
    %1236 = vector.broadcast %1235 : f32 to vector<16x16xf32>
    %1237 = arith.mulf %1236, %1230 : vector<16x16xf32>
    %1238 = arith.addf %1223, %1237 : vector<16x16xf32>
    %c39_300 = arith.constant 39 : index
    %1239 = memref.load %arg4[%c39_300] : memref<144xf32, #tpu.memory_space<smem>>
    %1240 = vector.broadcast %1239 : f32 to vector<16x16xf32>
    %1241 = arith.mulf %1240, %1227 : vector<16x16xf32>
    %1242 = arith.addf %1234, %1241 : vector<16x16xf32>
    %c111_301 = arith.constant 111 : index
    %1243 = memref.load %arg4[%c111_301] : memref<144xf32, #tpu.memory_space<smem>>
    %1244 = vector.broadcast %1243 : f32 to vector<16x16xf32>
    %1245 = arith.mulf %1244, %1227 : vector<16x16xf32>
    %1246 = arith.addf %1238, %1245 : vector<16x16xf32>
    %cst_302 = arith.constant 0.000000e+00 : f32
    %1247 = vector.broadcast %cst_302 : f32 to vector<1x16xf32>
    %1248 = vector.extract_strided_slice %1227 {offsets = [1, 0], sizes = [15, 16], strides = [1, 1]} : vector<16x16xf32> to vector<15x16xf32>
    %1249 = tpu.concatenate %1248, %1247 in 0 : vector<15x16xf32>, vector<1x16xf32> -> vector<16x16xf32>
    %c42_303 = arith.constant 42 : index
    %1250 = memref.load %arg4[%c42_303] : memref<144xf32, #tpu.memory_space<smem>>
    %1251 = vector.broadcast %1250 : f32 to vector<16x16xf32>
    %1252 = arith.mulf %1251, %1249 : vector<16x16xf32>
    %1253 = arith.addf %1242, %1252 : vector<16x16xf32>
    %c114_304 = arith.constant 114 : index
    %1254 = memref.load %arg4[%c114_304] : memref<144xf32, #tpu.memory_space<smem>>
    %1255 = vector.broadcast %1254 : f32 to vector<16x16xf32>
    %1256 = arith.mulf %1255, %1249 : vector<16x16xf32>
    %1257 = arith.addf %1246, %1256 : vector<16x16xf32>
    %cst_305 = arith.constant 0.000000e+00 : f32
    %1258 = vector.broadcast %cst_305 : f32 to vector<1x16xf32>
    %1259 = vector.extract_strided_slice %814 {offsets = [0, 0], sizes = [15, 16], strides = [1, 1]} : vector<16x16xf32> to vector<15x16xf32>
    %1260 = tpu.concatenate %1258, %1259 in 0 : vector<1x16xf32>, vector<15x16xf32> -> vector<16x16xf32>
    %c37_306 = arith.constant 37 : index
    %1261 = memref.load %arg4[%c37_306] : memref<144xf32, #tpu.memory_space<smem>>
    %1262 = vector.broadcast %1261 : f32 to vector<16x16xf32>
    %1263 = arith.mulf %1262, %1260 : vector<16x16xf32>
    %1264 = arith.addf %1253, %1263 : vector<16x16xf32>
    %c109_307 = arith.constant 109 : index
    %1265 = memref.load %arg4[%c109_307] : memref<144xf32, #tpu.memory_space<smem>>
    %1266 = vector.broadcast %1265 : f32 to vector<16x16xf32>
    %1267 = arith.mulf %1266, %1260 : vector<16x16xf32>
    %1268 = arith.addf %1257, %1267 : vector<16x16xf32>
    %c40_308 = arith.constant 40 : index
    %1269 = memref.load %arg4[%c40_308] : memref<144xf32, #tpu.memory_space<smem>>
    %1270 = vector.broadcast %1269 : f32 to vector<16x16xf32>
    %1271 = arith.mulf %1270, %814 : vector<16x16xf32>
    %1272 = arith.addf %1264, %1271 : vector<16x16xf32>
    %c112_309 = arith.constant 112 : index
    %1273 = memref.load %arg4[%c112_309] : memref<144xf32, #tpu.memory_space<smem>>
    %1274 = vector.broadcast %1273 : f32 to vector<16x16xf32>
    %1275 = arith.mulf %1274, %814 : vector<16x16xf32>
    %1276 = arith.addf %1268, %1275 : vector<16x16xf32>
    %cst_310 = arith.constant 0.000000e+00 : f32
    %1277 = vector.broadcast %cst_310 : f32 to vector<1x16xf32>
    %1278 = vector.extract_strided_slice %814 {offsets = [1, 0], sizes = [15, 16], strides = [1, 1]} : vector<16x16xf32> to vector<15x16xf32>
    %1279 = tpu.concatenate %1278, %1277 in 0 : vector<15x16xf32>, vector<1x16xf32> -> vector<16x16xf32>
    %c43_311 = arith.constant 43 : index
    %1280 = memref.load %arg4[%c43_311] : memref<144xf32, #tpu.memory_space<smem>>
    %1281 = vector.broadcast %1280 : f32 to vector<16x16xf32>
    %1282 = arith.mulf %1281, %1279 : vector<16x16xf32>
    %1283 = arith.addf %1272, %1282 : vector<16x16xf32>
    %c115_312 = arith.constant 115 : index
    %1284 = memref.load %arg4[%c115_312] : memref<144xf32, #tpu.memory_space<smem>>
    %1285 = vector.broadcast %1284 : f32 to vector<16x16xf32>
    %1286 = arith.mulf %1285, %1279 : vector<16x16xf32>
    %1287 = arith.addf %1276, %1286 : vector<16x16xf32>
    %1288 = arith.truncf %814 : vector<16x16xf32> to vector<16x16xbf16>
    %c1_313 = arith.constant 1 : index
    %c0_314 = arith.constant 0 : index
    %c0_315 = arith.constant 0 : index
    %1289 = vector.load %arg12[%c1_313, %c0_314, %c0_315] : memref<2x16x16xbf16, #tpu.memory_space<vmem>>, vector<1x16x16xbf16>
    %1290 = vector.shape_cast %1289 : vector<1x16x16xbf16> to vector<16x16xbf16>
    %cst_316 = arith.constant dense<0.000000e+00> : vector<16x16xf32>
    %1291 = tpu.matmul %1288, %1290, %cst_316 {dimension_numbers = #tpu.dot_dimension_numbers<[1], [0], [0], [1], [0, 0, 1, 1], [], []>} : vector<16x16xbf16>, vector<16x16xbf16>, vector<16x16xf32> -> vector<16x16xf32>
    %cst_317 = arith.constant 0.000000e+00 : f32
    %1292 = vector.broadcast %cst_317 : f32 to vector<1x16xf32>
    %1293 = vector.extract_strided_slice %1291 {offsets = [0, 0], sizes = [15, 16], strides = [1, 1]} : vector<16x16xf32> to vector<15x16xf32>
    %1294 = tpu.concatenate %1292, %1293 in 0 : vector<1x16xf32>, vector<15x16xf32> -> vector<16x16xf32>
    %c38_318 = arith.constant 38 : index
    %1295 = memref.load %arg4[%c38_318] : memref<144xf32, #tpu.memory_space<smem>>
    %1296 = vector.broadcast %1295 : f32 to vector<16x16xf32>
    %1297 = arith.mulf %1296, %1294 : vector<16x16xf32>
    %1298 = arith.addf %1283, %1297 : vector<16x16xf32>
    %c110_319 = arith.constant 110 : index
    %1299 = memref.load %arg4[%c110_319] : memref<144xf32, #tpu.memory_space<smem>>
    %1300 = vector.broadcast %1299 : f32 to vector<16x16xf32>
    %1301 = arith.mulf %1300, %1294 : vector<16x16xf32>
    %1302 = arith.addf %1287, %1301 : vector<16x16xf32>
    %c41_320 = arith.constant 41 : index
    %1303 = memref.load %arg4[%c41_320] : memref<144xf32, #tpu.memory_space<smem>>
    %1304 = vector.broadcast %1303 : f32 to vector<16x16xf32>
    %1305 = arith.mulf %1304, %1291 : vector<16x16xf32>
    %1306 = arith.addf %1298, %1305 : vector<16x16xf32>
    %c113_321 = arith.constant 113 : index
    %1307 = memref.load %arg4[%c113_321] : memref<144xf32, #tpu.memory_space<smem>>
    %1308 = vector.broadcast %1307 : f32 to vector<16x16xf32>
    %1309 = arith.mulf %1308, %1291 : vector<16x16xf32>
    %1310 = arith.addf %1302, %1309 : vector<16x16xf32>
    %cst_322 = arith.constant 0.000000e+00 : f32
    %1311 = vector.broadcast %cst_322 : f32 to vector<1x16xf32>
    %1312 = vector.extract_strided_slice %1291 {offsets = [1, 0], sizes = [15, 16], strides = [1, 1]} : vector<16x16xf32> to vector<15x16xf32>
    %1313 = tpu.concatenate %1312, %1311 in 0 : vector<15x16xf32>, vector<1x16xf32> -> vector<16x16xf32>
    %c44_323 = arith.constant 44 : index
    %1314 = memref.load %arg4[%c44_323] : memref<144xf32, #tpu.memory_space<smem>>
    %1315 = vector.broadcast %1314 : f32 to vector<16x16xf32>
    %1316 = arith.mulf %1315, %1313 : vector<16x16xf32>
    %1317 = arith.addf %1306, %1316 : vector<16x16xf32>
    %c116_324 = arith.constant 116 : index
    %1318 = memref.load %arg4[%c116_324] : memref<144xf32, #tpu.memory_space<smem>>
    %1319 = vector.broadcast %1318 : f32 to vector<16x16xf32>
    %1320 = arith.mulf %1319, %1313 : vector<16x16xf32>
    %1321 = arith.addf %1310, %1320 : vector<16x16xf32>
    %1322 = arith.truncf %819 : vector<16x16xf32> to vector<16x16xbf16>
    %c0_325 = arith.constant 0 : index
    %c0_326 = arith.constant 0 : index
    %c0_327 = arith.constant 0 : index
    %1323 = vector.load %arg12[%c0_325, %c0_326, %c0_327] : memref<2x16x16xbf16, #tpu.memory_space<vmem>>, vector<1x16x16xbf16>
    %1324 = vector.shape_cast %1323 : vector<1x16x16xbf16> to vector<16x16xbf16>
    %cst_328 = arith.constant dense<0.000000e+00> : vector<16x16xf32>
    %1325 = tpu.matmul %1322, %1324, %cst_328 {dimension_numbers = #tpu.dot_dimension_numbers<[1], [0], [0], [1], [0, 0, 1, 1], [], []>} : vector<16x16xbf16>, vector<16x16xbf16>, vector<16x16xf32> -> vector<16x16xf32>
    %cst_329 = arith.constant 0.000000e+00 : f32
    %1326 = vector.broadcast %cst_329 : f32 to vector<1x16xf32>
    %1327 = vector.extract_strided_slice %1325 {offsets = [0, 0], sizes = [15, 16], strides = [1, 1]} : vector<16x16xf32> to vector<15x16xf32>
    %1328 = tpu.concatenate %1326, %1327 in 0 : vector<1x16xf32>, vector<15x16xf32> -> vector<16x16xf32>
    %c45_330 = arith.constant 45 : index
    %1329 = memref.load %arg4[%c45_330] : memref<144xf32, #tpu.memory_space<smem>>
    %1330 = vector.broadcast %1329 : f32 to vector<16x16xf32>
    %1331 = arith.mulf %1330, %1328 : vector<16x16xf32>
    %1332 = arith.addf %1317, %1331 : vector<16x16xf32>
    %c117_331 = arith.constant 117 : index
    %1333 = memref.load %arg4[%c117_331] : memref<144xf32, #tpu.memory_space<smem>>
    %1334 = vector.broadcast %1333 : f32 to vector<16x16xf32>
    %1335 = arith.mulf %1334, %1328 : vector<16x16xf32>
    %1336 = arith.addf %1321, %1335 : vector<16x16xf32>
    %c48_332 = arith.constant 48 : index
    %1337 = memref.load %arg4[%c48_332] : memref<144xf32, #tpu.memory_space<smem>>
    %1338 = vector.broadcast %1337 : f32 to vector<16x16xf32>
    %1339 = arith.mulf %1338, %1325 : vector<16x16xf32>
    %1340 = arith.addf %1332, %1339 : vector<16x16xf32>
    %c120_333 = arith.constant 120 : index
    %1341 = memref.load %arg4[%c120_333] : memref<144xf32, #tpu.memory_space<smem>>
    %1342 = vector.broadcast %1341 : f32 to vector<16x16xf32>
    %1343 = arith.mulf %1342, %1325 : vector<16x16xf32>
    %1344 = arith.addf %1336, %1343 : vector<16x16xf32>
    %cst_334 = arith.constant 0.000000e+00 : f32
    %1345 = vector.broadcast %cst_334 : f32 to vector<1x16xf32>
    %1346 = vector.extract_strided_slice %1325 {offsets = [1, 0], sizes = [15, 16], strides = [1, 1]} : vector<16x16xf32> to vector<15x16xf32>
    %1347 = tpu.concatenate %1346, %1345 in 0 : vector<15x16xf32>, vector<1x16xf32> -> vector<16x16xf32>
    %c51_335 = arith.constant 51 : index
    %1348 = memref.load %arg4[%c51_335] : memref<144xf32, #tpu.memory_space<smem>>
    %1349 = vector.broadcast %1348 : f32 to vector<16x16xf32>
    %1350 = arith.mulf %1349, %1347 : vector<16x16xf32>
    %1351 = arith.addf %1340, %1350 : vector<16x16xf32>
    %c123_336 = arith.constant 123 : index
    %1352 = memref.load %arg4[%c123_336] : memref<144xf32, #tpu.memory_space<smem>>
    %1353 = vector.broadcast %1352 : f32 to vector<16x16xf32>
    %1354 = arith.mulf %1353, %1347 : vector<16x16xf32>
    %1355 = arith.addf %1344, %1354 : vector<16x16xf32>
    %cst_337 = arith.constant 0.000000e+00 : f32
    %1356 = vector.broadcast %cst_337 : f32 to vector<1x16xf32>
    %1357 = vector.extract_strided_slice %819 {offsets = [0, 0], sizes = [15, 16], strides = [1, 1]} : vector<16x16xf32> to vector<15x16xf32>
    %1358 = tpu.concatenate %1356, %1357 in 0 : vector<1x16xf32>, vector<15x16xf32> -> vector<16x16xf32>
    %c46_338 = arith.constant 46 : index
    %1359 = memref.load %arg4[%c46_338] : memref<144xf32, #tpu.memory_space<smem>>
    %1360 = vector.broadcast %1359 : f32 to vector<16x16xf32>
    %1361 = arith.mulf %1360, %1358 : vector<16x16xf32>
    %1362 = arith.addf %1351, %1361 : vector<16x16xf32>
    %c118_339 = arith.constant 118 : index
    %1363 = memref.load %arg4[%c118_339] : memref<144xf32, #tpu.memory_space<smem>>
    %1364 = vector.broadcast %1363 : f32 to vector<16x16xf32>
    %1365 = arith.mulf %1364, %1358 : vector<16x16xf32>
    %1366 = arith.addf %1355, %1365 : vector<16x16xf32>
    %c49_340 = arith.constant 49 : index
    %1367 = memref.load %arg4[%c49_340] : memref<144xf32, #tpu.memory_space<smem>>
    %1368 = vector.broadcast %1367 : f32 to vector<16x16xf32>
    %1369 = arith.mulf %1368, %819 : vector<16x16xf32>
    %1370 = arith.addf %1362, %1369 : vector<16x16xf32>
    %c121_341 = arith.constant 121 : index
    %1371 = memref.load %arg4[%c121_341] : memref<144xf32, #tpu.memory_space<smem>>
    %1372 = vector.broadcast %1371 : f32 to vector<16x16xf32>
    %1373 = arith.mulf %1372, %819 : vector<16x16xf32>
    %1374 = arith.addf %1366, %1373 : vector<16x16xf32>
    %cst_342 = arith.constant 0.000000e+00 : f32
    %1375 = vector.broadcast %cst_342 : f32 to vector<1x16xf32>
    %1376 = vector.extract_strided_slice %819 {offsets = [1, 0], sizes = [15, 16], strides = [1, 1]} : vector<16x16xf32> to vector<15x16xf32>
    %1377 = tpu.concatenate %1376, %1375 in 0 : vector<15x16xf32>, vector<1x16xf32> -> vector<16x16xf32>
    %c52_343 = arith.constant 52 : index
    %1378 = memref.load %arg4[%c52_343] : memref<144xf32, #tpu.memory_space<smem>>
    %1379 = vector.broadcast %1378 : f32 to vector<16x16xf32>
    %1380 = arith.mulf %1379, %1377 : vector<16x16xf32>
    %1381 = arith.addf %1370, %1380 : vector<16x16xf32>
    %c124_344 = arith.constant 124 : index
    %1382 = memref.load %arg4[%c124_344] : memref<144xf32, #tpu.memory_space<smem>>
    %1383 = vector.broadcast %1382 : f32 to vector<16x16xf32>
    %1384 = arith.mulf %1383, %1377 : vector<16x16xf32>
    %1385 = arith.addf %1374, %1384 : vector<16x16xf32>
    %1386 = arith.truncf %819 : vector<16x16xf32> to vector<16x16xbf16>
    %c1_345 = arith.constant 1 : index
    %c0_346 = arith.constant 0 : index
    %c0_347 = arith.constant 0 : index
    %1387 = vector.load %arg12[%c1_345, %c0_346, %c0_347] : memref<2x16x16xbf16, #tpu.memory_space<vmem>>, vector<1x16x16xbf16>
    %1388 = vector.shape_cast %1387 : vector<1x16x16xbf16> to vector<16x16xbf16>
    %cst_348 = arith.constant dense<0.000000e+00> : vector<16x16xf32>
    %1389 = tpu.matmul %1386, %1388, %cst_348 {dimension_numbers = #tpu.dot_dimension_numbers<[1], [0], [0], [1], [0, 0, 1, 1], [], []>} : vector<16x16xbf16>, vector<16x16xbf16>, vector<16x16xf32> -> vector<16x16xf32>
    %cst_349 = arith.constant 0.000000e+00 : f32
    %1390 = vector.broadcast %cst_349 : f32 to vector<1x16xf32>
    %1391 = vector.extract_strided_slice %1389 {offsets = [0, 0], sizes = [15, 16], strides = [1, 1]} : vector<16x16xf32> to vector<15x16xf32>
    %1392 = tpu.concatenate %1390, %1391 in 0 : vector<1x16xf32>, vector<15x16xf32> -> vector<16x16xf32>
    %c47_350 = arith.constant 47 : index
    %1393 = memref.load %arg4[%c47_350] : memref<144xf32, #tpu.memory_space<smem>>
    %1394 = vector.broadcast %1393 : f32 to vector<16x16xf32>
    %1395 = arith.mulf %1394, %1392 : vector<16x16xf32>
    %1396 = arith.addf %1381, %1395 : vector<16x16xf32>
    %c119_351 = arith.constant 119 : index
    %1397 = memref.load %arg4[%c119_351] : memref<144xf32, #tpu.memory_space<smem>>
    %1398 = vector.broadcast %1397 : f32 to vector<16x16xf32>
    %1399 = arith.mulf %1398, %1392 : vector<16x16xf32>
    %1400 = arith.addf %1385, %1399 : vector<16x16xf32>
    %c50_352 = arith.constant 50 : index
    %1401 = memref.load %arg4[%c50_352] : memref<144xf32, #tpu.memory_space<smem>>
    %1402 = vector.broadcast %1401 : f32 to vector<16x16xf32>
    %1403 = arith.mulf %1402, %1389 : vector<16x16xf32>
    %1404 = arith.addf %1396, %1403 : vector<16x16xf32>
    %c122_353 = arith.constant 122 : index
    %1405 = memref.load %arg4[%c122_353] : memref<144xf32, #tpu.memory_space<smem>>
    %1406 = vector.broadcast %1405 : f32 to vector<16x16xf32>
    %1407 = arith.mulf %1406, %1389 : vector<16x16xf32>
    %1408 = arith.addf %1400, %1407 : vector<16x16xf32>
    %cst_354 = arith.constant 0.000000e+00 : f32
    %1409 = vector.broadcast %cst_354 : f32 to vector<1x16xf32>
    %1410 = vector.extract_strided_slice %1389 {offsets = [1, 0], sizes = [15, 16], strides = [1, 1]} : vector<16x16xf32> to vector<15x16xf32>
    %1411 = tpu.concatenate %1410, %1409 in 0 : vector<15x16xf32>, vector<1x16xf32> -> vector<16x16xf32>
    %c53_355 = arith.constant 53 : index
    %1412 = memref.load %arg4[%c53_355] : memref<144xf32, #tpu.memory_space<smem>>
    %1413 = vector.broadcast %1412 : f32 to vector<16x16xf32>
    %1414 = arith.mulf %1413, %1411 : vector<16x16xf32>
    %1415 = arith.addf %1404, %1414 : vector<16x16xf32>
    %c125_356 = arith.constant 125 : index
    %1416 = memref.load %arg4[%c125_356] : memref<144xf32, #tpu.memory_space<smem>>
    %1417 = vector.broadcast %1416 : f32 to vector<16x16xf32>
    %1418 = arith.mulf %1417, %1411 : vector<16x16xf32>
    %1419 = arith.addf %1408, %1418 : vector<16x16xf32>
    %1420 = arith.truncf %824 : vector<16x16xf32> to vector<16x16xbf16>
    %c0_357 = arith.constant 0 : index
    %c0_358 = arith.constant 0 : index
    %c0_359 = arith.constant 0 : index
    %1421 = vector.load %arg12[%c0_357, %c0_358, %c0_359] : memref<2x16x16xbf16, #tpu.memory_space<vmem>>, vector<1x16x16xbf16>
    %1422 = vector.shape_cast %1421 : vector<1x16x16xbf16> to vector<16x16xbf16>
    %cst_360 = arith.constant dense<0.000000e+00> : vector<16x16xf32>
    %1423 = tpu.matmul %1420, %1422, %cst_360 {dimension_numbers = #tpu.dot_dimension_numbers<[1], [0], [0], [1], [0, 0, 1, 1], [], []>} : vector<16x16xbf16>, vector<16x16xbf16>, vector<16x16xf32> -> vector<16x16xf32>
    %cst_361 = arith.constant 0.000000e+00 : f32
    %1424 = vector.broadcast %cst_361 : f32 to vector<1x16xf32>
    %1425 = vector.extract_strided_slice %1423 {offsets = [0, 0], sizes = [15, 16], strides = [1, 1]} : vector<16x16xf32> to vector<15x16xf32>
    %1426 = tpu.concatenate %1424, %1425 in 0 : vector<1x16xf32>, vector<15x16xf32> -> vector<16x16xf32>
    %c54_362 = arith.constant 54 : index
    %1427 = memref.load %arg4[%c54_362] : memref<144xf32, #tpu.memory_space<smem>>
    %1428 = vector.broadcast %1427 : f32 to vector<16x16xf32>
    %1429 = arith.mulf %1428, %1426 : vector<16x16xf32>
    %1430 = arith.addf %1415, %1429 : vector<16x16xf32>
    %c126_363 = arith.constant 126 : index
    %1431 = memref.load %arg4[%c126_363] : memref<144xf32, #tpu.memory_space<smem>>
    %1432 = vector.broadcast %1431 : f32 to vector<16x16xf32>
    %1433 = arith.mulf %1432, %1426 : vector<16x16xf32>
    %1434 = arith.addf %1419, %1433 : vector<16x16xf32>
    %c57_364 = arith.constant 57 : index
    %1435 = memref.load %arg4[%c57_364] : memref<144xf32, #tpu.memory_space<smem>>
    %1436 = vector.broadcast %1435 : f32 to vector<16x16xf32>
    %1437 = arith.mulf %1436, %1423 : vector<16x16xf32>
    %1438 = arith.addf %1430, %1437 : vector<16x16xf32>
    %c129_365 = arith.constant 129 : index
    %1439 = memref.load %arg4[%c129_365] : memref<144xf32, #tpu.memory_space<smem>>
    %1440 = vector.broadcast %1439 : f32 to vector<16x16xf32>
    %1441 = arith.mulf %1440, %1423 : vector<16x16xf32>
    %1442 = arith.addf %1434, %1441 : vector<16x16xf32>
    %cst_366 = arith.constant 0.000000e+00 : f32
    %1443 = vector.broadcast %cst_366 : f32 to vector<1x16xf32>
    %1444 = vector.extract_strided_slice %1423 {offsets = [1, 0], sizes = [15, 16], strides = [1, 1]} : vector<16x16xf32> to vector<15x16xf32>
    %1445 = tpu.concatenate %1444, %1443 in 0 : vector<15x16xf32>, vector<1x16xf32> -> vector<16x16xf32>
    %c60_367 = arith.constant 60 : index
    %1446 = memref.load %arg4[%c60_367] : memref<144xf32, #tpu.memory_space<smem>>
    %1447 = vector.broadcast %1446 : f32 to vector<16x16xf32>
    %1448 = arith.mulf %1447, %1445 : vector<16x16xf32>
    %1449 = arith.addf %1438, %1448 : vector<16x16xf32>
    %c132_368 = arith.constant 132 : index
    %1450 = memref.load %arg4[%c132_368] : memref<144xf32, #tpu.memory_space<smem>>
    %1451 = vector.broadcast %1450 : f32 to vector<16x16xf32>
    %1452 = arith.mulf %1451, %1445 : vector<16x16xf32>
    %1453 = arith.addf %1442, %1452 : vector<16x16xf32>
    %cst_369 = arith.constant 0.000000e+00 : f32
    %1454 = vector.broadcast %cst_369 : f32 to vector<1x16xf32>
    %1455 = vector.extract_strided_slice %824 {offsets = [0, 0], sizes = [15, 16], strides = [1, 1]} : vector<16x16xf32> to vector<15x16xf32>
    %1456 = tpu.concatenate %1454, %1455 in 0 : vector<1x16xf32>, vector<15x16xf32> -> vector<16x16xf32>
    %c55_370 = arith.constant 55 : index
    %1457 = memref.load %arg4[%c55_370] : memref<144xf32, #tpu.memory_space<smem>>
    %1458 = vector.broadcast %1457 : f32 to vector<16x16xf32>
    %1459 = arith.mulf %1458, %1456 : vector<16x16xf32>
    %1460 = arith.addf %1449, %1459 : vector<16x16xf32>
    %c127_371 = arith.constant 127 : index
    %1461 = memref.load %arg4[%c127_371] : memref<144xf32, #tpu.memory_space<smem>>
    %1462 = vector.broadcast %1461 : f32 to vector<16x16xf32>
    %1463 = arith.mulf %1462, %1456 : vector<16x16xf32>
    %1464 = arith.addf %1453, %1463 : vector<16x16xf32>
    %c58_372 = arith.constant 58 : index
    %1465 = memref.load %arg4[%c58_372] : memref<144xf32, #tpu.memory_space<smem>>
    %1466 = vector.broadcast %1465 : f32 to vector<16x16xf32>
    %1467 = arith.mulf %1466, %824 : vector<16x16xf32>
    %1468 = arith.addf %1460, %1467 : vector<16x16xf32>
    %c130_373 = arith.constant 130 : index
    %1469 = memref.load %arg4[%c130_373] : memref<144xf32, #tpu.memory_space<smem>>
    %1470 = vector.broadcast %1469 : f32 to vector<16x16xf32>
    %1471 = arith.mulf %1470, %824 : vector<16x16xf32>
    %1472 = arith.addf %1464, %1471 : vector<16x16xf32>
    %cst_374 = arith.constant 0.000000e+00 : f32
    %1473 = vector.broadcast %cst_374 : f32 to vector<1x16xf32>
    %1474 = vector.extract_strided_slice %824 {offsets = [1, 0], sizes = [15, 16], strides = [1, 1]} : vector<16x16xf32> to vector<15x16xf32>
    %1475 = tpu.concatenate %1474, %1473 in 0 : vector<15x16xf32>, vector<1x16xf32> -> vector<16x16xf32>
    %c61_375 = arith.constant 61 : index
    %1476 = memref.load %arg4[%c61_375] : memref<144xf32, #tpu.memory_space<smem>>
    %1477 = vector.broadcast %1476 : f32 to vector<16x16xf32>
    %1478 = arith.mulf %1477, %1475 : vector<16x16xf32>
    %1479 = arith.addf %1468, %1478 : vector<16x16xf32>
    %c133_376 = arith.constant 133 : index
    %1480 = memref.load %arg4[%c133_376] : memref<144xf32, #tpu.memory_space<smem>>
    %1481 = vector.broadcast %1480 : f32 to vector<16x16xf32>
    %1482 = arith.mulf %1481, %1475 : vector<16x16xf32>
    %1483 = arith.addf %1472, %1482 : vector<16x16xf32>
    %1484 = arith.truncf %824 : vector<16x16xf32> to vector<16x16xbf16>
    %c1_377 = arith.constant 1 : index
    %c0_378 = arith.constant 0 : index
    %c0_379 = arith.constant 0 : index
    %1485 = vector.load %arg12[%c1_377, %c0_378, %c0_379] : memref<2x16x16xbf16, #tpu.memory_space<vmem>>, vector<1x16x16xbf16>
    %1486 = vector.shape_cast %1485 : vector<1x16x16xbf16> to vector<16x16xbf16>
    %cst_380 = arith.constant dense<0.000000e+00> : vector<16x16xf32>
    %1487 = tpu.matmul %1484, %1486, %cst_380 {dimension_numbers = #tpu.dot_dimension_numbers<[1], [0], [0], [1], [0, 0, 1, 1], [], []>} : vector<16x16xbf16>, vector<16x16xbf16>, vector<16x16xf32> -> vector<16x16xf32>
    %cst_381 = arith.constant 0.000000e+00 : f32
    %1488 = vector.broadcast %cst_381 : f32 to vector<1x16xf32>
    %1489 = vector.extract_strided_slice %1487 {offsets = [0, 0], sizes = [15, 16], strides = [1, 1]} : vector<16x16xf32> to vector<15x16xf32>
    %1490 = tpu.concatenate %1488, %1489 in 0 : vector<1x16xf32>, vector<15x16xf32> -> vector<16x16xf32>
    %c56_382 = arith.constant 56 : index
    %1491 = memref.load %arg4[%c56_382] : memref<144xf32, #tpu.memory_space<smem>>
    %1492 = vector.broadcast %1491 : f32 to vector<16x16xf32>
    %1493 = arith.mulf %1492, %1490 : vector<16x16xf32>
    %1494 = arith.addf %1479, %1493 : vector<16x16xf32>
    %c128_383 = arith.constant 128 : index
    %1495 = memref.load %arg4[%c128_383] : memref<144xf32, #tpu.memory_space<smem>>
    %1496 = vector.broadcast %1495 : f32 to vector<16x16xf32>
    %1497 = arith.mulf %1496, %1490 : vector<16x16xf32>
    %1498 = arith.addf %1483, %1497 : vector<16x16xf32>
    %c59_384 = arith.constant 59 : index
    %1499 = memref.load %arg4[%c59_384] : memref<144xf32, #tpu.memory_space<smem>>
    %1500 = vector.broadcast %1499 : f32 to vector<16x16xf32>
    %1501 = arith.mulf %1500, %1487 : vector<16x16xf32>
    %1502 = arith.addf %1494, %1501 : vector<16x16xf32>
    %c131_385 = arith.constant 131 : index
    %1503 = memref.load %arg4[%c131_385] : memref<144xf32, #tpu.memory_space<smem>>
    %1504 = vector.broadcast %1503 : f32 to vector<16x16xf32>
    %1505 = arith.mulf %1504, %1487 : vector<16x16xf32>
    %1506 = arith.addf %1498, %1505 : vector<16x16xf32>
    %cst_386 = arith.constant 0.000000e+00 : f32
    %1507 = vector.broadcast %cst_386 : f32 to vector<1x16xf32>
    %1508 = vector.extract_strided_slice %1487 {offsets = [1, 0], sizes = [15, 16], strides = [1, 1]} : vector<16x16xf32> to vector<15x16xf32>
    %1509 = tpu.concatenate %1508, %1507 in 0 : vector<15x16xf32>, vector<1x16xf32> -> vector<16x16xf32>
    %c62_387 = arith.constant 62 : index
    %1510 = memref.load %arg4[%c62_387] : memref<144xf32, #tpu.memory_space<smem>>
    %1511 = vector.broadcast %1510 : f32 to vector<16x16xf32>
    %1512 = arith.mulf %1511, %1509 : vector<16x16xf32>
    %1513 = arith.addf %1502, %1512 : vector<16x16xf32>
    %c134_388 = arith.constant 134 : index
    %1514 = memref.load %arg4[%c134_388] : memref<144xf32, #tpu.memory_space<smem>>
    %1515 = vector.broadcast %1514 : f32 to vector<16x16xf32>
    %1516 = arith.mulf %1515, %1509 : vector<16x16xf32>
    %1517 = arith.addf %1506, %1516 : vector<16x16xf32>
    %1518 = arith.truncf %829 : vector<16x16xf32> to vector<16x16xbf16>
    %c0_389 = arith.constant 0 : index
    %c0_390 = arith.constant 0 : index
    %c0_391 = arith.constant 0 : index
    %1519 = vector.load %arg12[%c0_389, %c0_390, %c0_391] : memref<2x16x16xbf16, #tpu.memory_space<vmem>>, vector<1x16x16xbf16>
    %1520 = vector.shape_cast %1519 : vector<1x16x16xbf16> to vector<16x16xbf16>
    %cst_392 = arith.constant dense<0.000000e+00> : vector<16x16xf32>
    %1521 = tpu.matmul %1518, %1520, %cst_392 {dimension_numbers = #tpu.dot_dimension_numbers<[1], [0], [0], [1], [0, 0, 1, 1], [], []>} : vector<16x16xbf16>, vector<16x16xbf16>, vector<16x16xf32> -> vector<16x16xf32>
    %cst_393 = arith.constant 0.000000e+00 : f32
    %1522 = vector.broadcast %cst_393 : f32 to vector<1x16xf32>
    %1523 = vector.extract_strided_slice %1521 {offsets = [0, 0], sizes = [15, 16], strides = [1, 1]} : vector<16x16xf32> to vector<15x16xf32>
    %1524 = tpu.concatenate %1522, %1523 in 0 : vector<1x16xf32>, vector<15x16xf32> -> vector<16x16xf32>
    %c63_394 = arith.constant 63 : index
    %1525 = memref.load %arg4[%c63_394] : memref<144xf32, #tpu.memory_space<smem>>
    %1526 = vector.broadcast %1525 : f32 to vector<16x16xf32>
    %1527 = arith.mulf %1526, %1524 : vector<16x16xf32>
    %1528 = arith.addf %1513, %1527 : vector<16x16xf32>
    %c135_395 = arith.constant 135 : index
    %1529 = memref.load %arg4[%c135_395] : memref<144xf32, #tpu.memory_space<smem>>
    %1530 = vector.broadcast %1529 : f32 to vector<16x16xf32>
    %1531 = arith.mulf %1530, %1524 : vector<16x16xf32>
    %1532 = arith.addf %1517, %1531 : vector<16x16xf32>
    %c66_396 = arith.constant 66 : index
    %1533 = memref.load %arg4[%c66_396] : memref<144xf32, #tpu.memory_space<smem>>
    %1534 = vector.broadcast %1533 : f32 to vector<16x16xf32>
    %1535 = arith.mulf %1534, %1521 : vector<16x16xf32>
    %1536 = arith.addf %1528, %1535 : vector<16x16xf32>
    %c138_397 = arith.constant 138 : index
    %1537 = memref.load %arg4[%c138_397] : memref<144xf32, #tpu.memory_space<smem>>
    %1538 = vector.broadcast %1537 : f32 to vector<16x16xf32>
    %1539 = arith.mulf %1538, %1521 : vector<16x16xf32>
    %1540 = arith.addf %1532, %1539 : vector<16x16xf32>
    %cst_398 = arith.constant 0.000000e+00 : f32
    %1541 = vector.broadcast %cst_398 : f32 to vector<1x16xf32>
    %1542 = vector.extract_strided_slice %1521 {offsets = [1, 0], sizes = [15, 16], strides = [1, 1]} : vector<16x16xf32> to vector<15x16xf32>
    %1543 = tpu.concatenate %1542, %1541 in 0 : vector<15x16xf32>, vector<1x16xf32> -> vector<16x16xf32>
    %c69_399 = arith.constant 69 : index
    %1544 = memref.load %arg4[%c69_399] : memref<144xf32, #tpu.memory_space<smem>>
    %1545 = vector.broadcast %1544 : f32 to vector<16x16xf32>
    %1546 = arith.mulf %1545, %1543 : vector<16x16xf32>
    %1547 = arith.addf %1536, %1546 : vector<16x16xf32>
    %c141_400 = arith.constant 141 : index
    %1548 = memref.load %arg4[%c141_400] : memref<144xf32, #tpu.memory_space<smem>>
    %1549 = vector.broadcast %1548 : f32 to vector<16x16xf32>
    %1550 = arith.mulf %1549, %1543 : vector<16x16xf32>
    %1551 = arith.addf %1540, %1550 : vector<16x16xf32>
    %cst_401 = arith.constant 0.000000e+00 : f32
    %1552 = vector.broadcast %cst_401 : f32 to vector<1x16xf32>
    %1553 = vector.extract_strided_slice %829 {offsets = [0, 0], sizes = [15, 16], strides = [1, 1]} : vector<16x16xf32> to vector<15x16xf32>
    %1554 = tpu.concatenate %1552, %1553 in 0 : vector<1x16xf32>, vector<15x16xf32> -> vector<16x16xf32>
    %c64_402 = arith.constant 64 : index
    %1555 = memref.load %arg4[%c64_402] : memref<144xf32, #tpu.memory_space<smem>>
    %1556 = vector.broadcast %1555 : f32 to vector<16x16xf32>
    %1557 = arith.mulf %1556, %1554 : vector<16x16xf32>
    %1558 = arith.addf %1547, %1557 : vector<16x16xf32>
    %c136_403 = arith.constant 136 : index
    %1559 = memref.load %arg4[%c136_403] : memref<144xf32, #tpu.memory_space<smem>>
    %1560 = vector.broadcast %1559 : f32 to vector<16x16xf32>
    %1561 = arith.mulf %1560, %1554 : vector<16x16xf32>
    %1562 = arith.addf %1551, %1561 : vector<16x16xf32>
    %c67_404 = arith.constant 67 : index
    %1563 = memref.load %arg4[%c67_404] : memref<144xf32, #tpu.memory_space<smem>>
    %1564 = vector.broadcast %1563 : f32 to vector<16x16xf32>
    %1565 = arith.mulf %1564, %829 : vector<16x16xf32>
    %1566 = arith.addf %1558, %1565 : vector<16x16xf32>
    %c139_405 = arith.constant 139 : index
    %1567 = memref.load %arg4[%c139_405] : memref<144xf32, #tpu.memory_space<smem>>
    %1568 = vector.broadcast %1567 : f32 to vector<16x16xf32>
    %1569 = arith.mulf %1568, %829 : vector<16x16xf32>
    %1570 = arith.addf %1562, %1569 : vector<16x16xf32>
    %cst_406 = arith.constant 0.000000e+00 : f32
    %1571 = vector.broadcast %cst_406 : f32 to vector<1x16xf32>
    %1572 = vector.extract_strided_slice %829 {offsets = [1, 0], sizes = [15, 16], strides = [1, 1]} : vector<16x16xf32> to vector<15x16xf32>
    %1573 = tpu.concatenate %1572, %1571 in 0 : vector<15x16xf32>, vector<1x16xf32> -> vector<16x16xf32>
    %c70_407 = arith.constant 70 : index
    %1574 = memref.load %arg4[%c70_407] : memref<144xf32, #tpu.memory_space<smem>>
    %1575 = vector.broadcast %1574 : f32 to vector<16x16xf32>
    %1576 = arith.mulf %1575, %1573 : vector<16x16xf32>
    %1577 = arith.addf %1566, %1576 : vector<16x16xf32>
    %c142_408 = arith.constant 142 : index
    %1578 = memref.load %arg4[%c142_408] : memref<144xf32, #tpu.memory_space<smem>>
    %1579 = vector.broadcast %1578 : f32 to vector<16x16xf32>
    %1580 = arith.mulf %1579, %1573 : vector<16x16xf32>
    %1581 = arith.addf %1570, %1580 : vector<16x16xf32>
    %1582 = arith.truncf %829 : vector<16x16xf32> to vector<16x16xbf16>
    %c1_409 = arith.constant 1 : index
    %c0_410 = arith.constant 0 : index
    %c0_411 = arith.constant 0 : index
    %1583 = vector.load %arg12[%c1_409, %c0_410, %c0_411] : memref<2x16x16xbf16, #tpu.memory_space<vmem>>, vector<1x16x16xbf16>
    %1584 = vector.shape_cast %1583 : vector<1x16x16xbf16> to vector<16x16xbf16>
    %cst_412 = arith.constant dense<0.000000e+00> : vector<16x16xf32>
    %1585 = tpu.matmul %1582, %1584, %cst_412 {dimension_numbers = #tpu.dot_dimension_numbers<[1], [0], [0], [1], [0, 0, 1, 1], [], []>} : vector<16x16xbf16>, vector<16x16xbf16>, vector<16x16xf32> -> vector<16x16xf32>
    %cst_413 = arith.constant 0.000000e+00 : f32
    %1586 = vector.broadcast %cst_413 : f32 to vector<1x16xf32>
    %1587 = vector.extract_strided_slice %1585 {offsets = [0, 0], sizes = [15, 16], strides = [1, 1]} : vector<16x16xf32> to vector<15x16xf32>
    %1588 = tpu.concatenate %1586, %1587 in 0 : vector<1x16xf32>, vector<15x16xf32> -> vector<16x16xf32>
    %c65_414 = arith.constant 65 : index
    %1589 = memref.load %arg4[%c65_414] : memref<144xf32, #tpu.memory_space<smem>>
    %1590 = vector.broadcast %1589 : f32 to vector<16x16xf32>
    %1591 = arith.mulf %1590, %1588 : vector<16x16xf32>
    %1592 = arith.addf %1577, %1591 : vector<16x16xf32>
    %c137_415 = arith.constant 137 : index
    %1593 = memref.load %arg4[%c137_415] : memref<144xf32, #tpu.memory_space<smem>>
    %1594 = vector.broadcast %1593 : f32 to vector<16x16xf32>
    %1595 = arith.mulf %1594, %1588 : vector<16x16xf32>
    %1596 = arith.addf %1581, %1595 : vector<16x16xf32>
    %c68_416 = arith.constant 68 : index
    %1597 = memref.load %arg4[%c68_416] : memref<144xf32, #tpu.memory_space<smem>>
    %1598 = vector.broadcast %1597 : f32 to vector<16x16xf32>
    %1599 = arith.mulf %1598, %1585 : vector<16x16xf32>
    %1600 = arith.addf %1592, %1599 : vector<16x16xf32>
    %c140_417 = arith.constant 140 : index
    %1601 = memref.load %arg4[%c140_417] : memref<144xf32, #tpu.memory_space<smem>>
    %1602 = vector.broadcast %1601 : f32 to vector<16x16xf32>
    %1603 = arith.mulf %1602, %1585 : vector<16x16xf32>
    %1604 = arith.addf %1596, %1603 : vector<16x16xf32>
    %cst_418 = arith.constant 0.000000e+00 : f32
    %1605 = vector.broadcast %cst_418 : f32 to vector<1x16xf32>
    %1606 = vector.extract_strided_slice %1585 {offsets = [1, 0], sizes = [15, 16], strides = [1, 1]} : vector<16x16xf32> to vector<15x16xf32>
    %1607 = tpu.concatenate %1606, %1605 in 0 : vector<15x16xf32>, vector<1x16xf32> -> vector<16x16xf32>
    %c71_419 = arith.constant 71 : index
    %1608 = memref.load %arg4[%c71_419] : memref<144xf32, #tpu.memory_space<smem>>
    %1609 = vector.broadcast %1608 : f32 to vector<16x16xf32>
    %1610 = arith.mulf %1609, %1607 : vector<16x16xf32>
    %1611 = arith.addf %1600, %1610 : vector<16x16xf32>
    %c143_420 = arith.constant 143 : index
    %1612 = memref.load %arg4[%c143_420] : memref<144xf32, #tpu.memory_space<smem>>
    %1613 = vector.broadcast %1612 : f32 to vector<16x16xf32>
    %1614 = arith.mulf %1613, %1607 : vector<16x16xf32>
    %1615 = arith.addf %1604, %1614 : vector<16x16xf32>
    %c0_421 = arith.constant 0 : index
    %1616 = memref.load %arg5[%c0_421] : memref<2xf32, #tpu.memory_space<smem>>
    %1617 = vector.broadcast %1616 : f32 to vector<16x16xf32>
    %1618 = arith.addf %1611, %1617 : vector<16x16xf32>
    %c1_422 = arith.constant 1 : index
    %1619 = memref.load %arg5[%c1_422] : memref<2xf32, #tpu.memory_space<smem>>
    %1620 = vector.broadcast %1619 : f32 to vector<16x16xf32>
    %1621 = arith.addf %1615, %1620 : vector<16x16xf32>
    %c0_423 = arith.constant 0 : index
    %c0_424 = arith.constant 0 : index
    %c0_425 = arith.constant 0 : index
    %c0_426 = arith.constant 0 : index
    %c0_427 = arith.constant 0 : index
    %1622 = vector.load %arg8[%c0_423, %c0_424, %c0_425, %c0_426, %c0_427] : memref<1x2x4x16x16xf32, #tpu.memory_space<vmem>>, vector<1x1x1x16x16xf32>
    %1623 = vector.shape_cast %1622 : vector<1x1x1x16x16xf32> to vector<16x16xf32>
    %c0_428 = arith.constant 0 : index
    %c1_429 = arith.constant 1 : index
    %c0_430 = arith.constant 0 : index
    %c0_431 = arith.constant 0 : index
    %c0_432 = arith.constant 0 : index
    %1624 = vector.load %arg8[%c0_428, %c1_429, %c0_430, %c0_431, %c0_432] : memref<1x2x4x16x16xf32, #tpu.memory_space<vmem>>, vector<1x1x1x16x16xf32>
    %1625 = vector.shape_cast %1624 : vector<1x1x1x16x16xf32> to vector<16x16xf32>
    %1626 = arith.mulf %1623, %1618 : vector<16x16xf32>
    %1627 = arith.mulf %1625, %1621 : vector<16x16xf32>
    %1628 = arith.subf %1626, %1627 : vector<16x16xf32>
    %1629 = arith.mulf %1623, %1621 : vector<16x16xf32>
    %1630 = arith.mulf %1625, %1618 : vector<16x16xf32>
    %1631 = arith.addf %1629, %1630 : vector<16x16xf32>
    %c3_433 = arith.constant 3 : index
    %c0_434 = arith.constant 0 : index
    %c0_435 = arith.constant 0 : index
    %1632 = vector.load %arg10[%c3_433, %c0_434, %c0_435] : memref<6x16x16xbf16, #tpu.memory_space<vmem>>, vector<1x16x16xbf16>
    %1633 = vector.shape_cast %1632 : vector<1x16x16xbf16> to vector<16x16xbf16>
    %1634 = arith.truncf %1628 : vector<16x16xf32> to vector<16x16xbf16>
    %cst_436 = arith.constant dense<0.000000e+00> : vector<16x16xf32>
    %1635 = tpu.matmul %1633, %1634, %cst_436 {dimension_numbers = #tpu.dot_dimension_numbers<[1], [0], [0], [1], [0, 0, 1, 1], [], []>} : vector<16x16xbf16>, vector<16x16xbf16>, vector<16x16xf32> -> vector<16x16xf32>
    %c4_437 = arith.constant 4 : index
    %c0_438 = arith.constant 0 : index
    %c0_439 = arith.constant 0 : index
    %1636 = vector.load %arg10[%c4_437, %c0_438, %c0_439] : memref<6x16x16xbf16, #tpu.memory_space<vmem>>, vector<1x16x16xbf16>
    %1637 = vector.shape_cast %1636 : vector<1x16x16xbf16> to vector<16x16xbf16>
    %1638 = arith.truncf %1631 : vector<16x16xf32> to vector<16x16xbf16>
    %cst_440 = arith.constant dense<0.000000e+00> : vector<16x16xf32>
    %1639 = tpu.matmul %1637, %1638, %cst_440 {dimension_numbers = #tpu.dot_dimension_numbers<[1], [0], [0], [1], [0, 0, 1, 1], [], []>} : vector<16x16xbf16>, vector<16x16xbf16>, vector<16x16xf32> -> vector<16x16xf32>
    %c5_441 = arith.constant 5 : index
    %c0_442 = arith.constant 0 : index
    %c0_443 = arith.constant 0 : index
    %1640 = vector.load %arg10[%c5_441, %c0_442, %c0_443] : memref<6x16x16xbf16, #tpu.memory_space<vmem>>, vector<1x16x16xbf16>
    %1641 = vector.shape_cast %1640 : vector<1x16x16xbf16> to vector<16x16xbf16>
    %1642 = arith.addf %1628, %1631 : vector<16x16xf32>
    %1643 = arith.truncf %1642 : vector<16x16xf32> to vector<16x16xbf16>
    %cst_444 = arith.constant dense<0.000000e+00> : vector<16x16xf32>
    %1644 = tpu.matmul %1641, %1643, %cst_444 {dimension_numbers = #tpu.dot_dimension_numbers<[1], [0], [0], [1], [0, 0, 1, 1], [], []>} : vector<16x16xbf16>, vector<16x16xbf16>, vector<16x16xf32> -> vector<16x16xf32>
    %1645 = arith.subf %1635, %1639 : vector<16x16xf32>
    %1646 = arith.subf %1644, %1635 : vector<16x16xf32>
    %1647 = arith.subf %1646, %1639 : vector<16x16xf32>
    %c0_445 = arith.constant 0 : index
    %c0_446 = arith.constant 0 : index
    %c1_447 = arith.constant 1 : index
    %c0_448 = arith.constant 0 : index
    %c0_449 = arith.constant 0 : index
    %1648 = vector.load %arg8[%c0_445, %c0_446, %c1_447, %c0_448, %c0_449] : memref<1x2x4x16x16xf32, #tpu.memory_space<vmem>>, vector<1x1x1x16x16xf32>
    %1649 = vector.shape_cast %1648 : vector<1x1x1x16x16xf32> to vector<16x16xf32>
    %c0_450 = arith.constant 0 : index
    %c1_451 = arith.constant 1 : index
    %c1_452 = arith.constant 1 : index
    %c0_453 = arith.constant 0 : index
    %c0_454 = arith.constant 0 : index
    %1650 = vector.load %arg8[%c0_450, %c1_451, %c1_452, %c0_453, %c0_454] : memref<1x2x4x16x16xf32, #tpu.memory_space<vmem>>, vector<1x1x1x16x16xf32>
    %1651 = vector.shape_cast %1650 : vector<1x1x1x16x16xf32> to vector<16x16xf32>
    %1652 = arith.mulf %1649, %1618 : vector<16x16xf32>
    %1653 = arith.mulf %1651, %1621 : vector<16x16xf32>
    %1654 = arith.subf %1652, %1653 : vector<16x16xf32>
    %1655 = arith.mulf %1649, %1621 : vector<16x16xf32>
    %1656 = arith.mulf %1651, %1618 : vector<16x16xf32>
    %1657 = arith.addf %1655, %1656 : vector<16x16xf32>
    %c3_455 = arith.constant 3 : index
    %c0_456 = arith.constant 0 : index
    %c0_457 = arith.constant 0 : index
    %1658 = vector.load %arg10[%c3_455, %c0_456, %c0_457] : memref<6x16x16xbf16, #tpu.memory_space<vmem>>, vector<1x16x16xbf16>
    %1659 = vector.shape_cast %1658 : vector<1x16x16xbf16> to vector<16x16xbf16>
    %1660 = arith.truncf %1654 : vector<16x16xf32> to vector<16x16xbf16>
    %cst_458 = arith.constant dense<0.000000e+00> : vector<16x16xf32>
    %1661 = tpu.matmul %1659, %1660, %cst_458 {dimension_numbers = #tpu.dot_dimension_numbers<[1], [0], [0], [1], [0, 0, 1, 1], [], []>} : vector<16x16xbf16>, vector<16x16xbf16>, vector<16x16xf32> -> vector<16x16xf32>
    %c4_459 = arith.constant 4 : index
    %c0_460 = arith.constant 0 : index
    %c0_461 = arith.constant 0 : index
    %1662 = vector.load %arg10[%c4_459, %c0_460, %c0_461] : memref<6x16x16xbf16, #tpu.memory_space<vmem>>, vector<1x16x16xbf16>
    %1663 = vector.shape_cast %1662 : vector<1x16x16xbf16> to vector<16x16xbf16>
    %1664 = arith.truncf %1657 : vector<16x16xf32> to vector<16x16xbf16>
    %cst_462 = arith.constant dense<0.000000e+00> : vector<16x16xf32>
    %1665 = tpu.matmul %1663, %1664, %cst_462 {dimension_numbers = #tpu.dot_dimension_numbers<[1], [0], [0], [1], [0, 0, 1, 1], [], []>} : vector<16x16xbf16>, vector<16x16xbf16>, vector<16x16xf32> -> vector<16x16xf32>
    %c5_463 = arith.constant 5 : index
    %c0_464 = arith.constant 0 : index
    %c0_465 = arith.constant 0 : index
    %1666 = vector.load %arg10[%c5_463, %c0_464, %c0_465] : memref<6x16x16xbf16, #tpu.memory_space<vmem>>, vector<1x16x16xbf16>
    %1667 = vector.shape_cast %1666 : vector<1x16x16xbf16> to vector<16x16xbf16>
    %1668 = arith.addf %1654, %1657 : vector<16x16xf32>
    %1669 = arith.truncf %1668 : vector<16x16xf32> to vector<16x16xbf16>
    %cst_466 = arith.constant dense<0.000000e+00> : vector<16x16xf32>
    %1670 = tpu.matmul %1667, %1669, %cst_466 {dimension_numbers = #tpu.dot_dimension_numbers<[1], [0], [0], [1], [0, 0, 1, 1], [], []>} : vector<16x16xbf16>, vector<16x16xbf16>, vector<16x16xf32> -> vector<16x16xf32>
    %1671 = arith.subf %1661, %1665 : vector<16x16xf32>
    %1672 = arith.subf %1670, %1661 : vector<16x16xf32>
    %1673 = arith.subf %1672, %1665 : vector<16x16xf32>
    %c0_467 = arith.constant 0 : index
    %c0_468 = arith.constant 0 : index
    %c2_469 = arith.constant 2 : index
    %c0_470 = arith.constant 0 : index
    %c0_471 = arith.constant 0 : index
    %1674 = vector.load %arg8[%c0_467, %c0_468, %c2_469, %c0_470, %c0_471] : memref<1x2x4x16x16xf32, #tpu.memory_space<vmem>>, vector<1x1x1x16x16xf32>
    %1675 = vector.shape_cast %1674 : vector<1x1x1x16x16xf32> to vector<16x16xf32>
    %c0_472 = arith.constant 0 : index
    %c1_473 = arith.constant 1 : index
    %c2_474 = arith.constant 2 : index
    %c0_475 = arith.constant 0 : index
    %c0_476 = arith.constant 0 : index
    %1676 = vector.load %arg8[%c0_472, %c1_473, %c2_474, %c0_475, %c0_476] : memref<1x2x4x16x16xf32, #tpu.memory_space<vmem>>, vector<1x1x1x16x16xf32>
    %1677 = vector.shape_cast %1676 : vector<1x1x1x16x16xf32> to vector<16x16xf32>
    %1678 = arith.mulf %1675, %1618 : vector<16x16xf32>
    %1679 = arith.mulf %1677, %1621 : vector<16x16xf32>
    %1680 = arith.subf %1678, %1679 : vector<16x16xf32>
    %1681 = arith.mulf %1675, %1621 : vector<16x16xf32>
    %1682 = arith.mulf %1677, %1618 : vector<16x16xf32>
    %1683 = arith.addf %1681, %1682 : vector<16x16xf32>
    %c3_477 = arith.constant 3 : index
    %c0_478 = arith.constant 0 : index
    %c0_479 = arith.constant 0 : index
    %1684 = vector.load %arg10[%c3_477, %c0_478, %c0_479] : memref<6x16x16xbf16, #tpu.memory_space<vmem>>, vector<1x16x16xbf16>
    %1685 = vector.shape_cast %1684 : vector<1x16x16xbf16> to vector<16x16xbf16>
    %1686 = arith.truncf %1680 : vector<16x16xf32> to vector<16x16xbf16>
    %cst_480 = arith.constant dense<0.000000e+00> : vector<16x16xf32>
    %1687 = tpu.matmul %1685, %1686, %cst_480 {dimension_numbers = #tpu.dot_dimension_numbers<[1], [0], [0], [1], [0, 0, 1, 1], [], []>} : vector<16x16xbf16>, vector<16x16xbf16>, vector<16x16xf32> -> vector<16x16xf32>
    %c4_481 = arith.constant 4 : index
    %c0_482 = arith.constant 0 : index
    %c0_483 = arith.constant 0 : index
    %1688 = vector.load %arg10[%c4_481, %c0_482, %c0_483] : memref<6x16x16xbf16, #tpu.memory_space<vmem>>, vector<1x16x16xbf16>
    %1689 = vector.shape_cast %1688 : vector<1x16x16xbf16> to vector<16x16xbf16>
    %1690 = arith.truncf %1683 : vector<16x16xf32> to vector<16x16xbf16>
    %cst_484 = arith.constant dense<0.000000e+00> : vector<16x16xf32>
    %1691 = tpu.matmul %1689, %1690, %cst_484 {dimension_numbers = #tpu.dot_dimension_numbers<[1], [0], [0], [1], [0, 0, 1, 1], [], []>} : vector<16x16xbf16>, vector<16x16xbf16>, vector<16x16xf32> -> vector<16x16xf32>
    %c5_485 = arith.constant 5 : index
    %c0_486 = arith.constant 0 : index
    %c0_487 = arith.constant 0 : index
    %1692 = vector.load %arg10[%c5_485, %c0_486, %c0_487] : memref<6x16x16xbf16, #tpu.memory_space<vmem>>, vector<1x16x16xbf16>
    %1693 = vector.shape_cast %1692 : vector<1x16x16xbf16> to vector<16x16xbf16>
    %1694 = arith.addf %1680, %1683 : vector<16x16xf32>
    %1695 = arith.truncf %1694 : vector<16x16xf32> to vector<16x16xbf16>
    %cst_488 = arith.constant dense<0.000000e+00> : vector<16x16xf32>
    %1696 = tpu.matmul %1693, %1695, %cst_488 {dimension_numbers = #tpu.dot_dimension_numbers<[1], [0], [0], [1], [0, 0, 1, 1], [], []>} : vector<16x16xbf16>, vector<16x16xbf16>, vector<16x16xf32> -> vector<16x16xf32>
    %1697 = arith.subf %1687, %1691 : vector<16x16xf32>
    %1698 = arith.subf %1696, %1687 : vector<16x16xf32>
    %1699 = arith.subf %1698, %1691 : vector<16x16xf32>
    %c0_489 = arith.constant 0 : index
    %c0_490 = arith.constant 0 : index
    %c3_491 = arith.constant 3 : index
    %c0_492 = arith.constant 0 : index
    %c0_493 = arith.constant 0 : index
    %1700 = vector.load %arg8[%c0_489, %c0_490, %c3_491, %c0_492, %c0_493] : memref<1x2x4x16x16xf32, #tpu.memory_space<vmem>>, vector<1x1x1x16x16xf32>
    %1701 = vector.shape_cast %1700 : vector<1x1x1x16x16xf32> to vector<16x16xf32>
    %c0_494 = arith.constant 0 : index
    %c1_495 = arith.constant 1 : index
    %c3_496 = arith.constant 3 : index
    %c0_497 = arith.constant 0 : index
    %c0_498 = arith.constant 0 : index
    %1702 = vector.load %arg8[%c0_494, %c1_495, %c3_496, %c0_497, %c0_498] : memref<1x2x4x16x16xf32, #tpu.memory_space<vmem>>, vector<1x1x1x16x16xf32>
    %1703 = vector.shape_cast %1702 : vector<1x1x1x16x16xf32> to vector<16x16xf32>
    %1704 = arith.mulf %1701, %1618 : vector<16x16xf32>
    %1705 = arith.mulf %1703, %1621 : vector<16x16xf32>
    %1706 = arith.subf %1704, %1705 : vector<16x16xf32>
    %1707 = arith.mulf %1701, %1621 : vector<16x16xf32>
    %1708 = arith.mulf %1703, %1618 : vector<16x16xf32>
    %1709 = arith.addf %1707, %1708 : vector<16x16xf32>
    %c3_499 = arith.constant 3 : index
    %c0_500 = arith.constant 0 : index
    %c0_501 = arith.constant 0 : index
    %1710 = vector.load %arg10[%c3_499, %c0_500, %c0_501] : memref<6x16x16xbf16, #tpu.memory_space<vmem>>, vector<1x16x16xbf16>
    %1711 = vector.shape_cast %1710 : vector<1x16x16xbf16> to vector<16x16xbf16>
    %1712 = arith.truncf %1706 : vector<16x16xf32> to vector<16x16xbf16>
    %cst_502 = arith.constant dense<0.000000e+00> : vector<16x16xf32>
    %1713 = tpu.matmul %1711, %1712, %cst_502 {dimension_numbers = #tpu.dot_dimension_numbers<[1], [0], [0], [1], [0, 0, 1, 1], [], []>} : vector<16x16xbf16>, vector<16x16xbf16>, vector<16x16xf32> -> vector<16x16xf32>
    %c4_503 = arith.constant 4 : index
    %c0_504 = arith.constant 0 : index
    %c0_505 = arith.constant 0 : index
    %1714 = vector.load %arg10[%c4_503, %c0_504, %c0_505] : memref<6x16x16xbf16, #tpu.memory_space<vmem>>, vector<1x16x16xbf16>
    %1715 = vector.shape_cast %1714 : vector<1x16x16xbf16> to vector<16x16xbf16>
    %1716 = arith.truncf %1709 : vector<16x16xf32> to vector<16x16xbf16>
    %cst_506 = arith.constant dense<0.000000e+00> : vector<16x16xf32>
    %1717 = tpu.matmul %1715, %1716, %cst_506 {dimension_numbers = #tpu.dot_dimension_numbers<[1], [0], [0], [1], [0, 0, 1, 1], [], []>} : vector<16x16xbf16>, vector<16x16xbf16>, vector<16x16xf32> -> vector<16x16xf32>
    %c5_507 = arith.constant 5 : index
    %c0_508 = arith.constant 0 : index
    %c0_509 = arith.constant 0 : index
    %1718 = vector.load %arg10[%c5_507, %c0_508, %c0_509] : memref<6x16x16xbf16, #tpu.memory_space<vmem>>, vector<1x16x16xbf16>
    %1719 = vector.shape_cast %1718 : vector<1x16x16xbf16> to vector<16x16xbf16>
    %1720 = arith.addf %1706, %1709 : vector<16x16xf32>
    %1721 = arith.truncf %1720 : vector<16x16xf32> to vector<16x16xbf16>
    %cst_510 = arith.constant dense<0.000000e+00> : vector<16x16xf32>
    %1722 = tpu.matmul %1719, %1721, %cst_510 {dimension_numbers = #tpu.dot_dimension_numbers<[1], [0], [0], [1], [0, 0, 1, 1], [], []>} : vector<16x16xbf16>, vector<16x16xbf16>, vector<16x16xf32> -> vector<16x16xf32>
    %1723 = arith.subf %1713, %1717 : vector<16x16xf32>
    %1724 = arith.subf %1722, %1713 : vector<16x16xf32>
    %1725 = arith.subf %1724, %1717 : vector<16x16xf32>
    %1726 = tpu.concatenate %1645, %1671, %1697, %1723 in 0 : vector<16x16xf32>, vector<16x16xf32>, vector<16x16xf32>, vector<16x16xf32> -> vector<64x16xf32>
    %1727 = tpu.concatenate %1647, %1673, %1699, %1725 in 0 : vector<16x16xf32>, vector<16x16xf32>, vector<16x16xf32>, vector<16x16xf32> -> vector<64x16xf32>
    %1728 = arith.truncf %1726 : vector<64x16xf32> to vector<64x16xbf16>
    %c3_511 = arith.constant 3 : index
    %c0_512 = arith.constant 0 : index
    %c0_513 = arith.constant 0 : index
    %1729 = vector.load %arg11[%c3_511, %c0_512, %c0_513] : memref<6x16x16xbf16, #tpu.memory_space<vmem>>, vector<1x16x16xbf16>
    %1730 = vector.shape_cast %1729 : vector<1x16x16xbf16> to vector<16x16xbf16>
    %cst_514 = arith.constant dense<0.000000e+00> : vector<64x16xf32>
    %1731 = tpu.matmul %1728, %1730, %cst_514 {dimension_numbers = #tpu.dot_dimension_numbers<[1], [0], [0], [1], [0, 0, 1, 1], [], []>} : vector<64x16xbf16>, vector<16x16xbf16>, vector<64x16xf32> -> vector<64x16xf32>
    %1732 = arith.truncf %1727 : vector<64x16xf32> to vector<64x16xbf16>
    %c4_515 = arith.constant 4 : index
    %c0_516 = arith.constant 0 : index
    %c0_517 = arith.constant 0 : index
    %1733 = vector.load %arg11[%c4_515, %c0_516, %c0_517] : memref<6x16x16xbf16, #tpu.memory_space<vmem>>, vector<1x16x16xbf16>
    %1734 = vector.shape_cast %1733 : vector<1x16x16xbf16> to vector<16x16xbf16>
    %cst_518 = arith.constant dense<0.000000e+00> : vector<64x16xf32>
    %1735 = tpu.matmul %1732, %1734, %cst_518 {dimension_numbers = #tpu.dot_dimension_numbers<[1], [0], [0], [1], [0, 0, 1, 1], [], []>} : vector<64x16xbf16>, vector<16x16xbf16>, vector<64x16xf32> -> vector<64x16xf32>
    %1736 = arith.addf %1726, %1727 : vector<64x16xf32>
    %1737 = arith.truncf %1736 : vector<64x16xf32> to vector<64x16xbf16>
    %c5_519 = arith.constant 5 : index
    %c0_520 = arith.constant 0 : index
    %c0_521 = arith.constant 0 : index
    %1738 = vector.load %arg11[%c5_519, %c0_520, %c0_521] : memref<6x16x16xbf16, #tpu.memory_space<vmem>>, vector<1x16x16xbf16>
    %1739 = vector.shape_cast %1738 : vector<1x16x16xbf16> to vector<16x16xbf16>
    %cst_522 = arith.constant dense<0.000000e+00> : vector<64x16xf32>
    %1740 = tpu.matmul %1737, %1739, %cst_522 {dimension_numbers = #tpu.dot_dimension_numbers<[1], [0], [0], [1], [0, 0, 1, 1], [], []>} : vector<64x16xbf16>, vector<16x16xbf16>, vector<64x16xf32> -> vector<64x16xf32>
    %1741 = arith.subf %1731, %1735 : vector<64x16xf32>
    %1742 = arith.subf %1740, %1731 : vector<64x16xf32>
    %1743 = arith.subf %1742, %1735 : vector<64x16xf32>
    %c0_523 = arith.constant 0 : index
    %c0_524 = arith.constant 0 : index
    %c0_525 = arith.constant 0 : index
    %1744 = vector.load %arg9[%c0_523, %c0_524, %c0_525] : memref<1x16x16xf32, #tpu.memory_space<vmem>>, vector<1x16x16xf32>
    %1745 = vector.shape_cast %1744 : vector<1x16x16xf32> to vector<16x16xf32>
    %cst_526 = arith.constant 0.000000e+00 : f32
    %1746 = vector.broadcast %cst_526 : f32 to vector<16x16xf32>
    %1747 = arith.cmpf oeq, %1745, %1746 : vector<16x16xf32>
    %c0_527 = arith.constant 0 : index
    %1748 = memref.load %arg1[%c0_527] : memref<1xf32, #tpu.memory_space<smem>>
    %cst_528 = arith.constant 0.000000e+00 : f32
    %1749 = vector.broadcast %cst_528 : f32 to vector<16x16xf32>
    %1750 = vector.broadcast %1748 : f32 to vector<16x16xf32>
    %1751 = arith.select %1747, %1749, %1750 : vector<16x16xi1>, vector<16x16xf32>
    %c0_529 = arith.constant 0 : index
    %c0_530 = arith.constant 0 : index
    %c0_531 = arith.constant 0 : index
    %c0_532 = arith.constant 0 : index
    %c0_533 = arith.constant 0 : index
    %1752 = vector.load %arg6[%c0_529, %c0_530, %c0_531, %c0_532, %c0_533] : memref<1x2x4x16x16xf32, #tpu.memory_space<vmem>>, vector<1x1x4x16x16xf32>
    %1753 = vector.shape_cast %1752 : vector<1x1x4x16x16xf32> to vector<4x16x16xf32>
    %c0_534 = arith.constant 0 : index
    %c1_535 = arith.constant 1 : index
    %c0_536 = arith.constant 0 : index
    %c0_537 = arith.constant 0 : index
    %c0_538 = arith.constant 0 : index
    %1754 = vector.load %arg6[%c0_534, %c1_535, %c0_536, %c0_537, %c0_538] : memref<1x2x4x16x16xf32, #tpu.memory_space<vmem>>, vector<1x1x4x16x16xf32>
    %1755 = vector.shape_cast %1754 : vector<1x1x4x16x16xf32> to vector<4x16x16xf32>
    %1756 = vector.shape_cast %1751 : vector<16x16xf32> to vector<1x16x16xf32>
    %c0_539 = arith.constant 0 : index
    %c0_540 = arith.constant 0 : index
    %c0_541 = arith.constant 0 : index
    %c0_542 = arith.constant 0 : index
    %c0_543 = arith.constant 0 : index
    %1757 = vector.load %arg7[%c0_539, %c0_540, %c0_541, %c0_542, %c0_543] : memref<1x2x4x16x16xf32, #tpu.memory_space<vmem>>, vector<1x1x4x16x16xf32>
    %1758 = vector.shape_cast %1757 : vector<1x1x4x16x16xf32> to vector<4x16x16xf32>
    %1759 = arith.subf %1753, %1758 : vector<4x16x16xf32>
    %1760 = vector.broadcast %1756 : vector<1x16x16xf32> to vector<4x16x16xf32>
    %1761 = arith.mulf %1760, %1759 : vector<4x16x16xf32>
    %1762 = arith.subf %1753, %1761 : vector<4x16x16xf32>
    %1763 = vector.shape_cast %1741 : vector<64x16xf32> to vector<4x16x16xf32>
    %1764 = arith.addf %1762, %1763 : vector<4x16x16xf32>
    %c0_544 = arith.constant 0 : index
    %c0_545 = arith.constant 0 : index
    %c0_546 = arith.constant 0 : index
    %c0_547 = arith.constant 0 : index
    %c0_548 = arith.constant 0 : index
    %1765 = vector.load %arg13[%c0_544, %c0_545, %c0_546, %c0_547, %c0_548] : memref<1x2x4x16x16xf32, #tpu.memory_space<vmem>>, vector<1x1x4x16x16xf32>
    %1766 = vector.shape_cast %1765 : vector<1x1x4x16x16xf32> to vector<4x16x16xf32>
    %1767 = vector.shape_cast %1764 : vector<4x16x16xf32> to vector<1x1x4x16x16xf32>
    tpu.vector_store %arg13[%c0_544, %c0_545, %c0_546, %c0_547, %c0_548], %1767 {strides = array<i32>} : memref<1x2x4x16x16xf32, #tpu.memory_space<vmem>>, vector<1x1x4x16x16xf32>,
    %1768 = vector.shape_cast %1751 : vector<16x16xf32> to vector<1x16x16xf32>
    %c0_549 = arith.constant 0 : index
    %c1_550 = arith.constant 1 : index
    %c0_551 = arith.constant 0 : index
    %c0_552 = arith.constant 0 : index
    %c0_553 = arith.constant 0 : index
    %1769 = vector.load %arg7[%c0_549, %c1_550, %c0_551, %c0_552, %c0_553] : memref<1x2x4x16x16xf32, #tpu.memory_space<vmem>>, vector<1x1x4x16x16xf32>
    %1770 = vector.shape_cast %1769 : vector<1x1x4x16x16xf32> to vector<4x16x16xf32>
    %1771 = arith.subf %1755, %1770 : vector<4x16x16xf32>
    %1772 = vector.broadcast %1768 : vector<1x16x16xf32> to vector<4x16x16xf32>
    %1773 = arith.mulf %1772, %1771 : vector<4x16x16xf32>
    %1774 = arith.subf %1755, %1773 : vector<4x16x16xf32>
    %1775 = vector.shape_cast %1743 : vector<64x16xf32> to vector<4x16x16xf32>
    %1776 = arith.addf %1774, %1775 : vector<4x16x16xf32>
    %c0_554 = arith.constant 0 : index
    %c1_555 = arith.constant 1 : index
    %c0_556 = arith.constant 0 : index
    %c0_557 = arith.constant 0 : index
    %c0_558 = arith.constant 0 : index
    %1777 = vector.load %arg13[%c0_554, %c1_555, %c0_556, %c0_557, %c0_558] : memref<1x2x4x16x16xf32, #tpu.memory_space<vmem>>, vector<1x1x4x16x16xf32>
    %1778 = vector.shape_cast %1777 : vector<1x1x4x16x16xf32> to vector<4x16x16xf32>
    %1779 = vector.shape_cast %1776 : vector<4x16x16xf32> to vector<1x1x4x16x16xf32>
    tpu.vector_store %arg13[%c0_554, %c1_555, %c0_556, %c0_557, %c0_558], %1779 {strides = array<i32>} : memref<1x2x4x16x16xf32, #tpu.memory_space<vmem>>, vector<1x1x4x16x16xf32>,
    return
  }
  func.func @transform_0(%arg0: i32, %arg1: memref<1xf32, #tpu.memory_space<smem>>, %arg2: memref<144xf32, #tpu.memory_space<smem>>, %arg3: memref<8xf32, #tpu.memory_space<smem>>, %arg4: memref<144xf32, #tpu.memory_space<smem>>, %arg5: memref<2xf32, #tpu.memory_space<smem>>) -> (i32, i32, i32, i32, i32) {
    %c0_i32 = arith.constant 0 : i32
    %c0_i32_0 = arith.constant 0 : i32
    %c0_i32_1 = arith.constant 0 : i32
    %c0_i32_2 = arith.constant 0 : i32
    %c0_i32_3 = arith.constant 0 : i32
    return %arg0, %c0_i32, %c0_i32_0, %c0_i32_1, %c0_i32_2 : i32, i32, i32, i32, i32
  }
  func.func @transform_1(%arg0: i32, %arg1: memref<1xf32, #tpu.memory_space<smem>>, %arg2: memref<144xf32, #tpu.memory_space<smem>>, %arg3: memref<8xf32, #tpu.memory_space<smem>>, %arg4: memref<144xf32, #tpu.memory_space<smem>>, %arg5: memref<2xf32, #tpu.memory_space<smem>>) -> (i32, i32, i32, i32, i32) {
    %c0_i32 = arith.constant 0 : i32
    %c0_i32_0 = arith.constant 0 : i32
    %c0_i32_1 = arith.constant 0 : i32
    %c0_i32_2 = arith.constant 0 : i32
    %c0_i32_3 = arith.constant 0 : i32
    return %arg0, %c0_i32, %c0_i32_0, %c0_i32_1, %c0_i32_2 : i32, i32, i32, i32, i32
  }
  func.func @transform_2(%arg0: i32, %arg1: memref<1xf32, #tpu.memory_space<smem>>, %arg2: memref<144xf32, #tpu.memory_space<smem>>, %arg3: memref<8xf32, #tpu.memory_space<smem>>, %arg4: memref<144xf32, #tpu.memory_space<smem>>, %arg5: memref<2xf32, #tpu.memory_space<smem>>) -> (i32, i32, i32, i32, i32) {
    %c0_i32 = arith.constant 0 : i32
    %c0_i32_0 = arith.constant 0 : i32
    %c0_i32_1 = arith.constant 0 : i32
    %c0_i32_2 = arith.constant 0 : i32
    %c0_i32_3 = arith.constant 0 : i32
    return %arg0, %c0_i32, %c0_i32_0, %c0_i32_1, %c0_i32_2 : i32, i32, i32, i32, i32
  }
  func.func @transform_3(%arg0: i32, %arg1: memref<1xf32, #tpu.memory_space<smem>>, %arg2: memref<144xf32, #tpu.memory_space<smem>>, %arg3: memref<8xf32, #tpu.memory_space<smem>>, %arg4: memref<144xf32, #tpu.memory_space<smem>>, %arg5: memref<2xf32, #tpu.memory_space<smem>>) -> (i32, i32, i32) {
    %c0_i32 = arith.constant 0 : i32
    %c0_i32_0 = arith.constant 0 : i32
    %c0_i32_1 = arith.constant 0 : i32
    return %arg0, %c0_i32, %c0_i32_0 : i32, i32, i32
  }
  func.func @transform_4(%arg0: i32, %arg1: memref<1xf32, #tpu.memory_space<smem>>, %arg2: memref<144xf32, #tpu.memory_space<smem>>, %arg3: memref<8xf32, #tpu.memory_space<smem>>, %arg4: memref<144xf32, #tpu.memory_space<smem>>, %arg5: memref<2xf32, #tpu.memory_space<smem>>) -> (i32, i32, i32) {
    %c0_i32 = arith.constant 0 : i32
    %c0_i32_0 = arith.constant 0 : i32
    %c0_i32_1 = arith.constant 0 : i32
    %c0_i32_2 = arith.constant 0 : i32
    return %c0_i32, %c0_i32_0, %c0_i32_1 : i32, i32, i32
  }
  func.func @transform_5(%arg0: i32, %arg1: memref<1xf32, #tpu.memory_space<smem>>, %arg2: memref<144xf32, #tpu.memory_space<smem>>, %arg3: memref<8xf32, #tpu.memory_space<smem>>, %arg4: memref<144xf32, #tpu.memory_space<smem>>, %arg5: memref<2xf32, #tpu.memory_space<smem>>) -> (i32, i32, i32) {
    %c0_i32 = arith.constant 0 : i32
    %c0_i32_0 = arith.constant 0 : i32
    %c0_i32_1 = arith.constant 0 : i32
    %c0_i32_2 = arith.constant 0 : i32
    return %c0_i32, %c0_i32_0, %c0_i32_1 : i32, i32, i32
  }
  func.func @transform_6(%arg0: i32, %arg1: memref<1xf32, #tpu.memory_space<smem>>, %arg2: memref<144xf32, #tpu.memory_space<smem>>, %arg3: memref<8xf32, #tpu.memory_space<smem>>, %arg4: memref<144xf32, #tpu.memory_space<smem>>, %arg5: memref<2xf32, #tpu.memory_space<smem>>) -> (i32, i32, i32) {
    %c0_i32 = arith.constant 0 : i32
    %c0_i32_0 = arith.constant 0 : i32
    %c0_i32_1 = arith.constant 0 : i32
    %c0_i32_2 = arith.constant 0 : i32
    return %c0_i32, %c0_i32_0, %c0_i32_1 : i32, i32, i32
  }
  func.func @transform_7(%arg0: i32, %arg1: memref<1xf32, #tpu.memory_space<smem>>, %arg2: memref<144xf32, #tpu.memory_space<smem>>, %arg3: memref<8xf32, #tpu.memory_space<smem>>, %arg4: memref<144xf32, #tpu.memory_space<smem>>, %arg5: memref<2xf32, #tpu.memory_space<smem>>) -> (i32, i32, i32, i32, i32) {
    %c0_i32 = arith.constant 0 : i32
    %c0_i32_0 = arith.constant 0 : i32
    %c0_i32_1 = arith.constant 0 : i32
    %c0_i32_2 = arith.constant 0 : i32
    %c0_i32_3 = arith.constant 0 : i32
    return %arg0, %c0_i32, %c0_i32_0, %c0_i32_1, %c0_i32_2 : i32, i32, i32, i32, i32
  }
}

</mosaic_0001>

<bundles_post_ra>
// kernel: tpu_custom_call.1
= control target key start
LH: loop header
LB: loop body
LE: loop exit
PB: predicated region body
PF: predicated region fallthrough
CT: control target
= control target key end

     0   :  { %s11476_s0 = inlined_call_operand.<no memory space> [shape: f32[1], index: 0, kind: input, shape index: {}]   ;;  %s11477_s1 = inlined_call_operand.vmem [shape: f32[144], index: 1, kind: input, shape index: {}]   ;;  %s11478_s5 = inlined_call_operand.hbm [shape: f32[2,2,4,16,16], index: 5, kind: input, shape index: {}]   ;;  %s11479_s6 = inlined_call_operand.hbm [shape: f32[2,2,4,16,16], index: 6, kind: input, shape index: {}]   ;;  %s11480_s7 = inlined_call_operand.hbm [shape: f32[2,2,4,16,16], index: 7, kind: input, shape index: {}]   ;;  %s11481_s8 = inlined_call_operand.hbm [shape: f32[2,16,16], index: 8, kind: input, shape index: {}]   ;;  %s11482_s9 = inlined_call_operand.hbm [shape: bf16[6,16,16], index: 9, kind: input, shape index: {}]   ;;  %s11483_s10 = inlined_call_operand.hbm [shape: bf16[6,16,16], index: 10, kind: input, shape index: {}]   ;;  %s11484_s11 = inlined_call_operand.vmem [shape: bf16[2,16,16], index: 11, kind: input, shape index: {}]   ;;  %s11485_s12 = inlined_call_operand.hbm [shape: f32[2,2,4,16,16], index: 12, kind: output, shape index: {}]   ;;  %s11486_s3 = inlined_call_operand.vmem [shape: f32[144], index: 3, kind: input, shape index: {}]   ;;  %s11487_s2 = inlined_call_operand.hbm [shape: f32[8], index: 2, kind: input, shape index: {}]   ;;  %s11488_s4 = inlined_call_operand.hbm [shape: f32[2], index: 4, kind: input, shape index: {}]  }
   0x1   :  { %11798 = sst [smem:[#allocation224_spill]] %s11478_s5  ;;  %s18_s25 = sshll.u32 %s11477_s1, 4  ;;  %s19_s25 = int_to_ptr.vmem [resolvable:$true] %s18_s25 }
   0x2   :  { %11799 = sst [smem:[#allocation225_spill]] %s11479_s6  ;;  %s24_s28 = sshll.u32 %s11486_s3, 4  ;;  %s25_s28 = int_to_ptr.vmem [resolvable:$true] %s24_s28 }
   0x3   :  { %11800 = sst [smem:[#allocation226_spill]] %s11480_s7  ;;  %s6755_s29 = scalar_lea.vmem %s19_s25, 32 }
   0x4   :  { %11801 = sst [smem:[#allocation227_spill]] %s11481_s8  ;;  %p6756_p0 = scmp.ne.s32.totalorder %s19_s25, %s6755_s29 }
   0x5   :  { %11802 = sst [smem:[#allocation228_spill]] %s11482_s9  ;;  %p6760_p1 = scmp.lt.s32.totalorder %s19_s25, %s19_s25 }
   0x6   :  { %11803 = sst [smem:[#allocation229_spill]] %s11483_s10  ;;  %p6761_p2 = scmp.lt.s32.totalorder %s6755_s29, %s6755_s29 }
   0x7   :  { %11804 = sst [smem:[#allocation230_spill]] %s11484_s11 }
   0x8   :  { %11805 = sst [smem:[#allocation231_spill]] %s11485_s12  ;;  %p6762_p3 = por %p6761_p2, %p6760_p1 }
   0x9   :  { %17 = sst [smem:[#allocation3]] %s11476_s0 }
   0xa   :  { %p6763_p4 = pnand %p6762_p3, %p6756_p0 }
   0xc   :  { %6766 = shalt.err (!%p6763_p4)  }
   0xd   :  { %s7043_s30 = smov [#allocation4]   ;;  %s7044_s13 = smov [#allocation5]  }
   0xe   :  { %21 = dma.vmem_to_smem %s19_s25, 32, %s7043_s30, [#allocation2] }
   0xf   :  { %23 = dma.hbm_to_smem %s11487_s2, 16, %s7044_s13, [#allocation2] }
  0x10   :  { %s6775_s1 = scalar_lea.vmem %s25_s28, 32  ;;  %p6780_p6 = scmp.lt.s32.totalorder %s25_s28, %s25_s28 }
  0x11   :  { %p6776_p5 = scmp.ne.s32.totalorder %s25_s28, %s6775_s1  ;;  %p6781_p7 = scmp.lt.s32.totalorder %s6775_s1, %s6775_s1 }
  0x13   :  { %p6782_p8 = por %p6781_p7, %p6780_p6 }
  0x15   :  { %p6783_p9 = pnand %p6782_p8, %p6776_p5 }
  0x17   :  { %6786 = shalt.err (!%p6783_p9)  }
  0x18   :  { %s7045_s3 = smov [#allocation6]   ;;  %s7046_s15 = smov [#allocation7]  }
  0x19   :  { %27 = dma.vmem_to_smem %s25_s28, 32, %s7045_s3, [#allocation2] }
  0x1a   :  { %29 = dma.hbm_to_smem %s11488_s4, 16, %s7046_s15, [#allocation2] }
  0x1b   :  { %7001 = dma.done.wait [#allocation2], 96 }
  0x1c   :  { %7002 = vsyncadd [#allocation2], 4294967200 }
  0x1d   :  { %31 = sfence }
  0x1e   :  { %32 = vsyncpa [#allocation9], 0 }
  0x1f   :  { %34 = vsyncpa [#allocation9 + $0x1], 0 }
  0x20   :  { %35 = vsyncpa [#allocation12], 0 }
  0x21   :  { %37 = vsyncpa [#allocation12 + $0x1], 0 }
  0x22   :  { %38 = vsyncpa [#allocation15], 0 }
  0x23   :  { %40 = vsyncpa [#allocation15 + $0x1], 0 }
  0x24   :  { %41 = vsyncpa [#allocation18], 0 }
  0x25   :  { %42 = vsyncpa [#allocation10], 0 }
  0x26   :  { %44 = vsyncpa [#allocation10 + $0x1], 0  ;;  %s7142_s2 = smov 0   ;;  %s7144_s18 = smov 0  }
  0x27   :  { %s7146_s19 = smov 0   ;;  %s7148_s20 = smov 0  }
  0x28 LB: > { %11806 = sst [smem:[#allocation27_spill]] %s7029_s2  ;;  %s7163_s4 = sadd.s32 4294967295, %s7041_s20   ;;  %s7041_s20 = sphi %s7148_s20, %s13203_s20   ;;  %s7037_s19 = sphi %s7146_s19, %s13206_s19   ;;  %s7033_s18 = sphi %s7144_s18, %s13205_s18   ;;  %s7029_s2 = sphi %s7142_s2, %s13204_s2  }
  0x29   : > { %11807 = sst [smem:[#allocation28_spill]] %s7033_s18  ;;  %s5718_s21 = sadd.s32 4294967294, %s7041_s20  }
  0x2a   : > { %11808 = sst [smem:[#allocation29_spill]] %s7037_s19  ;;  %s7167_s22 = sadd.s32 1, %s7041_s20  }
  0x2b   : > { %11809 = sst [smem:[#allocation30_spill]] %s7041_s20  ;;  %s57_s23 = sadd.s32 1, %s7037_s19 }
  0x2c   : > { %11810 = sst [smem:[#allocation31_spill]] %s7163_s4  ;;  %s54_s24 = ssub.s32 %s7041_s20, %s7167_s22 }
  0x2d   : > { %11811 = sst [smem:[#allocation32_spill]] %s7167_s22  ;;  %p64_p10 = scmp.ne.s32.totalorder %s7037_s19, %s7033_s18 }
  0x2e   : > { %p55_p11 = scmp.eq.s32.totalorder %s54_s24, 0  ;;  %p65_p12 = scmp.eq.s32.totalorder %s7041_s20, 0 }
  0x2f   : > { %p70_p13 = scmp.ne.s32.totalorder %s7033_s18, %s7029_s2  ;;  %p11489_p0 = scmp.eq.s32.totalorder %s7163_s4, 0 }
  0x30   : > { %s7179_s25 = scalar_select %p55_p11, %s7037_s19, %s57_s23  }
  0x31   : > { %p7181_p1 = por %p65_p12, %p64_p10  ;;  %p7187_p2 = por %p11489_p0, %p70_p13 }
  0x32   : > { %11812 = sst [smem:[#allocation33_spill]] %s7179_s25  ;;  %p235_p3 = scmp.eq.s32.totalorder %s7163_s4, 1 }
  0x33   : > { %s11814_s27 = scalar_select %p7187_p2, 1, 0 }
  0x34   : > { %p241_p4 = scmp.eq.s32.totalorder %s5718_s21, 1  ;;  %p5719_p5 = scmp.ge.s32.totalorder %s7041_s20, 1 }
  0x35   : > { %p248_p6 = scmp.lt.s32.totalorder %s7041_s20, 3  ;;  %p7194_p7 = por %p235_p3, %p64_p10 }
  0x36   : > { %p7198_p8 = por %p241_p4, %p70_p13  ;;  %s7047_s13 = smov [#allocation16]  }
  0x37   : > { %s11815_s28 = scalar_select %p7194_p7, 1, 0 }
  0x38   : > { %s11817_s29 = scalar_select %p7198_p8, 1, 0 }
  0x39   : > { %11816 = sst [smem:[#allocation34_spill]] %s11815_s28  ;;  %p7202_p9 = pnand %p5719_p5, %p248_p6 }
  0x3a   : > { %11818 = sst [smem:[#allocation35_spill]] %s11817_s29  ;;  %s260_s0 = sshll.u32 %s7047_s13, 4  ;;  %s261_s0 = int_to_ptr.vmem [resolvable:$true] %s260_s0 }
  0x3b   : > { %s11819_s30 = scalar_select %p7202_p9, 1, 0 }
  0x3c   : > { %p6631_p11 = pneg %p7202_p9  ;;  %p6657_p13 = scmp.lt.s32.totalorder %s7041_s20, 2 }
  0x3d   : > { %s7217_s1 = sand.u32 1, %s7037_s19   ;;  %s6806_s15 = scalar_lea.vmem %s261_s0, 768 }
  0x3e   : > { %p7210_p12 = pnand %p6631_p11, %p11489_p0  ;;  %s7220_s3 = sshll.u32 %s7217_s1, 7 }
  0x3f   : > { %p6807_p4 = scmp.ne.s32.totalorder %s261_s0, %s6806_s15  ;;  %p6814_p11 = scmp.lt.s32.totalorder %s261_s0, %s261_s0 }
  0x40   : > { %s11820_s14 = scalar_select %p7210_p12, 1, 0 }
  0x41   : > { %p11498_p3 = pneg %p7210_p12  ;;  %p6815_p0 = scmp.lt.s32.totalorder %s6806_s15, %s6806_s15 }
  0x43   : > { %p6809_p5 = pnand %p6807_p4, %p11498_p3  ;;  %p6816_p8 = por %p6815_p0, %p6814_p11 }
  0x45   : > { %p6810_p6 = pneg %p6809_p5 }
  0x47   : > { %p6817_p7 = pnand %p6816_p8, %p6810_p6 }
  0x49   : > { %6820 = shalt.err (!%p6817_p7)
}
  0x4a   : > { %s11494_s16 = smov 64   ;;  %s11495_s17 = smov 4  }
  0x4b   : > { %s11821_s9 = sld [smem:[#allocation228_spill]]  ;;  %s7236_s24 = sshll.u32 %s7041_s20, 11 }
  0x4c   : > { %p7242_p0 = pnand %p6657_p13, %p7181_p1  ;;  %s11496_s15 = sand.u32 1, %s7041_s20  }
  0x4d   : > { %s11823_s6 = sld [smem:[#allocation225_spill]]  ;;  %s7258_s26 = scalar_lea.sflag [#allocation12], %s11496_s15 }
  0x4e   : > { %p7264_p7 = pneg %p7242_p0 }
  0x51   : > { %6634 = dma.hbm_to_vmem [thread:$0]  (!%p7210_p12), %s11821_s9, 768, %s261_s0, [#allocation15], %s11494_s16, %s11494_s16, %s11495_s17  }
  0x52   : > { %s315_s0 = scalar_lea.vmem [#allocation11], %s7220_s3 }
  0x53   : > { %s7251_s22 = scalar_lea.hbm %s11823_s6, %s7236_s24  ;;  %s322_s21 = sshll.u32 %s315_s0, 4  ;;  %s7254_s21 = int_to_ptr.vmem [resolvable:$true] %s322_s21 }
  0x54   : > { %s6821_s23 = scalar_lea.hbm %s7251_s22, 2048  ;;  %s6826_s0 = scalar_lea.hbm %s11823_s6, 4096 }
  0x55   : > { %p6822_p1 = scmp.ne.s32.totalorder %s7251_s22, %s6821_s23  ;;  %p6827_p4 = scmp.lt.s32.totalorder %s7251_s22, %s11823_s6 }
  0x56   : > { %p6828_p5 = scmp.lt.s32.totalorder %s6826_s0, %s6821_s23 }
  0x57   : > { %p6824_p8 = pnand %p7264_p7, %p6822_p1 }
  0x58   : > { %p6829_p6 = por %p6828_p5, %p6827_p4 }
  0x59   : > { %p6825_p13 = pneg %p6824_p8 }
  0x5b   : > { %p6830_p11 = pnand %p6829_p6, %p6825_p13 }
  0x5d   : > { %6833 = shalt.err (!%p6830_p11)
}
  0x5e   : > { %s6834_s15 = scalar_lea.vmem %s7254_s21, 2048  ;;  %s7050_s29 = smov [#allocation11]  }
  0x5f   : > { %p6835_p10 = scmp.ne.s32.totalorder %s7254_s21, %s6834_s15  ;;  %s6839_s19 = sshll.u32 %s7050_s29, 4  ;;  %s6840_s19 = int_to_ptr.vmem [resolvable:$false] %s6839_s19 }
  0x60   : > { %s6841_s25 = scalar_lea.vmem %s6840_s19, 4096  ;;  %p6842_p3 = scmp.lt.s32.totalorder %s7254_s21, %s6840_s19 }
  0x61   : > { %p6837_p1 = pnand %p6835_p10, %p7264_p7  ;;  %p6843_p2 = scmp.lt.s32.totalorder %s6841_s25, %s6834_s15 }
  0x63   : > { %p6838_p8 = pneg %p6837_p1  ;;  %p6844_p9 = por %p6843_p2, %p6842_p3 }
  0x65   : > { %p6845_p12 = pnand %p6844_p9, %p6838_p8 }
  0x67   : > { %6848 = shalt.err (!%p6845_p12)
}
  0x68   : > { %s11503_s9 = smov 128   ;;  %s11505_s17 = smov 8  }
  0x69   : > { %6644 = dma.hbm_to_vmem [thread:$0]  (!%p7242_p0), %s7251_s22, 2048, %s7254_s21, %s7258_s26, %s11503_s9, %s11503_s9, %s11505_s17  }
  0x6a   : > { %s7053_s29 = smov [#allocation17]   ;;  %s11825_s5 = sld [smem:[#allocation224_spill]] }
  0x6b   : > { %s273_s23 = sshll.u32 %s7053_s29, 4  ;;  %p11826_p9 = scmp.ne.s32.totalorder %s11820_s14, 0  ;;  %s274_s23 = int_to_ptr.vmem [resolvable:$true] %s273_s23 }
  0x6c   : > { %s6860_s25 = scalar_lea.vmem %s274_s23, 768  ;;  %p6868_p13 = scmp.lt.s32.totalorder %s274_s23, %s274_s23 }
  0x6d   : > { %p6861_p2 = scmp.ne.s32.totalorder %s274_s23, %s6860_s25  ;;  %p11827_p12 = pneg %p11826_p9 }
  0x6e   : > { %p6869_p4 = scmp.lt.s32.totalorder %s6860_s25, %s6860_s25 }
  0x6f   : > { %p6863_p10 = pnand %p6861_p2, %p11827_p12 }
  0x70   : > { %s7294_s19 = scalar_lea.hbm %s11825_s5, %s7236_s24  ;;  %p6870_p5 = por %p6869_p4, %p6868_p13 }
  0x71   : > { %p6864_p3 = pneg %p6863_p10 }
  0x73   : > { %p6871_p6 = pnand %p6870_p5, %p6864_p3 }
  0x75   : > { %6874 = shalt.err (!%p6871_p6)
}
  0x76   : > { %s11828_s22 = smov 4   ;;  %s11829_s21 = smov 64  }
  0x77   : > { %s11830_s10 = sld [smem:[#allocation229_spill]]  ;;  %s294_s0 = scalar_lea.vmem [#allocation8], %s7220_s3 }
  0x78   : > { %s301_s25 = sshll.u32 %s294_s0, 4  ;;  %s11831_s7 = sld [smem:[#allocation226_spill]]  ;;  %s7308_s25 = int_to_ptr.vmem [resolvable:$true] %s301_s25 }
  0x79   : > { %s291_s6 = scalar_lea.sflag [#allocation9], %s7217_s1  ;;  %s6875_s2 = scalar_lea.hbm %s7294_s19, 2048 }
  0x7a   : > { %p6876_p11 = scmp.ne.s32.totalorder %s7294_s19, %s6875_s2  ;;  %s6880_s12 = scalar_lea.hbm %s11825_s5, 4096 }
  0x7b   : > { %p6881_p2 = scmp.lt.s32.totalorder %s7294_s19, %s11825_s5 }
  0x7c   : > { %p6878_p1 = pnand %p6876_p11, %p7264_p7 }
  0x7d   : > { %6637 = dma.hbm_to_vmem [thread:$0]  (!%p11826_p9), %s11830_s10, 768, %s274_s23, [#allocation18], %s11829_s21, %s11829_s21, %s11828_s22  }
  0x7e   : > { %s7314_s17 = scalar_lea.hbm %s11831_s7, %s7236_s24  ;;  %p6879_p8 = pneg %p6878_p1 }
  0x7f   : > { %p6882_p9 = scmp.lt.s32.totalorder %s6880_s12, %s6875_s2 }
  0x81   : > { %p6883_p12 = por %p6882_p9, %p6881_p2 }
  0x83   : > { %p6884_p10 = pnand %p6883_p12, %p6879_p8 }
  0x85   : > { %6887 = shalt.err (!%p6884_p10)
}
  0x86   : > { %s6888_s24 = scalar_lea.vmem %s7308_s25, 2048  ;;  %s7054_s9 = smov [#allocation8]  }
  0x87   : > { %p6889_p3 = scmp.ne.s32.totalorder %s7308_s25, %s6888_s24  ;;  %s6893_s21 = sshll.u32 %s7054_s9, 4  ;;  %s6894_s21 = int_to_ptr.vmem [resolvable:$false] %s6893_s21 }
  0x88   : > { %s6895_s0 = scalar_lea.vmem %s6894_s21, 4096  ;;  %p6896_p5 = scmp.lt.s32.totalorder %s7308_s25, %s6894_s21 }
  0x89   : > { %p6891_p13 = pnand %p6889_p3, %p7264_p7  ;;  %p6897_p6 = scmp.lt.s32.totalorder %s6895_s0, %s6888_s24 }
  0x8b   : > { %p6892_p4 = pneg %p6891_p13  ;;  %p6898_p11 = por %p6897_p6, %p6896_p5 }
  0x8d   : > { %p6899_p1 = pnand %p6898_p11, %p6892_p4 }
  0x8f   : > { %6902 = shalt.err (!%p6899_p1)
}
  0x90   : > { %s11832_s12 = smov 8   ;;  %s11833_s2 = smov 128  }
  0x91   : > { %6641 = dma.hbm_to_vmem [thread:$0]  (!%p7242_p0), %s7294_s19, 2048, %s7308_s25, %s291_s6, %s11833_s2, %s11833_s2, %s11832_s12  }
  0x92   : > { %s336_s14 = scalar_lea.vmem [#allocation13], %s7220_s3  ;;  %s5732_s15 = sshll.u32 %s7217_s1, 4 }
  0x93   : > { %s343_s29 = sshll.u32 %s336_s14, 4  ;;  %s6903_s23 = scalar_lea.hbm %s7314_s17, 2048  ;;  %s344_s29 = int_to_ptr.vmem [resolvable:$true] %s343_s29 }
  0x94   : > { %p6904_p8 = scmp.ne.s32.totalorder %s7314_s17, %s6903_s23  ;;  %s6908_s9 = scalar_lea.hbm %s11831_s7, 4096 }
  0x95   : > { %p6909_p12 = scmp.lt.s32.totalorder %s7314_s17, %s11831_s7  ;;  %p6910_p10 = scmp.lt.s32.totalorder %s6908_s9, %s6903_s23 }
  0x96   : > { %p6906_p2 = pnand %p6904_p8, %p7264_p7 }
  0x97   : > { %p6911_p3 = por %p6910_p10, %p6909_p12 }
  0x98   : > { %p6907_p9 = pneg %p6906_p2 }
  0x9a   : > { %p6912_p13 = pnand %p6911_p3, %p6907_p9 }
  0x9c   : > { %6915 = shalt.err (!%p6912_p13)
}
  0x9d   : > { %s6916_s6 = scalar_lea.vmem %s344_s29, 2048  ;;  %s7055_s3 = smov [#allocation13]  }
  0x9e   : > { %p6917_p4 = scmp.ne.s32.totalorder %s344_s29, %s6916_s6  ;;  %s6921_s19 = sshll.u32 %s7055_s3, 4  ;;  %s6922_s19 = int_to_ptr.vmem [resolvable:$false] %s6921_s19 }
  0x9f   : > { %s6923_s25 = scalar_lea.vmem %s6922_s19, 4096  ;;  %p6924_p11 = scmp.lt.s32.totalorder %s344_s29, %s6922_s19 }
  0xa0   : > { %p6919_p5 = pnand %p6917_p4, %p7264_p7  ;;  %p6925_p1 = scmp.lt.s32.totalorder %s6923_s25, %s6916_s6 }
  0xa2   : > { %p6920_p6 = pneg %p6919_p5  ;;  %p6926_p8 = por %p6925_p1, %p6924_p11 }
  0xa4   : > { %p6927_p2 = pnand %p6926_p8, %p6920_p6 }
  0xa6   : > { %6930 = shalt.err (!%p6927_p2)
}
  0xa7   : > { %6647 = dma.hbm_to_vmem [thread:$0]  (!%p7242_p0), %s7314_s17, 2048, %s344_s29, %s7258_s26, %s11833_s2, %s11833_s2, %s11832_s12  }
  0xa8   : > { %s6167_s14 = sshll.u32 %s7041_s20, 8  ;;  %s357_s23 = scalar_lea.vmem [#allocation14], %s5732_s15 }
  0xa9   : > { %s364_s22 = sshll.u32 %s357_s23, 4  ;;  %s11834_s8 = sld [smem:[#allocation227_spill]]  ;;  %s7370_s22 = int_to_ptr.vmem [resolvable:$true] %s364_s22 }
  0xaa   : > { %s11835_s0 = sand.u32 1, %s7041_s20  }
  0xab   : > { %s354_s6 = scalar_lea.sflag [#allocation15], %s11835_s0 }
  0xaf   : > { %s7368_s21 = scalar_lea.hbm %s11834_s8, %s6167_s14  ;;  %s6936_s17 = scalar_lea.hbm %s11834_s8, 512 }
  0xb0   : > { %s6931_s3 = scalar_lea.hbm %s7368_s21, 256  ;;  %p6937_p3 = scmp.lt.s32.totalorder %s7368_s21, %s11834_s8 }
  0xb1   : > { %p6932_p9 = scmp.ne.s32.totalorder %s7368_s21, %s6931_s3  ;;  %p6938_p13 = scmp.lt.s32.totalorder %s6936_s17, %s6931_s3 }
  0xb3   : > { %p6934_p12 = pnand %p6932_p9, %p7264_p7  ;;  %p6939_p4 = por %p6938_p13, %p6937_p3 }
  0xb5   : > { %p6935_p10 = pneg %p6934_p12 }
  0xb7   : > { %p6940_p5 = pnand %p6939_p4, %p6935_p10 }
  0xb9   : > { %6943 = shalt.err (!%p6940_p5)
}
  0xba   : > { %s6944_s19 = scalar_lea.vmem %s7370_s22, 256  ;;  %s7056_s25 = smov [#allocation14]  }
  0xbb   : > { %p6945_p6 = scmp.ne.s32.totalorder %s7370_s22, %s6944_s19  ;;  %s6949_s14 = sshll.u32 %s7056_s25, 4  ;;  %s6950_s14 = int_to_ptr.vmem [resolvable:$false] %s6949_s14 }
  0xbc   : > { %s6951_s23 = scalar_lea.vmem %s6950_s14, 512  ;;  %p6952_p8 = scmp.lt.s32.totalorder %s7370_s22, %s6950_s14 }
  0xbd   : > { %p6947_p11 = pnand %p6945_p6, %p7264_p7  ;;  %p6953_p2 = scmp.lt.s32.totalorder %s6951_s23, %s6944_s19 }
  0xbf   : > { %p6948_p1 = pneg %p6947_p11  ;;  %p6954_p9 = por %p6953_p2, %p6952_p8 }
  0xc1   : > { %p6955_p12 = pnand %p6954_p9, %p6948_p1 }
  0xc3   : > { %6958 = shalt.err (!%p6955_p12)
}
  0xc4   : > { %6650 = dma.hbm_to_vmem [thread:$0]  (!%p7242_p0), %s7368_s21, 256, %s7370_s22, %s354_s6, %s11833_s2, %s11833_s2, %s11832_s12  }
  0xc5   : > { %p11836_p7 = scmp.ne.s32.totalorder %s11819_s30, 0 }
  0xc7   : > { %376 = sbr.rel (%p11836_p7) target bundleno = 1990 (0x7c6), region = 48 }
  0xcc   : > { %s7400_s16 = sand.u32 1, %s7033_s18   ;;  %p11840_p10 = scmp.ne.s32.totalorder %s11814_s27, 0 }
  0xcd   : > { %11837 = sst [smem:[#allocation36_spill]] %s7400_s16  ;;  %s7403_s24 = sshll.u32 %s7400_s16, 7 }
  0xce   : > { %11838 = sst [smem:[#allocation37_spill]] %s7403_s24  ;;  %s379_s9 = scalar_lea.sflag [#allocation9], %s7400_s16 }
  0xcf   : > { %s7407_s13 = scalar_lea.vmem [#allocation8], %s7403_s24 }
  0xd0   : > { %11839 = sst [smem:[#allocation38_spill]] %s7407_s13 }
  0xd1   : > { %7004 = dma.done.wait (%p11840_p10), %s379_s9, 2048  }
  0xd2   : > { %7006 = vsyncadd (%p11840_p10), %s379_s9, 4294965248  ;;  %s387_s30 = sand.u32 1, %s7163_s4   ;;  %s7415_s2 = scalar_lea.vmem [#allocation11], %s7403_s24 }
  0xd3   : > { %s388_s12 = scalar_lea.sflag [#allocation12], %s387_s30  ;;  %11841 = sst [smem:[#allocation39_spill]] %s7415_s2 }
  0xd4   : > { %7008 = dma.done.wait (%p11840_p10), %s388_s12, 4096  }
  0xd5   : > { %7010 = vsyncadd (%p11840_p10), %s388_s12, 4294963200  ;;  %s5739_s22 = sshll.u32 %s7400_s16, 4  ;;  %s7423_s21 = scalar_lea.vmem [#allocation13], %s7403_s24 }
  0xd6   : > { %11842 = sst [smem:[#allocation40_spill]] %s7423_s21  ;;  %s406_s0 = scalar_lea.sflag [#allocation15], %s387_s30 }
  0xd7   : > { %s7425_s6 = scalar_lea.vmem [#allocation14], %s5739_s22 }
  0xd8   : > { %11843 = sst [smem:[#allocation41_spill]] %s7425_s6 }
  0xd9   : > { %7012 = dma.done.wait (%p11840_p10), %s406_s0, 256  }
  0xda   : > { %7014 = vsyncadd (%p11840_p10), %s406_s0, 4294967040  ;;  %p11844_p0 = scmp.eq.s32.totalorder %s7163_s4, 0 }
  0xdc   : > { %7016 = dma.done.wait (%p11844_p0), [#allocation15], 768   ;;  %p11845_p3 = pmov %p11844_p0 }
  0xdd   : > { %p11846_p13 = pmov %p11844_p0 }
  0xde   : > { %7018 = vsyncadd (%p11845_p3), [#allocation15], 4294966528 }
  0xdf   : > { %7020 = dma.done.wait (%p11846_p13), [#allocation18], 768   ;;  %p11847_p4 = pmov %p11844_p0 }
  0xe0   : > { %v6707_v0 = vld [vmem:[#allocation17] sm:$0xff]   ;;  %v464_v1 = vld [vmem:[%s7407_s13] sm:$0xff]  ;;  %v465_v2 = vld [vmem:[%s7407_s13 + $0x8] sm:$0xff]  ;;  %vm493_vm0 = vcmask 130048   ;;  %v11624_v39 = vmov 0.0   ;;  %vm7058_vm1 = vmmov 0  }
  0xe1   : > { %7022 = vsyncadd (%p11847_p4), [#allocation18], 4294966528  ;;  %6287 = vmatprep.subr.bf16.mxu0 %v6707_v0  ;;  %6611 = vmatprep.subr.bf16.mxu1 %v6707_v0  ;;  %v481_v3 = vpack.c.bf16 %v465_v2, %v464_v1  ;;  %v468_v4 = vld [vmem:[%s7407_s13 + $0x20] sm:$0xff]  ;;  %v469_v5 = vld [vmem:[%s7407_s13 + $0x28] sm:$0xff]  ;;  %s11848_s11 = sld [smem:[#allocation230_spill]]  ;;  %vm1493_vm2 = vcmask 1040384  }
  0xe2   : > { %6288 = vmatpush3.bf16.msra.mxu0 %v6707_v0  ;;  %6612 = vmatpush3.bf16.msra.mxu1 %v6707_v0  ;;  %v483_v6 = vpack.c.bf16 %v469_v5, %v468_v4  ;;  %v466_v7 = vld [vmem:[%s7407_s13 + $0x10] sm:$0xff]  ;;  %v467_v8 = vld [vmem:[%s7407_s13 + $0x18] sm:$0xff]  ;;  %v6709_v14 = vld [vmem:[#allocation17 + $0x10] sm:$0xff]   ;;  %vm1596_vm3 = vcmask 1046528   ;;  %s7672_s17 = sld [smem:[#allocation4 + $0x4]] }
  0xe3   : > { %6289 = vmatprep.mubr.msk.bf16.mxu0 %vm493_vm0, %v481_v3  ;;  %v482_v9 = vpack.c.bf16 %v467_v8, %v466_v7  ;;  %v470_v10 = vld [vmem:[%s7407_s13 + $0x30] sm:$0xff]  ;;  %v471_v11 = vld [vmem:[%s7407_s13 + $0x38] sm:$0xff]  ;;  %v5743_v15 = vld [vmem:[%s7407_s13 + $0x40] sm:$0xff]  ;;  %6307 = vmatprep.subr.bf16.mxu0 %v6709_v14  ;;  %s7674_s29 = sld [smem:[#allocation4 + $0x1]] }
  0xe4   : > { %6293 = vmatprep.mubr.msk.bf16.mxu1 %vm493_vm0, %v483_v6  ;;  %v484_v12 = vpack.c.bf16 %v471_v11, %v470_v10  ;;  %v6708_v13 = vld [vmem:[#allocation17 + $0x8] sm:$0xff]   ;;  %v5744_v16 = vld [vmem:[%s7407_s13 + $0x48] sm:$0xff]  ;;  %v661_v17 = vadd.f32 %v5743_v15, %v464_v1  ;;  %v5745_v18 = vld [vmem:[%s7407_s13 + $0x50] sm:$0xff]  ;;  %s7676_s15 = sld [smem:[#allocation4 + $0x13]] }
  0xe5   : > { %6290 = vmatmul.mubr.msk.bf16.vlgmr.msra.gmra.mxu0 %vm493_vm0, %v482_v9  ;;  %6297 = vmatprep.subr.bf16.mxu1 %v6708_v13  ;;  %v5746_v19 = vld [vmem:[%s7407_s13 + $0x58] sm:$0xff]  ;;  %v571_v20 = vpack.c.bf16 %v5744_v16, %v5743_v15  ;;  %v662_v21 = vadd.f32 %v5744_v16, %v465_v2  ;;  %v5747_v22 = vld [vmem:[%s7407_s13 + $0x60] sm:$0xff]  ;;  %v5748_v23 = vld [vmem:[%s7407_s13 + $0x68] sm:$0xff]  ;;  %v663_v24 = vadd.f32 %v5745_v18, %v466_v7  ;;  %s7678_s19 = sld [smem:[#allocation4 + $0x25]] }
  0xe6   : > { %6294 = vmatmul.mubr.msk.bf16.vlgmr.msra.gmra.mxu1 %vm493_vm0, %v484_v12  ;;  %6308 = vmatpush3.bf16.msra.mxu0 %v6709_v14  ;;  %v664_v25 = vadd.f32 %v5746_v19, %v467_v8  ;;  %v665_v26 = vadd.f32 %v5747_v22, %v468_v4  ;;  %v5749_v27 = vld [vmem:[%s7407_s13 + $0x70] sm:$0xff]  ;;  %v5750_v28 = vld [vmem:[%s7407_s13 + $0x78] sm:$0xff]  ;;  %v666_v30 = vadd.f32 %v5748_v23, %v469_v5  ;;  %v7483_v7 = vld [vmem:[#allocation16] sm:$0xff]   ;;  %s7680_s25 = sld [smem:[#allocation4 + $0x37]] }
  0xe7   : > { %6298 = vmatpush3.bf16.msra.mxu1 %v6708_v13  ;;  %6299 = vmatprep.mubr.msk.bf16.mxu1 %vm493_vm0, %v571_v20  ;;  %v669_v29 = vpack.c.bf16 %v662_v21, %v661_v17  ;;  %v572_v31 = vpack.c.bf16 %v5746_v19, %v5745_v18  ;;  %v573_v33 = vpack.c.bf16 %v5748_v23, %v5747_v22  ;;  %v7486_v13 = vld [vmem:[#allocation16 + $0x10] sm:$0xff]   ;;  %v6712_v19 = vld [vmem:[#allocation16 + $0x8] sm:$0xff]   ;;  %s7682_s14 = sld [smem:[#allocation4 + $0x49]] }
  0xe8   : > { %v670_v32 = vpack.c.bf16 %v664_v25, %v663_v24  ;;  %v671_v34 = vpack.c.bf16 %v666_v30, %v665_v26  ;;  %v667_v35 = vadd.f32 %v5749_v27, %v470_v10  ;;  %v668_v36 = vadd.f32 %v5750_v28, %v471_v11  ;;  %6317 = vmatprep.subr.bf16.mxu1 %v11624_v39  ;;  %s7684_s23 = sld [smem:[#allocation4 + $0x5b]] }
  0xe9   : > { %6309 = vmatprep.mubr.msk.bf16.mxu0 %vm493_vm0, %v669_v29  ;;  %v574_v38 = vpack.c.bf16 %v5750_v28, %v5749_v27  ;;  %6329 = vmatprep.subr.bf16.mxu0 %v11624_v39  ;;  %s7686_s9 = sld [smem:[#allocation4 + $0x6d]] }
  0xea   : > { %v672_v37 = vpack.c.bf16 %v668_v36, %v667_v35  ;;  %s7688_s30 = sld [smem:[#allocation4 + $0x7f]] }
  0xeb   : > { %s7690_s12 = sld [smem:[#allocation4 + $0x16]] }
  0xec   : > { %11849 = sst [smem:[#allocation42_spill]] %s7680_s25 }
  0xed   : > { %6310 = vmatmul.mubr.msk.bf16.vlgmr.msra.gmra.mxu0 %vm493_vm0, %v670_v32  ;;  %11850 = sst [smem:[#allocation43_spill]] %s7682_s14 }
  0xee   : > { %6300 = vmatmul.mubr.msk.bf16.vlgmr.msra.gmra.mxu1 %vm493_vm0, %v572_v31  ;;  %6313 = vmatprep.mubr.msk.bf16.mxu0 %vm493_vm0, %v671_v34  ;;  %11851 = sst [smem:[#allocation44_spill]] %s7684_s23 }
  0xef   : > { %6303 = vmatprep.mubr.msk.bf16.mxu1 %vm493_vm0, %v573_v33  ;;  %11852 = sst [smem:[#allocation45_spill]] %s7686_s9 }
  0xf0   : > { %11853 = sst [smem:[#allocation46_spill]] %s7688_s30 }
  0xf1   : > { %s7692_s22 = sld [smem:[#allocation4 + $0x28]] }
  0xf2   : > { %s7694_s0 = sld [smem:[#allocation4 + $0x3a]] }
  0xf3   : > { %s7696_s27 = sld [smem:[#allocation4 + $0x4c]] }
  0xf4   : > { %s7698_s3 = sld [smem:[#allocation4 + $0x5e]] }
  0xf5   : > { %6314 = vmatmul.mubr.msk.bf16.gmra.mxu0 %vm493_vm0, %v672_v37  ;;  %s7700_s1 = sld [smem:[#allocation4 + $0x70]] }
  0xf6   : > { %6304 = vmatmul.mubr.msk.bf16.gmra.mxu1 %vm493_vm0, %v574_v38  ;;  %6331 = vmatprep.mubr.msk.bf16.mxu0 %vm7058_vm1, %v11624_v39  ;;  %s7702_s26 = sld [smem:[#allocation4 + $0x82]] }
  0xf7   : > { %6319 = vmatprep.mubr.msk.bf16.mxu1 %vm7058_vm1, %v11624_v39  ;;  %s7704_s5 = sld [smem:[#allocation4 + $0x7]] }
  0xf8   : > { %s7706_s7 = sld [smem:[#allocation4 + $0x19]] }
  0xf9   : > { %s7708_s8 = sld [smem:[#allocation4 + $0x2b]] }
  0xfa   : > { %11854 = sst [smem:[#allocation47_spill]] %s7698_s3 }
  0xfb   : > { %11855 = sst [smem:[#allocation48_spill]] %s7700_s1 }
  0xfc   : > { %11856 = sst [smem:[#allocation49_spill]] %s7702_s26 }
  0xfd   : > { %11857 = sst [smem:[#allocation50_spill]] %s7704_s5 }
  0xfe   : > { %11858 = sst [smem:[#allocation51_spill]] %s7706_s7 }
  0xff   : > { %11859 = sst [smem:[#allocation52_spill]] %s7708_s8 }
 0x100   : > { %s7710_s10 = sld [smem:[#allocation4 + $0x3d]] }
 0x101   : > { %s7712_s18 = sld [smem:[#allocation4 + $0x4f]] }
 0x102   : > { %s7714_s20 = sld [smem:[#allocation4 + $0x61]] }
 0x103   : > { %s7716_s28 = sld [smem:[#allocation4 + $0x73]] }
 0x104   : > { %s7718_s16 = sld [smem:[#allocation4 + $0x85]] }
 0x105   : > { %s7720_s4 = sld [smem:[#allocation4 + $0xa]] }
 0x106   : > { %s7722_s24 = sld [smem:[#allocation4 + $0x1c]] }
 0x107   : > { %11860 = sst [smem:[#allocation53_spill]] %s7712_s18 }
 0x108   : > { %11861 = sst [smem:[#allocation54_spill]] %s7714_s20 }
 0x109   : > { %11862 = sst [smem:[#allocation55_spill]] %s7716_s28 }
 0x10a   : > { %11863 = sst [smem:[#allocation56_spill]] %s7718_s16 }
 0x10b   : > { %11864 = sst [smem:[#allocation57_spill]] %s7720_s4 }
 0x10c   : > { %11865 = sst [smem:[#allocation58_spill]] %s7722_s24 }
 0x10d   : > { %s7724_s13 = sld [smem:[#allocation4 + $0x2e]] }
 0x10e   : > { %s7726_s2 = sld [smem:[#allocation4 + $0x40]] }
 0x10f   : > { %s7728_s6 = sld [smem:[#allocation4 + $0x52]] }
 0x110   : > { %s7734_s18 = sld [smem:[#allocation4 + $0x88]] }
 0x111   : > { %s7736_s20 = sld [smem:[#allocation4 + $0xd]] }
 0x112   : > { %s7738_s28 = sld [smem:[#allocation4 + $0x10]] }
 0x113   : > { %11866 = sst [smem:[#allocation59_spill]] %s7724_s13 }
 0x114   : > { %11867 = sst [smem:[#allocation60_spill]] %s7726_s2 }
 0x115   : > { %11868 = sst [smem:[#allocation61_spill]] %s7728_s6 }
 0x116   : > { %11871 = sst [smem:[#allocation64_spill]] %s7734_s18 }
 0x117   : > { %11872 = sst [smem:[#allocation65_spill]] %s7736_s20 }
 0x118   : > { %11873 = sst [smem:[#allocation66_spill]] %s7738_s28 }
 0x119   : > { %s7740_s16 = sld [smem:[#allocation4 + $0x1f]] }
 0x11a   : > { %s7742_s4 = sld [smem:[#allocation4 + $0x22]] }
 0x11b   : > { %s7744_s24 = sld [smem:[#allocation4 + $0x31]] }
 0x11c   : > { %s7746_s13 = sld [smem:[#allocation4 + $0x43]] }
 0x11d   : > { %s7748_s2 = sld [smem:[#allocation4 + $0x34]] }
 0x11e   : > { %s7750_s6 = sld [smem:[#allocation4 + $0x46]] }
 0x11f   : > { %11874 = sst [smem:[#allocation67_spill]] %s7740_s16 }
 0x120   : > { %11875 = sst [smem:[#allocation68_spill]] %s7742_s4 }
 0x121   : > { %11876 = sst [smem:[#allocation69_spill]] %s7744_s24 }
 0x122   : > { %11877 = sst [smem:[#allocation70_spill]] %s7746_s13 }
 0x123   : > { %11878 = sst [smem:[#allocation71_spill]] %s7748_s2 }
 0x124   : > { %11879 = sst [smem:[#allocation72_spill]] %s7750_s6 }
 0x125   : > { %s7756_s18 = sld [smem:[#allocation4 + $0x58]] }
 0x126   : > { %s7758_s20 = sld [smem:[#allocation4 + $0x79]] }
 0x127   : > { %s7760_s28 = sld [smem:[#allocation4 + $0x6a]] }
 0x128   : > { %s7762_s16 = sld [smem:[#allocation4 + $0x7c]] }
 0x129   : > { %s7764_s4 = sld [smem:[#allocation4 + $0x8b]] }
 0x12a   : > { %s7766_s24 = sld [smem:[#allocation4 + $0x8e]] }
 0x12b   : > { %11882 = sst [smem:[#allocation75_spill]] %s7756_s18 }
 0x12c   : > { %11883 = sst [smem:[#allocation76_spill]] %s7758_s20 }
 0x12d   : > { %11884 = sst [smem:[#allocation77_spill]] %s7760_s28 }
 0x12e   : > { %11885 = sst [smem:[#allocation78_spill]] %s7762_s16 }
 0x12f   : > { %11886 = sst [smem:[#allocation79_spill]] %s7764_s4 }
 0x130   : > { %11887 = sst [smem:[#allocation80_spill]] %s7766_s24 }
 0x131   : > { %s7768_s13 = sld [smem:[#allocation4 + $0x3]] }
 0x132   : > { %s7770_s2 = sld [smem:[#allocation4 + $0x15]] }
 0x133   : > { %s7772_s6 = sld [smem:[#allocation4 + $0x27]] }
 0x134   : > { %s7778_s18 = sld [smem:[#allocation4 + $0x24]] }
 0x135   : > { %s7780_s20 = sld [smem:[#allocation4 + $0x36]] }
 0x136   : > { %s7782_s28 = sld [smem:[#allocation4 + $0x48]] }
 0x137   : > { %11888 = sst [smem:[#allocation81_spill]] %s7768_s13 }
 0x138   : > { %11889 = sst [smem:[#allocation82_spill]] %s7770_s2 }
 0x139   : > { %11890 = sst [smem:[#allocation83_spill]] %s7772_s6 }
 0x13a   : > { %11893 = sst [smem:[#allocation86_spill]] %s7778_s18 }
 0x13b   : > { %11894 = sst [smem:[#allocation87_spill]] %s7780_s20 }
 0x13c   : > { %11895 = sst [smem:[#allocation88_spill]] %s7782_s28 }
 0x13d   : > { %s7784_s16 = sld [smem:[#allocation4 + $0x5a]] }
 0x13e   : > { %s7786_s4 = sld [smem:[#allocation4 + $0x6c]] }
 0x13f   : > { %s7788_s24 = sld [smem:[#allocation4 + $0x7e]] }
 0x140   : > { %s7790_s13 = sld [smem:[#allocation4 + $0x39]] }
 0x141   : > { %s7792_s2 = sld [smem:[#allocation4 + $0x4b]] }
 0x142   : > { %s7794_s6 = sld [smem:[#allocation4 + $0x5d]] }
 0x143   : > { %11896 = sst [smem:[#allocation89_spill]] %s7784_s16 }
 0x144   : > { %11897 = sst [smem:[#allocation90_spill]] %s7786_s4 }
 0x145   : > { %11898 = sst [smem:[#allocation91_spill]] %s7788_s24 }
 0x146   : > { %11899 = sst [smem:[#allocation92_spill]] %s7790_s13 }
 0x147   : > { %11900 = sst [smem:[#allocation93_spill]] %s7792_s2 }
 0x148   : > { %11901 = sst [smem:[#allocation94_spill]] %s7794_s6 }
 0x149   : > { %s7800_s18 = sld [smem:[#allocation4 + $0x5]] }
 0x14a   : > { %s7802_s20 = sld [smem:[#allocation4 + $0x17]] }
 0x14b   : > { %s7804_s28 = sld [smem:[#allocation4 + $0x29]] }
 0x14c   : > { %s7806_s16 = sld [smem:[#allocation4 + $0x3b]] }
 0x14d   : > { %s7808_s4 = sld [smem:[#allocation4 + $0x4d]] }
 0x14e   : > { %s7810_s24 = sld [smem:[#allocation4 + $0x5f]] }
 0x14f   : > { %11904 = sst [smem:[#allocation97_spill]] %s7800_s18 }
 0x150   : > { %11905 = sst [smem:[#allocation98_spill]] %s7802_s20 }
 0x151   : > { %11906 = sst [smem:[#allocation99_spill]] %s7804_s28 }
 0x152   : > { %11907 = sst [smem:[#allocation100_spill]] %s7806_s16 }
 0x153   : > { %11908 = sst [smem:[#allocation101_spill]] %s7808_s4 }
 0x154   : > { %11909 = sst [smem:[#allocation102_spill]] %s7810_s24 }
 0x155   : > { %s7812_s13 = sld [smem:[#allocation4 + $0x71]] }
 0x156   : > { %s7814_s2 = sld [smem:[#allocation4 + $0x83]] }
 0x157   : > { %s7820_s20 = sld [smem:[#allocation4 + $0x2a]] }
 0x158   : > { %s7822_s28 = sld [smem:[#allocation4 + $0x3c]] }
 0x159   : > { %s7824_s16 = sld [smem:[#allocation4 + $0x4e]] }
 0x15a   : > { %s7826_s24 = sld [smem:[#allocation4 + $0x60]] }
 0x15b   : > { %11910 = sst [smem:[#allocation103_spill]] %s7812_s13 }
 0x15c   : > { %11911 = sst [smem:[#allocation104_spill]] %s7814_s2 }
 0x15d   : > { %11914 = sst [smem:[#allocation107_spill]] %s7820_s20 }
 0x15e   : > { %11915 = sst [smem:[#allocation108_spill]] %s7822_s28 }
 0x15f   : > { %11916 = sst [smem:[#allocation109_spill]] %s7824_s16 }
 0x160   : > { %11917 = sst [smem:[#allocation110_spill]] %s7826_s24 }
 0x161   : > { %s7828_s13 = sld [smem:[#allocation4 + $0x72]] }
 0x162   : > { %s7830_s2 = sld [smem:[#allocation4 + $0x84]] }
 0x163   : > { %s7836_s20 = sld [smem:[#allocation4 + $0x26]] }
 0x164   : > { %s7838_s28 = sld [smem:[#allocation4 + $0x38]] }
 0x165   : > { %s7840_s16 = sld [smem:[#allocation4 + $0x4a]] }
 0x166   : > { %s7842_s24 = sld [smem:[#allocation4 + $0x5c]] }
 0x167   : > { %11918 = sst [smem:[#allocation111_spill]] %s7828_s13 }
 0x168   : > { %11919 = sst [smem:[#allocation112_spill]] %s7830_s2 }
 0x169   : > { %11922 = sst [smem:[#allocation115_spill]] %s7836_s20 }
 0x16a   : > { %11923 = sst [smem:[#allocation116_spill]] %s7838_s28 }
 0x16b   : > { %11924 = sst [smem:[#allocation117_spill]] %s7840_s16 }
 0x16c   : > { %11925 = sst [smem:[#allocation118_spill]] %s7842_s24 }
 0x16d   : > { %s7844_s13 = sld [smem:[#allocation4 + $0x6e]] }
 0x16e   : > { %s7855_s24 = sld [smem:[#allocation4 + $0x8]] }
 0x16f   : > { %s11930_s16 = sld [smem:[#allocation54_spill]] }
 0x170   : > { %s11931_s28 = sld [smem:[#allocation55_spill]] }
 0x171   : > { %s7861_s20 = sld [smem:[#allocation4 + $0x1a]] }
 0x172   : > { %s11935_s2 = sld [smem:[#allocation58_spill]] }
 0x173   : > { %11926 = sst [smem:[#allocation119_spill]] %s7844_s13 }
 0x174   : > { %11928 = sst [smem:[#allocation121_spill]] %s7855_s24 }
 0x175   : > { %s11929_s13 = sld [smem:[#allocation53_spill]] }
 0x176   : > { %s11936_s4 = sld [smem:[#allocation59_spill]] }
 0x177   : > { %11932 = sst [smem:[#allocation122_spill]] %s7861_s20 }
 0x178   : > { %s7867_s18 = sld [smem:[#allocation4 + $0x2c]] }
 0x179   : > { %s11938_s24 = sld [smem:[#allocation60_spill]] }
 0x17a   : > { %s11939_s6 = sld [smem:[#allocation61_spill]] }
 0x17b   : > { %s11943_s20 = sld [smem:[#allocation64_spill]] }
 0x17e   : > { %11937 = sst [smem:[#allocation123_spill]] %s7867_s18 }
 0x17f   : > { %s8157_s18 = sld [smem:[#allocation4 + $0x78]] }
 0x1a5   : > { %v6291_v40 = vpop.f32.mrf.mxu0 }
 0x1a6   : > { %v7473_v41 = vpop.f32.mrf.mxu1 }
 0x1a7   : > { %v540_v42 = vpop.f32.mrf.mxu0 }
 0x1a8   : > { %v7475_v43 = vpop.f32.mrf.mxu1 }
 0x1a9   : > { %v6292_v44 = vpop.f32.mrf.mxu0 }
 0x1aa   : > { %v7477_v45 = vpop.f32.mrf.mxu1 }
 0x1ab   : > { %v543_v46 = vpop.f32.mrf.mxu0 }
 0x1ac   : > { %v559_v47 = vpop.f32.mrf.mxu1 }
 0x1ad   : > { %v6311_v48 = vpop.f32.mrf.mxu0 }
 0x1ae   : > { %v6301_v49 = vpop.f32.mrf.mxu1  ;;  %v769_v3 = vsub.f32 %v6311_v48, %v6291_v40 }
 0x1af   : > { %v728_v50 = vpop.f32.mrf.mxu0  ;;  %v761_v20 = vsub.f32 %v6291_v40, %v6301_v49 }
 0x1b0   : > { %v630_v51 = vpop.f32.mrf.mxu1  ;;  %v767_v52 = vsub.f32 %v728_v50, %v540_v42  ;;  %v777_v14 = vsub.f32 %v769_v3, %v6301_v49  ;;  %v7560_v49 = vld [vmem:[%s11848_s11 + $0x8] sm:$0xff]  }
 0x1b1   : > { %v6312_v53 = vpop.f32.mrf.mxu0  ;;  %v759_v59 = vsub.f32 %v540_v42, %v630_v51 }
 0x1b2   : > { %v6302_v54 = vpop.f32.mrf.mxu1  ;;  %v775_v56 = vsub.f32 %v767_v52, %v630_v51  ;;  %v770_v62 = vsub.f32 %v6312_v53, %v6292_v44  ;;  %v1054_v30 = vadd.f32 %v777_v14, %v761_v20 }
 0x1b3   : > { %v731_v55 = vpop.f32.mrf.mxu0  ;;  %v762_v16 = vsub.f32 %v6292_v44, %v6302_v54 }
 0x1b4   : > { %v633_v57 = vpop.f32.mrf.mxu1  ;;  %v768_v58 = vsub.f32 %v731_v55, %v543_v46  ;;  %v891_v4 = vadd.f32 %v775_v56, %v759_v59  ;;  %v778_v8 = vsub.f32 %v770_v62, %v6302_v54 }
 0x1b5   : > { %v760_v60 = vsub.f32 %v543_v46, %v633_v57  ;;  %v7479_v61 = vpop.f32.mrf.mxu0  ;;  %v970_v23 = vpack.c.bf16 %v762_v16, %v761_v20 }
 0x1b6   : > { %v776_v63 = vsub.f32 %v768_v58, %v633_v57  ;;  %v7481_v0 = vpop.f32.mrf.mxu1  ;;  %v1012_v15 = vpack.c.bf16 %v778_v8, %v777_v14  ;;  %v1055_v28 = vadd.f32 %v778_v8, %v762_v16  ;;  %v773_v36 = vsub.f32 %v7479_v61, %v7473_v41 }
 0x1b7   : > { %v785_v1 = vpack.c.bf16 %v760_v60, %v759_v59  ;;  %v744_v2 = vpop.f32.mrf.mxu0  ;;  %v765_v44 = vsub.f32 %v7473_v41, %v7481_v0  ;;  %v7555_v41 = vld [vmem:[%s11848_s11] sm:$0xff]   ;;  %s7732_s11 = sld [smem:[#allocation4 + $0x76]] }
 0x1b8   : > { %v892_v5 = vadd.f32 %v776_v63, %v760_v60  ;;  %v646_v6 = vpop.f32.mrf.mxu1  ;;  %v838_v10 = vpack.c.bf16 %v776_v63, %v775_v56  ;;  %v771_v25 = vsub.f32 %v744_v2, %v7475_v43  ;;  %v1056_v32 = vpack.c.bf16 %v1055_v28, %v1054_v30 }
 0x1b9   : > { %6318 = vmatpush3.bf16.msra.mxu1 %v785_v1  ;;  %v6316_v12 = vpop.f32.mrf.mxu0  ;;  %v763_v24 = vsub.f32 %v7475_v43, %v646_v6  ;;  %v781_v40 = vsub.f32 %v773_v36, %v7481_v0 }
 0x1ba   : > { %v893_v9 = vpack.c.bf16 %v892_v5, %v891_v4  ;;  %6323 = vmatprep.subr.bf16.mxu1 %v11624_v39  ;;  %v6306_v11 = vpop.f32.mrf.mxu1  ;;  %v779_v29 = vsub.f32 %v771_v25, %v646_v6  ;;  %v774_v34 = vsub.f32 %v6316_v12, %v7477_v45 }
 0x1bb   : > { %v747_v18 = vpop.f32.mrf.mxu0  ;;  %v766_v43 = vsub.f32 %v7477_v45, %v6306_v11 }
 0x1bc   : > { %6320 = vmatmul.mubr.msk.bf16.vlgmr.msra.gmra.mxu1 %vm493_vm0, %v7483_v7  ;;  %6330 = vmatpush3.bf16.msra.mxu0 %v893_v9  ;;  %v649_v17 = vpop.f32.mrf.mxu1  ;;  %v772_v22 = vsub.f32 %v747_v18, %v559_v47  ;;  %v1210_v33 = vadd.f32 %v779_v29, %v763_v24  ;;  %v782_v37 = vsub.f32 %v774_v34, %v6306_v11 }
 0x1bd   : > { %6324 = vmatpush3.bf16.msra.mxu1 %v838_v10  ;;  %6341 = vmatprep.subr.bf16.mxu0 %v11624_v39  ;;  %v764_v21 = vsub.f32 %v559_v47, %v649_v17  ;;  %v1282_v46 = vpack.c.bf16 %v766_v43, %v765_v44  ;;  %v1366_v47 = vadd.f32 %v781_v40, %v765_v44  ;;  %11870 = sst [smem:[#allocation63_spill]] %s7732_s11 }
 0x1be   : > { %6325 = vmatprep.mubr.msk.bf16.mxu1 %vm7058_vm1, %v11624_v39  ;;  %6335 = vmatprep.subr.bf16.mxu1 %v11624_v39  ;;  %v780_v27 = vsub.f32 %v772_v22, %v649_v17  ;;  %v1324_v42 = vpack.c.bf16 %v782_v37, %v781_v40  ;;  %v1367_v45 = vadd.f32 %v782_v37, %v766_v43  ;;  %v949_v22 = vld [vmem:[%s7423_s21] sm:$0xff]  ;;  %v950_v37 = vld [vmem:[%s7423_s21 + $0x8] sm:$0xff]  ;;  %s7754_s11 = sld [smem:[#allocation4 + $0x67]] }
 0x1bf   : > { %6332 = vmatmul.mubr.msk.bf16.vlgmr.msra.gmra.mxu0 %vm493_vm0, %v7486_v13  ;;  %v1126_v26 = vpack.c.bf16 %v764_v21, %v763_v24 }
 0x1c0   : > { %6342 = vmatpush3.bf16.msra.mxu0 %v1012_v15  ;;  %6343 = vmatprep.mubr.msk.bf16.mxu0 %vm7058_vm1, %v11624_v39  ;;  %v1211_v31 = vadd.f32 %v780_v27, %v764_v21  ;;  %v1168_v38 = vpack.c.bf16 %v780_v27, %v779_v29  ;;  %v1368_v48 = vpack.c.bf16 %v1367_v45, %v1366_v47  ;;  %v5778_v45 = vld [vmem:[%s7423_s21 + $0x18] sm:$0xff] }
 0x1c1   : > { %6353 = vmatprep.subr.bf16.mxu0 %v11624_v39 }
 0x1c2   : > { %v1212_v35 = vpack.c.bf16 %v1211_v31, %v1210_v33 }
 0x1c4   : > { %6326 = vmatmul.mubr.msk.bf16.vlgmr.msra.gmra.mxu1 %vm493_vm0, %v6712_v19  ;;  %11881 = sst [smem:[#allocation74_spill]] %s7754_s11 }
 0x1c5   : > { %6336 = vmatpush3.bf16.msra.mxu1 %v970_v23  ;;  %6337 = vmatprep.mubr.msk.bf16.mxu1 %vm7058_vm1, %v11624_v39  ;;  %v5772_v23 = vld [vmem:[%s7423_s21 + $0x40] sm:$0xff]  ;;  %s7776_s11 = sld [smem:[#allocation4 + $0x12]] }
 0x1c6   : > { %6347 = vmatprep.subr.bf16.mxu1 %v11624_v39 }
 0x1c7   : > { %6344 = vmatmul.mubr.msk.bf16.vlgmr.msra.gmra.mxu0 %vm493_vm0, %v6712_v19 }
 0x1c8   : > { %6354 = vmatpush3.bf16.msra.mxu0 %v1126_v26  ;;  %6355 = vmatprep.mubr.msk.bf16.mxu0 %vm7058_vm1, %v11624_v39 }
 0x1c9   : > { %6365 = vmatprep.subr.bf16.mxu0 %v11624_v39 }
 0x1cb   : > { %11892 = sst [smem:[#allocation85_spill]] %s7776_s11 }
 0x1cc   : > { %6338 = vmatmul.mubr.msk.bf16.vlgmr.msra.gmra.mxu1 %vm493_vm0, %v7483_v7  ;;  %s7798_s11 = sld [smem:[#allocation4 + $0x81]] }
 0x1cd   : > { %6348 = vmatpush3.bf16.msra.mxu1 %v1056_v32  ;;  %6349 = vmatprep.mubr.msk.bf16.mxu1 %vm7058_vm1, %v11624_v39 }
 0x1ce   : > { %6359 = vmatprep.subr.bf16.mxu1 %v11624_v39 }
 0x1cf   : > { %6356 = vmatmul.mubr.msk.bf16.vlgmr.msra.gmra.mxu0 %vm493_vm0, %v7483_v7 }
 0x1d0   : > { %6366 = vmatpush3.bf16.msra.mxu0 %v1212_v35  ;;  %6367 = vmatprep.mubr.msk.bf16.mxu0 %vm7058_vm1, %v11624_v39  ;;  %v5777_v35 = vld [vmem:[%s7423_s21 + $0x10] sm:$0xff] }
 0x1d1   : > { %6377 = vmatprep.subr.bf16.mxu0 %v11624_v39 }
 0x1d2   : > { %11903 = sst [smem:[#allocation96_spill]] %s7798_s11 }
 0x1d3   : > { %s7818_s11 = sld [smem:[#allocation4 + $0x18]] }
 0x1d4   : > { %6350 = vmatmul.mubr.msk.bf16.vlgmr.msra.gmra.mxu1 %vm493_vm0, %v7486_v13 }
 0x1d5   : > { %6360 = vmatpush3.bf16.msra.mxu1 %v1168_v38  ;;  %6361 = vmatprep.mubr.msk.bf16.mxu1 %vm7058_vm1, %v11624_v39  ;;  %v5773_v38 = vld [vmem:[%s7423_s21 + $0x48] sm:$0xff] }
 0x1d6   : > { %6371 = vmatprep.subr.bf16.mxu1 %v11624_v39 }
 0x1d7   : > { %6368 = vmatmul.mubr.msk.bf16.vlgmr.msra.gmra.mxu0 %vm493_vm0, %v7486_v13 }
 0x1d8   : > { %6378 = vmatpush3.bf16.msra.mxu0 %v1324_v42  ;;  %6379 = vmatprep.mubr.msk.bf16.mxu0 %vm7058_vm1, %v11624_v39 }
 0x1d9   : > { %6389 = vmatprep.subr.bf16.mxu0 %v11624_v39  ;;  %11913 = sst [smem:[#allocation106_spill]] %s7818_s11 }
 0x1da   : > { %s7834_s11 = sld [smem:[#allocation4 + $0x14]] }
 0x1dc   : > { %6362 = vmatmul.mubr.msk.bf16.vlgmr.msra.gmra.mxu1 %vm493_vm0, %v6712_v19 }
 0x1dd   : > { %6372 = vmatpush3.bf16.msra.mxu1 %v1282_v46  ;;  %6373 = vmatprep.mubr.msk.bf16.mxu1 %vm7058_vm1, %v11624_v39 }
 0x1de   : > { %6383 = vmatprep.subr.bf16.mxu1 %v11624_v39 }
 0x1df   : > { %6380 = vmatmul.mubr.msk.bf16.vlgmr.msra.gmra.mxu0 %vm493_vm0, %v6712_v19 }
 0x1e0   : > { %6391 = vmatprep.mubr.msk.bf16.mxu0 %vm7058_vm1, %v11624_v39  ;;  %6390 = vmatpush3.bf16.msra.mxu0 %v7555_v41  ;;  %11921 = sst [smem:[#allocation114_spill]] %s7834_s11 }
 0x1e1   : > { %6401 = vmatprep.subr.bf16.mxu0 %v11624_v39  ;;  %s7849_s11 = sld [smem:[#allocation4 + $0x80]] }
 0x1e4   : > { %6374 = vmatmul.mubr.msk.bf16.vlgmr.msra.gmra.mxu1 %vm493_vm0, %v7483_v7 }
 0x1e5   : > { %6384 = vmatpush3.bf16.msra.mxu1 %v1368_v48  ;;  %6385 = vmatprep.mubr.msk.bf16.mxu1 %vm7058_vm1, %v11624_v39 }
 0x1e6   : > { %6395 = vmatprep.subr.bf16.mxu1 %v11624_v39 }
 0x1e7   : > { %11927 = sst [smem:[#allocation120_spill]] %s7849_s11 }
 0x1e8   : > { %s11933_s11 = sld [smem:[#allocation56_spill]] }
 0x1ec   : > { %6386 = vmatmul.mubr.msk.bf16.vlgmr.msra.gmra.mxu1 %vm493_vm0, %v7486_v13 }
 0x1ed   : > { %6397 = vmatprep.mubr.msk.bf16.mxu1 %vm7058_vm1, %v11624_v39  ;;  %6396 = vmatpush3.bf16.msra.mxu1 %v7560_v49 }
 0x1ee   : > { %6407 = vmatprep.subr.bf16.mxu1 %v11624_v39 }
 0x27c   : > { %v828_v50 = vpop.f32.mrf.mxu1 }
 0x27e   : > { %v6321_v51 = vpop.f32.mrf.mxu1 }
 0x27f   : > { %v936_v52 = vpop.f32.mrf.mxu0 }
 0x280   : > { %v831_v53 = vpop.f32.mrf.mxu1  ;;  %v945_v16 = vsub.f32 %v936_v52, %v828_v50 }
 0x281   : > { %v6333_v54 = vpop.f32.mrf.mxu0 }
 0x282   : > { %v6322_v55 = vpop.f32.mrf.mxu1  ;;  %v5779_v54 = vld [vmem:[%s7423_s21 + $0x50] sm:$0xff] }
 0x283   : > { %v939_v56 = vpop.f32.mrf.mxu0  ;;  %v5784_v55 = vld [vmem:[%s7423_s21 + $0x20] sm:$0xff] }
 0x284   : > { %v881_v57 = vpop.f32.mrf.mxu1  ;;  %v946_v26 = vsub.f32 %v939_v56, %v831_v53 }
 0x285   : > { %v6334_v58 = vpop.f32.mrf.mxu0  ;;  %v943_v19 = vsub.f32 %v828_v50, %v881_v57  ;;  %v947_v20 = vsub.f32 %v945_v16, %v881_v57 }
 0x286   : > { %v6327_v59 = vpop.f32.mrf.mxu1 }
 0x287   : > { %v1047_v60 = vpop.f32.mrf.mxu0  ;;  %v954_v31 = vmul.f32 %v949_v22, %v943_v19  ;;  %v958_v32 = vmul.f32 %v5772_v23, %v947_v20 }
 0x288   : > { %v884_v61 = vpop.f32.mrf.mxu1 }
 0x289   : > { %v6345_v62 = vpop.f32.mrf.mxu0  ;;  %v944_v33 = vsub.f32 %v831_v53, %v884_v61  ;;  %v948_v34 = vsub.f32 %v946_v26, %v884_v61  ;;  %v960_v51 = vadd.f32 %v958_v32, %v954_v31 }
 0x28a   : > { %v6328_v63 = vpop.f32.mrf.mxu1  ;;  %v962_v62 = vmul.f32 %v949_v22, %v947_v20  ;;  %v5786_v20 = vld [vmem:[%s7423_s21 + $0x60] sm:$0xff] }
 0x28b   : > { %v1050_v0 = vpop.f32.mrf.mxu0  ;;  %v955_v52 = vmul.f32 %v950_v37, %v944_v33  ;;  %v959_v53 = vmul.f32 %v5773_v38, %v948_v34  ;;  %v963_v57 = vmul.f32 %v950_v37, %v948_v34  ;;  %v967_v58 = vmul.f32 %v5773_v38, %v944_v33 }
 0x28c   : > { %v1005_v1 = vpop.f32.mrf.mxu1 }
 0x28d   : > { %v6346_v2 = vpop.f32.mrf.mxu0  ;;  %v7578_v28 = vsub.f32 %v1005_v1, %v1047_v60 }
 0x28e   : > { %v6339_v3 = vpop.f32.mrf.mxu1 }
 0x28f   : > { %v7566_v4 = vpop.f32.mrf.mxu0  ;;  %v1110_v46 = vmul.f32 %v5777_v35, %v7578_v28  ;;  %v5780_v3 = vld [vmem:[%s7423_s21 + $0x58] sm:$0xff] }
 0x290   : > { %v1008_v5 = vpop.f32.mrf.mxu1 }
 0x291   : > { %v6357_v6 = vpop.f32.mrf.mxu0  ;;  %v1099_v43 = vsub.f32 %v1008_v5, %v1050_v0  ;;  %v1112_v2 = vadd.f32 %v1110_v46, %v960_v51  ;;  %v1122_v46 = vmul.f32 %v5779_v54, %v7578_v28  ;;  %v5794_v28 = vld [vmem:[%s7423_s21 + $0x78] sm:$0xff] }
 0x292   : > { %v6340_v7 = vpop.f32.mrf.mxu1 }
 0x293   : > { %v7568_v8 = vpop.f32.mrf.mxu0  ;;  %v1111_v63 = vmul.f32 %v5778_v45, %v1099_v43  ;;  %v5785_v7 = vld [vmem:[%s7423_s21 + $0x28] sm:$0xff] }
 0x294   : > { %v1091_v9 = vpop.f32.mrf.mxu1 }
 0x295   : > { %v6358_v10 = vpop.f32.mrf.mxu0  ;;  %v1100_v24 = vsub.f32 %v1091_v9, %v1005_v1  ;;  %v966_v1 = vmul.f32 %v5772_v23, %v943_v19 }
 0x296   : > { %v6351_v11 = vpop.f32.mrf.mxu1  ;;  %v961_v10 = vadd.f32 %v959_v53, %v955_v52  ;;  %v5793_v52 = vld [vmem:[%s7423_s21 + $0x70] sm:$0xff] }
 0x297   : > { %v7570_v12 = vpop.f32.mrf.mxu0  ;;  %v1102_v40 = vsub.f32 %v1100_v24, %v1047_v60  ;;  %v968_v24 = vsub.f32 %v962_v62, %v966_v1 }
 0x298   : > { %v1094_v13 = vpop.f32.mrf.mxu1  ;;  %v1256_v60 = vsub.f32 %v7570_v12, %v7566_v4  ;;  %v969_v12 = vsub.f32 %v963_v57, %v967_v58  ;;  %v1113_v19 = vadd.f32 %v1111_v63, %v961_v10 }
 0x299   : > { %v6369_v14 = vpop.f32.mrf.mxu0  ;;  %v1101_v29 = vsub.f32 %v1094_v13, %v1008_v5  ;;  %v1114_v59 = vmul.f32 %v5779_v54, %v1102_v40 }
 0x29a   : > { %v6352_v15 = vpop.f32.mrf.mxu1  ;;  %v1118_v14 = vmul.f32 %v5777_v35, %v1102_v40  ;;  %v5787_v35 = vld [vmem:[%s7423_s21 + $0x68] sm:$0xff] }
 0x29b   : > { %v7572_v17 = vpop.f32.mrf.mxu0  ;;  %v1103_v47 = vsub.f32 %v1101_v29, %v1050_v0  ;;  %v1116_v13 = vadd.f32 %v1114_v59, %v1112_v2  ;;  %v5791_v29 = vld [vmem:[%s7423_s21 + $0x30] sm:$0xff] }
 0x29c   : > { %v1203_v18 = vpop.f32.mrf.mxu1  ;;  %v1120_v33 = vadd.f32 %v1118_v14, %v968_v24 }
 0x29d   : > { %v6370_v21 = vpop.f32.mrf.mxu0  ;;  %v7588_v48 = vsub.f32 %v7566_v4, %v1203_v18  ;;  %v1119_v5 = vmul.f32 %v5778_v45, %v1103_v47  ;;  %v1115_v11 = vmul.f32 %v5780_v3, %v1103_v47  ;;  %v1257_v4 = vsub.f32 %v7572_v17, %v7568_v8 }
 0x29e   : > { %v6363_v25 = vpop.f32.mrf.mxu1  ;;  %v1258_v15 = vsub.f32 %v1256_v60, %v1203_v18  ;;  %v1123_v18 = vmul.f32 %v5780_v3, %v1099_v43  ;;  %v1124_v58 = vsub.f32 %v1120_v33, %v1122_v46  ;;  %v1690_v33 = vstv %s7684_s23  ;;  %s7873_s23 = sld [smem:[#allocation4 + $0x3e]] }
 0x29f   : > { %v7576_v27 = vpop.f32.mrf.mxu0  ;;  %v1266_v6 = vmul.f32 %v5784_v55, %v7588_v48  ;;  %v1121_v25 = vadd.f32 %v1119_v5, %v969_v12  ;;  %v1117_v32 = vadd.f32 %v1115_v11, %v1113_v19  ;;  %v1278_v5 = vmul.f32 %v5786_v20, %v7588_v48 }
 0x2a0   : > { %v1206_v30 = vpop.f32.mrf.mxu1  ;;  %v1270_v34 = vmul.f32 %v5786_v20, %v1258_v15  ;;  %v1274_v47 = vmul.f32 %v5784_v55, %v1258_v15  ;;  %v1750_v46 = vstv %s7702_s26  ;;  %s11952_s26 = sld [smem:[#allocation70_spill]] }
 0x2a1   : > { %v6381_v36 = vpop.f32.mrf.mxu0  ;;  %v1255_v0 = vsub.f32 %v7568_v8, %v1206_v30  ;;  %v1259_v21 = vsub.f32 %v1257_v4, %v1206_v30  ;;  %v1268_v26 = vadd.f32 %v1266_v6, %v1116_v13  ;;  %v1125_v51 = vsub.f32 %v1121_v25, %v1123_v18 }
 0x2a2   : > { %v6364_v42 = vpop.f32.mrf.mxu1  ;;  %v5792_v36 = vld [vmem:[%s7423_s21 + $0x38] sm:$0xff]  ;;  %s7730_s21 = sld [smem:[#allocation4 + $0x64]]  ;;  %v1684_v18 = vstv %s7682_s14 }
 0x2a3   : > { %v7583_v44 = vpop.f32.mrf.mxu0  ;;  %v1267_v22 = vmul.f32 %v5785_v7, %v1255_v0  ;;  %v1275_v38 = vmul.f32 %v5785_v7, %v1259_v21  ;;  %v1272_v45 = vadd.f32 %v1270_v34, %v1268_v26  ;;  %v1279_v1 = vmul.f32 %v5787_v35, %v1255_v0  ;;  %s11944_s14 = sld [smem:[#allocation65_spill]] }
 0x2a4   : > { %v1317_v50 = vpop.f32.mrf.mxu1  ;;  %v1696_v34 = vstv %s7686_s9  ;;  %s11941_s9 = sld [smem:[#allocation63_spill]] }
 0x2a5   : > { %v6382_v56 = vpop.f32.mrf.mxu0  ;;  %v1410_v23 = vsub.f32 %v1317_v50, %v7576_v27  ;;  %v1269_v30 = vadd.f32 %v1267_v22, %v1117_v32  ;;  %v1708_v32 = vstv %s7672_s17  ;;  %11942 = sst [smem:[#allocation60_spill]] %s7873_s23 }
 0x2a6   : > { %v6375_v61 = vpop.f32.mrf.mxu1  ;;  %s7887_s23 = sld [smem:[#allocation4 + $0x74]] }
 0x2a7   : > { %v1422_v40 = vmul.f32 %v5791_v29, %v1410_v23  ;;  %v1277_v61 = vadd.f32 %v1275_v38, %v1125_v51  ;;  %v1434_v15 = vmul.f32 %v5793_v52, %v1410_v23  ;;  %v1732_v38 = vstv %s7696_s27  ;;  %s12007_s17 = sld [smem:[#allocation57_spill]] }
 0x2a8   : > { %v1320_v9 = vpop.f32.mrf.mxu1  ;;  %11869 = sst [smem:[#allocation62_spill]] %s7730_s21  ;;  %v1774_v51 = vstv %s7708_s8 }
 0x2a9   : > { %v1411_v8 = vsub.f32 %v1320_v9, %v7583_v44  ;;  %v1424_v62 = vadd.f32 %v1422_v40, %v1272_v45  ;;  %v1281_v6 = vsub.f32 %v1277_v61, %v1279_v1  ;;  %s7752_s21 = sld [smem:[#allocation4 + $0x55]]  ;;  %v1738_v40 = vstv %s7698_s3 }
 0x2aa   : > { %v6376_v16 = vpop.f32.mrf.mxu1  ;;  %v1762_v45 = vstv %s7704_s5  ;;  %s7882_s5 = sld [smem:[#allocation4 + $0x62]]  ;;  %v11637_v61 = vstv %s11939_s6 }
 0x2ab   : > { %v1423_v43 = vmul.f32 %v5792_v36, %v1411_v8  ;;  %v1435_v12 = vmul.f32 %v5794_v28, %v1411_v8  ;;  %v1672_v8 = vstv %s7678_s19  ;;  %s8033_s19 = sld [smem:[#allocation4 + $0x75]] }
 0x2ac   : > { %v1403_v31 = vpop.f32.mrf.mxu1  ;;  %11953 = sst [smem:[#allocation64_spill]] %s7887_s23 }
 0x2ad   : > { %v1412_v17 = vsub.f32 %v1403_v31, %v1317_v50  ;;  %v1271_v50 = vmul.f32 %v5787_v35, %v1259_v21  ;;  %v1666_v31 = vstv %s7676_s15  ;;  %v1702_v35 = vstv %s7688_s30  ;;  %s11940_s30 = sld [smem:[#allocation62_spill]] }
 0x2ae   : > { %v6387_v37 = vpop.f32.mrf.mxu1  ;;  %s11963_s23 = sld [smem:[#allocation79_spill]] }
 0x2af   : > { %v1414_v42 = vsub.f32 %v1412_v17, %v7576_v27  ;;  %v1273_v60 = vadd.f32 %v1271_v50, %v1269_v30  ;;  %v1276_v27 = vadd.f32 %v1274_v47, %v1124_v58  ;;  %11880 = sst [smem:[#allocation73_spill]] %s7752_s21  ;;  %v1678_v17 = vstv %s7680_s25 }
 0x2b0   : > { %v1406_v53 = vpop.f32.mrf.mxu1  ;;  %s7774_s21 = sld [smem:[#allocation4]]  ;;  %v1720_v37 = vstv %s7692_s22  ;;  %v1726_v30 = vstv %s7694_s0  ;;  %v1768_v47 = vstv %s7706_s7  ;;  %v1792_v50 = vstv %s11930_s16 }
 0x2b1   : > { %v1426_v56 = vmul.f32 %v5793_v52, %v1414_v42  ;;  %v1413_v57 = vsub.f32 %v1406_v53, %v1320_v9  ;;  %v1425_v54 = vadd.f32 %v1423_v43, %v1273_v60  ;;  %v1430_v7 = vmul.f32 %v5791_v29, %v1414_v42  ;;  %s7879_s25 = sld [smem:[#allocation4 + $0x50]] }
 0x2b2   : > { %v6388_v59 = vpop.f32.mrf.mxu1  ;;  %v1280_v10 = vsub.f32 %v1276_v27, %v1278_v5  ;;  %v1744_v42 = vstv %s7700_s1  ;;  %v1780_v52 = vstv %s7710_s10  ;;  %v1786_v53 = vstv %s11929_s13  ;;  %s11946_s1 = sld [smem:[#allocation67_spill]] }
 0x2b3   : > { %v1415_v63 = vsub.f32 %v1413_v57, %v7583_v44  ;;  %v7611_v55 = vadd.f32 %v1426_v56, %v1424_v62  ;;  %v1798_v43 = vstv %s11931_s28  ;;  %v1804_v56 = vstv %s11933_s11  ;;  %11949 = sst [smem:[#allocation63_spill]] %s7882_s5 }
 0x2b4   : > { %v1432_v13 = vadd.f32 %v1430_v7, %v1280_v10  ;;  %s11950_s7 = sld [smem:[#allocation69_spill]]  ;;  %v11632_v58 = vstv %s11935_s2  ;;  %v11633_v59 = vstv %s11936_s4  ;;  %v11635_v60 = vstv %s11938_s24 }
 0x2b5   : > { %v1427_v2 = vmul.f32 %v5794_v28, %v1415_v63  ;;  %v1431_v3 = vmul.f32 %v5792_v36, %v1415_v63  ;;  %v1653_v44 = vrot.slane %v7611_v55, 7  ;;  %v1755_v19 = vrot.slane %v7611_v55, 1  ;;  %s11954_s13 = sld [smem:[#allocation72_spill]] }
 0x2b6   : > { %v7638_v20 = vsub.f32 %v1432_v13, %v1434_v15  ;;  %11891 = sst [smem:[#allocation84_spill]] %s7774_s21  ;;  %v1714_v36 = vstv %s7690_s12  ;;  %v11638_v62 = vstv %s11940_s30  ;;  %v7945_v15 = vmul.f32 %v1726_v30, %v7611_v55 }
 0x2b7   : > { %v7614_v9 = vadd.f32 %v1427_v2, %v1425_v54  ;;  %v1433_v11 = vadd.f32 %v1431_v3, %v1281_v6  ;;  %s7796_s21 = sld [smem:[#allocation4 + $0x6f]]  ;;  %v1658_v7 = vsel %vm1493_vm2, 0.0, %v1653_v44  ;;  %v7950_v13 = vmul.f32 %v1732_v38, %v7611_v55 }
 0x2b8   : > { %v2222_v23 = vrot.slane %v7638_v20, 7  ;;  %v2324_v26 = vrot.slane %v7638_v20, 1  ;;  %11947 = sst [smem:[#allocation61_spill]] %s7879_s25  ;;  %11976 = vst [vmem:[#allocation127_spill] sm:$0xff] %v7945_v15  ;;  %v7982_v10 = vmul.f32 %v1702_v35, %v1658_v7 }
 0x2b9   : > { %v1438_v4 = vpack.c.bf16 %v7614_v9, %v7611_v55  ;;  %v1654_v0 = vrot.slane %v7614_v9, 7  ;;  %v1756_v14 = vrot.slane %v7614_v9, 1  ;;  %v7630_v16 = vsub.f32 %v1433_v11, %v1435_v12  ;;  %s7893_s25 = sld [smem:[#allocation4 + $0x86]]  ;;  %11977 = vst [vmem:[#allocation128_spill] sm:$0xff] %v7950_v13 }
 0x2ba   : > { %s11958_s11 = sld [smem:[#allocation75_spill]]  ;;  %v7964_v12 = vmul.f32 %v1678_v17, %v1658_v7  ;;  %v7978_v11 = vmul.f32 %v1696_v34, %v1658_v7  ;;  %v7987_v5 = vmul.f32 %v1708_v32, %v7614_v9  ;;  %v2227_v63 = vsel %vm1493_vm2, 0.0, %v2222_v23 }
 0x2bb   : > { %6392 = vmatmul.mubr.msk.bf16.vlgmr.msra.gmra.mxu0 %vm493_vm0, %v1438_v4  ;;  %6398 = vmatmul.mubr.msk.bf16.vlgmr.msra.gmra.mxu1 %vm493_vm0, %v1438_v4  ;;  %v7625_v48 = vsel %vm1493_vm2, %v1653_v44, %v1654_v0  ;;  %v7644_v21 = vsel %vm1596_vm3, %v1755_v19, %v1756_v14  ;;  %v2017_v22 = vpack.c.bf16 %v7630_v16, %v7638_v20  ;;  %v2223_v24 = vrot.slane %v7630_v16, 7  ;;  %s11959_s5 = sld [smem:[#allocation77_spill]] }
 0x2bc   : > { %6402 = vmatpush3.bf16.msra.mxu0 %v7555_v41  ;;  %6408 = vmatpush3.bf16.msra.mxu1 %v7560_v49  ;;  %s11961_s2 = sld [smem:[#allocation78_spill]]  ;;  %v7922_v44 = vmul.f32 %v1708_v32, %v7611_v55  ;;  %v7927_v19 = vmul.f32 %v1714_v36, %v7611_v55  ;;  %v7968_v4 = vmul.f32 %v1684_v18, %v1658_v7 }
 0x2bd   : > { %6403 = vmatprep.mubr.msk.bf16.mxu0 %vm7058_vm1, %v11624_v39  ;;  %6409 = vmatprep.mubr.msk.bf16.mxu1 %vm7058_vm1, %v11624_v39  ;;  %v7656_v25 = vsel %vm1493_vm2, %v2222_v23, %v2223_v24  ;;  %11902 = sst [smem:[#allocation95_spill]] %s7796_s21  ;;  %v7956_v24 = vmul.f32 %v1666_v31, %v1658_v7  ;;  %v7974_v0 = vmul.f32 %v1690_v33, %v1658_v7 }
 0x2be   : > { %6413 = vmatprep.subr.bf16.mxu0 %v11624_v39  ;;  %6419 = vmatprep.subr.bf16.mxu1 %v11624_v39  ;;  %s7816_s21 = sld [smem:[#allocation4 + $0x6]]  ;;  %11970 = vst [vmem:[#allocation124_spill] sm:$0xff] %v7922_v44  ;;  %11972 = vst [vmem:[#allocation125_spill] sm:$0xff] %v7927_v19  ;;  %v7999_v28 = vmul.f32 %v1666_v31, %v7625_v48  ;;  %v8009_v32 = vmul.f32 %v1714_v36, %v7614_v9 }
 0x2bf   : > { %11957 = sst [smem:[#allocation65_spill]] %s7893_s25  ;;  %v8021_v31 = vmul.f32 %v1684_v18, %v7625_v48  ;;  %v8031_v36 = vmul.f32 %v1696_v34, %v7625_v48  ;;  %v8043_v18 = vmul.f32 %v1720_v37, %v7614_v9  ;;  %v1760_v34 = vsel %vm1596_vm3, %v1756_v14, 0.0 }
 0x2c0   : > { %s7899_s4 = sld [smem:[#allocation4 + $0xc]]  ;;  %v8073_v14 = vmul.f32 %v1744_v42, %v7611_v55  ;;  %v8095_v6 = vmul.f32 %v1762_v45, %v7644_v21  ;;  %v8121_v3 = vmul.f32 %v1774_v51, %v1760_v34  ;;  %v8130_v54 = vmul.f32 %v1780_v52, %v1760_v34 }
 0x2c1   : > { %s11964_s30 = sld [smem:[#allocation80_spill]]  ;;  %v8155_v1 = vmul.f32 %v1798_v43, %v7644_v21  ;;  %v8166_v27 = vmul.f32 %v1804_v56, %v7644_v21  ;;  %v8197_v23 = vmul.f32 %v11635_v60, %v7656_v25  ;;  %v12032_v60 = vstv %s11943_s20 }
 0x2c2   : > { %s7908_s25 = sld [smem:[#allocation4 + $0x1e]]  ;;  %11993 = vst [vmem:[#allocation131_spill] sm:$0xff] %v8073_v14  ;;  %12000 = vst [vmem:[#allocation135_spill] sm:$0xff] %v8095_v6 }
 0x2c3   : > { %6404 = vmatmul.mubr.msk.bf16.vlgmr.msra.gmra.mxu0 %vm493_vm0, %v2017_v22  ;;  %6410 = vmatmul.mubr.msk.bf16.vlgmr.msra.gmra.mxu1 %vm493_vm0, %v2017_v22  ;;  %s7929_s16 = sld [smem:[#allocation4 + $0x1b]]  ;;  %v7960_v22 = vmul.f32 %v1672_v8, %v1658_v7  ;;  %12006 = vst [vmem:[#allocation140_spill] sm:$0xff] %v8121_v3  ;;  %12010 = vst [vmem:[#allocation142_spill] sm:$0xff] %v8130_v54 }
 0x2c4   : > { %6414 = vmatpush3.bf16.msra.mxu0 %v7555_v41  ;;  %6420 = vmatpush3.bf16.msra.mxu1 %v7560_v49  ;;  %v11631_v41 = vrot.slane %v7630_v16, 1  ;;  %11912 = sst [smem:[#allocation105_spill]] %s7816_s21  ;;  %v1660_v49 = vstv %s7674_s29  ;;  %12017 = vst [vmem:[#allocation147_spill] sm:$0xff] %v8155_v1  ;;  %12019 = vst [vmem:[#allocation149_spill] sm:$0xff] %v8166_v27 }
 0x2c5   : > { %6415 = vmatprep.mubr.msk.bf16.mxu0 %vm7058_vm1, %v11624_v39  ;;  %6421 = vmatprep.mubr.msk.bf16.mxu1 %vm7058_vm1, %v11624_v39  ;;  %s7832_s21 = sld [smem:[#allocation4 + $0x2]]  ;;  %v7994_v2 = vmul.f32 %v1660_v49, %v7625_v48  ;;  %12026 = vst [vmem:[#allocation154_spill] sm:$0xff] %v8197_v23  ;;  %v8219_v23 = vmul.f32 %v12032_v60, %v7656_v25 }
 0x2c6   : > { %6425 = vmatprep.subr.bf16.mxu0 %v11624_v39  ;;  %6431 = vmatprep.subr.bf16.mxu1 %v11624_v39  ;;  %v7670_v29 = vsel %vm1596_vm3, %v2324_v26, %v11631_v41  ;;  %11962 = sst [smem:[#allocation67_spill]] %s7899_s4  ;;  %v7935_v26 = vmul.f32 %v1660_v49, %v1658_v7  ;;  %v7940_v39 = vmul.f32 %v1720_v37, %v7611_v55 }
 0x2c7   : > { %s7913_s4 = sld [smem:[#allocation4 + $0x9]]  ;;  %v8004_v7 = vmul.f32 %v1672_v8, %v7625_v48  ;;  %v8016_v49 = vmul.f32 %v1678_v17, %v7625_v48  ;;  %v8026_v8 = vmul.f32 %v1690_v33, %v7625_v48  ;;  %v8038_v17 = vmul.f32 %v1702_v35, %v7625_v48  ;;  %12033 = vst [vmem:[#allocation158_spill] sm:$0xff] %v8219_v23 }
 0x2c8   : > { %11965 = sst [smem:[#allocation69_spill]] %s7908_s25  ;;  %11975 = vst [vmem:[#allocation126_spill] sm:$0xff] %v7940_v39  ;;  %v8048_v33 = vmul.f32 %v1726_v30, %v7614_v9  ;;  %v8058_v48 = vmul.f32 %v1732_v38, %v7614_v9  ;;  %v8063_v35 = vmul.f32 %v1738_v40, %v7611_v55  ;;  %v8068_v37 = vmul.f32 %v1738_v40, %v7614_v9 }
 0x2c9   : > { %11974 = sst [smem:[#allocation72_spill]] %s7929_s16  ;;  %v8080_v30 = vmul.f32 %v1744_v42, %v7614_v9  ;;  %v8085_v38 = vmul.f32 %v1750_v46, %v7611_v55  ;;  %v8090_v40 = vmul.f32 %v1750_v46, %v7614_v9  ;;  %v8101_v42 = vmul.f32 %v1762_v45, %v1760_v34 }
 0x2ca   : > { %s7952_s16 = sld [smem:[#allocation4 + $0x2d]]  ;;  %11990 = vst [vmem:[#allocation129_spill] sm:$0xff] %v8063_v35  ;;  %11991 = vst [vmem:[#allocation130_spill] sm:$0xff] %v8068_v37  ;;  %v8106_v55 = vmul.f32 %v1768_v47, %v7644_v21  ;;  %v8110_v9 = vmul.f32 %v1768_v47, %v1760_v34  ;;  %v8115_v46 = vmul.f32 %v1774_v51, %v7644_v21 }
 0x2cb   : > { %11920 = sst [smem:[#allocation113_spill]] %s7832_s21  ;;  %11995 = vst [vmem:[#allocation132_spill] sm:$0xff] %v8080_v30  ;;  %11997 = vst [vmem:[#allocation133_spill] sm:$0xff] %v8085_v38  ;;  %v8126_v45 = vmul.f32 %v1780_v52, %v7644_v21  ;;  %v8135_v47 = vmul.f32 %v1786_v53, %v7644_v21  ;;  %v8141_v51 = vmul.f32 %v1786_v53, %v1760_v34 }
 0x2cc   : > { %s11934_s21 = sld [smem:[#allocation57_spill]]  ;;  %11998 = vst [vmem:[#allocation134_spill] sm:$0xff] %v8090_v40  ;;  %12001 = vst [vmem:[#allocation136_spill] sm:$0xff] %v8101_v42  ;;  %v8146_v41 = vmul.f32 %v1792_v50, %v7644_v21  ;;  %v8150_v52 = vmul.f32 %v1792_v50, %v1760_v34  ;;  %v8161_v53 = vmul.f32 %v1798_v43, %v1760_v34 }
 0x2cd   : > { %11966 = sst [smem:[#allocation70_spill]] %s7913_s4  ;;  %12003 = vst [vmem:[#allocation137_spill] sm:$0xff] %v8106_v55  ;;  %12004 = vst [vmem:[#allocation138_spill] sm:$0xff] %v8110_v9  ;;  %v8170_v50 = vmul.f32 %v1804_v56, %v1760_v34  ;;  %v8187_v21 = vmul.f32 %v11632_v58, %v7656_v25  ;;  %v8192_v56 = vmul.f32 %v11633_v59, %v7656_v25  ;;  %v12030_v59 = vstv %s11941_s9 }
 0x2ce   : > { %s7970_s4 = sld [smem:[#allocation4 + $0x3f]]  ;;  %12005 = vst [vmem:[#allocation139_spill] sm:$0xff] %v8115_v46  ;;  %12008 = vst [vmem:[#allocation141_spill] sm:$0xff] %v8126_v45  ;;  %v8204_v34 = vmul.f32 %v11637_v61, %v7656_v25  ;;  %v8209_v58 = vmul.f32 %v11638_v62, %v7656_v25 }
 0x2cf   : > { %11986 = sst [smem:[#allocation79_spill]] %s8033_s19  ;;  %12012 = vst [vmem:[#allocation143_spill] sm:$0xff] %v8135_v47  ;;  %12013 = vst [vmem:[#allocation144_spill] sm:$0xff] %v8141_v51 }
 0x2d0   : > { %11978 = sst [smem:[#allocation75_spill]] %s7952_s16  ;;  %12014 = vst [vmem:[#allocation145_spill] sm:$0xff] %v8146_v41  ;;  %12016 = vst [vmem:[#allocation146_spill] sm:$0xff] %v8150_v52 }
 0x2d1   : > { %s7989_s16 = sld [smem:[#allocation4 + $0x51]]  ;;  %12018 = vst [vmem:[#allocation148_spill] sm:$0xff] %v8161_v53  ;;  %12020 = vst [vmem:[#allocation150_spill] sm:$0xff] %v8170_v50 }
 0x2d2   : > { %v11634_v57 = vstv %s11934_s21  ;;  %s11960_s21 = sld [smem:[#allocation76_spill]]  ;;  %12024 = vst [vmem:[#allocation152_spill] sm:$0xff] %v8187_v21  ;;  %12025 = vst [vmem:[#allocation153_spill] sm:$0xff] %v8192_v56  ;;  %v12035_v56 = vstv %s12007_s17 }
 0x2d3   : > { %s8053_s25 = sld [smem:[#allocation4 + $0x87]]  ;;  %v8182_v43 = vmul.f32 %v11634_v57, %v7656_v25  ;;  %12028 = vst [vmem:[#allocation155_spill] sm:$0xff] %v8204_v34  ;;  %12029 = vst [vmem:[#allocation156_spill] sm:$0xff] %v8209_v58  ;;  %v8214_v57 = vmul.f32 %v12030_v59, %v7656_v25  ;;  %v8225_v61 = vmul.f32 %v12035_v56, %v2227_v63  ;;  %v12038_v34 = vstv %s11944_s14 }
 0x2d4   : > { %11979 = sst [smem:[#allocation77_spill]] %s7970_s4  ;;  %v8230_v62 = vmul.f32 %v12038_v34, %v7638_v20  ;;  %v12040_v58 = vmov %v12038_v34 }
 0x2d5   : > { %s8075_s12 = sld [smem:[#allocation4 + $0x30]]  ;;  %12023 = vst [vmem:[#allocation151_spill] sm:$0xff] %v8182_v43  ;;  %12031 = vst [vmem:[#allocation157_spill] sm:$0xff] %v8214_v57  ;;  %v8235_v59 = vmul.f32 %v12040_v58, %v7630_v16  ;;  %v12043_v57 = vrot.slane %v7630_v16, 1 }
 0x2d6   : > { %s8097_s0 = sld [smem:[#allocation4 + $0x42]]  ;;  %12037 = vst [vmem:[#allocation159_spill] sm:$0xff] %v8225_v61  ;;  %12039 = vst [vmem:[#allocation160_spill] sm:$0xff] %v8230_v62  ;;  %v12047_v61 = vstv %s11946_s1 }
 0x2d7   : > { %11980 = sst [smem:[#allocation76_spill]] %s7989_s16  ;;  %12042 = vst [vmem:[#allocation161_spill] sm:$0xff] %v8235_v59  ;;  %v2329_v25 = vsel %vm1596_vm3, %v12043_v57, 0.0  ;;  %v8249_v34 = vmul.f32 %v12047_v61, %v7638_v20  ;;  %v12050_v62 = vmov %v12047_v61  ;;  %v12055_v57 = vstv %s11950_s7 }
 0x2d8   : > { %s8011_s16 = sld [smem:[#allocation4 + $0x63]]  ;;  %v8254_v58 = vmul.f32 %v12050_v62, %v7630_v16 }
 0x2d9   : > { %11989 = sst [smem:[#allocation80_spill]] %s8053_s25  ;;  %12049 = vst [vmem:[#allocation163_spill] sm:$0xff] %v8249_v34  ;;  %v12059_v34 = vstv %s11938_s24 }
 0x2da   : > { %s8117_s3 = sld [smem:[#allocation4 + $0x54]]  ;;  %12051 = vst [vmem:[#allocation164_spill] sm:$0xff] %v8254_v58  ;;  %v8274_v62 = vmul.f32 %v12059_v34, %v2227_v63  ;;  %v12062_v58 = vstv %s11952_s26 }
 0x2db   : > { %11994 = sst [smem:[#allocation42_spill]] %s8075_s12 }
 0x2dc   : > { %s12009_s29 = sld [smem:[#allocation58_spill]]  ;;  %12061 = vst [vmem:[#allocation168_spill] sm:$0xff] %v8274_v62  ;;  %v12071_v62 = vmov %v12062_v58 }
 0x2dd   : > { %s12011_s15 = sld [smem:[#allocation59_spill]] }
 0x2de   : > { %11983 = sst [smem:[#allocation78_spill]] %s8011_s16 }
 0x2df   : > { %s8137_s8 = sld [smem:[#allocation4 + $0x66]] }
 0x2e0   : > { %s12015_s10 = sld [smem:[#allocation62_spill]] }
 0x2e1   : > { %s8172_s28 = sld [smem:[#allocation4 + $0x8a]] }
 0x2e2   : > { %s8177_s22 = sld [smem:[#allocation4 + $0xe]]  ;;  %v12045_v60 = vstv %s12009_s29 }
 0x2e3   : > { %s8199_s4 = sld [smem:[#allocation4 + $0x20]]  ;;  %v8244_v56 = vmul.f32 %v12045_v60, %v2227_v63  ;;  %v12052_v23 = vstv %s12011_s15  ;;  %v8265_v60 = vmul.f32 %v12055_v57, %v7638_v20 }
 0x2e4   : > { %s8221_s27 = sld [smem:[#allocation4 + $0x32]]  ;;  %v8258_v59 = vmul.f32 %v12052_v23, %v2227_v63  ;;  %v8279_v23 = vmul.f32 %v12062_v58, %v7638_v20  ;;  %v8300_v58 = vmul.f32 %v12071_v62, %v7630_v16 }
 0x2e5   : > { %12046 = vst [vmem:[#allocation162_spill] sm:$0xff] %v8244_v56  ;;  %s12048_s17 = sld [smem:[#allocation71_spill]]  ;;  %12056 = vst [vmem:[#allocation166_spill] sm:$0xff] %v8265_v60  ;;  %v12057_v56 = vmov %v12055_v57 }
 0x2e6   : > { %12053 = vst [vmem:[#allocation165_spill] sm:$0xff] %v8258_v59  ;;  %s8260_s14 = sld [smem:[#allocation4 + $0x56]]  ;;  %v8270_v61 = vmul.f32 %v12057_v56, %v7630_v16  ;;  %12063 = vst [vmem:[#allocation169_spill] sm:$0xff] %v8279_v23 }
 0x2e7   : > { %12021 = sst [smem:[#allocation43_spill]] %s8172_s28  ;;  %12073 = vst [vmem:[#allocation173_spill] sm:$0xff] %v8300_v58 }
 0x2e8   : > { %12022 = sst [smem:[#allocation44_spill]] %s8177_s22  ;;  %12058 = vst [vmem:[#allocation167_spill] sm:$0xff] %v8270_v61 }
 0x2e9   : > { %12027 = sst [smem:[#allocation45_spill]] %s8199_s4 }
 0x2ea   : > { %12034 = sst [smem:[#allocation46_spill]] %s8221_s27 }
 0x2eb   : > { %s12036_s4 = sld [smem:[#allocation66_spill]] }
 0x2ec   : > { %s12041_s22 = sld [smem:[#allocation68_spill]] }
 0x2ed   : > { %s8240_s27 = sld [smem:[#allocation4 + $0x44]] }
 0x2ee   : > { %12054 = sst [smem:[#allocation48_spill]] %s8260_s14 }
 0x2ef   : > { %s12060_s1 = sld [smem:[#allocation73_spill]] }
 0x2f0   : > { %s8281_s29 = sld [smem:[#allocation4 + $0x68]] }
 0x2f1   : > { %v12065_v59 = vstv %s12036_s4  ;;  %s12072_s7 = sld [smem:[#allocation74_spill]] }
 0x2f2   : > { %v8286_v57 = vmul.f32 %v12065_v59, %v7670_v29  ;;  %v12067_v60 = vmov %v12065_v59  ;;  %v12069_v61 = vstv %s12041_s22  ;;  %s8302_s24 = sld [smem:[#allocation4 + $0x7a]] }
 0x2f3   : > { %12044 = sst [smem:[#allocation47_spill]] %s8240_s27  ;;  %v8290_v56 = vmul.f32 %v12067_v60, %v2329_v25  ;;  %v8295_v34 = vmul.f32 %v12069_v61, %v7670_v29  ;;  %v12075_v23 = vmov %v12069_v61 }
 0x2f4   : > { %12066 = vst [vmem:[#allocation170_spill] sm:$0xff] %v8286_v57  ;;  %v8306_v59 = vmul.f32 %v12075_v23, %v2329_v25  ;;  %v12077_v57 = vstv %s12048_s17  ;;  %s8322_s26 = sld [smem:[#allocation4 + $0x8c]] }
 0x2f5   : > { %12068 = vst [vmem:[#allocation171_spill] sm:$0xff] %v8290_v56  ;;  %12070 = vst [vmem:[#allocation172_spill] sm:$0xff] %v8295_v34  ;;  %v8311_v60 = vmul.f32 %v12077_v57, %v7670_v29  ;;  %v12079_v56 = vmov %v12077_v57  ;;  %v12081_v34 = vstv %s11954_s13  ;;  %v12088_v57 = vstv %s12060_s1  ;;  %s8342_s15 = sld [smem:[#allocation4 + $0xf]] }
 0x2f6   : > { %12064 = sst [smem:[#allocation49_spill]] %s8281_s29  ;;  %12076 = vst [vmem:[#allocation174_spill] sm:$0xff] %v8306_v59  ;;  %v8315_v61 = vmul.f32 %v12079_v56, %v2329_v25  ;;  %v8320_v62 = vmul.f32 %v12081_v34, %v7670_v29  ;;  %v12084_v58 = vmov %v12081_v34  ;;  %v12086_v59 = vstv %s11939_s6 }
 0x2f7   : > { %12078 = vst [vmem:[#allocation175_spill] sm:$0xff] %v8311_v60  ;;  %v8326_v23 = vmul.f32 %v12084_v58, %v2329_v25  ;;  %v8330_v21 = vmul.f32 %v12086_v59, %v2227_v63  ;;  %v8335_v56 = vmul.f32 %v12088_v57, %v7638_v20  ;;  %v12090_v60 = vmov %v12088_v57  ;;  %s8362_s6 = sld [smem:[#allocation4 + $0x21]] }
 0x2f8   : > { %12074 = sst [smem:[#allocation50_spill]] %s8302_s24  ;;  %12080 = vst [vmem:[#allocation176_spill] sm:$0xff] %v8315_v61  ;;  %12082 = vst [vmem:[#allocation177_spill] sm:$0xff] %v8320_v62  ;;  %v8340_v34 = vmul.f32 %v12090_v60, %v7630_v16  ;;  %v12093_v62 = vstv %s11958_s11 }
 0x2f9   : > { %12085 = vst [vmem:[#allocation178_spill] sm:$0xff] %v8326_v23  ;;  %12087 = vst [vmem:[#allocation179_spill] sm:$0xff] %v8330_v21  ;;  %v8347_v58 = vmul.f32 %v12093_v62, %v7670_v29  ;;  %v12095_v23 = vmov %v12093_v62  ;;  %v12097_v21 = vstv %s12015_s10  ;;  %s8382_s4 = sld [smem:[#allocation4 + $0x33]] }
 0x2fa   : > { %12083 = sst [smem:[#allocation51_spill]] %s8322_s26  ;;  %12089 = vst [vmem:[#allocation180_spill] sm:$0xff] %v8335_v56  ;;  %12091 = vst [vmem:[#allocation181_spill] sm:$0xff] %v8340_v34  ;;  %v8351_v59 = vmul.f32 %v12095_v23, %v2329_v25  ;;  %v8355_v57 = vmul.f32 %v12097_v21, %v2227_v63  ;;  %v12099_v56 = vstv %s12072_s7  ;;  %v12106_v23 = vstv %s11959_s5 }
 0x2fb   : > { %12092 = sst [smem:[#allocation52_spill]] %s8342_s15  ;;  %12094 = vst [vmem:[#allocation182_spill] sm:$0xff] %v8347_v58  ;;  %v8360_v60 = vmul.f32 %v12099_v56, %v7638_v20  ;;  %v12103_v34 = vmov %v12099_v56  ;;  %v8372_v58 = vmul.f32 %v12106_v23, %v7670_v29  ;;  %v12109_v21 = vmov %v12106_v23 }
 0x2fc   : > { %12096 = vst [vmem:[#allocation183_spill] sm:$0xff] %v8351_v59  ;;  %12098 = vst [vmem:[#allocation184_spill] sm:$0xff] %v8355_v57  ;;  %v8367_v62 = vmul.f32 %v12103_v34, %v7630_v16  ;;  %v8376_v57 = vmul.f32 %v12109_v21, %v2329_v25  ;;  %v12111_v59 = vstv %s11941_s9  ;;  %v12121_v21 = vstv %s11961_s2  ;;  %s8403_s7 = sld [smem:[#allocation4 + $0x45]] }
 0x2fd   : > { %12100 = vst [vmem:[#allocation185_spill] sm:$0xff] %v8360_v60  ;;  %12102 = sst [smem:[#allocation53_spill]] %s8362_s6  ;;  %12108 = vst [vmem:[#allocation187_spill] sm:$0xff] %v8372_v58  ;;  %v8380_v56 = vmul.f32 %v12111_v59, %v2227_v63  ;;  %v12115_v60 = vstv %s11960_s21  ;;  %v8397_v58 = vmul.f32 %v12121_v21, %v7670_v29  ;;  %v12124_v59 = vmov %v12121_v21 }
 0x2fe   : > { %12105 = vst [vmem:[#allocation186_spill] sm:$0xff] %v8367_v62  ;;  %12110 = vst [vmem:[#allocation188_spill] sm:$0xff] %v8376_v57  ;;  %v8387_v34 = vmul.f32 %v12115_v60, %v7638_v20  ;;  %v12118_v62 = vmov %v12115_v60  ;;  %v12128_v57 = vstv %s11943_s20  ;;  %s8427_s26 = sld [smem:[#allocation4 + $0x57]] }
 0x2ff   : > { %12112 = vst [vmem:[#allocation189_spill] sm:$0xff] %v8380_v56  ;;  %12114 = sst [smem:[#allocation54_spill]] %s8382_s4  ;;  %v8392_v23 = vmul.f32 %v12118_v62, %v7630_v16  ;;  %12123 = vst [vmem:[#allocation192_spill] sm:$0xff] %v8397_v58  ;;  %v8401_v56 = vmul.f32 %v12124_v59, %v2329_v25  ;;  %v8407_v60 = vmul.f32 %v12128_v57, %v2227_v63  ;;  %v12137_v59 = vstv %s11964_s30 }
 0x300   : > { %12117 = vst [vmem:[#allocation190_spill] sm:$0xff] %v8387_v34  ;;  %v12131_v34 = vstv %s11963_s23  ;;  %v8422_v58 = vmul.f32 %v12137_v59, %v7670_v29  ;;  %s8437_s27 = sld [smem:[#allocation4 + $0x69]] }
 0x301   : > { %12120 = vst [vmem:[#allocation191_spill] sm:$0xff] %v8392_v23  ;;  %12125 = vst [vmem:[#allocation193_spill] sm:$0xff] %v8401_v56  ;;  %v8412_v62 = vmul.f32 %v12131_v34, %v7638_v20  ;;  %v12134_v23 = vmov %v12131_v34  ;;  %v12144_v20 = vmov %v12137_v59  ;;  %s8443_s30 = sld [smem:[#allocation4 + $0x7b]] }
 0x302   : > { %12127 = sst [smem:[#allocation55_spill]] %s8403_s7  ;;  %12130 = vst [vmem:[#allocation194_spill] sm:$0xff] %v8407_v60  ;;  %v8417_v21 = vmul.f32 %v12134_v23, %v7630_v16  ;;  %12138 = vst [vmem:[#allocation197_spill] sm:$0xff] %v8422_v58  ;;  %v8431_v57 = vmul.f32 %v12144_v20, %v2329_v25 }
 0x303   : > { %12133 = vst [vmem:[#allocation195_spill] sm:$0xff] %v8412_v62  ;;  %s8449_s5 = sld [smem:[#allocation4 + $0x8d]] }
 0x304   : > { %12136 = vst [vmem:[#allocation196_spill] sm:$0xff] %v8417_v21  ;;  %12143 = sst [smem:[#allocation56_spill]] %s8427_s26  ;;  %12145 = vst [vmem:[#allocation198_spill] sm:$0xff] %v8431_v57 }
 0x305   : > { %s8455_s6 = sld [smem:[#allocation4 + $0xb]] }
 0x306   : > { %12150 = sst [smem:[#allocation57_spill]] %s8437_s27 }
 0x307   : > { %12155 = sst [smem:[#allocation58_spill]] %s8443_s30 }
 0x308   : > { %s8461_s15 = sld [smem:[#allocation4 + $0x1d]] }
 0x309   : > { %12160 = sst [smem:[#allocation59_spill]] %s8449_s5 }
 0x30a   : > { %s8467_s14 = sld [smem:[#allocation4 + $0x11]] }
 0x30b   : > { %12165 = sst [smem:[#allocation62_spill]] %s8455_s6 }
 0x30c   : > { %s8473_s26 = sld [smem:[#allocation4 + $0x2f]] }
 0x30d   : > { %s8479_s1 = sld [smem:[#allocation4 + $0x41]] }
 0x30e   : > { %12170 = sst [smem:[#allocation66_spill]] %s8461_s15 }
 0x30f   : > { %s8485_s21 = sld [smem:[#allocation4 + $0x23]] }
 0x310   : > { %12175 = sst [smem:[#allocation68_spill]] %s8467_s14 }
 0x311   : > { %s8491_s7 = sld [smem:[#allocation4 + $0x35]] }
 0x312   : > { %12180 = sst [smem:[#allocation71_spill]] %s8473_s26 }
 0x313   : > { %12185 = sst [smem:[#allocation73_spill]] %s8479_s1 }
 0x314   : > { %s8497_s29 = sld [smem:[#allocation4 + $0x53]] }
 0x315   : > { %12190 = sst [smem:[#allocation74_spill]] %s8485_s21 }
 0x316   : > { %s12197_s11 = sld [smem:[#allocation43_spill]] }
 0x317   : > { %12195 = sst [smem:[#allocation199_spill]] %s8491_s7 }
 0x318   : > { %s8503_s22 = sld [smem:[#allocation4 + $0x47]] }
 0x319   : > { %s12199_s15 = sld [smem:[#allocation44_spill]] }
 0x31a   : > { %12196 = sst [smem:[#allocation200_spill]] %s8497_s29 }
 0x31b   : > { %s12201_s10 = sld [smem:[#allocation46_spill]] }
 0x31c   : > { %s8509_s6 = sld [smem:[#allocation5]] }
 0x31d   : > { %s8515_s23 = sld [smem:[#allocation4 + $0x65]] }
 0x31e   : > { %12198 = sst [smem:[#allocation43_spill]] %s8503_s22 }
 0x31f   : > { %s12222_s17 = sld [smem:[#allocation81_spill]] }
 0x320   : > { %s12223_s13 = sld [smem:[#allocation82_spill]] }
 0x321   : > { %s12224_s14 = sld [smem:[#allocation83_spill]] }
 0x322   : > { %12204 = sst [smem:[#allocation44_spill]] %s8509_s6 }
 0x323   : > { %12210 = sst [smem:[#allocation46_spill]] %s8515_s23 }
 0x324   : > { %s12225_s27 = sld [smem:[#allocation92_spill]] }
 0x325   : > { %s12226_s9 = sld [smem:[#allocation93_spill]]  ;;  %v12233_v29 = vstv %s12222_s17 }
 0x326   : > { %s12227_s24 = sld [smem:[#allocation94_spill]]  ;;  %v12235_v20 = vstv %s12223_s13 }
 0x327   : > { %s12228_s26 = sld [smem:[#allocation95_spill]]  ;;  %v12237_v34 = vstv %s12224_s14 }
 0x328   : > { %s12230_s5 = sld [smem:[#allocation96_spill]] }
 0x329   : > { %s12231_s19 = sld [smem:[#allocation84_spill]] }
 0x32a   : > { %s12232_s25 = sld [smem:[#allocation85_spill]]  ;;  %v12238_v57 = vstv %s12225_s27 }
 0x32b   : > { %s12234_s21 = sld [smem:[#allocation86_spill]]  ;;  %v12239_v56 = vstv %s12226_s9 }
 0x32c   : > { %s12236_s1 = sld [smem:[#allocation87_spill]]  ;;  %v12241_v21 = vstv %s12227_s24 }
 0x32d   : > { %s12240_s28 = sld [smem:[#allocation88_spill]] }
 0x32e   : > { %s12242_s29 = sld [smem:[#allocation89_spill]]  ;;  %v12246_v1 = vstv %s12230_s5 }
 0x32f   : > { %s12244_s22 = sld [smem:[#allocation90_spill]]  ;;  %v12247_v47 = vstv %s12231_s19  ;;  %v12294_v44 = vstv %s12231_s19 }
 0x330   : > { %s12245_s6 = sld [smem:[#allocation91_spill]]  ;;  %v12248_v46 = vstv %s12232_s25  ;;  %v12295_v50 = vstv %s12232_s25 }
 0x331   : > { %v12249_v55 = vstv %s12234_s21  ;;  %s12253_s7 = sld [smem:[#allocation97_spill]] }
 0x332   : > { %v12250_v38 = vstv %s12236_s1  ;;  %s12255_s23 = sld [smem:[#allocation98_spill]] }
 0x333   : > { %s12257_s12 = sld [smem:[#allocation99_spill]]  ;;  %v12298_v51 = vstv %s12240_s28 }
 0x334   : > { %s12259_s16 = sld [smem:[#allocation100_spill]]  ;;  %v12299_v54 = vstv %s12242_s29 }
 0x335   : > { %v12256_v13 = vstv %s12244_s22  ;;  %s12260_s20 = sld [smem:[#allocation101_spill]]  ;;  %v12301_v3 = vstv %s12244_s22 }
 0x336   : > { %s12261_s2 = sld [smem:[#allocation102_spill]]  ;;  %v12303_v9 = vstv %s12245_s6 }
 0x337   : > { %s12262_s30 = sld [smem:[#allocation103_spill]] }
 0x338   : > { %s12263_s4 = sld [smem:[#allocation104_spill]] }
 0x339   : > { %s12306_s19 = sld [smem:[#allocation117_spill]] }
 0x33a   : > { %s12307_s25 = sld [smem:[#allocation118_spill]] }
 0x33b   : > { %s12315_s22 = sld [smem:[#allocation108_spill]] }
 0x37b   : > { %v8545_v58 = vpop.f32.mrf.mxu0  ;;  %v8547_v61 = vpop.f32.mrf.mxu1 }
 0x37c   : > { %12229 = vst [vmem:[#allocation201_spill] sm:$0xff] %v8547_v61  ;;  %v1494_v23 = vrot.slane %v8545_v58, 7  ;;  %v1550_v16 = vmul.f32 %v12233_v29, %v8545_v58  ;;  %v1556_v63 = vmul.f32 %v12235_v20, %v8545_v58  ;;  %v1562_v62 = vmul.f32 %v12237_v34, %v8545_v58 }
 0x37d   : > { %v1568_v59 = vmul.f32 %v12238_v57, %v8545_v58  ;;  %v1574_v25 = vmul.f32 %v12239_v56, %v8545_v58  ;;  %v1580_v60 = vmul.f32 %v12241_v21, %v8545_v58  ;;  %v12243_v29 = vstv %s12228_s26  ;;  %v6393_v20 = vpop.f32.mrf.mxu0  ;;  %v6399_v27 = vpop.f32.mrf.mxu1 }
 0x37e   : > { %v1586_v43 = vmul.f32 %v12243_v29, %v8545_v58  ;;  %v1499_v34 = vsel %vm1493_vm2, 0.0, %v1494_v23  ;;  %v1592_v57 = vmul.f32 %v12246_v1, %v8545_v58  ;;  %v12252_v20 = vstv %s12240_s28  ;;  %s12308_s28 = sld [smem:[#allocation119_spill]] }
 0x37f   : > { %v1502_v45 = vmul.f32 %v12247_v47, %v1499_v34  ;;  %v1508_v21 = vmul.f32 %v12248_v46, %v1499_v34  ;;  %v1514_v6 = vmul.f32 %v12249_v55, %v1499_v34  ;;  %v1520_v29 = vmul.f32 %v12250_v38, %v1499_v34  ;;  %v8589_v14 = vpop.f32.mrf.mxu0  ;;  %v8591_v27 = vpop.f32.mrf.mxu1 }
 0x380   : > { %12251 = vst [vmem:[#allocation202_spill] sm:$0xff] %v8591_v27  ;;  %v1526_v35 = vmul.f32 %v12252_v20, %v1499_v34  ;;  %v12254_v1 = vstv %s12242_s29  ;;  %v1538_v56 = vmul.f32 %v12256_v13, %v1499_v34  ;;  %v12258_v47 = vstv %s12245_s6  ;;  %s12309_s29 = sld [smem:[#allocation105_spill]] }
 0x381   : > { %v1532_v41 = vmul.f32 %v12254_v1, %v1499_v34  ;;  %v1544_v15 = vmul.f32 %v12258_v47, %v1499_v34  ;;  %v8601_v46 = vadd.f32 %v1550_v16, %v1502_v45  ;;  %v8603_v55 = vadd.f32 %v1556_v63, %v1508_v21  ;;  %v6394_v20 = vpop.f32.mrf.mxu0  ;;  %v6400_v1 = vpop.f32.mrf.mxu1  ;;  %s12311_s6 = sld [smem:[#allocation107_spill]] }
 0x382   : > { %v8605_v38 = vadd.f32 %v1562_v62, %v1514_v6  ;;  %v8607_v39 = vadd.f32 %v1568_v59, %v1520_v29  ;;  %v8609_v19 = vadd.f32 %v1574_v25, %v1526_v35  ;;  %v8613_v45 = vadd.f32 %v1586_v43, %v1538_v56 }
 0x383   : > { %v8611_v13 = vadd.f32 %v1580_v60, %v1532_v41  ;;  %v8615_v16 = vadd.f32 %v1592_v57, %v1544_v15  ;;  %v12264_v63 = vrot.slane %v8547_v61, 7  ;;  %v12266_v62 = vstv %s12253_s7  ;;  %v8637_v60 = vpop.f32.mrf.mxu0  ;;  %v8639_v25 = vpop.f32.mrf.mxu1 }
 0x384   : > { %v8625_v59 = vmul.f32 %v12266_v62, %v8547_v61  ;;  %v12268_v35 = vstv %s12255_s23  ;;  %v12270_v43 = vstv %s12257_s12  ;;  %12272 = vst [vmem:[#allocation207_spill] sm:$0xff] %v8637_v60  ;;  %12273 = vst [vmem:[#allocation208_spill] sm:$0xff] %v8639_v25  ;;  %v12274_v34 = vstv %s12259_s16 }
 0x385   : > { %v8620_v6 = vsel %vm1493_vm2, 0.0, %v12264_v63  ;;  %v8630_v41 = vmul.f32 %v12268_v35, %v8547_v61  ;;  %v8635_v15 = vmul.f32 %v12270_v43, %v8547_v61  ;;  %v8644_v57 = vmul.f32 %v12274_v34, %v8547_v61  ;;  %v6411_v25 = vpop.f32.mrf.mxu1 }
 0x386   : > { %12265 = vst [vmem:[#allocation203_spill] sm:$0xff] %v8620_v6  ;;  %12267 = vst [vmem:[#allocation204_spill] sm:$0xff] %v8625_v59  ;;  %v12276_v56 = vstv %s12260_s20  ;;  %v12278_v29 = vstv %s12261_s2  ;;  %v12280_v20 = vstv %s12262_s30  ;;  %v12282_v63 = vstv %s12263_s4 }
 0x387   : > { %12269 = vst [vmem:[#allocation205_spill] sm:$0xff] %v8630_v41  ;;  %12271 = vst [vmem:[#allocation206_spill] sm:$0xff] %v8635_v15  ;;  %v8649_v21 = vmul.f32 %v12276_v56, %v8547_v61  ;;  %v8654_v47 = vmul.f32 %v12278_v29, %v8547_v61  ;;  %v8659_v1 = vmul.f32 %v12280_v20, %v8547_v61  ;;  %v1495_v43 = vrot.slane %v8589_v14, 7  ;;  %v6405_v29 = vpop.f32.mrf.mxu0 }
 0x388   : > { %12275 = vst [vmem:[#allocation209_spill] sm:$0xff] %v8644_v57  ;;  %v8664_v62 = vmul.f32 %v12282_v63, %v8547_v61  ;;  %v12284_v34 = vstv %s12222_s17  ;;  %v12285_v20 = vstv %s12223_s13  ;;  %v12286_v63 = vstv %s12224_s14  ;;  %s12302_s14 = sld [smem:[#allocation114_spill]] }
 0x389   : > { %12277 = vst [vmem:[#allocation210_spill] sm:$0xff] %v8649_v21  ;;  %12279 = vst [vmem:[#allocation211_spill] sm:$0xff] %v8654_v47  ;;  %v1551_v56 = vmul.f32 %v12284_v34, %v8589_v14  ;;  %v1557_v60 = vmul.f32 %v12285_v20, %v8589_v14  ;;  %v12287_v35 = vstv %s12225_s27  ;;  %v12288_v47 = vstv %s12226_s9  ;;  %v8693_v59 = vpop.f32.mrf.mxu0  ;;  %s12300_s27 = sld [smem:[#allocation113_spill]] }
 0x38a   : > { %12281 = vst [vmem:[#allocation212_spill] sm:$0xff] %v8659_v1  ;;  %12283 = vst [vmem:[#allocation213_spill] sm:$0xff] %v8664_v62  ;;  %v1563_v62 = vmul.f32 %v12286_v63, %v8589_v14  ;;  %v1569_v1 = vmul.f32 %v12287_v35, %v8589_v14  ;;  %v1575_v21 = vmul.f32 %v12288_v47, %v8589_v14  ;;  %v12289_v29 = vstv %s12227_s24  ;;  %v8695_v63 = vpop.f32.mrf.mxu1  ;;  %s12304_s24 = sld [smem:[#allocation115_spill]] }
 0x38b   : > { %v1496_v34 = vsel %vm1493_vm2, %v1494_v23, %v1495_v43  ;;  %v1581_v25 = vmul.f32 %v12289_v29, %v8589_v14  ;;  %v12290_v57 = vstv %s12228_s26  ;;  %v12291_v20 = vstv %s12230_s5  ;;  %12292 = vst [vmem:[#allocation214_spill] sm:$0xff] %v8693_v59  ;;  %12293 = vst [vmem:[#allocation215_spill] sm:$0xff] %v8695_v63  ;;  %s12305_s26 = sld [smem:[#allocation116_spill]]  ;;  %v6406_v63 = vpop.f32.mrf.mxu0 }
 0x38c   : > { %v1587_v15 = vmul.f32 %v12290_v57, %v8589_v14  ;;  %v1593_v41 = vmul.f32 %v12291_v20, %v8589_v14  ;;  %v1503_v35 = vmul.f32 %v12294_v44, %v1496_v34  ;;  %v1509_v53 = vmul.f32 %v12295_v50, %v1496_v34  ;;  %v6412_v44 = vpop.f32.mrf.mxu1  ;;  %s12310_s13 = sld [smem:[#allocation106_spill]] }
 0x38d   : > { %v12296_v47 = vstv %s12234_s21  ;;  %v12297_v23 = vstv %s12236_s1  ;;  %v1527_v29 = vmul.f32 %v12298_v51, %v1496_v34  ;;  %v1533_v57 = vmul.f32 %v12299_v54, %v1496_v34  ;;  %s12332_s17 = sld [smem:[#allocation109_spill]] }
 0x38e   : > { %v1515_v52 = vmul.f32 %v12296_v47, %v1496_v34  ;;  %v1521_v43 = vmul.f32 %v12297_v23, %v1496_v34  ;;  %v1539_v20 = vmul.f32 %v12301_v3, %v1496_v34  ;;  %v1545_v59 = vmul.f32 %v12303_v9, %v1496_v34  ;;  %s12335_s1 = sld [smem:[#allocation110_spill]] }
 0x38f   : > { %v1553_v50 = vadd.f32 %v1551_v56, %v1503_v35  ;;  %v1559_v47 = vadd.f32 %v1557_v60, %v1509_v53  ;;  %v1577_v51 = vadd.f32 %v1575_v21, %v1527_v29  ;;  %v1583_v40 = vadd.f32 %v1581_v25, %v1533_v57  ;;  %s12338_s5 = sld [smem:[#allocation111_spill]] }
 0x390   : > { %v1565_v42 = vadd.f32 %v1563_v62, %v1515_v52  ;;  %v1571_v23 = vadd.f32 %v1569_v1, %v1521_v43  ;;  %v1589_v54 = vadd.f32 %v1587_v15, %v1539_v20  ;;  %v1595_v3 = vadd.f32 %v1593_v41, %v1545_v59  ;;  %s12341_s9 = sld [smem:[#allocation112_spill]] }
 0x391   : > { %v1598_v9 = vrot.slane %v8589_v14, 1  ;;  %v1862_v34 = vrot.slane %v8591_v27, 7  ;;  %v12312_v63 = vstv %s12300_s27  ;;  %v12314_v52 = vstv %s12302_s14  ;;  %s12354_s21 = sld [smem:[#allocation120_spill]] }
 0x392   : > { %v8718_v53 = vmul.f32 %v12312_v63, %v8620_v6  ;;  %v8723_v60 = vmul.f32 %v12314_v52, %v8620_v6  ;;  %v12317_v15 = vstv %s12304_s24  ;;  %v12319_v14 = vstv %s12305_s26 }
 0x393   : > { %v8728_v59 = vmul.f32 %v12317_v15, %v8620_v6  ;;  %v8733_v41 = vmul.f32 %v12319_v14, %v8620_v6  ;;  %v12321_v21 = vstv %s12306_s19  ;;  %v12323_v62 = vstv %s12307_s25 }
 0x394   : > { %12313 = vst [vmem:[#allocation216_spill] sm:$0xff] %v8718_v53  ;;  %12316 = vst [vmem:[#allocation217_spill] sm:$0xff] %v8723_v60  ;;  %v8738_v1 = vmul.f32 %v12321_v21, %v8620_v6  ;;  %v8743_v56 = vmul.f32 %v12323_v62, %v8620_v6  ;;  %v12325_v25 = vrot.slane %v8545_v58, 1  ;;  %v1602_v43 = vsel %vm1596_vm3, %v1598_v9, 0.0 }
 0x395   : > { %12318 = vst [vmem:[#allocation218_spill] sm:$0xff] %v8728_v59  ;;  %12320 = vst [vmem:[#allocation219_spill] sm:$0xff] %v8733_v41  ;;  %v12326_v29 = vrot.slane %v8547_v61, 7  ;;  %v12328_v20 = vstv %s12308_s28  ;;  %v12330_v63 = vstv %s12309_s29  ;;  %v12333_v21 = vstv %s12310_s13  ;;  %s12448_s29 = sld [smem:[#allocation77_spill]] }
 0x396   : > { %12322 = vst [vmem:[#allocation220_spill] sm:$0xff] %v8738_v1  ;;  %12324 = vst [vmem:[#allocation221_spill] sm:$0xff] %v8743_v56  ;;  %v1599_v35 = vsel %vm1596_vm3, %v12325_v25, %v1598_v9  ;;  %v8757_v44 = vmul.f32 %v12328_v20, %v8620_v6  ;;  %v12331_v15 = vmov %v12330_v63  ;;  %v12334_v62 = vmov %v12333_v21  ;;  %s12449_s13 = sld [smem:[#allocation76_spill]] }
 0x397   : > { %v8752_v57 = vsel %vm1493_vm2, %v12326_v29, %v1862_v34  ;;  %v1605_v52 = vmul.f32 %v12330_v63, %v1599_v35  ;;  %v1606_v14 = vmul.f32 %v12331_v15, %v1602_v43  ;;  %v1611_v58 = vmul.f32 %v12333_v21, %v1599_v35 }
 0x398   : > { %12327 = vst [vmem:[#allocation222_spill] sm:$0xff] %v8752_v57  ;;  %12329 = vst [vmem:[#allocation223_spill] sm:$0xff] %v8757_v44  ;;  %v1612_v9 = vmul.f32 %v12334_v62, %v1602_v43  ;;  %v12336_v25 = vstv %s12311_s6  ;;  %v12339_v1 = vstv %s12315_s22  ;;  %v12344_v6 = vstv %s12335_s1  ;;  %s8990_s6 = sld [smem:[#allocation5 + $0x1]] }
 0x399   : > { %v1617_v56 = vmul.f32 %v12336_v25, %v1599_v35  ;;  %v12337_v34 = vmov %v12336_v25  ;;  %v1623_v20 = vmul.f32 %v12339_v1, %v1599_v35  ;;  %v12340_v44 = vmov %v12339_v1  ;;  %s12450_s22 = sld [smem:[#allocation78_spill]] }
 0x39a   : > { %v1618_v29 = vmul.f32 %v12337_v34, %v1602_v43  ;;  %v1624_v63 = vmul.f32 %v12340_v44, %v1602_v43  ;;  %v1607_v15 = vadd.f32 %v1605_v52, %v8601_v46  ;;  %v1608_v41 = vadd.f32 %v1606_v14, %v1553_v50  ;;  %s12454_s1 = sld [smem:[#allocation80_spill]] }
 0x39b   : > { %v1613_v21 = vadd.f32 %v1611_v58, %v8603_v55  ;;  %v1614_v59 = vadd.f32 %v1612_v9, %v1559_v47  ;;  %v1619_v62 = vadd.f32 %v1617_v56, %v8605_v38  ;;  %v1625_v25 = vadd.f32 %v1623_v20, %v8607_v39 }
 0x39c   : > { %v1620_v60 = vadd.f32 %v1618_v29, %v1565_v42  ;;  %v1626_v53 = vadd.f32 %v1624_v63, %v1571_v23  ;;  %v12342_v34 = vstv %s12332_s17  ;;  %v1635_v57 = vmul.f32 %v12344_v6, %v1599_v35  ;;  %v12361_v63 = vld [vmem:[#allocation150_spill] sm:$0xff]  ;;  %s12452_s17 = sld [smem:[#allocation79_spill]] }
 0x39d   : > { %v1629_v61 = vmul.f32 %v12342_v34, %v1599_v35  ;;  %v12343_v27 = vmov %v12342_v34  ;;  %v12345_v44 = vmov %v12344_v6  ;;  %v12346_v37 = vstv %s12338_s5  ;;  %s9005_s5 = sld [smem:[#allocation5 + $0x2]] }
 0x39e   : > { %v1630_v1 = vmul.f32 %v12343_v27, %v1602_v43  ;;  %v1636_v30 = vmul.f32 %v12345_v44, %v1602_v43  ;;  %v1641_v46 = vmul.f32 %v12346_v37, %v1599_v35  ;;  %v12347_v50 = vmov %v12346_v37 }
 0x39f   : > { %v1642_v52 = vmul.f32 %v12347_v50, %v1602_v43  ;;  %v12348_v55 = vstv %s12341_s9  ;;  %v1631_v42 = vadd.f32 %v1629_v61, %v8609_v19  ;;  %v1637_v23 = vadd.f32 %v1635_v57, %v8611_v13  ;;  %v12360_v57 = vld [vmem:[#allocation148_spill] sm:$0xff]  ;;  %s12468_s9 = sld [smem:[#allocation45_spill]] }
 0x3a0   : > { %v1647_v47 = vmul.f32 %v12348_v55, %v1599_v35  ;;  %v12349_v14 = vmov %v12348_v55  ;;  %v1632_v39 = vadd.f32 %v1630_v1, %v1577_v51  ;;  %v1638_v56 = vadd.f32 %v1636_v30, %v1583_v40  ;;  %v12353_v51 = vld [vmem:[#allocation136_spill] sm:$0xff] }
 0x3a1   : > { %v1648_v38 = vmul.f32 %v12349_v14, %v1602_v43  ;;  %v1643_v27 = vadd.f32 %v1641_v46, %v8613_v45  ;;  %v1644_v58 = vadd.f32 %v1642_v52, %v1589_v54  ;;  %v8800_v37 = vadd.f32 %v7935_v26, %v1607_v15  ;;  %v12355_v54 = vld [vmem:[#allocation138_spill] sm:$0xff] }
 0x3a2   : > { %v1649_v6 = vadd.f32 %v1647_v47, %v8615_v16  ;;  %v1664_v29 = vadd.f32 %v7994_v2, %v1608_v41  ;;  %v8804_v35 = vadd.f32 %v7956_v24, %v1613_v21  ;;  %v1670_v19 = vadd.f32 %v7999_v28, %v1614_v59  ;;  %v12358_v59 = vld [vmem:[#allocation144_spill] sm:$0xff]  ;;  %v12359_v41 = vld [vmem:[#allocation146_spill] sm:$0xff] }
 0x3a3   : > { %v1650_v9 = vadd.f32 %v1648_v38, %v1595_v3  ;;  %v8808_v61 = vadd.f32 %v7960_v22, %v1619_v62  ;;  %v1676_v30 = vadd.f32 %v8004_v7, %v1620_v60  ;;  %v8812_v40 = vadd.f32 %v7964_v12, %v1625_v25  ;;  %v12356_v3 = vld [vmem:[#allocation140_spill] sm:$0xff] }
 0x3a4   : > { %v1682_v13 = vadd.f32 %v8016_v49, %v1626_v53  ;;  %v1687_v26 = vadd.f32 %v7968_v4, %v1631_v42  ;;  %v1688_v45 = vadd.f32 %v8021_v31, %v1632_v39  ;;  %v1693_v2 = vadd.f32 %v7974_v0, %v1637_v23  ;;  %v12350_v31 = vld [vmem:[#allocation130_spill] sm:$0xff]  ;;  %v12362_v21 = vld [vmem:[#allocation222_spill] sm:$0xff]  ;;  %v12370_v23 = vld [vmem:[#allocation203_spill] sm:$0xff] }
 0x3a5   : > { %v1694_v24 = vadd.f32 %v8026_v8, %v1638_v56  ;;  %v1699_v28 = vadd.f32 %v7978_v11, %v1643_v27  ;;  %v1700_v22 = vadd.f32 %v8031_v36, %v1644_v58  ;;  %v1705_v16 = vadd.f32 %v7982_v10, %v1649_v6  ;;  %v12351_v10 = vld [vmem:[#allocation132_spill] sm:$0xff] }
 0x3a6   : > { %v1706_v7 = vadd.f32 %v8038_v17, %v1650_v9  ;;  %v1712_v12 = vadd.f32 %v7987_v5, %v1664_v29  ;;  %v1718_v49 = vadd.f32 %v8009_v32, %v1670_v19  ;;  %v1724_v4 = vadd.f32 %v8043_v18, %v1676_v30  ;;  %v12352_v17 = vld [vmem:[#allocation134_spill] sm:$0xff] }
 0x3a7   : > { %v1730_v0 = vadd.f32 %v8048_v33, %v1682_v13  ;;  %v1736_v11 = vadd.f32 %v8058_v48, %v1688_v45  ;;  %v1742_v8 = vadd.f32 %v12350_v31, %v1694_v24  ;;  %v1748_v36 = vadd.f32 %v12351_v10, %v1700_v22  ;;  %v12357_v33 = vld [vmem:[#allocation142_spill] sm:$0xff]  ;;  %v12373_v22 = vld [vmem:[#allocation202_spill] sm:$0xff] }
 0x3a8   : > { %v1754_v5 = vadd.f32 %v12352_v17, %v1706_v7  ;;  %v1766_v32 = vadd.f32 %v12353_v51, %v1712_v12  ;;  %v1772_v18 = vadd.f32 %v12355_v54, %v1718_v49  ;;  %v1778_v53 = vadd.f32 %v12356_v3, %v1724_v4 }
 0x3a9   : > { %v1784_v60 = vadd.f32 %v12357_v33, %v1730_v0  ;;  %v1790_v48 = vadd.f32 %v12358_v59, %v1736_v11  ;;  %v1796_v43 = vadd.f32 %v12359_v41, %v1742_v8  ;;  %v1802_v20 = vadd.f32 %v12360_v57, %v1748_v36 }
 0x3aa   : > { %v1808_v15 = vadd.f32 %v12361_v63, %v1754_v5  ;;  %v12363_v62 = vstv %s12300_s27  ;;  %v12364_v34 = vstv %s12302_s14  ;;  %v12365_v44 = vstv %s12304_s24  ;;  %s12392_s27 = sld [smem:[#allocation65_spill]] }
 0x3ab   : > { %v1870_v25 = vmul.f32 %v12363_v62, %v12362_v21  ;;  %v1876_v1 = vmul.f32 %v12364_v34, %v12362_v21  ;;  %v1882_v46 = vmul.f32 %v12365_v44, %v12362_v21  ;;  %v12366_v50 = vstv %s12305_s26  ;;  %v12390_v62 = vld [vmem:[#allocation126_spill] sm:$0xff]  ;;  %s12434_s14 = sld [smem:[#allocation67_spill]] }
 0x3ac   : > { %v1888_v52 = vmul.f32 %v12366_v50, %v12362_v21  ;;  %v12367_v55 = vstv %s12306_s19  ;;  %v12368_v14 = vstv %s12307_s25  ;;  %v12369_v42 = vstv %s12308_s28  ;;  %s12436_s24 = sld [smem:[#allocation69_spill]] }
 0x3ad   : > { %v1894_v47 = vmul.f32 %v12367_v55, %v12362_v21  ;;  %v1900_v38 = vmul.f32 %v12368_v14, %v12362_v21  ;;  %v1906_v39 = vmul.f32 %v12369_v42, %v12362_v21  ;;  %v12371_v56 = vstv %s12354_s21  ;;  %s12440_s26 = sld [smem:[#allocation42_spill]] }
 0x3ae   : > { %v8863_v27 = vmul.f32 %v12371_v56, %v12370_v23  ;;  %v1872_v58 = vadd.f32 %v1870_v25, %v1766_v32  ;;  %v1878_v6 = vadd.f32 %v1876_v1, %v1772_v18  ;;  %v1884_v9 = vadd.f32 %v1882_v46, %v1778_v53  ;;  %v12393_v1 = vld [vmem:[#allocation127_spill] sm:$0xff]  ;;  %v12394_v46 = vld [vmem:[#allocation128_spill] sm:$0xff]  ;;  %s12442_s19 = sld [smem:[#allocation70_spill]] }
 0x3af   : > { %v1890_v29 = vadd.f32 %v1888_v52, %v1784_v60  ;;  %v1896_v19 = vadd.f32 %v1894_v47, %v1790_v48  ;;  %v1902_v30 = vadd.f32 %v1900_v38, %v1796_v43  ;;  %v1908_v13 = vadd.f32 %v1906_v39, %v1802_v20  ;;  %v12386_v20 = vld [vmem:[#allocation124_spill] sm:$0xff]  ;;  %v12395_v52 = vld [vmem:[#allocation129_spill] sm:$0xff]  ;;  %v12396_v47 = vld [vmem:[#allocation201_spill] sm:$0xff]  ;;  %s12444_s25 = sld [smem:[#allocation72_spill]] }
 0x3b0   : > { %v12372_v45 = vmov %v12371_v56  ;;  %v12374_v7 = vstv %s12253_s7  ;;  %v12375_v49 = vstv %s12255_s23  ;;  %v12376_v0 = vstv %s12257_s12  ;;  %s12381_s12 = sld [smem:[#allocation121_spill]]  ;;  %v12399_v39 = vld [vmem:[#allocation133_spill] sm:$0xff] }
 0x3b1   : > { %v1912_v24 = vmul.f32 %v12372_v45, %v12362_v21  ;;  %v1918_v12 = vmul.f32 %v12374_v7, %v12373_v22  ;;  %v1924_v4 = vmul.f32 %v12375_v49, %v12373_v22  ;;  %v1930_v11 = vmul.f32 %v12376_v0, %v12373_v22  ;;  %s12382_s7 = sld [smem:[#allocation122_spill]] }
 0x3b2   : > { %v12377_v31 = vstv %s12259_s16  ;;  %v12378_v36 = vstv %s12260_s20  ;;  %v12379_v5 = vstv %s12261_s2  ;;  %v12380_v32 = vstv %s12262_s30  ;;  %s12384_s16 = sld [smem:[#allocation123_spill]] }
 0x3b3   : > { %v1936_v8 = vmul.f32 %v12377_v31, %v12373_v22  ;;  %v1914_v10 = vadd.f32 %v1912_v24, %v1808_v15  ;;  %v1942_v17 = vmul.f32 %v12378_v36, %v12373_v22  ;;  %v1948_v51 = vmul.f32 %v12379_v5, %v12373_v22  ;;  %s12385_s20 = sld [smem:[#allocation60_spill]]  ;;  %v12388_v15 = vld [vmem:[#allocation125_spill] sm:$0xff]  ;;  %v12410_v5 = vld [vmem:[#allocation139_spill] sm:$0xff] }
 0x3b4   : > { %v1954_v54 = vmul.f32 %v12380_v32, %v12373_v22  ;;  %v1920_v18 = vadd.f32 %v1918_v12, %v1872_v58  ;;  %v1926_v3 = vadd.f32 %v1924_v4, %v1878_v6  ;;  %v1932_v53 = vadd.f32 %v1930_v11, %v1884_v9  ;;  %s12387_s2 = sld [smem:[#allocation61_spill]]  ;;  %v12409_v36 = vld [vmem:[#allocation137_spill] sm:$0xff] }
 0x3b5   : > { %v1938_v33 = vadd.f32 %v1936_v8, %v1890_v29  ;;  %v1944_v60 = vadd.f32 %v1942_v17, %v1896_v19  ;;  %v1950_v59 = vadd.f32 %v1948_v51, %v1902_v30  ;;  %v12383_v41 = vstv %s12263_s4  ;;  %s12389_s23 = sld [smem:[#allocation63_spill]]  ;;  %v12408_v8 = vld [vmem:[#allocation135_spill] sm:$0xff]  ;;  %v12411_v32 = vld [vmem:[#allocation141_spill] sm:$0xff] }
 0x3b6   : > { %v1956_v48 = vadd.f32 %v1954_v54, %v1908_v13  ;;  %v1960_v43 = vmul.f32 %v12383_v41, %v12373_v22  ;;  %v1964_v57 = vrot.slane %v12373_v22, 1  ;;  %v1711_v63 = vadd.f32 %v12386_v20, %v8800_v37  ;;  %s12391_s30 = sld [smem:[#allocation64_spill]]  ;;  %v12417_v20 = vld [vmem:[#allocation217_spill] sm:$0xff] }
 0x3b7   : > { %v1717_v21 = vadd.f32 %v12388_v15, %v8804_v35  ;;  %v1723_v25 = vadd.f32 %v12390_v62, %v8808_v61  ;;  %v1729_v44 = vadd.f32 %v12393_v1, %v8812_v40  ;;  %v1735_v50 = vadd.f32 %v12394_v46, %v1687_v26  ;;  %v12398_v35 = vld [vmem:[#allocation131_spill] sm:$0xff]  ;;  %v12418_v62 = vld [vmem:[#allocation218_spill] sm:$0xff]  ;;  %s8953_s4 = sld [smem:[#allocation4 + $0x59]] }
 0x3b8   : > { %v1962_v34 = vadd.f32 %v1960_v43, %v1914_v10  ;;  %v1741_v55 = vadd.f32 %v12395_v52, %v1693_v2  ;;  %v12397_v14 = vrot.slane %v12396_v47, 1  ;;  %v1968_v38 = vsel %vm1596_vm3, %v1964_v57, 0.0  ;;  %v12423_v47 = vld [vmem:[#allocation204_spill] sm:$0xff]  ;;  %s12446_s28 = sld [smem:[#allocation75_spill]] }
 0x3b9   : > { %v1747_v42 = vadd.f32 %v12398_v35, %v1699_v28  ;;  %v1753_v23 = vadd.f32 %v12399_v39, %v1705_v16  ;;  %v12400_v61 = vstv %s12381_s12  ;;  %v12401_v58 = vstv %s12382_s7  ;;  %s12469_s21 = sld [smem:[#allocation47_spill]] }
 0x3ba   : > { %v1965_v37 = vsel %vm1596_vm3, %v12397_v14, %v1964_v57  ;;  %v1972_v56 = vmul.f32 %v12400_v61, %v1968_v38  ;;  %v1978_v6 = vmul.f32 %v12401_v58, %v1968_v38  ;;  %v12402_v9 = vstv %s12384_s16 }
 0x3bb   : > { %v1984_v40 = vmul.f32 %v12402_v9, %v1968_v38  ;;  %v12403_v29 = vstv %s12385_s20  ;;  %v12404_v19 = vstv %s12387_s2  ;;  %v12405_v30 = vstv %s12389_s23 }
 0x3bc   : > { %v1990_v26 = vmul.f32 %v12403_v29, %v1968_v38  ;;  %v1996_v2 = vmul.f32 %v12404_v19, %v1968_v38  ;;  %v2002_v13 = vmul.f32 %v12405_v30, %v1968_v38  ;;  %v12406_v45 = vstv %s12391_s30 }
 0x3bd   : > { %v2008_v24 = vmul.f32 %v12406_v45, %v1968_v38  ;;  %v12407_v22 = vstv %s12392_s27  ;;  %v8925_v12 = vadd.f32 %v1972_v56, %v1920_v18  ;;  %v8927_v28 = vadd.f32 %v1978_v6, %v1926_v3  ;;  %v12412_v18 = vld [vmem:[#allocation143_spill] sm:$0xff]  ;;  %v12427_v56 = vld [vmem:[#allocation210_spill] sm:$0xff]  ;;  %v12428_v6 = vld [vmem:[#allocation211_spill] sm:$0xff] }
 0x3be   : > { %v2014_v7 = vmul.f32 %v12407_v22, %v1968_v38  ;;  %v8929_v16 = vadd.f32 %v1984_v40, %v1932_v53  ;;  %v8931_v49 = vadd.f32 %v1990_v26, %v1938_v33  ;;  %v8933_v4 = vadd.f32 %v1996_v2, %v1944_v60  ;;  %v12413_v53 = vld [vmem:[#allocation145_spill] sm:$0xff]  ;;  %v12414_v60 = vld [vmem:[#allocation147_spill] sm:$0xff]  ;;  %v12429_v40 = vld [vmem:[#allocation212_spill] sm:$0xff] }
 0x3bf   : > { %v8935_v0 = vadd.f32 %v2002_v13, %v1950_v59  ;;  %v8937_v11 = vadd.f32 %v2008_v24, %v1956_v48  ;;  %v1765_v10 = vadd.f32 %v12408_v8, %v1711_v63  ;;  %v1771_v17 = vadd.f32 %v12409_v36, %v1717_v21  ;;  %v12415_v59 = vld [vmem:[#allocation149_spill] sm:$0xff]  ;;  %v12416_v48 = vld [vmem:[#allocation216_spill] sm:$0xff]  ;;  %v12424_v38 = vld [vmem:[#allocation205_spill] sm:$0xff] }
 0x3c0   : > { %v8939_v31 = vadd.f32 %v2014_v7, %v1962_v34  ;;  %v1777_v51 = vadd.f32 %v12410_v5, %v1723_v25  ;;  %v1783_v54 = vadd.f32 %v12411_v32, %v1729_v44  ;;  %v1789_v3 = vadd.f32 %v12412_v18, %v1735_v50  ;;  %v12419_v21 = vld [vmem:[#allocation219_spill] sm:$0xff]  ;;  %v12420_v34 = vld [vmem:[#allocation220_spill] sm:$0xff]  ;;  %v12421_v44 = vld [vmem:[#allocation221_spill] sm:$0xff] }
 0x3c1   : > { %v1795_v33 = vadd.f32 %v12413_v53, %v1741_v55  ;;  %v1801_v41 = vadd.f32 %v12414_v60, %v1747_v42  ;;  %v1807_v43 = vadd.f32 %v12415_v59, %v1753_v23  ;;  %v1871_v57 = vadd.f32 %v12416_v48, %v1765_v10  ;;  %v12422_v50 = vld [vmem:[#allocation223_spill] sm:$0xff]  ;;  %v12425_v42 = vld [vmem:[#allocation206_spill] sm:$0xff]  ;;  %v12426_v23 = vld [vmem:[#allocation209_spill] sm:$0xff] }
 0x3c2   : > { %v1877_v15 = vadd.f32 %v12417_v20, %v1771_v17  ;;  %v1883_v63 = vadd.f32 %v12418_v62, %v1777_v51  ;;  %v1889_v25 = vadd.f32 %v12419_v21, %v1783_v54  ;;  %v1895_v1 = vadd.f32 %v12420_v34, %v1789_v3  ;;  %v12430_v26 = vld [vmem:[#allocation213_spill] sm:$0xff]  ;;  %v12443_v48 = vld [vmem:[#allocation207_spill] sm:$0xff] }
 0x3c3   : > { %v1901_v46 = vadd.f32 %v12421_v44, %v1795_v33  ;;  %v1907_v52 = vadd.f32 %v12422_v50, %v1801_v41  ;;  %v1913_v55 = vadd.f32 %v8863_v27, %v1807_v43  ;;  %v1919_v14 = vadd.f32 %v12423_v47, %v1871_v57 }
 0x3c4   : > { %v1925_v35 = vadd.f32 %v12424_v38, %v1877_v15  ;;  %v1931_v39 = vadd.f32 %v12425_v42, %v1883_v63  ;;  %v1937_v61 = vadd.f32 %v12426_v23, %v1889_v25  ;;  %v1943_v58 = vadd.f32 %v12427_v56, %v1895_v1  ;;  %v12459_v42 = vld [vmem:[#allocation208_spill] sm:$0xff]  ;;  %v12532_v63 = vld [vmem:[#allocation155_spill] sm:$0xff] }
 0x3c5   : > { %v1949_v9 = vadd.f32 %v12428_v6, %v1901_v46  ;;  %v1955_v29 = vadd.f32 %v12429_v40, %v1907_v52  ;;  %v1961_v19 = vadd.f32 %v12430_v26, %v1913_v55  ;;  %v12431_v2 = vstv %s12381_s12  ;;  %s12470_s12 = sld [smem:[#allocation48_spill]] }
 0x3c6   : > { %v1971_v30 = vmul.f32 %v12431_v2, %v1965_v37  ;;  %v12432_v27 = vstv %s12382_s7  ;;  %v12433_v45 = vstv %s12384_s16  ;;  %v12435_v22 = vstv %s12385_s20  ;;  %s12471_s7 = sld [smem:[#allocation49_spill]] }
 0x3c7   : > { %v1977_v13 = vmul.f32 %v12432_v27, %v1965_v37  ;;  %v1983_v24 = vmul.f32 %v12433_v45, %v1965_v37  ;;  %v1989_v7 = vmul.f32 %v12435_v22, %v1965_v37  ;;  %v12437_v8 = vstv %s12387_s2  ;;  %s12472_s16 = sld [smem:[#allocation50_spill]] }
 0x3c8   : > { %v1995_v10 = vmul.f32 %v12437_v8, %v1965_v37  ;;  %v12438_v36 = vstv %s12389_s23  ;;  %v12439_v5 = vstv %s12391_s30  ;;  %v12441_v32 = vstv %s12392_s27  ;;  %s12517_s20 = sld [smem:[#allocation59_spill]] }
 0x3c9   : > { %v2001_v17 = vmul.f32 %v12438_v36, %v1965_v37  ;;  %v2007_v51 = vmul.f32 %v12439_v5, %v1965_v37  ;;  %v2013_v54 = vmul.f32 %v12441_v32, %v1965_v37  ;;  %v1973_v18 = vadd.f32 %v1971_v30, %v1919_v14  ;;  %s12529_s2 = sld [smem:[#allocation62_spill]] }
 0x3ca   : > { %v1979_v3 = vadd.f32 %v1977_v13, %v1925_v35  ;;  %v1985_v53 = vadd.f32 %v1983_v24, %v1931_v39  ;;  %v1991_v33 = vadd.f32 %v1989_v7, %v1937_v61  ;;  %v1997_v60 = vadd.f32 %v1995_v10, %v1943_v58  ;;  %s12534_s23 = sld [smem:[#allocation68_spill]] }
 0x3cb   : > { %v2003_v41 = vadd.f32 %v2001_v17, %v1949_v9  ;;  %v2009_v59 = vadd.f32 %v2007_v51, %v1955_v29  ;;  %v2015_v43 = vadd.f32 %v2013_v54, %v1961_v19  ;;  %v2064_v57 = vrot.slane %v12443_v48, 7  ;;  %s12537_s30 = sld [smem:[#allocation66_spill]] }
 0x3cc   : > { %v12445_v20 = vstv %s12434_s14  ;;  %v12447_v15 = vstv %s12436_s24  ;;  %v12451_v21 = vstv %s12440_s26  ;;  %v12453_v34 = vstv %s8097_s0  ;;  %s12541_s27 = sld [smem:[#allocation74_spill]] }
 0x3cd   : > { %v2120_v37 = vmul.f32 %v12445_v20, %v12443_v48  ;;  %v2126_v62 = vmul.f32 %v12447_v15, %v12443_v48  ;;  %v2132_v25 = vmul.f32 %v12451_v21, %v12443_v48  ;;  %v2138_v1 = vmul.f32 %v12453_v34, %v12443_v48  ;;  %s12548_s14 = sld [smem:[#allocation71_spill]] }
 0x3ce   : > { %v12455_v44 = vstv %s8117_s3  ;;  %v12456_v50 = vstv %s8137_s8  ;;  %v2069_v55 = vsel %vm1493_vm2, 0.0, %v2064_v57  ;;  %v12457_v47 = vstv %s8157_s18 }
 0x3cf   : > { %v2144_v46 = vmul.f32 %v12455_v44, %v12443_v48  ;;  %v2150_v52 = vmul.f32 %v12456_v50, %v12443_v48  ;;  %v2156_v14 = vmul.f32 %v12457_v47, %v12443_v48  ;;  %v12458_v38 = vstv %s12197_s11 }
 0x3d0   : > { %v2162_v35 = vmul.f32 %v12458_v38, %v12443_v48  ;;  %v2421_v39 = vrot.slane %v12459_v42, 7  ;;  %v12460_v23 = vstv %s12442_s19  ;;  %v12461_v56 = vstv %s12444_s25  ;;  %v12480_v38 = vld [vmem:[#allocation214_spill] sm:$0xff] }
 0x3d1   : > { %v2072_v61 = vmul.f32 %v12460_v23, %v2069_v55  ;;  %v2078_v58 = vmul.f32 %v12461_v56, %v2069_v55  ;;  %v12462_v6 = vstv %s12446_s28  ;;  %v12463_v40 = vstv %s12448_s29 }
 0x3d2   : > { %v2084_v9 = vmul.f32 %v12462_v6, %v2069_v55  ;;  %v2090_v29 = vmul.f32 %v12463_v40, %v2069_v55  ;;  %v12464_v26 = vstv %s12449_s13  ;;  %v12465_v2 = vstv %s12450_s22 }
 0x3d3   : > { %v2096_v19 = vmul.f32 %v12464_v26, %v2069_v55  ;;  %v2102_v30 = vmul.f32 %v12465_v2, %v2069_v55  ;;  %v12466_v27 = vstv %s12452_s17  ;;  %v12467_v45 = vstv %s12454_s1 }
 0x3d4   : > { %v2108_v13 = vmul.f32 %v12466_v27, %v2069_v55  ;;  %v2114_v24 = vmul.f32 %v12467_v45, %v2069_v55  ;;  %v2074_v22 = vadd.f32 %v2072_v61, %v1973_v18  ;;  %v2080_v7 = vadd.f32 %v2078_v58, %v1979_v3 }
 0x3d5   : > { %v2086_v8 = vadd.f32 %v2084_v9, %v1985_v53  ;;  %v2092_v10 = vadd.f32 %v2090_v29, %v1991_v33  ;;  %v2098_v36 = vadd.f32 %v2096_v19, %v1997_v60  ;;  %v2104_v17 = vadd.f32 %v2102_v30, %v2003_v41 }
 0x3d6   : > { %v2110_v5 = vadd.f32 %v2108_v13, %v2009_v59  ;;  %v2116_v51 = vadd.f32 %v2114_v24, %v2015_v43  ;;  %v9031_v32 = vadd.f32 %v2120_v37, %v2074_v22  ;;  %v9033_v54 = vadd.f32 %v2126_v62, %v2080_v7 }
 0x3d7   : > { %v9035_v18 = vadd.f32 %v2132_v25, %v2086_v8  ;;  %v9037_v3 = vadd.f32 %v2138_v1, %v2092_v10  ;;  %v9039_v53 = vadd.f32 %v2144_v46, %v2098_v36  ;;  %v9041_v33 = vadd.f32 %v2150_v52, %v2104_v17 }
 0x3d8   : > { %v9043_v60 = vadd.f32 %v2156_v14, %v2110_v5  ;;  %v9045_v41 = vadd.f32 %v2162_v35, %v2116_v51  ;;  %v2166_v59 = vrot.slane %v12443_v48, 1  ;;  %v9051_v43 = vsel %vm1493_vm2, 0.0, %v2421_v39 }
 0x3d9   : > { %v12473_v15 = vstv %s12199_s15  ;;  %v12474_v21 = vstv %s12468_s9  ;;  %v12475_v48 = vstv %s12201_s10  ;;  %v12476_v1 = vstv %s12469_s21 }
 0x3da   : > { %v9058_v62 = vmul.f32 %v12473_v15, %v12459_v42  ;;  %v9063_v25 = vmul.f32 %v12474_v21, %v12459_v42  ;;  %v9068_v34 = vmul.f32 %v12475_v48, %v12459_v42  ;;  %v9073_v44 = vmul.f32 %v12476_v1, %v12459_v42 }
 0x3db   : > { %v12477_v46 = vstv %s12470_s12  ;;  %v12478_v52 = vstv %s12471_s7  ;;  %v12479_v47 = vstv %s12472_s16  ;;  %v2065_v35 = vrot.slane %v12480_v38, 7 }
 0x3dc   : > { %v9078_v50 = vmul.f32 %v12477_v46, %v12459_v42  ;;  %v9083_v55 = vmul.f32 %v12478_v52, %v12459_v42  ;;  %v9088_v14 = vmul.f32 %v12479_v47, %v12459_v42  ;;  %v2523_v23 = vrot.slane %v12459_v42, 1 }
 0x3dd   : > { %v12481_v61 = vmov %v12445_v20  ;;  %v12482_v58 = vstv %s12436_s24  ;;  %v12483_v9 = vstv %s12440_s26  ;;  %v2066_v29 = vsel %vm1493_vm2, %v2064_v57, %v2065_v35  ;;  %s12555_s24 = sld [smem:[#allocation199_spill]] }
 0x3de   : > { %v2121_v56 = vmul.f32 %v12481_v61, %v12480_v38  ;;  %v2127_v6 = vmul.f32 %v12482_v58, %v12480_v38  ;;  %v2133_v40 = vmul.f32 %v12483_v9, %v12480_v38  ;;  %v12484_v26 = vstv %s8097_s0  ;;  %s12497_s0 = sld [smem:[#allocation52_spill]] }
 0x3df   : > { %v2139_v19 = vmul.f32 %v12484_v26, %v12480_v38  ;;  %v12485_v2 = vstv %s8117_s3  ;;  %v12486_v27 = vstv %s8137_s8  ;;  %v12487_v45 = vstv %s12442_s19  ;;  %s12498_s3 = sld [smem:[#allocation53_spill]] }
 0x3e0   : > { %v2145_v30 = vmul.f32 %v12485_v2, %v12480_v38  ;;  %v2151_v13 = vmul.f32 %v12486_v27, %v12480_v38  ;;  %v2073_v24 = vmul.f32 %v12487_v45, %v2066_v29  ;;  %v12488_v22 = vstv %s12444_s25  ;;  %s12500_s8 = sld [smem:[#allocation54_spill]] }
 0x3e1   : > { %v2079_v7 = vmul.f32 %v12488_v22, %v2066_v29  ;;  %v12489_v8 = vstv %s12446_s28  ;;  %v12490_v36 = vstv %s12448_s29  ;;  %v12491_v5 = vstv %s12449_s13  ;;  %s12560_s26 = sld [smem:[#allocation44_spill]] }
 0x3e2   : > { %v2085_v10 = vmul.f32 %v12489_v8, %v2066_v29  ;;  %v2091_v17 = vmul.f32 %v12490_v36, %v2066_v29  ;;  %v2097_v57 = vmul.f32 %v12491_v5, %v2066_v29  ;;  %v12492_v51 = vstv %s12450_s22  ;;  %s12571_s19 = sld [smem:[#allocation73_spill]] }
 0x3e3   : > { %v2103_v15 = vmul.f32 %v12492_v51, %v2066_v29  ;;  %v12493_v21 = vstv %s12452_s17  ;;  %v12494_v1 = vstv %s12454_s1  ;;  %v2075_v52 = vadd.f32 %v2073_v24, %v8925_v12  ;;  %s9314_s25 = sld [smem:[#allocation5 + $0x3]] }
 0x3e4   : > { %v2109_v48 = vmul.f32 %v12493_v21, %v2066_v29  ;;  %v2115_v46 = vmul.f32 %v12494_v1, %v2066_v29  ;;  %v2081_v47 = vadd.f32 %v2079_v7, %v8927_v28  ;;  %v2087_v35 = vadd.f32 %v2085_v10, %v8929_v16  ;;  %s12579_s28 = sld [smem:[#allocation43_spill]] }
 0x3e5   : > { %v2093_v61 = vadd.f32 %v2091_v17, %v8931_v49  ;;  %v2099_v58 = vadd.f32 %v2097_v57, %v8933_v4  ;;  %v2105_v9 = vadd.f32 %v2103_v15, %v8935_v0  ;;  %v2123_v29 = vadd.f32 %v2121_v56, %v2075_v52  ;;  %s9327_s29 = sld [smem:[#allocation4 + $0x77]] }
 0x3e6   : > { %v2111_v26 = vadd.f32 %v2109_v48, %v8937_v11  ;;  %v2117_v2 = vadd.f32 %v2115_v46, %v8939_v31  ;;  %v2129_v12 = vadd.f32 %v2127_v6, %v2081_v47  ;;  %v12495_v28 = vstv %s8157_s18  ;;  %v12499_v6 = vld [vmem:[#allocation215_spill] sm:$0xff]  ;;  %s12502_s18 = sld [smem:[#allocation55_spill]] }
 0x3e7   : > { %v2157_v27 = vmul.f32 %v12495_v28, %v12480_v38  ;;  %v12496_v16 = vstv %s12197_s11  ;;  %v2135_v4 = vadd.f32 %v2133_v40, %v2087_v35  ;;  %v2141_v0 = vadd.f32 %v2139_v19, %v2093_v61  ;;  %s12506_s11 = sld [smem:[#allocation56_spill]] }
 0x3e8   : > { %v2163_v49 = vmul.f32 %v12496_v16, %v12480_v38  ;;  %v2147_v45 = vadd.f32 %v2145_v30, %v2099_v58  ;;  %v2153_v11 = vadd.f32 %v2151_v13, %v2105_v9  ;;  %v2167_v56 = vrot.slane %v12480_v38, 1  ;;  %s9335_s13 = sld [smem:[#allocation4 + $0x6b]] }
 0x3e9   : > { %v2159_v24 = vadd.f32 %v2157_v27, %v2111_v26  ;;  %v2422_v22 = vrot.slane %v12499_v6, 7  ;;  %v12501_v7 = vstv %s12199_s15  ;;  %v12503_v40 = vstv %s12468_s9  ;;  %s12510_s15 = sld [smem:[#allocation57_spill]] }
 0x3ea   : > { %v2165_v31 = vadd.f32 %v2163_v49, %v2117_v2  ;;  %v9146_v8 = vmul.f32 %v12501_v7, %v12499_v6  ;;  %v9151_v19 = vmul.f32 %v12503_v40, %v12499_v6  ;;  %v12504_v30 = vstv %s12201_s10  ;;  %s12514_s10 = sld [smem:[#allocation58_spill]] }
 0x3eb   : > { %v9156_v13 = vmul.f32 %v12504_v30, %v12499_v6  ;;  %v12505_v10 = vstv %s12469_s21  ;;  %v2168_v36 = vsel %vm1596_vm3, %v2166_v59, %v2167_v56  ;;  %v2171_v17 = vsel %vm1596_vm3, %v2167_v56, 0.0  ;;  %s12585_s22 = sld [smem:[#allocation200_spill]] }
 0x3ec   : > { %v9161_v38 = vmul.f32 %v12505_v10, %v12499_v6  ;;  %v12507_v5 = vstv %s12470_s12  ;;  %v12508_v51 = vstv %s12471_s7  ;;  %v12509_v21 = vstv %s12497_s0  ;;  %s9390_s12 = sld [smem:[#allocation5 + $0x4]] }
 0x3ed   : > { %v9168_v57 = vmul.f32 %v12507_v5, %v12499_v6  ;;  %v9173_v15 = vmul.f32 %v12508_v51, %v12499_v6  ;;  %v2175_v48 = vmul.f32 %v12509_v21, %v2171_v17  ;;  %v12511_v1 = vstv %s12498_s3  ;;  %s12596_s7 = sld [smem:[#allocation46_spill]] }
 0x3ee   : > { %v2181_v46 = vmul.f32 %v12511_v1, %v2171_v17  ;;  %v9182_v59 = vsel %vm1493_vm2, %v2421_v39, %v2422_v22  ;;  %v12512_v52 = vstv %s12472_s16  ;;  %v12513_v35 = vmov %v12509_v21  ;;  %s9400_s16 = sld [smem:[#allocation4 + $0x7d]] }
 0x3ef   : > { %v9187_v47 = vmul.f32 %v12512_v52, %v12499_v6  ;;  %v2174_v61 = vmul.f32 %v12513_v35, %v2168_v36  ;;  %v12515_v58 = vmov %v12511_v1  ;;  %v12516_v26 = vstv %s12500_s8  ;;  %s9413_s0 = sld [smem:[#allocation5 + $0x5]] }
 0x3f0   : > { %v2180_v9 = vmul.f32 %v12515_v58, %v2168_v36  ;;  %v2187_v2 = vmul.f32 %v12516_v26, %v2171_v17  ;;  %v12518_v28 = vstv %s12502_s18  ;;  %v2177_v16 = vadd.f32 %v2175_v48, %v2123_v29  ;;  %s9462_s3 = sld [smem:[#allocation4 + $0x8f]] }
 0x3f1   : > { %v2193_v27 = vmul.f32 %v12518_v28, %v2171_v17  ;;  %v2183_v49 = vadd.f32 %v2181_v46, %v2129_v12  ;;  %v12519_v56 = vmov %v12516_v26  ;;  %v12520_v22 = vstv %s12506_s11  ;;  %s9496_s8 = sld [smem:[#allocation5 + $0x7]] }
 0x3f2   : > { %v2186_v39 = vmul.f32 %v12519_v56, %v2168_v36  ;;  %v2199_v7 = vmul.f32 %v12520_v22, %v2171_v17  ;;  %v2189_v40 = vadd.f32 %v2187_v2, %v2135_v4  ;;  %v12521_v30 = vmov %v12518_v28  ;;  %v12527_v4 = vld [vmem:[#allocation151_spill] sm:$0xff]  ;;  %v12528_v56 = vld [vmem:[#allocation152_spill] sm:$0xff]  ;;  %s12615_s18 = sld [smem:[#allocation51_spill]] }
 0x3f3   : > { %v2192_v10 = vmul.f32 %v12521_v30, %v2168_v36  ;;  %v2195_v5 = vadd.f32 %v2193_v27, %v2141_v0  ;;  %v12522_v51 = vstv %s12510_s15  ;;  %v12523_v1 = vmov %v12520_v22  ;;  %v12530_v27 = vld [vmem:[#allocation153_spill] sm:$0xff]  ;;  %s9660_s11 = sld [smem:[#allocation6 + $0x4]] }
 0x3f4   : > { %v2205_v21 = vmul.f32 %v12522_v51, %v2171_v17  ;;  %v9207_v52 = vmul.f32 %v12523_v1, %v2168_v36  ;;  %v2201_v35 = vadd.f32 %v2199_v7, %v2147_v45  ;;  %v12524_v58 = vmov %v12522_v51  ;;  %v12531_v51 = vld [vmem:[#allocation154_spill] sm:$0xff]  ;;  %s9669_s15 = sld [smem:[#allocation6 + $0x4c]] }
 0x3f5   : > { %v9211_v26 = vmul.f32 %v12524_v58, %v2168_v36  ;;  %v12525_v29 = vstv %s12514_s10  ;;  %v12526_v46 = vstv %s12517_s20  ;;  %v2233_v2 = vadd.f32 %v12527_v4, %v2177_v16  ;;  %v12543_v4 = vld [vmem:[#allocation159_spill] sm:$0xff]  ;;  %s9671_s10 = sld [smem:[#allocation6 + $0xd]] }
 0x3f6   : > { %v2211_v12 = vmul.f32 %v12525_v29, %v2171_v17  ;;  %v2207_v48 = vadd.f32 %v2205_v21, %v2153_v11  ;;  %v2217_v28 = vmul.f32 %v12526_v46, %v2171_v17  ;;  %v2239_v22 = vadd.f32 %v12528_v56, %v2183_v49  ;;  %v12535_v17 = vld [vmem:[#allocation156_spill] sm:$0xff]  ;;  %s9673_s20 = sld [smem:[#allocation6 + $0x1]] }
 0x3f7   : > { %v2245_v30 = vadd.f32 %v12530_v27, %v2189_v40  ;;  %v2251_v1 = vadd.f32 %v12531_v51, %v2195_v5  ;;  %v9222_v45 = vadd.f32 %v12532_v63, %v2201_v35  ;;  %v12533_v7 = vmov %v12525_v29  ;;  %v12538_v5 = vld [vmem:[#allocation157_spill] sm:$0xff]  ;;  %s9733_s17 = sld [smem:[#allocation6 + $0x1c]] }
 0x3f8   : > { %v2213_v0 = vadd.f32 %v2211_v12, %v2159_v24  ;;  %v9226_v58 = vmul.f32 %v12533_v7, %v2168_v36  ;;  %v2219_v11 = vadd.f32 %v2217_v28, %v2165_v31  ;;  %v9229_v16 = vadd.f32 %v12535_v17, %v2207_v48  ;;  %v12539_v35 = vld [vmem:[#allocation161_spill] sm:$0xff]  ;;  %v12540_v12 = vld [vmem:[#allocation158_spill] sm:$0xff]  ;;  %v12549_v17 = vld [vmem:[#allocation164_spill] sm:$0xff]  ;;  %s9740_s1 = sld [smem:[#allocation6 + $0x64]] }
 0x3f9   : > { %v2524_v49 = vrot.slane %v12499_v6, 1  ;;  %v12536_v24 = vmov %v12526_v46  ;;  %v2176_v63 = vadd.f32 %v2174_v61, %v9031_v32  ;;  %v2281_v29 = vadd.f32 %v12539_v35, %v2233_v2  ;;  %v12544_v61 = vld [vmem:[#allocation171_spill] sm:$0xff]  ;;  %v12568_v6 = vld [vmem:[#allocation166_spill] sm:$0xff]  ;;  %s9744_s9 = sld [smem:[#allocation6 + $0x67]] }
 0x3fa   : > { %v9234_v40 = vmul.f32 %v12536_v24, %v2168_v36  ;;  %v9237_v21 = vadd.f32 %v12538_v5, %v2213_v0  ;;  %v9242_v31 = vadd.f32 %v12540_v12, %v2219_v11  ;;  %v12542_v46 = vstv %s12529_s2  ;;  %s9677_s2 = sld [smem:[#allocation6 + $0x49]] }
 0x3fb   : > { %v9247_v48 = vsel %vm1596_vm3, %v2523_v23, %v2524_v49  ;;  %v9250_v36 = vsel %vm1596_vm3, %v2524_v49, 0.0  ;;  %v2429_v28 = vmul.f32 %v12542_v46, %v9051_v43  ;;  %v2232_v32 = vadd.f32 %v12543_v4, %v2176_v63  ;;  %v12551_v63 = vld [vmem:[#allocation160_spill] sm:$0xff]  ;;  %s9746_s21 = sld [smem:[#allocation6 + $0x22]] }
 0x3fc   : > { %v2335_v56 = vadd.f32 %v12544_v61, %v2281_v29  ;;  %v12545_v2 = vmov %v12542_v46  ;;  %v12546_v27 = vstv %s12534_s23  ;;  %v2182_v11 = vadd.f32 %v2180_v9, %v9033_v54  ;;  %s9680_s23 = sld [smem:[#allocation6 + $0x7]] }
 0x3fd   : > { %v2430_v0 = vmul.f32 %v12545_v2, %v9182_v59  ;;  %v2531_v51 = vmul.f32 %v12546_v27, %v9247_v48  ;;  %v12547_v23 = vmov %v12546_v27  ;;  %v2287_v49 = vadd.f32 %v12549_v17, %v2239_v22  ;;  %v12554_v2 = vld [vmem:[#allocation162_spill] sm:$0xff]  ;;  %v12557_v22 = vld [vmem:[#allocation167_spill] sm:$0xff] }
 0x3fe   : > { %v2532_v7 = vmul.f32 %v12547_v23, %v9250_v36  ;;  %v12550_v24 = vstv %s12537_s30  ;;  %v2280_v35 = vadd.f32 %v12551_v63, %v2232_v32  ;;  %v12553_v4 = vstv %s12541_s27  ;;  %v12556_v23 = vld [vmem:[#allocation174_spill] sm:$0xff]  ;;  %s9688_s30 = sld [smem:[#allocation6 + $0x4f]] }
 0x3ff   : > { %v2435_v5 = vmul.f32 %v12550_v24, %v9051_v43  ;;  %v2432_v29 = vadd.f32 %v2430_v0, %v2335_v56  ;;  %v12552_v12 = vmov %v12550_v24  ;;  %v2537_v61 = vmul.f32 %v12553_v4, %v9247_v48  ;;  %v12558_v24 = vld [vmem:[#allocation170_spill] sm:$0xff]  ;;  %s9690_s27 = sld [smem:[#allocation6 + $0xa]] }
 0x400   : > { %v2436_v46 = vmul.f32 %v12552_v12, %v9182_v59  ;;  %v2238_v27 = vadd.f32 %v12554_v2, %v2182_v11  ;;  %v2341_v54 = vadd.f32 %v12556_v23, %v2287_v49  ;;  %v2188_v9 = vadd.f32 %v2186_v39, %v9035_v18  ;;  %v12563_v2 = vld [vmem:[#allocation165_spill] sm:$0xff]  ;;  %v12564_v23 = vld [vmem:[#allocation176_spill] sm:$0xff]  ;;  %12623 = sst [smem:[#allocation82_spill]] %s9744_s9 }
 0x401   : > { %v2293_v17 = vadd.f32 %v12557_v22, %v2245_v30  ;;  %v2334_v37 = vadd.f32 %v12558_v24, %v2280_v35  ;;  %v2480_v32 = vadd.f32 %v9146_v8, %v2432_v29  ;;  %v12559_v56 = vmov %v12553_v4  ;;  %v12562_v4 = vld [vmem:[#allocation163_spill] sm:$0xff]  ;;  %v12567_v24 = vld [vmem:[#allocation172_spill] sm:$0xff]  ;;  %12624 = sst [smem:[#allocation83_spill]] %s9746_s21 }
 0x402   : > { %v2538_v0 = vmul.f32 %v12559_v56, %v9250_v36  ;;  %v12561_v63 = vstv %s12548_s14  ;;  %v2286_v20 = vadd.f32 %v12562_v4, %v2238_v27  ;;  %v2438_v11 = vadd.f32 %v2436_v46, %v2341_v54  ;;  %s9697_s14 = sld [smem:[#allocation6 + $0x52]] }
 0x403   : > { %v2442_v12 = vmul.f32 %v12561_v63, %v9182_v59  ;;  %v2244_v49 = vadd.f32 %v12563_v2, %v2188_v9  ;;  %v2347_v18 = vadd.f32 %v12564_v23, %v2293_v17  ;;  %v2431_v39 = vadd.f32 %v2429_v28, %v2334_v37  ;;  %v12572_v2 = vld [vmem:[#allocation175_spill] sm:$0xff]  ;;  %v12575_v23 = vld [vmem:[#allocation178_spill] sm:$0xff]  ;;  %s9766_s9 = sld [smem:[#allocation6 + $0x31]] }
 0x404   : > { %v2534_v30 = vadd.f32 %v2532_v7, %v2480_v32  ;;  %v12565_v35 = vmov %v12561_v63  ;;  %v12566_v29 = vstv %s12555_s24  ;;  %v2340_v56 = vadd.f32 %v12567_v24, %v2286_v20  ;;  %v12570_v7 = vld [vmem:[#allocation173_spill] sm:$0xff]  ;;  %s9699_s24 = sld [smem:[#allocation6 + $0x55]] }
 0x405   : > { %v2441_v8 = vmul.f32 %v12565_v35, %v9051_v43  ;;  %v2544_v22 = vmul.f32 %v12566_v29, %v9250_v36  ;;  %v2486_v63 = vadd.f32 %v9151_v19, %v2438_v11  ;;  %v2292_v27 = vadd.f32 %v12568_v6, %v2244_v49  ;;  %s9768_s21 = sld [smem:[#allocation6 + $0x79]] }
 0x406   : > { %v2444_v46 = vadd.f32 %v2442_v12, %v2347_v18  ;;  %v2479_v54 = vadd.f32 %v9058_v62, %v2431_v39  ;;  %v12569_v9 = vstv %s12560_s26  ;;  %v2194_v28 = vadd.f32 %v2192_v10, %v9037_v3  ;;  %v12574_v62 = vld [vmem:[#allocation168_spill] sm:$0xff]  ;;  %s9703_s26 = sld [smem:[#allocation6 + $0x10]] }
 0x407   : > { %v2580_v37 = vadd.f32 %v12569_v9, %v2534_v30  ;;  %v2299_v17 = vadd.f32 %v12570_v7, %v2251_v1  ;;  %v2437_v32 = vadd.f32 %v2435_v5, %v2340_v56  ;;  %v2540_v4 = vadd.f32 %v2538_v0, %v2486_v63  ;;  %v12578_v30 = vld [vmem:[#allocation169_spill] sm:$0xff] }
 0x408   : > { %v2346_v20 = vadd.f32 %v12572_v2, %v2292_v27  ;;  %v2492_v19 = vadd.f32 %v9156_v13, %v2444_v46  ;;  %v2533_v11 = vadd.f32 %v2531_v51, %v2479_v54  ;;  %v12573_v6 = vmov %v12566_v29 }
 0x409   : > { %v2543_v12 = vmul.f32 %v12573_v6, %v9247_v48  ;;  %v2250_v49 = vadd.f32 %v12574_v62, %v2194_v28  ;;  %v2353_v18 = vadd.f32 %v12575_v23, %v2299_v17  ;;  %v2485_v3 = vadd.f32 %v9063_v25, %v2437_v32  ;;  %12634 = sst [smem:[#allocation88_spill]] %s9766_s9 }
 0x40a   : > { %v12576_v10 = vstv %s8990_s6  ;;  %v2443_v5 = vadd.f32 %v2441_v8, %v2346_v20  ;;  %v2546_v0 = vadd.f32 %v2544_v22, %v2492_v19  ;;  %v12577_v13 = vmov %v12569_v9  ;;  %v12583_v9 = vld [vmem:[#allocation177_spill] sm:$0xff]  ;;  %s9370_s6 = sld [smem:[#allocation4 + $0x89]] }
 0x40b   : > { %v2586_v1 = vadd.f32 %v12576_v10, %v2540_v4  ;;  %v2579_v51 = vadd.f32 %v12577_v13, %v2533_v11  ;;  %v9321_v39 = vmax.f32 %v2580_v37, 0.0  ;;  %v2298_v35 = vadd.f32 %v12578_v30, %v2250_v49  ;;  %v12592_v13 = vld [vmem:[#allocation179_spill] sm:$0xff]  ;;  %12635 = sst [smem:[#allocation89_spill]] %s9768_s21 }
 0x40c   : > { %v12580_v29 = vstv %s12571_s19  ;;  %v2539_v56 = vadd.f32 %v2537_v61, %v2485_v3  ;;  %v2491_v25 = vadd.f32 %v9068_v34, %v2443_v5  ;;  %v12581_v63 = vstv %s9005_s5  ;;  %s12591_s5 = sld [smem:[#allocation230_spill]]  ;;  %v12593_v30 = vld [vmem:[#allocation183_spill] sm:$0xff] }
 0x40d   : > { %v2448_v24 = vmul.f32 %v12580_v29, %v9182_v59  ;;  %v2592_v8 = vadd.f32 %v12581_v63, %v2546_v0  ;;  %v12582_v22 = vmov %v12580_v29  ;;  %v9337_v46 = vmax.f32 %v2579_v51, 0.0  ;;  %s9706_s19 = sld [smem:[#allocation6 + $0x58]] }
 0x40e   : > { %v2447_v27 = vmul.f32 %v12582_v22, %v9051_v43  ;;  %v9339_v54 = vmax.f32 %v2586_v1, 0.0  ;;  %v2352_v37 = vadd.f32 %v12583_v9, %v2298_v35  ;;  %v12584_v7 = vmov %v12576_v10  ;;  %s9788_s9 = sld [smem:[#allocation6 + $0x88]] }
 0x40f   : > { %v2450_v28 = vadd.f32 %v2448_v24, %v2353_v18  ;;  %v2585_v61 = vadd.f32 %v12584_v7, %v2539_v56  ;;  %v2545_v17 = vadd.f32 %v2543_v12, %v2491_v25  ;;  %v9344_v34 = vmax.f32 %v2592_v8, 0.0  ;;  %v12589_v18 = vld [vmem:[#allocation181_spill] sm:$0xff]  ;;  %s9790_s21 = sld [smem:[#allocation6 + $0x43]] }
 0x410   : > { %v12586_v32 = vstv %s12579_s28  ;;  %v2625_v2 = vpack.c.bf16 %v9321_v39, %v9337_v46  ;;  %v2449_v20 = vadd.f32 %v2447_v27, %v2352_v37  ;;  %v12588_v49 = vmov %v12581_v63  ;;  %v12597_v27 = vld [vmem:[#allocation180_spill] sm:$0xff]  ;;  %s9716_s28 = sld [smem:[#allocation6 + $0x5b]] }
 0x411   : > { %v2549_v4 = vmul.f32 %v12586_v32, %v9247_v48  ;;  %v2498_v19 = vadd.f32 %v9161_v38, %v2450_v28  ;;  %v12587_v11 = vmov %v12586_v32  ;;  %v9355_v62 = vmax.f32 %v2585_v61, 0.0 }
 0x412   : > { %v2550_v6 = vmul.f32 %v12587_v11, %v9250_v36  ;;  %v2591_v23 = vadd.f32 %v12588_v49, %v2545_v17  ;;  %v2200_v12 = vadd.f32 %v9207_v52, %v9039_v53  ;;  %v2305_v3 = vadd.f32 %v12589_v18, %v9222_v45  ;;  %6416 = vmatmul.mubr.msk.bf16.vlgmr.msra.gmra.mxu0 %vm493_vm0, %v2625_v2  ;;  %v9375_v53 = vld [vmem:[%s12591_s5] sm:$0xff]  }
 0x413   : > { %6422 = vmatmul.mubr.msk.bf16.vlgmr.msra.gmra.mxu1 %vm493_vm0, %v2625_v2  ;;  %v2497_v10 = vadd.f32 %v9073_v44, %v2449_v20  ;;  %v2596_v1 = vstv %s9314_s25  ;;  %v12590_v5 = vstv %s12585_s22  ;;  %6426 = vmatpush3.bf16.msra.mxu0 %v9375_v53  ;;  %v9381_v44 = vld [vmem:[%s12591_s5 + $0x8] sm:$0xff]   ;;  %v2861_v52 = vpack.c.bf16 %v9339_v54, %v9355_v62  ;;  %v12600_v20 = vld [vmem:[#allocation182_spill] sm:$0xff]  ;;  %s9714_s25 = sld [smem:[#allocation6 + $0x13]] }
 0x414   : > { %v2552_v38 = vadd.f32 %v2550_v6, %v2498_v19  ;;  %v2453_v0 = vmul.f32 %v12590_v5, %v9051_v43  ;;  %6432 = vmatpush3.bf16.msra.mxu1 %v9381_v44  ;;  %v9386_v45 = vmax.f32 %v2591_v23, 0.0  ;;  %v2256_v51 = vadd.f32 %v12592_v13, %v2200_v12  ;;  %v12601_v6 = vld [vmem:[#allocation186_spill] sm:$0xff]  ;;  %v12604_v13 = vld [vmem:[#allocation184_spill] sm:$0xff]  ;;  %s9727_s22 = sld [smem:[#allocation6 + $0x19]] }
 0x415   : > { %v2359_v35 = vadd.f32 %v12593_v30, %v2305_v3  ;;  %v12594_v29 = vmov 0.0   ;;  %v2551_v24 = vadd.f32 %v2549_v4, %v2497_v10  ;;  %v12595_v25 = vmov %v12590_v5  ;;  %s9742_s5 = sld [smem:[#allocation6 + $0x1f]] }
 0x416   : > { %6427 = vmatprep.mubr.msk.bf16.mxu0 %vm7058_vm1, %v12594_v29  ;;  %6433 = vmatprep.mubr.msk.bf16.mxu1 %vm7058_vm1, %v12594_v29  ;;  %v2598_v56 = vadd.f32 %v2596_v1, %v2552_v38  ;;  %v2454_v63 = vmul.f32 %v12595_v25, %v9182_v59  ;;  %v2464_v8 = vstv %s9327_s29  ;;  %v9406_v22 = vpack.c.bf16 %v9344_v34, %v9386_v45  ;;  %s9723_s29 = sld [smem:[#allocation6 + $0x16]] }
 0x417   : > { %6437 = vmatprep.subr.bf16.mxu0 %v12594_v29  ;;  %6443 = vmatprep.subr.bf16.mxu1 %v12594_v29  ;;  %v2304_v9 = vadd.f32 %v12597_v27, %v2256_v51  ;;  %v12598_v37 = vstv %s8953_s4  ;;  %v2560_v7 = vstv %s9335_s13  ;;  %v2597_v61 = vadd.f32 %v2596_v1, %v2551_v24  ;;  %s9446_s4 = sld [smem:[#allocation5 + $0x6]] }
 0x418   : > { %v2555_v28 = vmul.f32 %v12598_v37, %v9247_v48  ;;  %v9415_v17 = vmax.f32 %v2598_v56, 0.0  ;;  %v2456_v32 = vadd.f32 %v2454_v63, %v2359_v35  ;;  %v12599_v4 = vmov %v12598_v37  ;;  %v12606_v56 = vld [vmem:[#allocation185_spill] sm:$0xff]  ;;  %s9725_s13 = sld [smem:[#allocation6 + $0x5e]] }
 0x419   : > { %v2556_v2 = vmul.f32 %v12599_v4, %v9250_v36  ;;  %v2358_v19 = vadd.f32 %v12600_v20, %v2304_v9  ;;  %v2206_v11 = vadd.f32 %v9211_v26, %v9041_v33  ;;  %v2311_v49 = vadd.f32 %v12601_v6, %v9229_v16  ;;  %v12605_v26 = vld [vmem:[#allocation188_spill] sm:$0xff]  ;;  %v12608_v9 = vld [vmem:[#allocation191_spill] sm:$0xff]  ;;  %v12611_v6 = vld [vmem:[#allocation193_spill] sm:$0xff]  ;;  %12645 = sst [smem:[#allocation104_spill]] %s9788_s9 }
 0x41a   : > { %v12602_v23 = vstv %s12596_s7  ;;  %v9428_v18 = vmax.f32 %v2597_v61, 0.0  ;;  %v2504_v3 = vadd.f32 %v9168_v57, %v2456_v32  ;;  %v2561_v1 = vmul.f32 %v2560_v7, %v9247_v48  ;;  %6428 = vmatmul.mubr.msk.bf16.vlgmr.msra.gmra.mxu0 %vm493_vm0, %v2861_v52  ;;  %v12609_v61 = vld [vmem:[#allocation187_spill] sm:$0xff]  ;;  %s9750_s7 = sld [smem:[#allocation6 + $0x25]] }
 0x41b   : > { %v2459_v12 = vmul.f32 %v12602_v23, %v9051_v43  ;;  %v12603_v10 = vmov %v12602_v23  ;;  %v2455_v5 = vadd.f32 %v2453_v0, %v2358_v19  ;;  %v2262_v33 = vadd.f32 %v12604_v13, %v2206_v11  ;;  %6434 = vmatmul.mubr.msk.bf16.vlgmr.msra.gmra.mxu1 %vm493_vm0, %v2861_v52  ;;  %6438 = vmatpush3.bf16.msra.mxu0 %v9375_v53  ;;  %v12610_v19 = vld [vmem:[#allocation190_spill] sm:$0xff]  ;;  %12622 = sst [smem:[#allocation81_spill]] %s9742_s5 }
 0x41c   : > { %v2460_v38 = vmul.f32 %v12603_v10, %v9182_v59  ;;  %v2365_v51 = vadd.f32 %v12605_v26, %v2311_v49  ;;  %v2562_v16 = vmul.f32 %v2560_v7, %v9250_v36  ;;  %v9442_v57 = vpack.c.bf16 %v9415_v17, %v9428_v18  ;;  %6444 = vmatpush3.bf16.msra.mxu1 %v9381_v44  ;;  %s9764_s5 = sld [smem:[#allocation6 + $0x76]] }
 0x41d   : > { %v2558_v30 = vadd.f32 %v2556_v2, %v2504_v3  ;;  %v2212_v35 = vadd.f32 %v9226_v58, %v9043_v60  ;;  %v2470_v0 = vstv %s9370_s6  ;;  %v2503_v24 = vadd.f32 %v9078_v50, %v2455_v5  ;;  %6439 = vmatprep.mubr.msk.bf16.mxu0 %vm7058_vm1, %v12594_v29  ;;  %6445 = vmatprep.mubr.msk.bf16.mxu1 %vm7058_vm1, %v12594_v29  ;;  %v12607_v58 = vld [vmem:[#allocation189_spill] sm:$0xff]  ;;  %s9731_s6 = sld [smem:[#allocation6 + $0x61]] }
 0x41e   : > { %v2602_v52 = vstv %s9390_s12  ;;  %v2310_v25 = vadd.f32 %v12606_v56, %v2262_v33  ;;  %v2462_v63 = vadd.f32 %v2460_v38, %v2365_v51  ;;  %v2317_v37 = vadd.f32 %v12608_v9, %v9237_v21  ;;  %6449 = vmatprep.subr.bf16.mxu0 %v12594_v29  ;;  %6455 = vmatprep.subr.bf16.mxu1 %v12594_v29  ;;  %s9748_s12 = sld [smem:[#allocation6 + $0x6a]] }
 0x41f   : > { %v2604_v60 = vadd.f32 %v2602_v52, %v2558_v30  ;;  %v2268_v27 = vadd.f32 %v12607_v58, %v2212_v35  ;;  %v2566_v7 = vstv %s9400_s16  ;;  %v2557_v50 = vadd.f32 %v2555_v28, %v2503_v24  ;;  %v12612_v28 = vld [vmem:[#allocation192_spill] sm:$0xff]  ;;  %s9752_s16 = sld [smem:[#allocation6 + $0x6d]] }
 0x420   : > { %v2364_v32 = vadd.f32 %v12609_v61, %v2310_v25  ;;  %v2510_v4 = vadd.f32 %v9173_v15, %v2462_v63  ;;  %v2608_v2 = vstv %s9413_s0  ;;  %v2371_v49 = vadd.f32 %v12611_v6, %v2317_v37  ;;  %v12616_v25 = vld [vmem:[#allocation195_spill] sm:$0xff]  ;;  %12626 = sst [smem:[#allocation93_spill]] %s9750_s7 }
 0x421   : > { %v9469_v20 = vmax.f32 %v2604_v60, 0.0  ;;  %v2316_v11 = vadd.f32 %v12610_v19, %v2268_v27  ;;  %v2465_v21 = vmul.f32 %v2464_v8, %v9051_v43  ;;  %v2603_v23 = vadd.f32 %v2602_v52, %v2557_v50  ;;  %v12614_v52 = vld [vmem:[#allocation196_spill] sm:$0xff]  ;;  %v12618_v50 = vld [vmem:[#allocation197_spill] sm:$0xff]  ;;  %s9754_s0 = sld [smem:[#allocation6 + $0x28]] }
 0x422   : > { %v2461_v3 = vadd.f32 %v2459_v12, %v2364_v32  ;;  %v2564_v10 = vadd.f32 %v2562_v16, %v2510_v4  ;;  %v2466_v38 = vmul.f32 %v2464_v8, %v9182_v59  ;;  %v2567_v13 = vmul.f32 %v2566_v7, %v9247_v48  ;;  %6440 = vmatmul.mubr.msk.bf16.vlgmr.msra.gmra.mxu0 %vm493_vm0, %v9406_v22  ;;  %v12613_v16 = vld [vmem:[#allocation194_spill] sm:$0xff]  ;;  %12633 = sst [smem:[#allocation87_spill]] %s9764_s5 }
 0x423   : > { %v2370_v5 = vadd.f32 %v12612_v28, %v2316_v11  ;;  %v2568_v15 = vmul.f32 %v2566_v7, %v9250_v36  ;;  %v2218_v33 = vadd.f32 %v9234_v40, %v9045_v41  ;;  %v9480_v26 = vmax.f32 %v2603_v23, 0.0  ;;  %6446 = vmatmul.mubr.msk.bf16.vlgmr.msra.gmra.mxu1 %vm493_vm0, %v9406_v22  ;;  %6450 = vmatpush3.bf16.msra.mxu0 %v9375_v53  ;;  %s9772_s7 = sld [smem:[#allocation6 + $0x7c]] }
 0x424   : > { %v2509_v51 = vadd.f32 %v9083_v55, %v2461_v3  ;;  %v2610_v30 = vadd.f32 %v2608_v2, %v2564_v10  ;;  %v2468_v35 = vadd.f32 %v2466_v38, %v2371_v49  ;;  %v2614_v12 = vstv %s9446_s4  ;;  %6456 = vmatpush3.bf16.msra.mxu1 %v9381_v44  ;;  %6451 = vmatprep.mubr.msk.bf16.mxu0 %vm7058_vm1, %v12594_v29  ;;  %v12620_v49 = vld [vmem:[#allocation215_spill] sm:$0xff]  ;;  %12625 = sst [smem:[#allocation92_spill]] %s9748_s12 }
 0x425   : > { %v2467_v8 = vadd.f32 %v2465_v21, %v2370_v5  ;;  %v2274_v24 = vadd.f32 %v12613_v16, %v2218_v33  ;;  %v2323_v41 = vadd.f32 %v12614_v52, %v9242_v31  ;;  %v3569_v55 = vpack.c.bf16 %v9469_v20, %v9480_v26  ;;  %6457 = vmatprep.mubr.msk.bf16.mxu1 %vm7058_vm1, %v12594_v29  ;;  %12627 = sst [smem:[#allocation94_spill]] %s9752_s16 }
 0x426   : > { %v2563_v40 = vadd.f32 %v2561_v1, %v2509_v51  ;;  %v2516_v56 = vadd.f32 %v9187_v47, %v2468_v35  ;;  %v2723_v22 = vrot.slane %v9321_v39, 7  ;;  %v12617_v1 = vld [vmem:[#allocation198_spill] sm:$0xff]  ;;  %v2572_v47 = vstv %s9462_s3  ;;  %6461 = vmatprep.subr.bf16.mxu0 %v12594_v29  ;;  %6467 = vmatprep.subr.bf16.mxu1 %v12594_v29  ;;  %s9756_s4 = sld [smem:[#allocation6 + $0x70]] }
 0x427   : > { %v2515_v31 = vadd.f32 %v9088_v14, %v2467_v8  ;;  %v2322_v63 = vadd.f32 %v12616_v25, %v2274_v24  ;;  %v2377_v60 = vadd.f32 %v12617_v1, %v2323_v41  ;;  %v9509_v27 = vmax.f32 %v2610_v30, 0.0  ;;  %12628 = sst [smem:[#allocation95_spill]] %s9754_s0 }
 0x428   : > { %v2609_v58 = vadd.f32 %v2608_v2, %v2563_v40  ;;  %v2570_v9 = vadd.f32 %v2568_v15, %v2516_v56  ;;  %v2722_v37 = vrot.slane %v9337_v46, 7  ;;  %v2471_v14 = vmul.f32 %v2470_v0, %v9051_v43  ;;  %s9758_s3 = sld [smem:[#allocation6 + $0x2b]] }
 0x429   : > { %v2569_v7 = vadd.f32 %v2567_v13, %v2515_v31  ;;  %v2376_v61 = vadd.f32 %v12618_v50, %v2322_v63  ;;  %v2472_v32 = vmul.f32 %v2470_v0, %v9182_v59  ;;  %v12619_v4 = vstv %s12615_s18  ;;  %s9762_s18 = sld [smem:[#allocation6 + $0x2e]] }
 0x42a   : > { %v2519_v19 = vmul.f32 %v12619_v4, %v12459_v42  ;;  %v9522_v11 = vmax.f32 %v2609_v58, 0.0  ;;  %v2616_v2 = vadd.f32 %v2614_v12, %v2570_v9  ;;  %v9527_v6 = vsel %vm1493_vm2, %v2722_v37, %v2723_v22  ;;  %6452 = vmatmul.mubr.msk.bf16.vlgmr.msra.gmra.mxu0 %vm493_vm0, %v9442_v57  ;;  %s9770_s12 = sld [smem:[#allocation6 + $0x34]] }
 0x42b   : > { %v12621_v21 = vmov %v12619_v4  ;;  %v2615_v3 = vadd.f32 %v2614_v12, %v2569_v7  ;;  %v2473_v43 = vadd.f32 %v2471_v14, %v2376_v61  ;;  %v2474_v10 = vadd.f32 %v2472_v32, %v2377_v60  ;;  %6458 = vmatmul.mubr.msk.bf16.vlgmr.msra.gmra.mxu1 %vm493_vm0, %v9442_v57  ;;  %6462 = vmatpush3.bf16.msra.mxu0 %v9375_v53  ;;  %12637 = sst [smem:[#allocation91_spill]] %s9772_s7 }
 0x42c   : > { %v2520_v23 = vmul.f32 %v12621_v21, %v12620_v49  ;;  %v3805_v59 = vpack.c.bf16 %v9509_v27, %v9522_v11  ;;  %v9534_v0 = vmax.f32 %v2616_v2, 0.0  ;;  %v2573_v42 = vmul.f32 %v2572_v47, %v9247_v48  ;;  %6468 = vmatpush3.bf16.msra.mxu1 %v9381_v44  ;;  %6463 = vmatprep.mubr.msk.bf16.mxu0 %vm7058_vm1, %v12594_v29  ;;  %12629 = sst [smem:[#allocation96_spill]] %s9756_s4 }
 0x42d   : > { %v9541_v38 = vmax.f32 %v2615_v3, 0.0  ;;  %v2521_v28 = vadd.f32 %v2519_v19, %v2473_v43  ;;  %v2574_v13 = vmul.f32 %v2572_v47, %v9250_v36  ;;  %v2620_v15 = vstv %s9496_s8  ;;  %6469 = vmatprep.mubr.msk.bf16.mxu1 %vm7058_vm1, %v12594_v29  ;;  %6473 = vmatprep.subr.bf16.mxu0 %v12594_v29  ;;  %s9760_s8 = sld [smem:[#allocation6 + $0x73]] }
 0x42e   : > { %v2522_v5 = vadd.f32 %v2520_v23, %v2474_v10  ;;  %v2753_v33 = vrot.slane %v9321_v39, 1  ;;  %v2752_v36 = vrot.slane %v9337_v46, 1  ;;  %6479 = vmatprep.subr.bf16.mxu1 %v12594_v29  ;;  %v2958_v24 = vrot.slane %v9355_v62, 7  ;;  %12630 = sst [smem:[#allocation84_spill]] %s9758_s3 }
 0x42f   : > { %v4041_v48 = vpack.c.bf16 %v9534_v0, %v9541_v38  ;;  %v2575_v57 = vadd.f32 %v2573_v42, %v2521_v28  ;;  %v2959_v52 = vrot.slane %v9339_v54, 7  ;;  %v2989_v56 = vrot.slane %v9339_v54, 1  ;;  %12632 = sst [smem:[#allocation86_spill]] %s9762_s18 }
 0x430   : > { %v2576_v51 = vadd.f32 %v2574_v13, %v2522_v5  ;;  %v9560_v8 = vsel %vm1596_vm3, %v2752_v36, %v2753_v33  ;;  %v3195_v22 = vrot.slane %v9344_v34, 7  ;;  %v3194_v25 = vrot.slane %v9386_v45, 7  ;;  %12636 = sst [smem:[#allocation90_spill]] %s9770_s12 }
 0x431   : > { %v2621_v30 = vadd.f32 %v2620_v15, %v2575_v57  ;;  %v9577_v40 = vsel %vm1493_vm2, %v2958_v24, %v2959_v52  ;;  %v3224_v1 = vrot.slane %v9386_v45, 1  ;;  %v3225_v60 = vrot.slane %v9344_v34, 1  ;;  %s9774_s16 = sld [smem:[#allocation6 + $0x37]] }
 0x432   : > { %v2622_v35 = vadd.f32 %v2620_v15, %v2576_v51  ;;  %6464 = vmatmul.mubr.msk.bf16.vlgmr.msra.gmra.mxu0 %vm493_vm0, %v3569_v55  ;;  %v9597_v63 = vsel %vm1493_vm2, %v3194_v25, %v3195_v22  ;;  %v3431_v47 = vrot.slane %v9415_v17, 7  ;;  %v3430_v9 = vrot.slane %v9428_v18, 7  ;;  %s9776_s0 = sld [smem:[#allocation6 + $0x7f]] }
 0x433   : > { %v9562_v12 = vmax.f32 %v2621_v30, 0.0  ;;  %6470 = vmatmul.mubr.msk.bf16.vlgmr.msra.gmra.mxu1 %vm493_vm0, %v3569_v55  ;;  %6474 = vmatpush3.bf16.msra.mxu0 %v9375_v53  ;;  %v2988_v55 = vrot.slane %v9355_v62, 1  ;;  %v9615_v58 = vsel %vm1596_vm3, %v3224_v1, %v3225_v60  ;;  %v3460_v50 = vrot.slane %v9428_v18, 1  ;;  %12631 = sst [smem:[#allocation85_spill]] %s9760_s8 }
 0x434   : > { %v9564_v16 = vmax.f32 %v2622_v35, 0.0  ;;  %6480 = vmatpush3.bf16.msra.mxu1 %v9381_v44  ;;  %6475 = vmatprep.mubr.msk.bf16.mxu0 %vm7058_vm1, %v12594_v29  ;;  %v9621_v7 = vsel %vm1493_vm2, %v3430_v9, %v3431_v47  ;;  %v11719_v61 = vrot.slane %v9415_v17, 1  ;;  %v3667_v14 = vrot.slane %v9469_v20, 7  ;;  %s9778_s4 = sld [smem:[#allocation6 + $0x3a]] }
 0x435   : > { %6481 = vmatprep.mubr.msk.bf16.mxu1 %vm7058_vm1, %v12594_v29  ;;  %6485 = vmatprep.subr.bf16.mxu0 %v12594_v29  ;;  %v9591_v31 = vsel %vm1596_vm3, %v2988_v55, %v2989_v56  ;;  %v11718_v4 = vrot.slane %v9480_v26, 7  ;;  %v11717_v19 = vrot.slane %v9469_v20, 1  ;;  %v3903_v2 = vrot.slane %v9509_v27, 7  ;;  %s9780_s3 = sld [smem:[#allocation6 + $0x82]] }
 0x436   : > { %v4277_v41 = vpack.c.bf16 %v9564_v16, %v9562_v12  ;;  %6491 = vmatprep.subr.bf16.mxu1 %v12594_v29  ;;  %v9637_v32 = vsel %vm1596_vm3, %v3460_v50, %v11719_v61  ;;  %v11716_v21 = vrot.slane %v9522_v11, 7  ;;  %v3932_v3 = vrot.slane %v9522_v11, 1  ;;  %s9782_s8 = sld [smem:[#allocation6 + $0x3d]] }
 0x437   : > { %v11715_v43 = vrot.slane %v9509_v27, 1  ;;  %v4139_v10 = vrot.slane %v9534_v0, 7  ;;  %v11714_v42 = vrot.slane %v9541_v38, 7  ;;  %v4168_v5 = vrot.slane %v9541_v38, 1  ;;  %12638 = sst [smem:[#allocation97_spill]] %s9774_s16 }
 0x438   : > { %v9665_v23 = vsel %vm1493_vm2, %v11716_v21, %v3903_v2  ;;  %v11713_v13 = vrot.slane %v9534_v0, 1  ;;  %v4375_v15 = vrot.slane %v9564_v16, 7  ;;  %v11712_v57 = vrot.slane %v9562_v12, 7  ;;  %12639 = sst [smem:[#allocation98_spill]] %s9776_s0 }
 0x439   : > { %v9695_v28 = vsel %vm1493_vm2, %v11714_v42, %v4139_v10  ;;  %v4404_v36 = vrot.slane %v9562_v12, 1  ;;  %v11711_v30 = vrot.slane %v9564_v16, 1  ;;  %s9784_s18 = sld [smem:[#allocation6 + $0x85]]  ;;  %v2727_v52 = vsel %vm1493_vm2, 0.0, %v2722_v37 }
 0x43a   : > { %6476 = vmatmul.mubr.msk.bf16.vlgmr.msra.gmra.mxu0 %vm493_vm0, %v3805_v59  ;;  %v9721_v51 = vsel %vm1493_vm2, %v11712_v57, %v4375_v15  ;;  %12640 = sst [smem:[#allocation99_spill]] %s9778_s4  ;;  %v2735_v55 = vstv %s9677_s2  ;;  %v2741_v47 = vstv %s9660_s11  ;;  %v2747_v50 = vstv %s9669_s15 }
 0x43b   : > { %6482 = vmatmul.mubr.msk.bf16.vlgmr.msra.gmra.mxu1 %vm493_vm0, %v3805_v59  ;;  %6486 = vmatpush3.bf16.msra.mxu0 %v9375_v53  ;;  %v9685_v59 = vsel %vm1596_vm3, %v3932_v3, %v11715_v43  ;;  %v9738_v35 = vsel %vm1596_vm3, %v4404_v36, %v11711_v30  ;;  %12641 = sst [smem:[#allocation100_spill]] %s9780_s3  ;;  %v9872_v37 = vmul.f32 %v2735_v55, %v2727_v52  ;;  %v2765_v2 = vstv %s9688_s30 }
 0x43c   : > { %6492 = vmatpush3.bf16.msra.mxu1 %v9381_v44  ;;  %6487 = vmatprep.mubr.msk.bf16.mxu0 %vm7058_vm1, %v12594_v29  ;;  %12642 = sst [smem:[#allocation101_spill]] %s9782_s8  ;;  %v9882_v3 = vmul.f32 %v2735_v55, %v9527_v6  ;;  %v2963_v10 = vsel %vm1493_vm2, 0.0, %v2958_v24  ;;  %v2971_v15 = vstv %s9697_s14  ;;  %v9892_v36 = vmul.f32 %v2741_v47, %v9337_v46 }
 0x43d   : > { %6493 = vmatprep.mubr.msk.bf16.mxu1 %vm7058_vm1, %v12594_v29  ;;  %6497 = vmatprep.subr.bf16.mxu0 %v12594_v29  ;;  %s9786_s5 = sld [smem:[#allocation6 + $0x40]]  ;;  %v9904_v24 = vmul.f32 %v2747_v50, %v9321_v39  ;;  %v9920_v57 = vmul.f32 %v2971_v15, %v2963_v10  ;;  %v3219_v42 = vstv %s9725_s13  ;;  %v9946_v43 = vmul.f32 %v2971_v15, %v9577_v40 }
 0x43e   : > { %6503 = vmatprep.subr.bf16.mxu1 %v12594_v29  ;;  %12646 = sst [smem:[#allocation113_spill]] %s9790_s21  ;;  %v3201_v21 = vstv %s9714_s25  ;;  %v3207_v15 = vstv %s9716_s28  ;;  %v3231_v61 = vstv %s9727_s22 }
 0x43f   : > { %12643 = sst [smem:[#allocation102_spill]] %s9784_s18 }
 0x440   : > { %s9792_s12 = sld [smem:[#allocation6 + $0x8b]] }
 0x441   : > { %s9794_s7 = sld [smem:[#allocation6 + $0x46]] }
 0x442   : > { %6488 = vmatmul.mubr.msk.bf16.vlgmr.msra.gmra.mxu0 %vm493_vm0, %v4041_v48  ;;  %s9796_s16 = sld [smem:[#allocation6 + $0x8e]] }
 0x443   : > { %6494 = vmatmul.mubr.msk.bf16.vlgmr.msra.gmra.mxu1 %vm493_vm0, %v4041_v48  ;;  %6498 = vmatpush3.bf16.msra.mxu0 %v9375_v53  ;;  %v9644_v53 = vsel %vm1493_vm2, %v11718_v4, %v3667_v14  ;;  %v9711_v48 = vsel %vm1596_vm3, %v4168_v5, %v11713_v13  ;;  %12644 = sst [smem:[#allocation103_spill]] %s9786_s5  ;;  %v2757_v14 = vsel %vm1596_vm3, %v2753_v33, 0.0  ;;  %v2965_v5 = vstv %s9690_s27 }
 0x444   : > { %6504 = vmatpush3.bf16.msra.mxu1 %v9381_v44  ;;  %6499 = vmatprep.mubr.msk.bf16.mxu0 %vm7058_vm1, %v12594_v29  ;;  %v3696_v44 = vrot.slane %v9480_v26, 1  ;;  %s9798_s0 = sld [smem:[#allocation6]]  ;;  %v9895_v33 = vmul.f32 %v2747_v50, %v9337_v46  ;;  %v9912_v46 = vmul.f32 %v2765_v2, %v9560_v8  ;;  %v9918_v30 = vmul.f32 %v2965_v5, %v2963_v10 }
 0x445   : > { %6505 = vmatprep.mubr.msk.bf16.mxu1 %vm7058_vm1, %v12594_v29  ;;  %6509 = vmatprep.subr.bf16.mxu0 %v12594_v29  ;;  %s9800_s4 = sld [smem:[#allocation6 + $0x48]]  ;;  %v3001_v10 = vstv %s9706_s19  ;;  %v3213_v13 = vstv %s9723_s29 }
 0x446   : > { %6515 = vmatprep.subr.bf16.mxu1 %v12594_v29  ;;  %v9655_v49 = vsel %vm1596_vm3, %v3696_v44, %v11717_v19  ;;  %12647 = sst [smem:[#allocation114_spill]] %s9792_s12  ;;  %v2759_v44 = vstv %s9680_s23  ;;  %v9974_v4 = vmul.f32 %v3213_v13, %v9386_v45 }
 0x447   : > { %12648 = sst [smem:[#allocation115_spill]] %s9794_s7  ;;  %v9909_v55 = vmul.f32 %v2759_v44, %v2757_v14 }
 0x448   : > { %12649 = sst [smem:[#allocation116_spill]] %s9796_s16  ;;  %12690 = vst [vmem:[#allocation130_spill] sm:$0xff] %v9974_v4  ;;  %v10008_v4 = vmul.f32 %v3219_v42, %v9344_v34 }
 0x449   : > { %s9802_s3 = sld [smem:[#allocation6 + $0x3]] }
 0x44a   : > { %6500 = vmatmul.mubr.msk.bf16.vlgmr.msra.gmra.mxu0 %vm493_vm0, %v4277_v41  ;;  %12650 = sst [smem:[#allocation117_spill]] %s9798_s0 }
 0x44b   : > { %6506 = vmatmul.mubr.msk.bf16.vlgmr.msra.gmra.mxu1 %vm493_vm0, %v4277_v41  ;;  %6511 = vmatprep.mubr.msk.bf16.mxu0 %vm7058_vm1, %v12594_v29  ;;  %12651 = sst [smem:[#allocation118_spill]] %s9800_s4  ;;  %v2729_v41 = vstv %s9673_s20 }
 0x44c   : > { %6517 = vmatprep.mubr.msk.bf16.mxu1 %vm7058_vm1, %v12594_v29  ;;  %s9804_s8 = sld [smem:[#allocation6 + $0x4b]]  ;;  %v9863_v22 = vmul.f32 %v2729_v41, %v2727_v52  ;;  %v9866_v1 = vmul.f32 %v2729_v41, %v9527_v6  ;;  %v9898_v52 = vmul.f32 %v2741_v47, %v9321_v39  ;;  %v2977_v6 = vstv %s9671_s10 }
 0x44d   : > { %s9806_s18 = sld [smem:[#allocation6 + $0x2]]  ;;  %v9907_v41 = vmul.f32 %v2759_v44, %v9560_v8  ;;  %v9916_v47 = vmul.f32 %v2765_v2, %v2757_v14  ;;  %v2983_v39 = vstv %s9699_s24  ;;  %v9926_v50 = vmul.f32 %v2977_v6, %v9355_v62 }
 0x44e   : > { %s9808_s5 = sld [smem:[#allocation6 + $0x4a]]  ;;  %v9929_v44 = vmul.f32 %v2977_v6, %v9339_v54  ;;  %v2993_v8 = vsel %vm1596_vm3, %v2989_v56, 0.0  ;;  %v2995_v14 = vstv %s9703_s26  ;;  %v9938_v2 = vmul.f32 %v2965_v5, %v9577_v40 }
 0x44f   : > { %12652 = sst [smem:[#allocation119_spill]] %s9802_s3  ;;  %v9949_v6 = vmul.f32 %v2983_v39, %v9355_v62  ;;  %v3199_v56 = vsel %vm1493_vm2, 0.0, %v3194_v25  ;;  %v9958_v5 = vmul.f32 %v2983_v39, %v9339_v54  ;;  %v9961_v19 = vmul.f32 %v2995_v14, %v9591_v31 }
 0x450   : > { %s9810_s9 = sld [smem:[#allocation6 + $0x5]]  ;;  %v9963_v40 = vmul.f32 %v2995_v14, %v2993_v8  ;;  %v9969_v62 = vmul.f32 %v3001_v10, %v9591_v31  ;;  %v9971_v25 = vmul.f32 %v3001_v10, %v2993_v8  ;;  %v9977_v54 = vmul.f32 %v3219_v42, %v9386_v45 }
 0x451   : > { %s9812_s21 = sld [smem:[#allocation6 + $0x4d]]  ;;  %v9981_v39 = vmul.f32 %v3201_v21, %v3199_v56  ;;  %v3229_v14 = vsel %vm1596_vm3, %v3225_v60, 0.0  ;;  %v3237_v31 = vstv %s9731_s6  ;;  %v9991_v8 = vmul.f32 %v3201_v21, %v9597_v63 }
 0x452   : > { %12653 = sst [smem:[#allocation105_spill]] %s9804_s8  ;;  %12691 = vst [vmem:[#allocation132_spill] sm:$0xff] %v9977_v54  ;;  %v9993_v10 = vmul.f32 %v3207_v15, %v3199_v56  ;;  %v3435_v45 = vsel %vm1493_vm2, 0.0, %v3430_v9  ;;  %v3437_v29 = vstv %s9733_s17  ;;  %v10002_v60 = vmul.f32 %v3207_v15, %v9597_v63 }
 0x453   : > { %12654 = sst [smem:[#allocation106_spill]] %s9806_s18  ;;  %12695 = vst [vmem:[#allocation134_spill] sm:$0xff] %v9991_v8  ;;  %v10005_v54 = vmul.f32 %v3213_v13, %v9344_v34  ;;  %v3443_v21 = vstv %s9740_s1  ;;  %v10014_v56 = vmul.f32 %v3231_v61, %v9615_v58  ;;  %v10016_v9 = vmul.f32 %v3231_v61, %v3229_v14 }
 0x454   : > { %12655 = sst [smem:[#allocation107_spill]] %s9808_s5  ;;  %v10019_v8 = vmul.f32 %v3237_v31, %v9615_v58  ;;  %v10024_v34 = vmul.f32 %v3237_v31, %v3229_v14  ;;  %v10028_v42 = vmul.f32 %v3437_v29, %v3435_v45  ;;  %v10031_v13 = vmul.f32 %v3437_v29, %v9621_v7 }
 0x455   : > { %s9814_s12 = sld [smem:[#allocation6 + $0x6]]  ;;  %12700 = vst [vmem:[#allocation136_spill] sm:$0xff] %v10014_v56  ;;  %12702 = vst [vmem:[#allocation138_spill] sm:$0xff] %v10016_v9  ;;  %v10034_v15 = vmul.f32 %v3443_v21, %v3435_v45  ;;  %v10037_v58 = vmul.f32 %v3443_v21, %v9621_v7  ;;  %v12714_v9 = vrot.slane %v9415_v17, 1  ;;  %v12722_v21 = vrot.slane %v9480_v26, 7 }
 0x456   : > { %12656 = sst [smem:[#allocation108_spill]] %s9810_s9  ;;  %12703 = vst [vmem:[#allocation140_spill] sm:$0xff] %v10019_v8  ;;  %12707 = vst [vmem:[#allocation142_spill] sm:$0xff] %v10024_v34 }
 0x457   : > { %12657 = sst [smem:[#allocation109_spill]] %s9812_s21  ;;  %12709 = vst [vmem:[#allocation144_spill] sm:$0xff] %v10028_v42  ;;  %12710 = vst [vmem:[#allocation146_spill] sm:$0xff] %v10031_v13  ;;  %v3465_v8 = vsel %vm1596_vm3, %v12714_v9, 0.0  ;;  %v3671_v9 = vsel %vm1493_vm2, 0.0, %v12722_v21 }
 0x458   : > { %s9816_s7 = sld [smem:[#allocation6 + $0x4e]]  ;;  %12712 = vst [vmem:[#allocation148_spill] sm:$0xff] %v10034_v15  ;;  %12713 = vst [vmem:[#allocation150_spill] sm:$0xff] %v10037_v58 }
 0x459   : > { %s9818_s16 = sld [smem:[#allocation6 + $0x8]] }
 0x45a   : > { %s9820_s0 = sld [smem:[#allocation6 + $0x50]] }
 0x45b   : > { %12658 = sst [smem:[#allocation110_spill]] %s9814_s12 }
 0x45c   : > { %s9822_s4 = sld [smem:[#allocation6 + $0x9]] }
 0x45d   : > { %s9824_s8 = sld [smem:[#allocation6 + $0x51]] }
 0x45e   : > { %12659 = sst [smem:[#allocation111_spill]] %s9816_s7 }
 0x45f   : > { %12660 = sst [smem:[#allocation112_spill]] %s9818_s16 }
 0x460   : > { %12661 = sst [smem:[#allocation120_spill]] %s9820_s0 }
 0x461   : > { %s9826_s18 = sld [smem:[#allocation6 + $0xc]] }
 0x462   : > { %12662 = sst [smem:[#allocation121_spill]] %s9822_s4 }
 0x463   : > { %12663 = sst [smem:[#allocation122_spill]] %s9824_s8 }
 0x464   : > { %s9828_s5 = sld [smem:[#allocation6 + $0x54]] }
 0x465   : > { %s9830_s9 = sld [smem:[#allocation6 + $0xb]] }
 0x466   : > { %s9832_s21 = sld [smem:[#allocation6 + $0x53]] }
 0x467   : > { %12664 = sst [smem:[#allocation123_spill]] %s9826_s18 }
 0x468   : > { %s9834_s12 = sld [smem:[#allocation6 + $0xe]] }
 0x469   : > { %s9836_s7 = sld [smem:[#allocation6 + $0x56]] }
 0x46a   : > { %12665 = sst [smem:[#allocation60_spill]] %s9828_s5 }
 0x46b   : > { %12666 = sst [smem:[#allocation61_spill]] %s9830_s9 }
 0x46c   : > { %12667 = sst [smem:[#allocation63_spill]] %s9832_s21 }
 0x46d   : > { %s9838_s0 = sld [smem:[#allocation6 + $0xf]] }
 0x46e   : > { %12668 = sst [smem:[#allocation64_spill]] %s9834_s12 }
 0x46f   : > { %12669 = sst [smem:[#allocation65_spill]] %s9836_s7 }
 0x470   : > { %s9840_s4 = sld [smem:[#allocation6 + $0x57]] }
 0x471   : > { %s9842_s8 = sld [smem:[#allocation6 + $0x11]] }
 0x472   : > { %s9844_s18 = sld [smem:[#allocation6 + $0x59]] }
 0x473   : > { %12670 = sst [smem:[#allocation67_spill]] %s9838_s0 }
 0x474   : > { %s9846_s16 = sld [smem:[#allocation6 + $0x12]] }
 0x475   : > { %s9848_s9 = sld [smem:[#allocation6 + $0x5a]] }
 0x476   : > { %12671 = sst [smem:[#allocation69_spill]] %s9840_s4 }
 0x477   : > { %12672 = sst [smem:[#allocation42_spill]] %s9842_s8 }
 0x478   : > { %12673 = sst [smem:[#allocation70_spill]] %s9844_s18 }
 0x479   : > { %s9850_s21 = sld [smem:[#allocation6 + $0x15]] }
 0x47a   : > { %12674 = sst [smem:[#allocation72_spill]] %s9846_s16 }
 0x47b   : > { %12675 = sst [smem:[#allocation75_spill]] %s9848_s9 }
 0x47c   : > { %s9856_s0 = sld [smem:[#allocation6 + $0x5d]] }
 0x47d   : > { %s9859_s8 = sld [smem:[#allocation6 + $0x14]] }
 0x47e   : > { %s9861_s18 = sld [smem:[#allocation6 + $0x5c]] }
 0x47f   : > { %12676 = sst [smem:[#allocation77_spill]] %s9850_s21 }
 0x480   : > { %s9870_s21 = sld [smem:[#allocation6 + $0x17]] }
 0x481   : > { %s9879_s20 = sld [smem:[#allocation6 + $0x5f]] }
 0x482   : > { %12677 = sst [smem:[#allocation76_spill]] %s9856_s0 }
 0x483   : > { %12678 = sst [smem:[#allocation78_spill]] %s9859_s8 }
 0x484   : > { %12679 = sst [smem:[#allocation79_spill]] %s9861_s18 }
 0x485   : > { %s9889_s11 = sld [smem:[#allocation6 + $0x18]] }
 0x486   : > { %12680 = sst [smem:[#allocation80_spill]] %s9870_s21 }
 0x487   : > { %12681 = sst [smem:[#allocation45_spill]] %s9879_s20 }
 0x488   : > { %s9901_s15 = sld [smem:[#allocation6 + $0x60]] }
 0x489   : > { %s9914_s2 = sld [smem:[#allocation6 + $0x1a]] }
 0x48a   : > { %s9923_s10 = sld [smem:[#allocation6 + $0x62]] }
 0x48b   : > { %12682 = sst [smem:[#allocation47_spill]] %s9889_s11 }
 0x48c   : > { %s9935_s23 = sld [smem:[#allocation6 + $0x1b]] }
 0x48d   : > { %s9943_s30 = sld [smem:[#allocation6 + $0x63]] }
 0x48e   : > { %12683 = sst [smem:[#allocation48_spill]] %s9901_s15 }
 0x48f   : > { %12684 = sst [smem:[#allocation49_spill]] %s9914_s2 }
 0x490   : > { %12685 = sst [smem:[#allocation50_spill]] %s9923_s10 }
 0x491   : > { %s9955_s27 = sld [smem:[#allocation6 + $0x1e]] }
 0x492   : > { %12686 = sst [smem:[#allocation52_spill]] %s9935_s23 }
 0x493   : > { %12687 = sst [smem:[#allocation53_spill]] %s9943_s30 }
 0x494   : > { %s9966_s14 = sld [smem:[#allocation6 + $0x66]] }
 0x495   : > { %s9979_s24 = sld [smem:[#allocation6 + $0x1d]] }
 0x496   : > { %s12693_s26 = sld [smem:[#allocation81_spill]] }
 0x497   : > { %12688 = sst [smem:[#allocation54_spill]] %s9955_s27 }
 0x498   : > { %s9988_s19 = sld [smem:[#allocation6 + $0x65]] }
 0x499   : > { %s9995_s25 = sld [smem:[#allocation6 + $0x20]] }
 0x49a   : > { %12689 = sst [smem:[#allocation55_spill]] %s9966_s14 }
 0x49b   : > { %12692 = sst [smem:[#allocation56_spill]] %s9979_s24 }
 0x49c   : > { %s12697_s28 = sld [smem:[#allocation82_spill]]  ;;  %v3449_v63 = vstv %s12693_s26 }
 0x49d   : > { %s12698_s29 = sld [smem:[#allocation83_spill]]  ;;  %v10046_v31 = vmul.f32 %v3449_v63, %v9428_v18  ;;  %v10057_v7 = vmul.f32 %v3449_v63, %v9415_v17 }
 0x49e   : > { %12694 = sst [smem:[#allocation57_spill]] %s9988_s19 }
 0x49f   : > { %12696 = sst [smem:[#allocation58_spill]] %s9995_s25  ;;  %12717 = vst [vmem:[#allocation222_spill] sm:$0xff] %v10046_v31  ;;  %12720 = vst [vmem:[#allocation202_spill] sm:$0xff] %v10057_v7 }
 0x4a0   : > { %s10010_s13 = sld [smem:[#allocation6 + $0x68]] }
 0x4a1   : > { %s12701_s22 = sld [smem:[#allocation92_spill]] }
 0x4a2   : > { %s12704_s6 = sld [smem:[#allocation95_spill]]  ;;  %v3455_v61 = vstv %s12697_s28 }
 0x4a3   : > { %s10021_s17 = sld [smem:[#allocation6 + $0x21]]  ;;  %v3467_v14 = vstv %s12698_s29  ;;  %v10054_v15 = vmul.f32 %v3455_v61, %v9428_v18  ;;  %v10066_v58 = vmul.f32 %v3455_v61, %v9415_v17 }
 0x4a4   : > { %s12706_s25 = sld [smem:[#allocation96_spill]]  ;;  %v10069_v42 = vmul.f32 %v3467_v14, %v9637_v32  ;;  %v10071_v18 = vmul.f32 %v3467_v14, %v3465_v8  ;;  %v12738_v14 = vrot.slane %v9469_v20, 1 }
 0x4a5   : > { %s10026_s19 = sld [smem:[#allocation6 + $0x69]]  ;;  %12719 = vst [vmem:[#allocation203_spill] sm:$0xff] %v10054_v15  ;;  %12725 = vst [vmem:[#allocation124_spill] sm:$0xff] %v10066_v58 }
 0x4a6   : > { %12699 = sst [smem:[#allocation59_spill]] %s10010_s13  ;;  %12726 = vst [vmem:[#allocation125_spill] sm:$0xff] %v10069_v42  ;;  %12727 = vst [vmem:[#allocation126_spill] sm:$0xff] %v10071_v18 }
 0x4a7   : > { %s12711_s1 = sld [smem:[#allocation93_spill]]  ;;  %v3473_v29 = vstv %s12701_s22 }
 0x4a8   : > { %s12715_s26 = sld [smem:[#allocation94_spill]]  ;;  %v3685_v13 = vstv %s12704_s6  ;;  %v10077_v7 = vmul.f32 %v3473_v29, %v9637_v32  ;;  %v10079_v15 = vmul.f32 %v3473_v29, %v3465_v8  ;;  %v3701_v32 = vsel %vm1596_vm3, %v12738_v14, 0.0 }
 0x4a9   : > { %12705 = sst [smem:[#allocation62_spill]] %s10021_s17  ;;  %v10084_v21 = vmul.f32 %v3685_v13, %v9480_v26 }
 0x4aa   : > { %s10043_s17 = sld [smem:[#allocation6 + $0x23]]  ;;  %v3691_v45 = vstv %s12706_s25  ;;  %12730 = vst [vmem:[#allocation127_spill] sm:$0xff] %v10077_v7  ;;  %12731 = vst [vmem:[#allocation128_spill] sm:$0xff] %v10079_v15  ;;  %v10115_v15 = vmul.f32 %v3685_v13, %v9469_v20 }
 0x4ab   : > { %12708 = sst [smem:[#allocation68_spill]] %s10026_s19  ;;  %12733 = vst [vmem:[#allocation129_spill] sm:$0xff] %v10084_v21  ;;  %v10087_v17 = vmul.f32 %v3691_v45, %v9480_v26  ;;  %v12743_v26 = vrot.slane %v9522_v11, 7  ;;  %v10118_v7 = vmul.f32 %v3691_v45, %v9469_v20 }
 0x4ac   : > { %s10049_s19 = sld [smem:[#allocation6 + $0x6b]]  ;;  %12747 = vst [vmem:[#allocation139_spill] sm:$0xff] %v10115_v15 }
 0x4ad   : > { %s10059_s28 = sld [smem:[#allocation6 + $0x24]]  ;;  %v3673_v31 = vstv %s12711_s1  ;;  %12735 = vst [vmem:[#allocation201_spill] sm:$0xff] %v10087_v17  ;;  %v3907_v17 = vsel %vm1493_vm2, 0.0, %v12743_v26  ;;  %12748 = vst [vmem:[#allocation141_spill] sm:$0xff] %v10118_v7 }
 0x4ae   : > { %s12723_s29 = sld [smem:[#allocation84_spill]]  ;;  %v3679_v63 = vstv %s12715_s26  ;;  %v10091_v61 = vmul.f32 %v3673_v31, %v3671_v9  ;;  %v10101_v29 = vmul.f32 %v3673_v31, %v9644_v53 }
 0x4af   : > { %s10073_s25 = sld [smem:[#allocation6 + $0x6c]]  ;;  %v10103_v21 = vmul.f32 %v3679_v63, %v3671_v9  ;;  %v10112_v14 = vmul.f32 %v3679_v63, %v9644_v53 }
 0x4b0   : > { %12716 = sst [smem:[#allocation66_spill]] %s10043_s17  ;;  %12737 = vst [vmem:[#allocation131_spill] sm:$0xff] %v10091_v61  ;;  %12741 = vst [vmem:[#allocation133_spill] sm:$0xff] %v10101_v29 }
 0x4b1   : > { %s12724_s17 = sld [smem:[#allocation85_spill]]  ;;  %12742 = vst [vmem:[#allocation135_spill] sm:$0xff] %v10103_v21  ;;  %12746 = vst [vmem:[#allocation137_spill] sm:$0xff] %v10112_v14 }
 0x4b2   : > { %12718 = sst [smem:[#allocation74_spill]] %s10049_s19 }
 0x4b3   : > { %12721 = sst [smem:[#allocation71_spill]] %s10059_s28 }
 0x4b4   : > { %s12729_s22 = sld [smem:[#allocation86_spill]]  ;;  %v3703_v18 = vstv %s12723_s29 }
 0x4b5   : > { %12728 = sst [smem:[#allocation199_spill]] %s10073_s25  ;;  %v10124_v9 = vmul.f32 %v3703_v18, %v9655_v49  ;;  %v10126_v26 = vmul.f32 %v3703_v18, %v3701_v32 }
 0x4b6   : > { %s10081_s6 = sld [smem:[#allocation6 + $0x27]] }
 0x4b7   : > { %s12734_s1 = sld [smem:[#allocation87_spill]]  ;;  %v3709_v8 = vstv %s12724_s17  ;;  %12751 = vst [vmem:[#allocation143_spill] sm:$0xff] %v10124_v9  ;;  %12753 = vst [vmem:[#allocation145_spill] sm:$0xff] %v10126_v26  ;;  %v12765_v26 = vrot.slane %v9509_v27, 1 }
 0x4b8   : > { %s10089_s28 = sld [smem:[#allocation6 + $0x6f]]  ;;  %v10129_v53 = vmul.f32 %v3709_v8, %v9655_v49  ;;  %v10134_v20 = vmul.f32 %v3709_v8, %v3701_v32 }
 0x4b9   : > { %s12739_s26 = sld [smem:[#allocation88_spill]] }
 0x4ba   : > { %s10098_s25 = sld [smem:[#allocation6 + $0x26]]  ;;  %v3909_v61 = vstv %s12729_s22  ;;  %12755 = vst [vmem:[#allocation147_spill] sm:$0xff] %v10129_v53  ;;  %12758 = vst [vmem:[#allocation149_spill] sm:$0xff] %v10134_v20  ;;  %v3937_v53 = vsel %vm1596_vm3, %v12765_v26, 0.0 }
 0x4bb   : > { %s12749_s17 = sld [smem:[#allocation90_spill]]  ;;  %v10136_v45 = vmul.f32 %v3909_v61, %v3907_v17  ;;  %v10139_v63 = vmul.f32 %v3909_v61, %v9665_v23 }
 0x4bc   : > { %12732 = sst [smem:[#allocation44_spill]] %s10081_s6 }
 0x4bd   : > { %s10109_s6 = sld [smem:[#allocation6 + $0x6e]]  ;;  %v3915_v31 = vstv %s12734_s1  ;;  %12759 = vst [vmem:[#allocation216_spill] sm:$0xff] %v10136_v45  ;;  %12760 = vst [vmem:[#allocation217_spill] sm:$0xff] %v10139_v63 }
 0x4be   : > { %12736 = sst [smem:[#allocation73_spill]] %s10089_s28  ;;  %v10144_v18 = vmul.f32 %v3915_v31, %v3907_v17  ;;  %v10147_v49 = vmul.f32 %v3915_v31, %v9665_v23  ;;  %v12772_v31 = vrot.slane %v9541_v38, 7 }
 0x4bf   : > { %s12744_s28 = sld [smem:[#allocation89_spill]]  ;;  %v3921_v13 = vstv %s12739_s26 }
 0x4c0   : > { %12740 = sst [smem:[#allocation43_spill]] %s10098_s25  ;;  %12763 = vst [vmem:[#allocation218_spill] sm:$0xff] %v10144_v18  ;;  %12764 = vst [vmem:[#allocation219_spill] sm:$0xff] %v10147_v49  ;;  %v10156_v61 = vmul.f32 %v3921_v13, %v9522_v11  ;;  %v10167_v23 = vmul.f32 %v3921_v13, %v9509_v27  ;;  %v4143_v26 = vsel %vm1493_vm2, 0.0, %v12772_v31 }
 0x4c1   : > { %s10121_s29 = sld [smem:[#allocation6 + $0x29]]  ;;  %v3939_v32 = vstv %s12749_s17 }
 0x4c2   : > { %s12752_s25 = sld [smem:[#allocation91_spill]]  ;;  %12768 = vst [vmem:[#allocation220_spill] sm:$0xff] %v10156_v61  ;;  %12771 = vst [vmem:[#allocation223_spill] sm:$0xff] %v10167_v23  ;;  %v10179_v18 = vmul.f32 %v3939_v32, %v9685_v59 }
 0x4c3   : > { %12745 = sst [smem:[#allocation200_spill]] %s10109_s6 }
 0x4c4   : > { %s12754_s22 = sld [smem:[#allocation99_spill]]  ;;  %12777 = vst [vmem:[#allocation205_spill] sm:$0xff] %v10179_v18 }
 0x4c5   : > { %s12756_s6 = sld [smem:[#allocation100_spill]]  ;;  %v3927_v9 = vstv %s12744_s28 }
 0x4c6   : > { %s10132_s19 = sld [smem:[#allocation6 + $0x71]]  ;;  %v10164_v17 = vmul.f32 %v3927_v9, %v9522_v11  ;;  %v10176_v61 = vmul.f32 %v3927_v9, %v9509_v27  ;;  %v10181_v11 = vmul.f32 %v3939_v32, %v3937_v53 }
 0x4c7   : > { %12750 = sst [smem:[#allocation46_spill]] %s10121_s29 }
 0x4c8   : > { %s12761_s1 = sld [smem:[#allocation97_spill]]  ;;  %v3945_v8 = vstv %s12752_s25  ;;  %12770 = vst [vmem:[#allocation221_spill] sm:$0xff] %v10164_v17  ;;  %12775 = vst [vmem:[#allocation204_spill] sm:$0xff] %v10176_v61 }
 0x4c9   : > { %s10142_s29 = sld [smem:[#allocation6 + $0x2a]]  ;;  %12778 = vst [vmem:[#allocation206_spill] sm:$0xff] %v10181_v11  ;;  %v10187_v23 = vmul.f32 %v3945_v8, %v9685_v59  ;;  %v10189_v31 = vmul.f32 %v3945_v8, %v3937_v53  ;;  %v12789_v11 = vrot.slane %v9534_v0, 1 }
 0x4ca   : > { %s12766_s26 = sld [smem:[#allocation98_spill]]  ;;  %v4157_v63 = vstv %s12754_s22 }
 0x4cb   : > { %v4163_v45 = vstv %s12756_s6  ;;  %s10161_s28 = sld [smem:[#allocation6 + $0x2c]]  ;;  %12781 = vst [vmem:[#allocation209_spill] sm:$0xff] %v10187_v23  ;;  %12782 = vst [vmem:[#allocation210_spill] sm:$0xff] %v10189_v31  ;;  %v10192_v17 = vmul.f32 %v4157_v63, %v9541_v38  ;;  %v4173_v59 = vsel %vm1596_vm3, %v12789_v11, 0.0 }
 0x4cc   : > { %12757 = sst [smem:[#allocation51_spill]] %s10132_s19  ;;  %v10195_v27 = vmul.f32 %v4163_v45, %v9541_v38  ;;  %v10226_v11 = vmul.f32 %v4163_v45, %v9534_v0 }
 0x4cd   : > { %s10153_s19 = sld [smem:[#allocation6 + $0x72]]  ;;  %12783 = vst [vmem:[#allocation211_spill] sm:$0xff] %v10192_v17 }
 0x4ce   : > { %s12773_s17 = sld [smem:[#allocation101_spill]]  ;;  %v4145_v49 = vstv %s12761_s1  ;;  %12785 = vst [vmem:[#allocation212_spill] sm:$0xff] %v10195_v27  ;;  %v12794_v27 = vrot.slane %v9562_v12, 7  ;;  %12798 = vst [vmem:[#allocation152_spill] sm:$0xff] %v10226_v11 }
 0x4cf   : > { %12762 = sst [smem:[#allocation81_spill]] %s10142_s29  ;;  %v10199_v9 = vmul.f32 %v4145_v49, %v4143_v26  ;;  %v10202_v32 = vmul.f32 %v4145_v49, %v9695_v28 }
 0x4d0   : > { %s12776_s25 = sld [smem:[#allocation102_spill]]  ;;  %v4151_v13 = vstv %s12766_s26  ;;  %v4379_v17 = vsel %vm1493_vm2, 0.0, %v12794_v27 }
 0x4d1   : > { %12769 = sst [smem:[#allocation83_spill]] %s10161_s28  ;;  %12787 = vst [vmem:[#allocation213_spill] sm:$0xff] %v10199_v9  ;;  %12788 = vst [vmem:[#allocation207_spill] sm:$0xff] %v10202_v32  ;;  %v10210_v8 = vmul.f32 %v4151_v13, %v4143_v26  ;;  %v10220_v49 = vmul.f32 %v4151_v13, %v9695_v28  ;;  %v10223_v32 = vmul.f32 %v4157_v63, %v9534_v0 }
 0x4d2   : > { %s12779_s6 = sld [smem:[#allocation103_spill]] }
 0x4d3   : > { %12767 = sst [smem:[#allocation82_spill]] %s10153_s19  ;;  %12793 = vst [vmem:[#allocation208_spill] sm:$0xff] %v10210_v8  ;;  %12796 = vst [vmem:[#allocation214_spill] sm:$0xff] %v10220_v49 }
 0x4d4   : > { %s10173_s19 = sld [smem:[#allocation6 + $0x74]]  ;;  %v4175_v53 = vstv %s12773_s17  ;;  %12797 = vst [vmem:[#allocation151_spill] sm:$0xff] %v10223_v32 }
 0x4d5   : > { %s10184_s22 = sld [smem:[#allocation6 + $0x30]]  ;;  %v10232_v8 = vmul.f32 %v4175_v53, %v9711_v48  ;;  %v10234_v27 = vmul.f32 %v4175_v53, %v4173_v59 }
 0x4d6   : > { %s12784_s1 = sld [smem:[#allocation104_spill]]  ;;  %v4181_v38 = vstv %s12776_s25 }
 0x4d7   : > { %s12790_s26 = sld [smem:[#allocation113_spill]]  ;;  %12802 = vst [vmem:[#allocation153_spill] sm:$0xff] %v10232_v8  ;;  %12803 = vst [vmem:[#allocation154_spill] sm:$0xff] %v10234_v27  ;;  %v10241_v0 = vmul.f32 %v4181_v38, %v9711_v48  ;;  %v10243_v45 = vmul.f32 %v4181_v38, %v4173_v59  ;;  %v12816_v8 = vrot.slane %v9564_v16, 1 }
 0x4d8   : > { %s10208_s28 = sld [smem:[#allocation6 + $0x75]]  ;;  %v4381_v9 = vstv %s12779_s6 }
 0x4d9   : > { %s12799_s17 = sld [smem:[#allocation115_spill]]  ;;  %12807 = vst [vmem:[#allocation155_spill] sm:$0xff] %v10241_v0  ;;  %12808 = vst [vmem:[#allocation156_spill] sm:$0xff] %v10243_v45  ;;  %v10245_v63 = vmul.f32 %v4381_v9, %v4379_v17  ;;  %v10248_v13 = vmul.f32 %v4381_v9, %v9721_v51  ;;  %v10260_v48 = vsel %vm1596_vm3, %v12816_v8, 0.0 }
 0x4da   : > { %12774 = sst [smem:[#allocation92_spill]] %s10173_s19  ;;  %12817 = vst [vmem:[#allocation171_spill] sm:$0xff] %v10260_v48 }
 0x4db   : > { %12780 = sst [smem:[#allocation95_spill]] %s10184_s22  ;;  %12809 = vst [vmem:[#allocation157_spill] sm:$0xff] %v10245_v63  ;;  %12810 = vst [vmem:[#allocation161_spill] sm:$0xff] %v10248_v13 }
 0x4dc   : > { %s10197_s19 = sld [smem:[#allocation6 + $0x2d]]  ;;  %v4387_v26 = vstv %s12784_s1 }
 0x4dd   : > { %s12791_s22 = sld [smem:[#allocation114_spill]]  ;;  %v4393_v31 = vstv %s12790_s26  ;;  %v10252_v53 = vmul.f32 %v4387_v26, %v4379_v17  ;;  %v10255_v27 = vmul.f32 %v4387_v26, %v9721_v51 }
 0x4de   : > { %12792 = sst [smem:[#allocation93_spill]] %s10208_s28  ;;  %v10267_v9 = vmul.f32 %v4393_v31, %v9562_v12  ;;  %v10278_v38 = vmul.f32 %v4393_v31, %v9564_v16 }
 0x4df   : > { %s10229_s25 = sld [smem:[#allocation6 + $0x2f]]  ;;  %12814 = vst [vmem:[#allocation158_spill] sm:$0xff] %v10252_v53  ;;  %12815 = vst [vmem:[#allocation159_spill] sm:$0xff] %v10255_v27  ;;  %v4411_v59 = vstv %s12799_s17 }
 0x4e0   : > { %s12804_s6 = sld [smem:[#allocation116_spill]]  ;;  %12822 = vst [vmem:[#allocation164_spill] sm:$0xff] %v10267_v9  ;;  %12829 = vst [vmem:[#allocation162_spill] sm:$0xff] %v10278_v38  ;;  %v10288_v8 = vmul.f32 %v4411_v59, %v9738_v35  ;;  %v10291_v26 = vmul.f32 %v4411_v59, %v10260_v48 }
 0x4e1   : > { %s10238_s29 = sld [smem:[#allocation6 + $0x77]] }
 0x4e2   : > { %12786 = sst [smem:[#allocation96_spill]] %s10197_s19  ;;  %12835 = vst [vmem:[#allocation167_spill] sm:$0xff] %v10288_v8  ;;  %12836 = vst [vmem:[#allocation170_spill] sm:$0xff] %v10291_v26 }
 0x4e3   : > { %s10217_s19 = sld [smem:[#allocation6 + $0x78]]  ;;  %v4399_v28 = vstv %s12791_s22 }
 0x4e4   : > { %s10264_s13 = sld [smem:[#allocation6 + $0x7a]]  ;;  %v10270_v17 = vmul.f32 %v4399_v28, %v9562_v12  ;;  %v10281_v27 = vmul.f32 %v4399_v28, %v9564_v16 }
 0x4e5   : > { %12801 = sst [smem:[#allocation84_spill]] %s10229_s25 }
 0x4e6   : > { %s10250_s25 = sld [smem:[#allocation6 + $0x32]]  ;;  %12823 = vst [vmem:[#allocation160_spill] sm:$0xff] %v10270_v17  ;;  %12830 = vst [vmem:[#allocation174_spill] sm:$0xff] %v10281_v27  ;;  %v12840_v28 = vstv %s12804_s6  ;;  %v10387_v17 = vpop.f32.mrf.mxu1 }
 0x4e7   : > { %12806 = sst [smem:[#allocation85_spill]] %s10238_s29  ;;  %v10301_v12 = vmul.f32 %v12840_v28, %v9738_v35  ;;  %v2663_v35 = vpop.f32.mrf.mxu0  ;;  %v2813_v38 = vrot.slane %v10387_v17, 7  ;;  %v2843_v42 = vrot.slane %v10387_v17, 1 }
 0x4e8   : > { %s10275_s17 = sld [smem:[#allocation6 + $0x33]]  ;;  %v6423_v28 = vpop.f32.mrf.mxu1  ;;  %v2702_v32 = vrot.slane %v2663_v35, 1 }
 0x4e9   : > { %12795 = sst [smem:[#allocation94_spill]] %s10217_s19  ;;  %12841 = vst [vmem:[#allocation163_spill] sm:$0xff] %v10301_v12  ;;  %v2672_v12 = vrot.slane %v2663_v35, 7  ;;  %v6417_v16 = vpop.f32.mrf.mxu0  ;;  %v2818_v53 = vsel %vm1493_vm2, 0.0, %v2813_v38 }
 0x4ea   : > { %12820 = sst [smem:[#allocation87_spill]] %s10264_s13  ;;  %v2807_v0 = vpop.f32.mrf.mxu1 }
 0x4eb   : > { %s10285_s10 = sld [smem:[#allocation6 + $0x7b]]  ;;  %v2677_v26 = vsel %vm1493_vm2, 0.0, %v2672_v12  ;;  %v2666_v45 = vpop.f32.mrf.mxu0 }
 0x4ec   : > { %12812 = sst [smem:[#allocation86_spill]] %s10250_s25  ;;  %v2673_v49 = vrot.slane %v2666_v45, 7  ;;  %v2703_v16 = vrot.slane %v2666_v45, 1  ;;  %v6424_v51 = vpop.f32.mrf.mxu1 }
 0x4ed   : > { %s10296_s1 = sld [smem:[#allocation6 + $0x35]]  ;;  %v6418_v28 = vpop.f32.mrf.mxu0 }
 0x4ee   : > { %12827 = sst [smem:[#allocation88_spill]] %s10275_s17  ;;  %v2704_v15 = vsel %vm1596_vm3, %v2702_v32, %v2703_v16  ;;  %v10433_v51 = vpop.f32.mrf.mxu1  ;;  %v2844_v32 = vrot.slane %v2807_v0, 1 }
 0x4ef   : > { %s10307_s22 = sld [smem:[#allocation6 + $0x7d]]  ;;  %v10431_v14 = vpop.f32.mrf.mxu0 }
 0x4f0   : > { %s10313_s6 = sld [smem:[#allocation6 + $0x39]] }
 0x4f1   : > { %12834 = sst [smem:[#allocation89_spill]] %s10285_s10 }
 0x4f2   : > { %s10319_s28 = sld [smem:[#allocation6 + $0x81]] }
 0x4f3   : > { %12839 = sst [smem:[#allocation90_spill]] %s10296_s1 }
 0x4f4   : > { %s10325_s13 = sld [smem:[#allocation6 + $0x36]] }
 0x4f5   : > { %s10331_s7 = sld [smem:[#allocation6 + $0x7e]] }
 0x4f6   : > { %s10337_s17 = sld [smem:[#allocation6 + $0x38]] }
 0x4f7   : > { %s10343_s0 = sld [smem:[#allocation6 + $0x80]] }
 0x4f8   : > { %s12861_s14 = sld [smem:[#allocation71_spill]] }
 0x4f9   : > { %s12862_s8 = sld [smem:[#allocation199_spill]] }
 0x4fa   : > { %s12863_s18 = sld [smem:[#allocation44_spill]] }
 0x4fb   : > { %s12864_s21 = sld [smem:[#allocation73_spill]] }
 0x4fc   : > { %12855 = sst [smem:[#allocation91_spill]] %s10337_s17 }
 0x4fd   : > { %12860 = sst [smem:[#allocation99_spill]] %s10343_s0 }
 0x4fe   : > { %s10349_s20 = sld [smem:[#allocation6 + $0x3b]] }
 0x4ff   : > { %s12868_s15 = sld [smem:[#allocation46_spill]] }
 0x500   : > { %s12869_s2 = sld [smem:[#allocation51_spill]] }
 0x501   : > { %s10355_s30 = sld [smem:[#allocation6 + $0x83]] }
 0x502   : > { %s12871_s29 = sld [smem:[#allocation81_spill]] }
 0x503   : > { %s12872_s5 = sld [smem:[#allocation82_spill]] }
 0x504   : > { %12865 = sst [smem:[#allocation100_spill]] %s10349_s20 }
 0x505   : > { %s10361_s20 = sld [smem:[#allocation6 + $0x3c]] }
 0x506   : > { %s12878_s26 = sld [smem:[#allocation95_spill]] }
 0x507   : > { %12870 = sst [smem:[#allocation97_spill]] %s10355_s30 }
 0x508   : > { %s12879_s4 = sld [smem:[#allocation94_spill]] }
 0x509   : > { %s10367_s0 = sld [smem:[#allocation6 + $0x84]] }
 0x50a   : > { %s12882_s27 = sld [smem:[#allocation86_spill]] }
 0x50b   : > { %12876 = sst [smem:[#allocation98_spill]] %s10361_s20 }
 0x50c   : > { %s12883_s16 = sld [smem:[#allocation87_spill]] }
 0x50d   : > { %s12884_s24 = sld [smem:[#allocation88_spill]] }
 0x50e   : > { %s10373_s9 = sld [smem:[#allocation6 + $0x3e]] }
 0x50f   : > { %s12886_s20 = sld [smem:[#allocation89_spill]] }
 0x510   : > { %s12888_s25 = sld [smem:[#allocation100_spill]] }
 0x511   : > { %s12890_s12 = sld [smem:[#allocation98_spill]] }
 0x512   : > { %s12891_s23 = sld [smem:[#allocation117_spill]] }
 0x513   : > { %s12892_s3 = sld [smem:[#allocation118_spill]] }
 0x514   : > { %12885 = sst [smem:[#allocation101_spill]] %s10373_s9 }
 0x515   : > { %s12893_s30 = sld [smem:[#allocation119_spill]] }
 0x516   : > { %s12894_s10 = sld [smem:[#allocation105_spill]] }
 0x517   : > { %s12895_s1 = sld [smem:[#allocation108_spill]] }
 0x518   : > { %v12896_v31 = vstv %s12891_s23  ;;  %s12901_s11 = sld [smem:[#allocation110_spill]]  ;;  %v12905_v61 = vstv %s12891_s23 }
 0x519   : > { %v2680_v63 = vmul.f32 %v12896_v31, %v2677_v26  ;;  %v12897_v27 = vstv %s12892_s3  ;;  %s12903_s17 = sld [smem:[#allocation111_spill]]  ;;  %v12906_v7 = vstv %s12892_s3 }
 0x51a   : > { %v2686_v48 = vmul.f32 %v12897_v27, %v2677_v26  ;;  %s12907_s9 = sld [smem:[#allocation109_spill]] }
 0x51b   : > { %v12898_v59 = vstv %s12893_s30  ;;  %s12908_s30 = sld [smem:[#allocation106_spill]] }
 0x51c   : > { %v2692_v8 = vmul.f32 %v12898_v59, %v2663_v35  ;;  %v12899_v13 = vstv %s12894_s10  ;;  %v12902_v27 = vmov %v12898_v59  ;;  %s12910_s19 = sld [smem:[#allocation107_spill]] }
 0x51d   : > { %v2698_v11 = vmul.f32 %v12899_v13, %v2663_v35  ;;  %v12900_v9 = vstv %s12895_s1  ;;  %v2693_v26 = vmul.f32 %v12902_v27, %v2666_v45  ;;  %v2674_v13 = vsel %vm1493_vm2, %v2672_v12, %v2673_v49  ;;  %s12918_s3 = sld [smem:[#allocation112_spill]] }
 0x51e   : > { %v10418_v31 = vmul.f32 %v12900_v9, %v10387_v17  ;;  %v2694_v23 = vadd.f32 %v2692_v8, %v2680_v63  ;;  %v12904_v35 = vstv %s12894_s10  ;;  %v2681_v20 = vmul.f32 %v12905_v61, %v2674_v13  ;;  %s12926_s10 = sld [smem:[#allocation60_spill]] }
 0x51f   : > { %v2700_v59 = vadd.f32 %v2698_v11, %v2686_v48  ;;  %v2699_v18 = vmul.f32 %v12904_v35, %v2666_v45  ;;  %v2687_v9 = vmul.f32 %v12906_v7, %v2674_v13  ;;  %v2707_v27 = vsel %vm1596_vm3, %v2703_v16, 0.0  ;;  %v6429_v16 = vpop.f32.mrf.mxu0  ;;  %v6435_v35 = vpop.f32.mrf.mxu1  ;;  %s12928_s23 = sld [smem:[#allocation121_spill]] }
 0x520   : > { %v12909_v63 = vstv %s12901_s11  ;;  %v12912_v45 = vstv %s12903_s17  ;;  %v2814_v61 = vrot.slane %v2807_v0, 7  ;;  %v2695_v12 = vadd.f32 %v2693_v26, %v2681_v20  ;;  %s12919_s11 = sld [smem:[#allocation120_spill]] }
 0x521   : > { %v2710_v11 = vmul.f32 %v12909_v63, %v2704_v15  ;;  %v12911_v49 = vmov %v12909_v63  ;;  %v2716_v8 = vmul.f32 %v12912_v45, %v2704_v15  ;;  %v2701_v28 = vadd.f32 %v2699_v18, %v2687_v9  ;;  %v10451_v18 = vpop.f32.mrf.mxu0  ;;  %v10453_v26 = vpop.f32.mrf.mxu1  ;;  %s12937_s17 = sld [smem:[#allocation64_spill]] }
 0x522   : > { %v2711_v48 = vmul.f32 %v12911_v49, %v2707_v27  ;;  %v12913_v7 = vmov %v12912_v45  ;;  %v12914_v29 = vstv %s12907_s9  ;;  %v12915_v34 = vstv %s12908_s30 }
 0x523   : > { %v2717_v13 = vmul.f32 %v12913_v7, %v2707_v27  ;;  %v2839_v21 = vmul.f32 %v12914_v29, %v10387_v17  ;;  %v2712_v58 = vadd.f32 %v2710_v11, %v2694_v23  ;;  %v2718_v63 = vadd.f32 %v2716_v8, %v2700_v59  ;;  %v6430_v11 = vpop.f32.mrf.mxu0 }
 0x524   : > { %v2821_v49 = vmul.f32 %v12915_v34, %v2818_v53  ;;  %v12916_v56 = vstv %s12910_s19  ;;  %v2713_v45 = vadd.f32 %v2711_v48, %v2695_v12  ;;  %v2815_v23 = vsel %vm1493_vm2, %v2813_v38, %v2814_v61 }
 0x525   : > { %v2827_v15 = vmul.f32 %v12916_v56, %v2818_v53  ;;  %v2719_v20 = vadd.f32 %v2717_v13, %v2701_v28  ;;  %v2732_v9 = vadd.f32 %v9863_v22, %v2712_v58  ;;  %v2738_v29 = vadd.f32 %v9872_v37, %v2718_v63  ;;  %v6436_v22 = vpop.f32.mrf.mxu1  ;;  %v10475_v7 = vpop.f32.mrf.mxu0 }
 0x526   : > { %v12917_v17 = vstv %s12895_s1  ;;  %v2733_v34 = vadd.f32 %v9866_v1, %v2713_v45  ;;  %v2845_v53 = vsel %vm1596_vm3, %v2843_v42, %v2844_v32  ;;  %v2848_v27 = vsel %vm1596_vm3, %v2844_v32, 0.0  ;;  %s12936_s1 = sld [smem:[#allocation61_spill]] }
 0x527   : > { %v2834_v59 = vmul.f32 %v12917_v17, %v2807_v0  ;;  %v2739_v56 = vadd.f32 %v9882_v3, %v2719_v20  ;;  %v2744_v58 = vadd.f32 %v9892_v36, %v2732_v9  ;;  %v2750_v37 = vadd.f32 %v9895_v33, %v2738_v29  ;;  %v10477_v13 = vpop.f32.mrf.mxu1  ;;  %v6441_v9 = vpop.f32.mrf.mxu0 }
 0x528   : > { %v12920_v38 = vstv %s12907_s9  ;;  %v2908_v8 = vrot.slane %v10431_v14, 7  ;;  %v2745_v1 = vadd.f32 %v9898_v52, %v2733_v34  ;;  %v12921_v61 = vstv %s12908_s30  ;;  %s12925_s9 = sld [smem:[#allocation123_spill]] }
 0x529   : > { %v2840_v48 = vmul.f32 %v12920_v38, %v2807_v0  ;;  %v2751_v3 = vadd.f32 %v9904_v24, %v2739_v56  ;;  %v2822_v42 = vmul.f32 %v12921_v61, %v2815_v23  ;;  %v12922_v12 = vstv %s12910_s19  ;;  %v6447_v29 = vpop.f32.mrf.mxu1  ;;  %s12930_s19 = sld [smem:[#allocation122_spill]] }
 0x52a   : > { %v2828_v28 = vmul.f32 %v12922_v12, %v2815_v23  ;;  %v12923_v36 = vstv %s12918_s3  ;;  %v2762_v16 = vadd.f32 %v9907_v41, %v2744_v58  ;;  %v2768_v52 = vadd.f32 %v9912_v46, %v2750_v37  ;;  %v10499_v58 = vpop.f32.mrf.mxu0  ;;  %s12938_s30 = sld [smem:[#allocation67_spill]] }
 0x52b   : > { %v2851_v32 = vmul.f32 %v12923_v36, %v2845_v53  ;;  %v12924_v33 = vmov %v12923_v36  ;;  %v2763_v24 = vadd.f32 %v9909_v55, %v2745_v1  ;;  %v2769_v35 = vadd.f32 %v9916_v47, %v2751_v3  ;;  %v10501_v37 = vpop.f32.mrf.mxu1  ;;  %s12940_s3 = sld [smem:[#allocation69_spill]] }
 0x52c   : > { %v2852_v0 = vmul.f32 %v12924_v33, %v2848_v27  ;;  %v12927_v63 = vstv %s12919_s11  ;;  %v2913_v20 = vsel %vm1493_vm2, 0.0, %v2908_v8  ;;  %v2823_v34 = vadd.f32 %v2821_v49, %v2762_v16  ;;  %v6442_v36 = vpop.f32.mrf.mxu0  ;;  %s12945_s11 = sld [smem:[#allocation63_spill]] }
 0x52d   : > { %v2857_v45 = vmul.f32 %v12927_v63, %v2845_v53  ;;  %v12929_v23 = vmov %v12927_v63  ;;  %v2829_v56 = vadd.f32 %v2827_v15, %v2768_v52  ;;  %v3049_v41 = vrot.slane %v10433_v51, 7  ;;  %v6448_v33 = vpop.f32.mrf.mxu1 }
 0x52e   : > { %v2858_v17 = vmul.f32 %v12929_v23, %v2848_v27  ;;  %v2824_v11 = vadd.f32 %v2822_v42, %v2763_v24  ;;  %v2830_v46 = vadd.f32 %v2828_v28, %v2769_v35  ;;  %v12931_v55 = vstv %s12925_s9  ;;  %v10516_v63 = vpop.f32.mrf.mxu0  ;;  %s12947_s9 = sld [smem:[#allocation65_spill]] }
 0x52f   : > { %v2928_v22 = vmul.f32 %v12931_v55, %v10431_v14  ;;  %v12932_v47 = vstv %s12926_s10  ;;  %v2835_v38 = vadd.f32 %v10418_v31, %v2823_v34  ;;  %v2841_v27 = vadd.f32 %v2839_v21, %v2829_v56  ;;  %s12954_s10 = sld [smem:[#allocation77_spill]] }
 0x530   : > { %v2934_v53 = vmul.f32 %v12932_v47, %v10431_v14  ;;  %v12933_v1 = vstv %s12928_s23  ;;  %v2938_v15 = vrot.slane %v10431_v14, 1  ;;  %v2836_v3 = vadd.f32 %v2834_v59, %v2824_v11  ;;  %s12956_s23 = sld [smem:[#allocation42_spill]] }
 0x531   : > { %v2916_v49 = vmul.f32 %v12933_v1, %v2913_v20  ;;  %v2842_v61 = vadd.f32 %v2840_v48, %v2830_v46  ;;  %v12934_v42 = vstv %s12930_s19  ;;  %v2909_v28 = vrot.slane %v10451_v18, 7  ;;  %v6453_v46 = vpop.f32.mrf.mxu0  ;;  %s12957_s19 = sld [smem:[#allocation70_spill]] }
 0x532   : > { %v2922_v12 = vmul.f32 %v12934_v42, %v2913_v20  ;;  %v2853_v16 = vadd.f32 %v2851_v32, %v2835_v38  ;;  %v2859_v52 = vadd.f32 %v2857_v45, %v2841_v27  ;;  %v3054_v21 = vsel %vm1493_vm2, 0.0, %v3049_v41  ;;  %v10518_v20 = vpop.f32.mrf.mxu1 }
 0x533   : > { %v2939_v31 = vrot.slane %v10451_v18, 1  ;;  %v2854_v24 = vadd.f32 %v2852_v0, %v2836_v3  ;;  %v2860_v35 = vadd.f32 %v2858_v17, %v2842_v61  ;;  %v2910_v14 = vsel %vm1493_vm2, %v2908_v8, %v2909_v28  ;;  %v10539_v36 = vpop.f32.mrf.mxu0 }
 0x534   : > { %v12935_v59 = vmov %v12931_v55  ;;  %v2918_v9 = vadd.f32 %v2916_v49, %v2853_v16  ;;  %v2924_v32 = vadd.f32 %v2922_v12, %v2859_v52  ;;  %v12939_v45 = vmov %v12933_v1  ;;  %v6459_v55 = vpop.f32.mrf.mxu1 }
 0x535   : > { %v2929_v48 = vmul.f32 %v12935_v59, %v10451_v18  ;;  %v2917_v29 = vmul.f32 %v12939_v45, %v2910_v14  ;;  %v12941_v23 = vmov %v12934_v42  ;;  %v12942_v17 = vmov %v12932_v47 }
 0x536   : > { %v2923_v0 = vmul.f32 %v12941_v23, %v2910_v14  ;;  %v2935_v8 = vmul.f32 %v12942_v17, %v10451_v18  ;;  %v2940_v34 = vsel %vm1596_vm3, %v2938_v15, %v2939_v31  ;;  %v2943_v56 = vsel %vm1596_vm3, %v2939_v31, 0.0  ;;  %v10541_v33 = vpop.f32.mrf.mxu1 }
 0x537   : > { %v3050_v11 = vrot.slane %v10453_v26, 7  ;;  %v2930_v47 = vadd.f32 %v2928_v22, %v2918_v9  ;;  %v2936_v38 = vadd.f32 %v2934_v53, %v2924_v32  ;;  %v2919_v27 = vadd.f32 %v2917_v29, %v2854_v24  ;;  %v6454_v32 = vpop.f32.mrf.mxu0 }
 0x538   : > { %v2925_v1 = vadd.f32 %v2923_v0, %v2860_v35  ;;  %v12943_v49 = vstv %s12936_s1  ;;  %v12944_v61 = vstv %s12937_s17  ;;  %v12946_v42 = vstv %s12938_s30  ;;  %v6460_v45 = vpop.f32.mrf.mxu1  ;;  %s12961_s1 = sld [smem:[#allocation72_spill]] }
 0x539   : > { %v3057_v3 = vmul.f32 %v12943_v49, %v3054_v21  ;;  %v3069_v18 = vmul.f32 %v12944_v61, %v10433_v51  ;;  %v2946_v15 = vmul.f32 %v12946_v42, %v2940_v34  ;;  %v12948_v12 = vstv %s12940_s3  ;;  %s12962_s17 = sld [smem:[#allocation76_spill]] }
 0x53a   : > { %v2952_v28 = vmul.f32 %v12948_v12, %v2940_v34  ;;  %v2931_v16 = vadd.f32 %v2929_v48, %v2919_v27  ;;  %v2937_v22 = vadd.f32 %v2935_v8, %v2925_v1  ;;  %v12949_v53 = vmov %v12946_v42  ;;  %v10560_v55 = vpop.f32.mrf.mxu1  ;;  %s12963_s30 = sld [smem:[#allocation75_spill]] }
 0x53b   : > { %v2947_v52 = vmul.f32 %v12949_v53, %v2943_v56  ;;  %v12950_v31 = vmov %v12948_v12  ;;  %v2948_v35 = vadd.f32 %v2946_v15, %v2930_v47  ;;  %v3051_v59 = vsel %vm1493_vm2, %v3049_v41, %v3050_v11  ;;  %v10558_v11 = vpop.f32.mrf.mxu0  ;;  %s12968_s3 = sld [smem:[#allocation80_spill]] }
 0x53c   : > { %v2953_v24 = vmul.f32 %v12950_v31, %v2943_v56  ;;  %v2954_v14 = vadd.f32 %v2952_v28, %v2936_v38  ;;  %v3080_v9 = vrot.slane %v10453_v26, 1  ;;  %v12951_v29 = vstv %s12945_s11  ;;  %s12975_s11 = sld [smem:[#allocation45_spill]] }
 0x53d   : > { %v3063_v23 = vmul.f32 %v12951_v29, %v3054_v21  ;;  %v12952_v0 = vstv %s12947_s9  ;;  %v2949_v17 = vadd.f32 %v2947_v52, %v2931_v16  ;;  %v3079_v34 = vrot.slane %v10433_v51, 1  ;;  %v6465_v42 = vpop.f32.mrf.mxu0  ;;  %s12977_s9 = sld [smem:[#allocation47_spill]] }
 0x53e   : > { %v3075_v48 = vmul.f32 %v12952_v0, %v10433_v51  ;;  %v2955_v8 = vadd.f32 %v2953_v24, %v2937_v22  ;;  %v2968_v56 = vadd.f32 %v9918_v30, %v2948_v35  ;;  %v2974_v46 = vadd.f32 %v9920_v57, %v2954_v14 }
 0x53f   : > { %v3144_v41 = vrot.slane %v10475_v7, 7  ;;  %v2969_v21 = vadd.f32 %v9938_v2, %v2949_v17  ;;  %v12953_v38 = vmov %v12943_v49  ;;  %v12955_v51 = vmov %v12944_v61  ;;  %v6471_v2 = vpop.f32.mrf.mxu1  ;;  %v10586_v24 = vpop.f32.mrf.mxu0 }
 0x540   : > { %v2975_v47 = vadd.f32 %v9946_v43, %v2955_v8  ;;  %v3058_v27 = vmul.f32 %v12953_v38, %v3051_v59  ;;  %v3070_v30 = vmul.f32 %v12955_v51, %v10453_v26  ;;  %v2980_v57 = vadd.f32 %v9926_v50, %v2968_v56 }
 0x541   : > { %v2986_v1 = vadd.f32 %v9949_v6, %v2974_v46  ;;  %v3081_v49 = vsel %vm1596_vm3, %v3079_v34, %v3080_v9  ;;  %v3084_v61 = vsel %vm1596_vm3, %v3080_v9, 0.0  ;;  %v2981_v43 = vadd.f32 %v9929_v44, %v2969_v21  ;;  %v10588_v44 = vpop.f32.mrf.mxu1  ;;  %v6466_v17 = vpop.f32.mrf.mxu0 }
 0x542   : > { %v2987_v15 = vadd.f32 %v9958_v5, %v2975_v47  ;;  %v12958_v12 = vmov %v12951_v29  ;;  %v12959_v50 = vmov %v12952_v0  ;;  %v2998_v6 = vadd.f32 %v9961_v19, %v2980_v57 }
 0x543   : > { %v3064_v28 = vmul.f32 %v12958_v12, %v3051_v59  ;;  %v3076_v16 = vmul.f32 %v12959_v50, %v10453_v26  ;;  %v3004_v22 = vadd.f32 %v9969_v62, %v2986_v1  ;;  %v3149_v53 = vsel %vm1493_vm2, 0.0, %v3144_v41  ;;  %v6472_v8 = vpop.f32.mrf.mxu1 }
 0x544   : > { %v12960_v52 = vstv %s12954_s10  ;;  %v2999_v5 = vadd.f32 %v9963_v40, %v2981_v43  ;;  %v3005_v26 = vadd.f32 %v9971_v25, %v2987_v15  ;;  %v12964_v35 = vstv %s12956_s23  ;;  %s12978_s23 = sld [smem:[#allocation48_spill]] }
 0x545   : > { %v3164_v31 = vmul.f32 %v12960_v52, %v10475_v7  ;;  %v3087_v19 = vmul.f32 %v12964_v35, %v3081_v49  ;;  %v12965_v14 = vmov %v12964_v35  ;;  %v12966_v59 = vstv %s12957_s19  ;;  %s12980_s10 = sld [smem:[#allocation78_spill]] }
 0x546   : > { %v3088_v62 = vmul.f32 %v12965_v14, %v3084_v61  ;;  %v3093_v9 = vmul.f32 %v12966_v59, %v3081_v49  ;;  %v12967_v32 = vmov %v12966_v59  ;;  %v3059_v29 = vadd.f32 %v3057_v3, %v2998_v6  ;;  %v10608_v49 = vpop.f32.mrf.mxu0  ;;  %v10610_v3 = vpop.f32.mrf.mxu1  ;;  %s12984_s19 = sld [smem:[#allocation79_spill]] }
 0x547   : > { %v3094_v45 = vmul.f32 %v12967_v32, %v3084_v61  ;;  %v3065_v0 = vadd.f32 %v3063_v23, %v3004_v22  ;;  %v3060_v34 = vadd.f32 %v3058_v27, %v2999_v5  ;;  %v3066_v56 = vadd.f32 %v3064_v28, %v3005_v26 }
 0x548   : > { %v12969_v46 = vstv %s12961_s1  ;;  %v12970_v21 = vstv %s12962_s17  ;;  %v3071_v47 = vadd.f32 %v3069_v18, %v3059_v29  ;;  %v12971_v51 = vstv %s12963_s30  ;;  %v6477_v15 = vpop.f32.mrf.mxu0  ;;  %v6483_v12 = vpop.f32.mrf.mxu1  ;;  %s12992_s1 = sld [smem:[#allocation54_spill]] }
 0x549   : > { %v3152_v40 = vmul.f32 %v12969_v46, %v3149_v53  ;;  %v3170_v25 = vmul.f32 %v12970_v21, %v10475_v7  ;;  %v3077_v38 = vadd.f32 %v3075_v48, %v3065_v0  ;;  %v3158_v57 = vmul.f32 %v12971_v51, %v3149_v53  ;;  %s12995_s17 = sld [smem:[#allocation49_spill]] }
 0x54a   : > { %v3174_v1 = vrot.slane %v10475_v7, 1  ;;  %v3072_v23 = vadd.f32 %v3070_v30, %v3060_v34  ;;  %v3078_v27 = vadd.f32 %v3076_v16, %v3066_v56  ;;  %v3285_v61 = vrot.slane %v10477_v13, 7  ;;  %v10630_v14 = vpop.f32.mrf.mxu1  ;;  %s12996_s30 = sld [smem:[#allocation50_spill]] }
 0x54b   : > { %v3145_v42 = vrot.slane %v10499_v58, 7  ;;  %v3089_v2 = vadd.f32 %v3087_v19, %v3071_v47  ;;  %v3095_v18 = vadd.f32 %v3093_v9, %v3077_v38  ;;  %v12972_v48 = vstv %s12968_s3  ;;  %v10628_v19 = vpop.f32.mrf.mxu0 }
 0x54c   : > { %v10617_v43 = vmul.f32 %v12972_v48, %v10477_v13  ;;  %v3175_v7 = vrot.slane %v10499_v58, 1  ;;  %v3090_v28 = vadd.f32 %v3088_v62, %v3072_v23  ;;  %v3096_v30 = vadd.f32 %v3094_v45, %v3078_v27  ;;  %v6484_v34 = vpop.f32.mrf.mxu1 }
 0x54d   : > { %v3146_v50 = vsel %vm1493_vm2, %v3144_v41, %v3145_v42  ;;  %v12973_v16 = vmov %v12960_v52  ;;  %v3154_v22 = vadd.f32 %v3152_v40, %v3089_v2  ;;  %v3160_v53 = vadd.f32 %v3158_v57, %v3095_v18  ;;  %v6478_v8 = vpop.f32.mrf.mxu0 }
 0x54e   : > { %v3165_v6 = vmul.f32 %v12973_v16, %v10499_v58  ;;  %v12974_v52 = vmov %v12969_v46  ;;  %v12976_v26 = vmov %v12971_v51  ;;  %v12979_v62 = vmov %v12970_v21  ;;  %v10652_v42 = vpop.f32.mrf.mxu1 }
 0x54f   : > { %v3153_v5 = vmul.f32 %v12974_v52, %v3146_v50  ;;  %v3159_v35 = vmul.f32 %v12976_v26, %v3146_v50  ;;  %v3171_v59 = vmul.f32 %v12979_v62, %v10499_v58  ;;  %v3176_v41 = vsel %vm1596_vm3, %v3174_v1, %v3175_v7  ;;  %v10650_v27 = vpop.f32.mrf.mxu0  ;;  %v12989_v26 = vld [vmem:[#allocation134_spill] sm:$0xff] }
 0x550   : > { %v3179_v9 = vsel %vm1596_vm3, %v3175_v7, 0.0  ;;  %v3286_v32 = vrot.slane %v10501_v37, 7  ;;  %v3166_v45 = vadd.f32 %v3164_v31, %v3154_v22  ;;  %v3172_v29 = vadd.f32 %v3170_v25, %v3160_v53 }
 0x551   : > { %v3155_v0 = vadd.f32 %v3153_v5, %v3090_v28  ;;  %v3161_v17 = vadd.f32 %v3159_v35, %v3096_v30  ;;  %v3290_v56 = vsel %vm1493_vm2, 0.0, %v3285_v61  ;;  %v12981_v46 = vstv %s12975_s11  ;;  %v6489_v16 = vpop.f32.mrf.mxu0 }
 0x552   : > { %v3311_v58 = vmul.f32 %v12981_v46, %v10477_v13  ;;  %v12982_v40 = vstv %s12977_s9  ;;  %v12983_v47 = vstv %s12978_s23  ;;  %v3287_v48 = vsel %vm1493_vm2, %v3285_v61, %v3286_v32  ;;  %s13002_s9 = sld [smem:[#allocation55_spill]] }
 0x553   : > { %v3182_v21 = vmul.f32 %v12982_v40, %v3176_v41  ;;  %v3188_v38 = vmul.f32 %v12983_v47, %v3176_v41  ;;  %v3167_v51 = vadd.f32 %v3165_v6, %v3155_v0  ;;  %v3173_v57 = vadd.f32 %v3171_v59, %v3161_v17  ;;  %v6495_v6 = vpop.f32.mrf.mxu1  ;;  %v10671_v32 = vpop.f32.mrf.mxu0  ;;  %v12994_v0 = vld [vmem:[#allocation132_spill] sm:$0xff]  ;;  %s13013_s23 = sld [smem:[#allocation58_spill]] }
 0x554   : > { %v12985_v1 = vmov %v12982_v40  ;;  %v12986_v25 = vmov %v12983_v47  ;;  %v3316_v7 = vrot.slane %v10501_v37, 1  ;;  %v12987_v15 = vstv %s12980_s10  ;;  %s13017_s10 = sld [smem:[#allocation59_spill]] }
 0x555   : > { %v3183_v31 = vmul.f32 %v12985_v1, %v3179_v9  ;;  %v3189_v23 = vmul.f32 %v12986_v25, %v3179_v9  ;;  %v3184_v2 = vadd.f32 %v3182_v21, %v3166_v45  ;;  %v3190_v18 = vadd.f32 %v3188_v38, %v3172_v29  ;;  %v10673_v45 = vpop.f32.mrf.mxu1  ;;  %v6490_v47 = vpop.f32.mrf.mxu0  ;;  %v13000_v1 = vld [vmem:[#allocation140_spill] sm:$0xff] }
 0x556   : > { %v3293_v12 = vmul.f32 %v12987_v15, %v3290_v56  ;;  %v3315_v28 = vrot.slane %v10477_v13, 1  ;;  %v12988_v22 = vstv %s12984_s19  ;;  %v3380_v61 = vrot.slane %v10516_v63, 7  ;;  %s13018_s19 = sld [smem:[#allocation62_spill]] }
 0x557   : > { %v3185_v30 = vadd.f32 %v3183_v31, %v3167_v51  ;;  %v3191_v50 = vadd.f32 %v3189_v23, %v3173_v57  ;;  %v3299_v53 = vmul.f32 %v12988_v22, %v3290_v56  ;;  %v3204_v52 = vadd.f32 %v9981_v39, %v3184_v2  ;;  %v12993_v39 = vld [vmem:[#allocation130_spill] sm:$0xff]  ;;  %v6496_v38 = vpop.f32.mrf.mxu1  ;;  %v12999_v51 = vld [vmem:[#allocation136_spill] sm:$0xff] }
 0x558   : > { %v3210_v5 = vadd.f32 %v9993_v10, %v3190_v18  ;;  %v12990_v59 = vmov %v12987_v15  ;;  %v12991_v41 = vstv %s12968_s3  ;;  %v3317_v17 = vsel %vm1596_vm3, %v3315_v28, %v3316_v7  ;;  %s13001_s3 = sld [smem:[#allocation52_spill]]  ;;  %v13005_v18 = vld [vmem:[#allocation142_spill] sm:$0xff] }
 0x559   : > { %v3205_v35 = vadd.f32 %v12989_v26, %v3185_v30  ;;  %v3211_v62 = vadd.f32 %v10002_v60, %v3191_v50  ;;  %v3294_v13 = vmul.f32 %v12990_v59, %v3287_v48  ;;  %v3306_v9 = vmul.f32 %v12991_v41, %v10501_v37  ;;  %v10698_v30 = vpop.f32.mrf.mxu0  ;;  %v10700_v50 = vpop.f32.mrf.mxu1 }
 0x55a   : > { %v3216_v29 = vadd.f32 %v12993_v39, %v3204_v52  ;;  %v3222_v10 = vadd.f32 %v12994_v0, %v3210_v5  ;;  %v3320_v60 = vsel %vm1596_vm3, %v3316_v7, 0.0  ;;  %v12997_v56 = vmov %v12988_v22 }
 0x55b   : > { %v3217_v8 = vadd.f32 %v10005_v54, %v3205_v35  ;;  %v3223_v34 = vadd.f32 %v10008_v4, %v3211_v62  ;;  %v3300_v46 = vmul.f32 %v12997_v56, %v3287_v48  ;;  %v12998_v40 = vstv %s12975_s11  ;;  %v13004_v4 = vld [vmem:[#allocation138_spill] sm:$0xff]  ;;  %s13008_s11 = sld [smem:[#allocation53_spill]]  ;;  %v6501_v0 = vpop.f32.mrf.mxu0 }
 0x55c   : > { %v3312_v21 = vmul.f32 %v12998_v40, %v10501_v37  ;;  %v3234_v57 = vadd.f32 %v12999_v51, %v3216_v29  ;;  %v3240_v31 = vadd.f32 %v13000_v1, %v3222_v10  ;;  %v3385_v25 = vsel %vm1493_vm2, 0.0, %v3380_v61  ;;  %v6507_v10 = vpop.f32.mrf.mxu1 }
 0x55d   : > { %v13003_v54 = vstv %s12992_s1  ;;  %v3235_v2 = vadd.f32 %v13004_v4, %v3217_v8  ;;  %v3241_v48 = vadd.f32 %v13005_v18, %v3223_v34  ;;  %v13006_v7 = vstv %s12995_s17  ;;  %v10717_v40 = vpop.f32.mrf.mxu0  ;;  %s13019_s17 = sld [smem:[#allocation68_spill]] }
 0x55e   : > { %v3400_v23 = vmul.f32 %v13003_v54, %v10516_v63  ;;  %v3323_v15 = vmul.f32 %v13006_v7, %v3317_v17  ;;  %v13007_v37 = vmov %v13006_v7  ;;  %v13009_v16 = vstv %s12996_s30  ;;  %v10719_v47 = vpop.f32.mrf.mxu1  ;;  %s13023_s1 = sld [smem:[#allocation56_spill]] }
 0x55f   : > { %v3324_v28 = vmul.f32 %v13007_v37, %v3320_v60  ;;  %v3329_v6 = vmul.f32 %v13009_v16, %v3317_v17  ;;  %v13010_v22 = vmov %v13009_v16  ;;  %v3295_v5 = vadd.f32 %v3293_v12, %v3234_v57  ;;  %s13025_s30 = sld [smem:[#allocation57_spill]] }
 0x560   : > { %v3330_v52 = vmul.f32 %v13010_v22, %v3320_v60  ;;  %v3301_v26 = vadd.f32 %v3299_v53, %v3240_v31  ;;  %v3296_v35 = vadd.f32 %v3294_v13, %v3235_v2  ;;  %v3302_v62 = vadd.f32 %v3300_v46, %v3241_v48 }
 0x561   : > { %v13011_v59 = vstv %s13001_s3  ;;  %v13012_v39 = vstv %s13002_s9  ;;  %v3307_v8 = vadd.f32 %v10617_v43, %v3295_v5  ;;  %v13014_v56 = vstv %s13008_s11  ;;  %s13038_s3 = sld [smem:[#allocation66_spill]] }
 0x562   : > { %v3388_v41 = vmul.f32 %v13011_v59, %v3385_v25  ;;  %v3406_v29 = vmul.f32 %v13012_v39, %v10516_v63  ;;  %v3313_v34 = vadd.f32 %v3311_v58, %v3301_v26  ;;  %v3394_v17 = vmul.f32 %v13014_v56, %v3385_v25  ;;  %v6502_v25 = vpop.f32.mrf.mxu0  ;;  %s13041_s9 = sld [smem:[#allocation74_spill]] }
 0x563   : > { %v3410_v60 = vrot.slane %v10516_v63, 1  ;;  %v3308_v12 = vadd.f32 %v3306_v9, %v3296_v35  ;;  %v3314_v53 = vadd.f32 %v3312_v21, %v3302_v62  ;;  %v3521_v13 = vrot.slane %v10518_v20, 7  ;;  %s11081_s11 = sld [smem:[#allocation6 + $0x89]] }
 0x564   : > { %v3381_v46 = vrot.slane %v10539_v36, 7  ;;  %v3325_v43 = vadd.f32 %v3323_v15, %v3307_v8  ;;  %v3331_v58 = vadd.f32 %v3329_v6, %v3313_v34  ;;  %v13015_v38 = vstv %s13013_s23 }
 0x565   : > { %v10724_v51 = vmul.f32 %v13015_v38, %v10518_v20  ;;  %v3411_v63 = vrot.slane %v10539_v36, 1  ;;  %v3326_v9 = vadd.f32 %v3324_v28, %v3308_v12  ;;  %v3332_v21 = vadd.f32 %v3330_v52, %v3314_v53 }
 0x566   : > { %v3382_v57 = vsel %vm1493_vm2, %v3380_v61, %v3381_v46  ;;  %v13016_v1 = vmov %v13003_v54  ;;  %v6508_v54 = vpop.f32.mrf.mxu1  ;;  %v3390_v4 = vadd.f32 %v3388_v41, %v3325_v43  ;;  %v3396_v2 = vadd.f32 %v3394_v17, %v3331_v58 }
 0x567   : > { %v3401_v31 = vmul.f32 %v13016_v1, %v10539_v36  ;;  %v13020_v18 = vmov %v13011_v59  ;;  %v13021_v7 = vmov %v13014_v56  ;;  %v13022_v37 = vmov %v13012_v39 }
 0x568   : > { %v3389_v48 = vmul.f32 %v13020_v18, %v3382_v57  ;;  %v3395_v15 = vmul.f32 %v13021_v7, %v3382_v57  ;;  %v3407_v28 = vmul.f32 %v13022_v37, %v10539_v36  ;;  %v3412_v61 = vsel %vm1596_vm3, %v3410_v60, %v3411_v63  ;;  %v13032_v57 = vld [vmem:[#allocation144_spill] sm:$0xff] }
 0x569   : > { %v3415_v16 = vsel %vm1596_vm3, %v3411_v63, 0.0  ;;  %v3522_v6 = vrot.slane %v10541_v33, 7  ;;  %v3402_v22 = vadd.f32 %v3400_v23, %v3390_v4  ;;  %v3408_v52 = vadd.f32 %v3406_v29, %v3396_v2  ;;  %v13034_v4 = vld [vmem:[#allocation146_spill] sm:$0xff]  ;;  %v13039_v37 = vld [vmem:[#allocation222_spill] sm:$0xff] }
 0x56a   : > { %v3391_v5 = vadd.f32 %v3389_v48, %v3326_v9  ;;  %v3397_v26 = vadd.f32 %v3395_v15, %v3332_v21  ;;  %v3526_v35 = vsel %vm1493_vm2, 0.0, %v3521_v13  ;;  %v13024_v62 = vstv %s13017_s10  ;;  %v13035_v2 = vld [vmem:[#allocation150_spill] sm:$0xff] }
 0x56b   : > { %v3547_v59 = vmul.f32 %v13024_v62, %v10518_v20  ;;  %v13026_v41 = vstv %s13018_s19  ;;  %v13027_v36 = vstv %s13019_s17  ;;  %v3523_v12 = vsel %vm1493_vm2, %v3521_v13, %v3522_v6  ;;  %s11104_s19 = sld [smem:[#allocation6 + $0x47]] }
 0x56c   : > { %v3418_v39 = vmul.f32 %v13026_v41, %v3412_v61  ;;  %v3424_v0 = vmul.f32 %v13027_v36, %v3412_v61  ;;  %v3403_v10 = vadd.f32 %v3401_v31, %v3391_v5  ;;  %v3409_v8 = vadd.f32 %v3407_v28, %v3397_v26  ;;  %v13033_v31 = vld [vmem:[#allocation148_spill] sm:$0xff]  ;;  %v13040_v61 = vld [vmem:[#allocation203_spill] sm:$0xff]  ;;  %s11108_s17 = sld [smem:[#allocation6 + $0x8f]] }
 0x56d   : > { %v13028_v34 = vmov %v13026_v41  ;;  %v13029_v17 = vmov %v13027_v36  ;;  %v3552_v53 = vrot.slane %v10541_v33, 1  ;;  %v13030_v46 = vstv %s13023_s1  ;;  %v13043_v26 = vld [vmem:[#allocation124_spill] sm:$0xff]  ;;  %s11115_s1 = sld [smem:[#allocation7]] }
 0x56e   : > { %v3419_v56 = vmul.f32 %v13028_v34, %v3415_v16  ;;  %v3425_v23 = vmul.f32 %v13029_v17, %v3415_v16  ;;  %v3420_v29 = vadd.f32 %v3418_v39, %v3402_v22  ;;  %v3426_v60 = vadd.f32 %v3424_v0, %v3408_v52  ;;  %v13042_v52 = vld [vmem:[#allocation202_spill] sm:$0xff]  ;;  %v13046_v0 = vld [vmem:[#allocation125_spill] sm:$0xff] }
 0x56f   : > { %v3529_v43 = vmul.f32 %v13030_v46, %v3526_v35  ;;  %v3551_v58 = vrot.slane %v10518_v20, 1  ;;  %v13031_v9 = vstv %s13025_s30  ;;  %v3616_v54 = vrot.slane %v10558_v11, 7  ;;  %s11125_s30 = sld [smem:[#allocation7 + $0x1]] }
 0x570   : > { %v3421_v38 = vadd.f32 %v3419_v56, %v3403_v10  ;;  %v3427_v63 = vadd.f32 %v3425_v23, %v3409_v8  ;;  %v3535_v21 = vmul.f32 %v13031_v9, %v3526_v35  ;;  %v3440_v1 = vadd.f32 %v13032_v57, %v3420_v29  ;;  %v13047_v8 = vld [vmem:[#allocation127_spill] sm:$0xff]  ;;  %v13049_v29 = vld [vmem:[#allocation126_spill] sm:$0xff] }
 0x571   : > { %v3446_v25 = vadd.f32 %v13033_v31, %v3426_v60  ;;  %v13036_v48 = vmov %v13030_v46  ;;  %v13037_v20 = vstv %s13013_s23  ;;  %v3553_v6 = vsel %vm1596_vm3, %v3551_v58, %v3552_v53  ;;  %s11086_s23 = sld [smem:[#allocation6 + $0x8c]] }
 0x572   : > { %v3441_v13 = vadd.f32 %v13034_v4, %v3421_v38  ;;  %v3447_v18 = vadd.f32 %v13035_v2, %v3427_v63  ;;  %v3530_v7 = vmul.f32 %v13036_v48, %v3523_v12  ;;  %v3542_v15 = vmul.f32 %v13037_v20, %v10541_v33 }
 0x573   : > { %v3452_v28 = vadd.f32 %v13039_v37, %v3440_v1  ;;  %v3458_v16 = vadd.f32 %v13040_v61, %v3446_v25  ;;  %v3556_v22 = vsel %vm1596_vm3, %v3552_v53, 0.0  ;;  %v13044_v62 = vmov %v13031_v9  ;;  %v13050_v53 = vld [vmem:[#allocation128_spill] sm:$0xff] }
 0x574   : > { %v3453_v5 = vadd.f32 %v13042_v52, %v3441_v13  ;;  %v3459_v35 = vadd.f32 %v13043_v26, %v3447_v18  ;;  %v3536_v41 = vmul.f32 %v13044_v62, %v3523_v12  ;;  %v13045_v39 = vstv %s13017_s10  ;;  %s13173_s10 = sld [smem:[#allocation116_spill]] }
 0x575   : > { %v3548_v36 = vmul.f32 %v13045_v39, %v10541_v33  ;;  %v3470_v10 = vadd.f32 %v13046_v0, %v3452_v28  ;;  %v3476_v34 = vadd.f32 %v13047_v8, %v3458_v16  ;;  %v3621_v56 = vsel %vm1493_vm2, 0.0, %v3616_v54 }
 0x576   : > { %v13048_v17 = vstv %s12863_s18  ;;  %v3471_v60 = vadd.f32 %v13049_v29, %v3453_v5  ;;  %v3477_v46 = vadd.f32 %v13050_v53, %v3459_v35  ;;  %v13051_v12 = vstv %s13038_s3  ;;  %s13063_s18 = sld [smem:[#allocation43_spill]] }
 0x577   : > { %v3636_v23 = vmul.f32 %v13048_v17, %v10558_v11  ;;  %v3559_v58 = vmul.f32 %v13051_v12, %v3553_v6  ;;  %v13052_v38 = vmov %v13051_v12  ;;  %v13053_v33 = vstv %s13041_s9  ;;  %s13187_s3 = sld [smem:[#allocation40_spill]] }
 0x578   : > { %v3560_v63 = vmul.f32 %v13052_v38, %v3556_v22  ;;  %v3565_v9 = vmul.f32 %v13053_v33, %v3553_v6  ;;  %v13054_v57 = vmov %v13053_v33  ;;  %v3531_v31 = vadd.f32 %v3529_v43, %v3470_v10  ;;  %s13189_s9 = sld [smem:[#allocation41_spill]] }
 0x579   : > { %v3566_v1 = vmul.f32 %v13054_v57, %v3556_v22  ;;  %v3537_v25 = vadd.f32 %v3535_v21, %v3476_v34  ;;  %v3532_v4 = vadd.f32 %v3530_v7, %v3471_v60  ;;  %v3538_v13 = vadd.f32 %v3536_v41, %v3477_v46 }
 0x57a   : > { %v13055_v2 = vstv %s12861_s14  ;;  %v13056_v48 = vstv %s12864_s21  ;;  %v3543_v37 = vadd.f32 %v10724_v51, %v3531_v31  ;;  %v13057_v61 = vstv %s12862_s8  ;;  %s13065_s8 = sld [smem:[#allocation200_spill]] }
 0x57b   : > { %v3624_v18 = vmul.f32 %v13055_v2, %v3621_v56  ;;  %v3642_v20 = vmul.f32 %v13056_v48, %v10558_v11  ;;  %v3549_v28 = vadd.f32 %v3547_v59, %v3537_v25  ;;  %v3630_v16 = vmul.f32 %v13057_v61, %v3621_v56  ;;  %s13081_s21 = sld [smem:[#allocation92_spill]] }
 0x57c   : > { %v3646_v6 = vrot.slane %v10558_v11, 1  ;;  %v3544_v43 = vadd.f32 %v3542_v15, %v3532_v4  ;;  %v3550_v21 = vadd.f32 %v3548_v36, %v3538_v13  ;;  %v3757_v7 = vrot.slane %v10560_v55, 7  ;;  %s13091_s14 = sld [smem:[#allocation93_spill]] }
 0x57d   : > { %v3617_v22 = vrot.slane %v10586_v24, 7  ;;  %v3561_v52 = vadd.f32 %v3559_v58, %v3543_v37  ;;  %v3567_v5 = vadd.f32 %v3565_v9, %v3549_v28  ;;  %v13058_v26 = vstv %s12868_s15 }
 0x57e   : > { %v10811_v35 = vmul.f32 %v13058_v26, %v10560_v55  ;;  %v3647_v51 = vrot.slane %v10586_v24, 1  ;;  %v3562_v59 = vadd.f32 %v3560_v63, %v3544_v43  ;;  %v3568_v62 = vadd.f32 %v3566_v1, %v3550_v21  ;;  %v13073_v26 = vld [vmem:[#allocation135_spill] sm:$0xff] }
 0x57f   : > { %v3618_v11 = vsel %vm1493_vm2, %v3616_v54, %v3617_v22  ;;  %v13059_v15 = vmov %v13048_v17  ;;  %v3626_v39 = vadd.f32 %v3624_v18, %v3561_v52  ;;  %v3632_v36 = vadd.f32 %v3630_v16, %v3567_v5  ;;  %v13072_v52 = vld [vmem:[#allocation131_spill] sm:$0xff] }
 0x580   : > { %v3637_v41 = vmul.f32 %v13059_v15, %v10586_v24  ;;  %v13060_v0 = vmov %v13055_v2  ;;  %v13061_v8 = vmov %v13057_v61  ;;  %v13062_v56 = vmov %v13056_v48 }
 0x581   : > { %v3625_v10 = vmul.f32 %v13060_v0, %v3618_v11  ;;  %v3631_v34 = vmul.f32 %v13061_v8, %v3618_v11  ;;  %v3643_v17 = vmul.f32 %v13062_v56, %v10586_v24  ;;  %v3648_v29 = vsel %vm1596_vm3, %v3646_v6, %v3647_v51  ;;  %v13075_v11 = vld [vmem:[#allocation137_spill] sm:$0xff]  ;;  %v13080_v8 = vld [vmem:[#allocation201_spill] sm:$0xff] }
 0x582   : > { %v3651_v54 = vsel %vm1596_vm3, %v3647_v51, 0.0  ;;  %v3758_v60 = vrot.slane %v10588_v44, 7  ;;  %v3638_v53 = vadd.f32 %v3636_v23, %v3626_v39  ;;  %v3644_v46 = vadd.f32 %v3642_v20, %v3632_v36  ;;  %v13079_v0 = vld [vmem:[#allocation129_spill] sm:$0xff] }
 0x583   : > { %v3627_v12 = vadd.f32 %v3625_v10, %v3562_v59  ;;  %v3633_v58 = vadd.f32 %v3631_v34, %v3568_v62  ;;  %v3762_v38 = vsel %vm1493_vm2, 0.0, %v3757_v7  ;;  %v13064_v63 = vstv %s12869_s2  ;;  %v13074_v62 = vld [vmem:[#allocation133_spill] sm:$0xff]  ;;  %s10889_s2 = sld [smem:[#allocation6 + $0x86]] }
 0x584   : > { %v3783_v33 = vmul.f32 %v13064_v63, %v10560_v55  ;;  %v13066_v9 = vstv %s12871_s29  ;;  %v13067_v24 = vstv %s12872_s5  ;;  %v3759_v20 = vsel %vm1493_vm2, %v3757_v7, %v3758_v60  ;;  %s13078_s5 = sld [smem:[#allocation83_spill]]  ;;  %v13083_v60 = vld [vmem:[#allocation141_spill] sm:$0xff] }
 0x585   : > { %v3654_v57 = vmul.f32 %v13066_v9, %v3648_v29  ;;  %v3660_v1 = vmul.f32 %v13067_v24, %v3648_v29  ;;  %v3639_v31 = vadd.f32 %v3637_v41, %v3627_v12  ;;  %v3645_v25 = vadd.f32 %v3643_v17, %v3633_v58  ;;  %v13082_v29 = vld [vmem:[#allocation139_spill] sm:$0xff]  ;;  %s10901_s29 = sld [smem:[#allocation6 + $0x42]] }
 0x586   : > { %v13068_v4 = vmov %v13066_v9  ;;  %v13069_v2 = vmov %v13067_v24  ;;  %v3788_v37 = vrot.slane %v10588_v44, 1  ;;  %v13070_v28 = vstv %s13063_s18  ;;  %s13190_s18 = sld [smem:[#allocation39_spill]] }
 0x587   : > { %v3655_v13 = vmul.f32 %v13068_v4, %v3651_v54  ;;  %v3661_v23 = vmul.f32 %v13069_v2, %v3651_v54  ;;  %v3656_v18 = vadd.f32 %v3654_v57, %v3638_v53  ;;  %v3662_v48 = vadd.f32 %v3660_v1, %v3644_v46  ;;  %v13088_v57 = vld [vmem:[#allocation147_spill] sm:$0xff]  ;;  %v13090_v4 = vld [vmem:[#allocation145_spill] sm:$0xff] }
 0x588   : > { %v3765_v61 = vmul.f32 %v13070_v28, %v3762_v38  ;;  %v3787_v16 = vrot.slane %v10560_v55, 1  ;;  %v13071_v21 = vstv %s13065_s8  ;;  %v3852_v59 = vrot.slane %v10608_v49, 7  ;;  %v13092_v2 = vld [vmem:[#allocation149_spill] sm:$0xff]  ;;  %s13191_s8 = sld [smem:[#allocation38_spill]] }
 0x589   : > { %v3657_v6 = vadd.f32 %v3655_v13, %v3639_v31  ;;  %v3663_v43 = vadd.f32 %v3661_v23, %v3645_v25  ;;  %v3771_v22 = vmul.f32 %v13071_v21, %v3762_v38  ;;  %v3676_v5 = vadd.f32 %v13072_v52, %v3656_v18 }
 0x58a   : > { %v3682_v51 = vadd.f32 %v13073_v26, %v3662_v48  ;;  %v13076_v41 = vmov %v13070_v28  ;;  %v13077_v55 = vstv %s12868_s15  ;;  %v3789_v56 = vsel %vm1596_vm3, %v3787_v16, %v3788_v37  ;;  %s13086_s15 = sld [smem:[#allocation96_spill]] }
 0x58b   : > { %v3677_v7 = vadd.f32 %v13074_v62, %v3657_v6  ;;  %v3683_v15 = vadd.f32 %v13075_v11, %v3663_v43  ;;  %v3766_v39 = vmul.f32 %v13076_v41, %v3759_v20  ;;  %v3778_v36 = vmul.f32 %v13077_v55, %v10588_v44 }
 0x58c   : > { %v3688_v10 = vadd.f32 %v13079_v0, %v3676_v5  ;;  %v3694_v34 = vadd.f32 %v13080_v8, %v3682_v51  ;;  %v3792_v17 = vsel %vm1596_vm3, %v3788_v37, 0.0  ;;  %v13084_v46 = vmov %v13071_v21 }
 0x58d   : > { %v3689_v54 = vadd.f32 %v13082_v29, %v3677_v7  ;;  %v3695_v53 = vadd.f32 %v13083_v60, %v3683_v15  ;;  %v3772_v12 = vmul.f32 %v13084_v46, %v3759_v20  ;;  %v13085_v58 = vmov %v13064_v63  ;;  %v13087_v63 = vld [vmem:[#allocation143_spill] sm:$0xff] }
 0x58e   : > { %v3784_v38 = vmul.f32 %v13085_v58, %v10588_v44  ;;  %v3706_v9 = vadd.f32 %v13087_v63, %v3688_v10  ;;  %v3712_v24 = vadd.f32 %v13088_v57, %v3694_v34  ;;  %v3857_v1 = vsel %vm1493_vm2, 0.0, %v3852_v59 }
 0x58f   : > { %v13089_v31 = vstv %s12878_s26  ;;  %v3707_v13 = vadd.f32 %v13090_v4, %v3689_v54  ;;  %v3713_v23 = vadd.f32 %v13092_v2, %v3695_v53  ;;  %v13093_v18 = vstv %s13078_s5  ;;  %s13109_s26 = sld [smem:[#allocation85_spill]] }
 0x590   : > { %v3872_v25 = vmul.f32 %v13089_v31, %v10608_v49  ;;  %v3795_v48 = vmul.f32 %v13093_v18, %v3789_v56  ;;  %v13094_v20 = vmov %v13093_v18  ;;  %v13095_v44 = vstv %s13081_s21  ;;  %s5444_s5 = sld [smem:[#allocation3]] }
 0x591   : > { %v3796_v37 = vmul.f32 %v13094_v20, %v3792_v17  ;;  %v3801_v28 = vmul.f32 %v13095_v44, %v3789_v56  ;;  %v13096_v16 = vmov %v13095_v44  ;;  %v3767_v43 = vadd.f32 %v3765_v61, %v3706_v9  ;;  %s13192_s21 = sld [smem:[#allocation37_spill]] }
 0x592   : > { %v3802_v6 = vmul.f32 %v13096_v16, %v3792_v17  ;;  %v3773_v21 = vadd.f32 %v3771_v22, %v3712_v24  ;;  %v3768_v52 = vadd.f32 %v3766_v39, %v3707_v13  ;;  %v3774_v5 = vadd.f32 %v3772_v12, %v3713_v23 }
 0x593   : > { %v13097_v26 = vstv %s13086_s15  ;;  %v13098_v62 = vstv %s12879_s4  ;;  %v3779_v11 = vadd.f32 %v10811_v35, %v3767_v43  ;;  %v13099_v41 = vstv %s13091_s14  ;;  %s13106_s4 = sld [smem:[#allocation84_spill]] }
 0x594   : > { %v3860_v51 = vmul.f32 %v13097_v26, %v3857_v1  ;;  %v3878_v7 = vmul.f32 %v13098_v62, %v10608_v49  ;;  %v3785_v15 = vadd.f32 %v3783_v33, %v3773_v21  ;;  %v3866_v55 = vmul.f32 %v13099_v41, %v3857_v1  ;;  %s13193_s14 = sld [smem:[#allocation31_spill]] }
 0x595   : > { %v3882_v0 = vrot.slane %v10608_v49, 1  ;;  %v3780_v61 = vadd.f32 %v3778_v36, %v3768_v52  ;;  %v3786_v22 = vadd.f32 %v3784_v38, %v3774_v5  ;;  %v3993_v39 = vrot.slane %v10610_v3, 7 }
 0x596   : > { %v3853_v10 = vrot.slane %v10628_v19, 7  ;;  %v3797_v8 = vadd.f32 %v3795_v48, %v3779_v11  ;;  %v3803_v34 = vadd.f32 %v3801_v28, %v3785_v15  ;;  %v13100_v56 = vmov %v13089_v31 }
 0x597   : > { %v3873_v17 = vmul.f32 %v13100_v56, %v10628_v19  ;;  %v3883_v35 = vrot.slane %v10628_v19, 1  ;;  %v3798_v33 = vadd.f32 %v3796_v37, %v3780_v61  ;;  %v3804_v49 = vadd.f32 %v3802_v6, %v3786_v22  ;;  %v13116_v56 = vld [vmem:[#allocation219_spill] sm:$0xff]  ;;  %s11308_s15 = scalar_lea.vmem [#allocation19], %s13192_s21 }
 0x598   : > { %v3854_v36 = vsel %vm1493_vm2, %v3852_v59, %v3853_v10  ;;  %v3994_v29 = vrot.slane %v10630_v14, 7  ;;  %v3862_v54 = vadd.f32 %v3860_v51, %v3797_v8  ;;  %v3868_v60 = vadd.f32 %v3866_v55, %v3803_v34  ;;  %v13115_v8 = vld [vmem:[#allocation217_spill] sm:$0xff] }
 0x599   : > { %v13101_v53 = vmov %v13097_v26  ;;  %v13102_v12 = vmov %v13099_v41  ;;  %v13103_v38 = vmov %v13098_v62  ;;  %v3884_v9 = vsel %vm1596_vm3, %v3882_v0, %v3883_v35  ;;  %v13112_v41 = vld [vmem:[#allocation216_spill] sm:$0xff]  ;;  %v13113_v0 = vld [vmem:[#allocation218_spill] sm:$0xff] }
 0x59a   : > { %v3861_v46 = vmul.f32 %v13101_v53, %v3854_v36  ;;  %v3867_v58 = vmul.f32 %v13102_v12, %v3854_v36  ;;  %v3879_v63 = vmul.f32 %v13103_v38, %v10628_v19  ;;  %v3887_v57 = vsel %vm1596_vm3, %v3883_v35, 0.0 }
 0x59b   : > { %v3995_v59 = vsel %vm1493_vm2, %v3993_v39, %v3994_v29  ;;  %v3874_v24 = vadd.f32 %v3872_v25, %v3862_v54  ;;  %v3880_v1 = vadd.f32 %v3878_v7, %v3868_v60  ;;  %v3998_v13 = vsel %vm1493_vm2, 0.0, %v3993_v39  ;;  %v13120_v29 = vld [vmem:[#allocation221_spill] sm:$0xff] }
 0x59c   : > { %v3863_v31 = vadd.f32 %v3861_v46, %v3798_v33  ;;  %v3869_v4 = vadd.f32 %v3867_v58, %v3804_v49  ;;  %v13104_v2 = vstv %s12884_s24  ;;  %v13105_v18 = vstv %s12886_s20  ;;  %s13119_s20 = sld [smem:[#allocation90_spill]]  ;;  %v13122_v46 = vld [vmem:[#allocation223_spill] sm:$0xff]  ;;  %v13123_v58 = vld [vmem:[#allocation204_spill] sm:$0xff] }
 0x59d   : > { %v3890_v23 = vmul.f32 %v13104_v2, %v3884_v9  ;;  %v3896_v48 = vmul.f32 %v13105_v18, %v3884_v9  ;;  %v4272_v19 = vstv %s10889_s2  ;;  %v13107_v44 = vmov %v13104_v2  ;;  %s13143_s24 = sld [smem:[#allocation97_spill]] }
 0x59e   : > { %v3875_v20 = vadd.f32 %v3873_v17, %v3863_v31  ;;  %v3881_v37 = vadd.f32 %v3879_v63, %v3869_v4  ;;  %v3891_v28 = vmul.f32 %v13107_v44, %v3887_v57  ;;  %v13108_v16 = vmov %v13105_v18  ;;  %s13194_s2 = sld [smem:[#allocation36_spill]] }
 0x59f   : > { %v3897_v25 = vmul.f32 %v13108_v16, %v3887_v57  ;;  %v4023_v6 = vrot.slane %v10610_v3, 1  ;;  %v3892_v43 = vadd.f32 %v3890_v23, %v3874_v24  ;;  %v3898_v21 = vadd.f32 %v3896_v48, %v3880_v1  ;;  %v13128_v23 = vld [vmem:[#allocation209_spill] sm:$0xff]  ;;  %v13129_v48 = vld [vmem:[#allocation206_spill] sm:$0xff] }
 0x5a0   : > { %v4024_v52 = vrot.slane %v10630_v14, 1  ;;  %v13110_v5 = vstv %s12882_s27  ;;  %v3893_v51 = vadd.f32 %v3891_v28, %v3875_v20  ;;  %v4343_v7 = vstv %s10901_s29  ;;  %s10985_s27 = sld [smem:[#allocation6 + $0x3f]] }
 0x5a1   : > { %v4013_v26 = vmul.f32 %v13110_v5, %v10610_v3  ;;  %v3899_v62 = vadd.f32 %v3897_v25, %v3881_v37  ;;  %v13111_v11 = vstv %s12883_s16  ;;  %v3912_v55 = vadd.f32 %v13112_v41, %v3892_v43  ;;  %v13130_v37 = vld [vmem:[#allocation210_spill] sm:$0xff]  ;;  %s10975_s16 = sld [smem:[#allocation6 + $0x8a]] }
 0x5a2   : > { %v4019_v15 = vmul.f32 %v13111_v11, %v10610_v3  ;;  %v3918_v61 = vadd.f32 %v13113_v0, %v3898_v21  ;;  %v4025_v22 = vsel %vm1596_vm3, %v4023_v6, %v4024_v52  ;;  %v13114_v39 = vstv %s13106_s4  ;;  %v13118_v3 = vld [vmem:[#allocation220_spill] sm:$0xff]  ;;  %s13195_s29 = sld [smem:[#allocation34_spill]]  ;;  %s6168_s4 = sshll.u32 %s13193_s14, 11 }
 0x5a3   : > { %v4001_v10 = vmul.f32 %v13114_v39, %v3998_v13  ;;  %v3913_v34 = vadd.f32 %v13115_v8, %v3893_v51  ;;  %v3919_v17 = vadd.f32 %v13116_v56, %v3899_v62  ;;  %v4088_v35 = vrot.slane %v10650_v27, 7 }
 0x5a4   : > { %v13117_v33 = vstv %s13109_s26  ;;  %v3924_v36 = vadd.f32 %v13118_v3, %v3912_v55  ;;  %v3930_v54 = vadd.f32 %v13120_v29, %v3918_v61  ;;  %v13121_v60 = vmov %v13110_v5  ;;  %s5560_s26 = sshll.u32 %s11308_s15, 4  ;;  %s11429_s26 = int_to_ptr.vmem [resolvable:$true] %s5560_s26 }
 0x5a5   : > { %v4007_v49 = vmul.f32 %v13117_v33, %v3998_v13  ;;  %v4014_v53 = vmul.f32 %v13121_v60, %v10630_v14  ;;  %v3925_v12 = vadd.f32 %v13122_v46, %v3913_v34  ;;  %v3931_v38 = vadd.f32 %v13123_v58, %v3919_v17  ;;  %v13127_v13 = vld [vmem:[#allocation205_spill] sm:$0xff] }
 0x5a6   : > { %v13124_v63 = vmov %v13114_v39  ;;  %v4028_v57 = vsel %vm1596_vm3, %v4024_v52, 0.0  ;;  %v13125_v24 = vmov %v13117_v33  ;;  %v13126_v31 = vmov %v13111_v11 }
 0x5a7   : > { %v4002_v9 = vmul.f32 %v13124_v63, %v3995_v59  ;;  %v4008_v1 = vmul.f32 %v13125_v24, %v3995_v59  ;;  %v4020_v4 = vmul.f32 %v13126_v31, %v10630_v14  ;;  %v3942_v2 = vadd.f32 %v13127_v13, %v3924_v36 }
 0x5a8   : > { %v3948_v18 = vadd.f32 %v13128_v23, %v3930_v54  ;;  %v3943_v20 = vadd.f32 %v13129_v48, %v3925_v12  ;;  %v3949_v44 = vadd.f32 %v13130_v37, %v3931_v38  ;;  %v4093_v28 = vsel %vm1493_vm2, 0.0, %v4088_v35  ;;  %p13197_p6 = scmp.ne.s32.totalorder %s13195_s29, 0 }
 0x5a9   : > { %v13131_v16 = vstv %s10313_s6  ;;  %v13132_v6 = vstv %s13119_s20  ;;  %v4003_v21 = vadd.f32 %v4001_v10, %v3942_v2  ;;  %v13134_v62 = vstv %s10307_s22  ;;  %s11061_s6 = sld [smem:[#allocation6 + $0x8d]] }
 0x5aa   : > { %v4108_v25 = vmul.f32 %v13131_v16, %v10650_v27  ;;  %v4031_v59 = vmul.f32 %v13132_v6, %v4025_v22  ;;  %v13133_v43 = vmov %v13132_v6  ;;  %v4009_v52 = vadd.f32 %v4007_v49, %v3948_v18  ;;  %s11076_s22 = sld [smem:[#allocation6 + $0x44]] }
 0x5ab   : > { %v4032_v14 = vmul.f32 %v13133_v43, %v4028_v57  ;;  %v4004_v5 = vadd.f32 %v4002_v9, %v3943_v20  ;;  %v4010_v51 = vadd.f32 %v4008_v1, %v3949_v44  ;;  %v4037_v11 = vmul.f32 %v13134_v62, %v4025_v22 }
 0x5ac   : > { %v13135_v41 = vmov %v13134_v62  ;;  %v4015_v0 = vadd.f32 %v4013_v26, %v4003_v21  ;;  %v4021_v61 = vadd.f32 %v4019_v15, %v4009_v52  ;;  %v13136_v39 = vstv %s10325_s13  ;;  %s13149_s13 = sld [smem:[#allocation99_spill]] }
 0x5ad   : > { %v4038_v55 = vmul.f32 %v13135_v41, %v4028_v57  ;;  %v4096_v8 = vmul.f32 %v13136_v39, %v4093_v28  ;;  %v13137_v34 = vstv %s10319_s28  ;;  %v4016_v17 = vadd.f32 %v4014_v53, %v4004_v5  ;;  %s11015_s28 = sld [smem:[#allocation6 + $0x87]] }
 0x5ae   : > { %v4114_v56 = vmul.f32 %v13137_v34, %v10650_v27  ;;  %v4022_v10 = vadd.f32 %v4020_v4, %v4010_v51  ;;  %v13138_v33 = vstv %s10331_s7  ;;  %v4089_v22 = vrot.slane %v10671_v32, 7  ;;  %s13147_s7 = sld [smem:[#allocation91_spill]] }
 0x5af   : > { %v4102_v49 = vmul.f32 %v13138_v33, %v4093_v28  ;;  %v4033_v3 = vadd.f32 %v4031_v59, %v4015_v0  ;;  %v4039_v26 = vadd.f32 %v4037_v11, %v4021_v61  ;;  %v4118_v15 = vrot.slane %v10650_v27, 1  ;;  %v13152_v61 = vld [vmem:[#allocation213_spill] sm:$0xff] }
 0x5b0   : > { %v4119_v36 = vrot.slane %v10671_v32, 1  ;;  %v4034_v29 = vadd.f32 %v4032_v14, %v4016_v17  ;;  %v4040_v54 = vadd.f32 %v4038_v55, %v4022_v10  ;;  %v4229_v60 = vrot.slane %v10652_v42, 7 }
 0x5b1   : > { %v4090_v53 = vsel %vm1493_vm2, %v4088_v35, %v4089_v22  ;;  %v4098_v46 = vadd.f32 %v4096_v8, %v4033_v3  ;;  %v4104_v12 = vadd.f32 %v4102_v49, %v4039_v26  ;;  %v13139_v58 = vmov %v13136_v39  ;;  %v13153_v8 = vld [vmem:[#allocation208_spill] sm:$0xff]  ;;  %v13155_v22 = vld [vmem:[#allocation207_spill] sm:$0xff]  ;;  %v13156_v26 = vld [vmem:[#allocation214_spill] sm:$0xff] }
 0x5b2   : > { %v4097_v38 = vmul.f32 %v13139_v58, %v4090_v53  ;;  %v13140_v63 = vmov %v13138_v33  ;;  %v13141_v27 = vmov %v13131_v16  ;;  %v13142_v24 = vmov %v13137_v34  ;;  %v13160_v58 = vld [vmem:[#allocation151_spill] sm:$0xff] }
 0x5b3   : > { %v4103_v9 = vmul.f32 %v13140_v63, %v4090_v53  ;;  %v4109_v57 = vmul.f32 %v13141_v27, %v10671_v32  ;;  %v4115_v1 = vmul.f32 %v13142_v24, %v10671_v32  ;;  %v4120_v31 = vsel %vm1596_vm3, %v4118_v15, %v4119_v36  ;;  %v13161_v63 = vld [vmem:[#allocation152_spill] sm:$0xff] }
 0x5b4   : > { %v4123_v4 = vsel %vm1596_vm3, %v4119_v36, 0.0  ;;  %v4110_v35 = vadd.f32 %v4108_v25, %v4098_v46  ;;  %v4116_v13 = vadd.f32 %v4114_v56, %v4104_v12  ;;  %v4099_v2 = vadd.f32 %v4097_v38, %v4034_v29  ;;  %v13159_v46 = vld [vmem:[#allocation212_spill] sm:$0xff] }
 0x5b5   : > { %v4105_v23 = vadd.f32 %v4103_v9, %v4040_v54  ;;  %v13144_v18 = vstv %s12890_s12  ;;  %v13145_v20 = vstv %s10367_s0  ;;  %v4230_v44 = vrot.slane %v10673_v45, 7  ;;  %v13158_v54 = vld [vmem:[#allocation211_spill] sm:$0xff]  ;;  %s11044_s12 = sld [smem:[#allocation6 + $0x41]] }
 0x5b6   : > { %v4126_v48 = vmul.f32 %v13144_v18, %v4120_v31  ;;  %v4132_v37 = vmul.f32 %v13145_v20, %v4120_v31  ;;  %v4349_v28 = vstv %s10975_s16  ;;  %v4111_v16 = vadd.f32 %v4109_v57, %v4099_v2  ;;  %s13164_s0 = sld [smem:[#allocation101_spill]] }
 0x5b7   : > { %v4117_v32 = vadd.f32 %v4115_v1, %v4105_v23  ;;  %v13146_v6 = vmov %v13144_v18  ;;  %v13148_v43 = vmov %v13145_v20  ;;  %v4234_v25 = vsel %vm1493_vm2, 0.0, %v4229_v60  ;;  %v13167_v23 = vld [vmem:[#allocation154_spill] sm:$0xff] }
 0x5b8   : > { %v4127_v59 = vmul.f32 %v13146_v6, %v4123_v4  ;;  %v4133_v14 = vmul.f32 %v13148_v43, %v4123_v4  ;;  %v4128_v21 = vadd.f32 %v4126_v48, %v4110_v35  ;;  %v4134_v52 = vadd.f32 %v4132_v37, %v4116_v13  ;;  %v13165_v4 = vld [vmem:[#allocation153_spill] sm:$0xff]  ;;  %v13166_v13 = vld [vmem:[#allocation155_spill] sm:$0xff]  ;;  %v13168_v48 = vld [vmem:[#allocation156_spill] sm:$0xff] }
 0x5b9   : > { %v4331_v5 = vstv %s10985_s27  ;;  %v13150_v51 = vstv %s12888_s25  ;;  %v13151_v11 = vstv %s13143_s24  ;;  %v4231_v56 = vsel %vm1493_vm2, %v4229_v60, %v4230_v44  ;;  %s11057_s25 = sld [smem:[#allocation6 + $0x45]] }
 0x5ba   : > { %v4249_v62 = vmul.f32 %v13150_v51, %v10652_v42  ;;  %v4255_v41 = vmul.f32 %v13151_v11, %v10652_v42  ;;  %v4129_v55 = vadd.f32 %v4127_v59, %v4111_v16  ;;  %v4135_v0 = vadd.f32 %v4133_v14, %v4117_v32  ;;  %s13196_s27 = sld [smem:[#allocation231_spill]] }
 0x5bb   : > { %v4148_v39 = vadd.f32 %v13152_v61, %v4128_v21  ;;  %v4154_v34 = vadd.f32 %v13153_v8, %v4134_v52  ;;  %v4260_v17 = vrot.slane %v10673_v45, 1  ;;  %v13154_v10 = vstv %s13147_s7  ;;  %s5547_s7 = scalar_lea.sflag [#allocation10], %s13194_s2 }
 0x5bc   : > { %v4237_v33 = vmul.f32 %v13154_v10, %v4234_v25  ;;  %v4259_v49 = vrot.slane %v10652_v42, 1  ;;  %v4149_v3 = vadd.f32 %v13155_v22, %v4129_v55  ;;  %v4155_v15 = vadd.f32 %v13156_v26, %v4135_v0 }
 0x5bd   : > { %v13157_v36 = vstv %s13149_s13  ;;  %v4160_v53 = vadd.f32 %v13158_v54, %v4148_v39  ;;  %v4166_v12 = vadd.f32 %v13159_v46, %v4154_v34  ;;  %v4324_v60 = vrot.slane %v10698_v30, 7  ;;  %s6959_s13 = scalar_lea.vmem %s11429_s26, 2048 }
 0x5be   : > { %v4243_v29 = vmul.f32 %v13157_v36, %v4234_v25  ;;  %v4161_v38 = vadd.f32 %v13160_v58, %v4149_v3  ;;  %v4167_v9 = vadd.f32 %v13161_v63, %v4155_v15  ;;  %v13162_v27 = vmov %v13154_v10  ;;  %p6960_p5 = scmp.ne.s32.totalorder %s11429_s26, %s6959_s13 }
 0x5bf   : > { %v4238_v42 = vmul.f32 %v13162_v27, %v4231_v56  ;;  %v13163_v57 = vmov %v13150_v51  ;;  %v4261_v1 = vsel %vm1596_vm3, %v4259_v49, %v4260_v17  ;;  %v4264_v31 = vsel %vm1596_vm3, %v4260_v17, 0.0 }
 0x5c0   : > { %v4250_v24 = vmul.f32 %v13163_v57, %v10673_v45  ;;  %v4178_v35 = vadd.f32 %v13165_v4, %v4160_v53  ;;  %v4184_v2 = vadd.f32 %v13166_v13, %v4166_v12  ;;  %v4179_v18 = vadd.f32 %v13167_v23, %v4161_v38  ;;  %s11427_s24 = scalar_lea.hbm %s13196_s27, %s6168_s4  ;;  %p6961_p11 = pnand %p6960_p5, %p13197_p6 }
 0x5c1   : > { %v4185_v20 = vadd.f32 %v13168_v48, %v4167_v9  ;;  %v13169_v37 = vmov %v13157_v36  ;;  %v13170_v16 = vmov %v13151_v11  ;;  %v4329_v43 = vsel %vm1493_vm2, 0.0, %v4324_v60 }
 0x5c2   : > { %v4244_v44 = vmul.f32 %v13169_v37, %v4231_v56  ;;  %v4256_v32 = vmul.f32 %v13170_v16, %v10673_v45  ;;  %v4239_v6 = vadd.f32 %v4237_v33, %v4178_v35  ;;  %v4245_v59 = vadd.f32 %v4243_v29, %v4184_v2  ;;  %p6962_p1 = pneg %p6961_p11 }
 0x5c3   : > { %v4337_v14 = vstv %s11015_s28  ;;  %v4240_v25 = vadd.f32 %v4238_v42, %v4179_v18  ;;  %v13171_v52 = vstv %s13164_s0  ;;  %v4273_v45 = vmul.f32 %v4272_v19, %v4261_v1  ;;  %s7059_s28 = smov [#allocation19]  }
 0x5c4   : > { %v4246_v21 = vadd.f32 %v4244_v44, %v4185_v20  ;;  %v4267_v51 = vmul.f32 %v13171_v52, %v4261_v1  ;;  %v13172_v11 = vmov %v13171_v52  ;;  %v4274_v0 = vmul.f32 %v4272_v19, %v4264_v31  ;;  %v13174_v20 = vld [vmem:[#allocation171_spill] sm:$0xff] }
 0x5c5   : > { %v4268_v55 = vmul.f32 %v13172_v11, %v4264_v31  ;;  %v4251_v61 = vadd.f32 %v4249_v62, %v4239_v6  ;;  %v4257_v39 = vadd.f32 %v4255_v41, %v4245_v59  ;;  %v4252_v8 = vadd.f32 %v4250_v24, %v4240_v25  ;;  %v13176_v6 = vld [vmem:[#allocation157_spill] sm:$0xff] }
 0x5c6   : > { %v4258_v34 = vadd.f32 %v4256_v32, %v4246_v21  ;;  %v4332_v56 = vmul.f32 %v4331_v5, %v4329_v43  ;;  %v4344_v17 = vmul.f32 %v4343_v7, %v10698_v30  ;;  %v4338_v49 = vmul.f32 %v4337_v14, %v4329_v43  ;;  %v13177_v21 = vld [vmem:[#allocation158_spill] sm:$0xff] }
 0x5c7   : > { %v4269_v10 = vadd.f32 %v4267_v51, %v4251_v61  ;;  %v4275_v33 = vadd.f32 %v4273_v45, %v4257_v39  ;;  %v4350_v22 = vmul.f32 %v4349_v28, %v10698_v30  ;;  %v4354_v19 = vrot.slane %v10698_v30, 1  ;;  %v13180_v39 = vld [vmem:[#allocation164_spill] sm:$0xff] }
 0x5c8   : > { %v4465_v62 = vrot.slane %v10700_v50, 7  ;;  %v4472_v41 = vstv %s11044_s12  ;;  %v4325_v3 = vrot.slane %v10717_v40, 7  ;;  %v4270_v26 = vadd.f32 %v4268_v55, %v4252_v8  ;;  %v13178_v55 = vld [vmem:[#allocation161_spill] sm:$0xff]  ;;  %s6963_s12 = sshll.u32 %s7059_s28, 4  ;;  %s6964_s12 = int_to_ptr.vmem [resolvable:$false] %s6963_s12 }
 0x5c9   : > { %v4276_v15 = vadd.f32 %v4274_v0, %v4258_v34  ;;  %v4334_v36 = vadd.f32 %v4332_v56, %v4269_v10  ;;  %v4340_v29 = vadd.f32 %v4338_v49, %v4275_v33  ;;  %v4345_v53 = vmul.f32 %v4343_v7, %v10717_v40  ;;  %v13179_v0 = vld [vmem:[#allocation159_spill] sm:$0xff]  ;;  %v13182_v49 = vld [vmem:[#allocation162_spill] sm:$0xff]  ;;  %s6965_s0 = scalar_lea.vmem %s6964_s12, 4096  ;;  %p6966_p8 = scmp.lt.s32.totalorder %s11429_s26, %s6964_s12 }
 0x5ca   : > { %v4326_v54 = vsel %vm1493_vm2, %v4324_v60, %v4325_v3  ;;  %v4355_v30 = vrot.slane %v10717_v40, 1  ;;  %v4361_v46 = vstv %s11057_s25  ;;  %v4367_v63 = vstv %s11061_s6  ;;  %v13184_v3 = vld [vmem:[#allocation167_spill] sm:$0xff]  ;;  %p6967_p2 = scmp.lt.s32.totalorder %s6965_s0, %s6959_s13 }
 0x5cb   : > { %v4346_v12 = vadd.f32 %v4344_v17, %v4334_v36  ;;  %v4333_v58 = vmul.f32 %v4331_v5, %v4326_v54  ;;  %v4339_v38 = vmul.f32 %v4337_v14, %v4326_v54  ;;  %v4352_v9 = vadd.f32 %v4350_v22, %v4340_v29  ;;  %v13181_v17 = vld [vmem:[#allocation160_spill] sm:$0xff]  ;;  %v13185_v36 = vld [vmem:[#allocation163_spill] sm:$0xff] }
 0x5cc   : > { %v4351_v27 = vmul.f32 %v4349_v28, %v10717_v40  ;;  %v4356_v42 = vsel %vm1596_vm3, %v4354_v19, %v4355_v30  ;;  %v4359_v60 = vsel %vm1596_vm3, %v4355_v30, 0.0  ;;  %v4466_v1 = vrot.slane %v10719_v47, 7  ;;  %v13183_v19 = vld [vmem:[#allocation174_spill] sm:$0xff]  ;;  %p6968_p9 = por %p6967_p2, %p6966_p8 }
 0x5cd   : > { %v4335_v7 = vadd.f32 %v4333_v58, %v4270_v26  ;;  %v4341_v57 = vadd.f32 %v4339_v38, %v4276_v15  ;;  %v4362_v24 = vmul.f32 %v4361_v46, %v4356_v42  ;;  %v4470_v5 = vsel %vm1493_vm2, 0.0, %v4465_v62 }
 0x5ce   : > { %v4484_v31 = vstv %s11076_s22  ;;  %v4363_v4 = vmul.f32 %v4361_v46, %v4359_v60  ;;  %v4368_v35 = vmul.f32 %v4367_v63, %v4356_v42  ;;  %v4369_v2 = vmul.f32 %v4367_v63, %v4359_v60  ;;  %v13186_v46 = vld [vmem:[#allocation170_spill] sm:$0xff]  ;;  %p6969_p12 = pnand %p6968_p9, %p6962_p1 }
 0x5cf   : > { %v4347_v40 = vadd.f32 %v4345_v53, %v4335_v7  ;;  %v4353_v28 = vadd.f32 %v4351_v27, %v4341_v57  ;;  %v4364_v13 = vadd.f32 %v4362_v24, %v4346_v12  ;;  %v4478_v23 = vstv %s11081_s11 }
 0x5d0   : > { %v4490_v18 = vstv %s11086_s23  ;;  %v4370_v48 = vadd.f32 %v4368_v35, %v4352_v9  ;;  %v13175_v37 = vstv %s13173_s10  ;;  %v4467_v43 = vsel %vm1493_vm2, %v4465_v62, %v4466_v1 }
 0x5d1   : > { %v4419_v44 = vmul.f32 %v13175_v37, %v13174_v20  ;;  %v4365_v16 = vadd.f32 %v4363_v4, %v4347_v40  ;;  %v4371_v32 = vadd.f32 %v4369_v2, %v4353_v28  ;;  %v4384_v59 = vadd.f32 %v13176_v6, %v4364_v13  ;;  %v6723_v37 = vld [vmem:[%s13187_s3] sm:$0xff] }
 0x5d2   : > { %v4473_v14 = vmul.f32 %v4472_v41, %v4470_v5  ;;  %v4485_v25 = vmul.f32 %v4484_v31, %v10700_v50  ;;  %v4390_v52 = vadd.f32 %v13177_v21, %v4370_v48  ;;  %v4496_v51 = vrot.slane %v10719_v47, 1 }
 0x5d3   : > { %v4479_v11 = vmul.f32 %v4478_v23, %v4470_v5  ;;  %v4385_v45 = vadd.f32 %v13178_v55, %v4365_v16  ;;  %v4391_v61 = vadd.f32 %v13179_v0, %v4371_v32  ;;  %v4396_v8 = vadd.f32 %v13180_v39, %v4384_v59  ;;  %v6724_v16 = vld [vmem:[%s13187_s3 + $0x40] sm:$0xff] }
 0x5d4   : > { %v4491_v34 = vmul.f32 %v4490_v18, %v10700_v50  ;;  %v4495_v56 = vrot.slane %v10700_v50, 1  ;;  %v4402_v10 = vadd.f32 %v13181_v17, %v4390_v52  ;;  %v4474_v33 = vmul.f32 %v4472_v41, %v4467_v43  ;;  %v6727_v52 = vld [vmem:[%s13187_s3 + $0x8] sm:$0xff] }
 0x5d5   : > { %v4397_v22 = vadd.f32 %v13182_v49, %v4385_v45  ;;  %v4403_v62 = vadd.f32 %v13183_v19, %v4391_v61  ;;  %v4414_v26 = vadd.f32 %v13184_v3, %v4396_v8  ;;  %v4480_v15 = vmul.f32 %v4478_v23, %v4467_v43  ;;  %v6725_v43 = vld [vmem:[%s13187_s3 + $0x10] sm:$0xff]  ;;  %v6729_v8 = vld [vmem:[%s13187_s3 + $0x18] sm:$0xff] }
 0x5d6   : > { %v4420_v29 = vadd.f32 %v13185_v36, %v4402_v10  ;;  %v4497_v54 = vsel %vm1596_vm3, %v4495_v56, %v4496_v51  ;;  %v4502_v53 = vstv %s11104_s19  ;;  %v4508_v30 = vstv %s11108_s17  ;;  %v6730_v56 = vld [vmem:[%s13187_s3 + $0x58] sm:$0xff] }
 0x5d7   : > { %v4415_v12 = vadd.f32 %v13186_v46, %v4397_v22  ;;  %v4421_v50 = vadd.f32 %v4419_v44, %v4403_v62  ;;  %v4475_v58 = vadd.f32 %v4473_v14, %v4414_v26  ;;  %v4500_v41 = vsel %vm1596_vm3, %v4496_v51, 0.0 }
 0x5d8   : > { %v4481_v38 = vadd.f32 %v4479_v11, %v4420_v29  ;;  %v4486_v63 = vmul.f32 %v4484_v31, %v10719_v47  ;;  %v4492_v9 = vmul.f32 %v4490_v18, %v10719_v47  ;;  %v4514_v27 = vstv %s11115_s1  ;;  %v6728_v11 = vld [vmem:[%s13187_s3 + $0x48] sm:$0xff] }
 0x5d9   : > { %v4476_v42 = vadd.f32 %v4474_v33, %v4415_v12  ;;  %v4482_v60 = vadd.f32 %v4480_v15, %v4421_v50  ;;  %v4487_v7 = vadd.f32 %v4485_v25, %v4475_v58  ;;  %v4503_v57 = vmul.f32 %v4502_v53, %v4497_v54  ;;  %v6726_v25 = vld [vmem:[%s13187_s3 + $0x50] sm:$0xff]  ;;  %v6731_v50 = vld [vmem:[%s13187_s3 + $0x20] sm:$0xff] }
 0x5da   : > { %v4493_v24 = vadd.f32 %v4491_v34, %v4481_v38  ;;  %v4504_v1 = vmul.f32 %v4502_v53, %v4500_v41  ;;  %v4509_v5 = vmul.f32 %v4508_v30, %v4497_v54  ;;  %v4510_v4 = vmul.f32 %v4508_v30, %v4500_v41  ;;  %v11175_v53 = vld [vmem:[#allocation16 + $0x18] sm:$0xff]   ;;  %v11177_v30 = vld [vmem:[#allocation16 + $0x20] sm:$0xff]   ;;  %v6732_v41 = vld [vmem:[%s13187_s3 + $0x28] sm:$0xff] }
 0x5db   : > { %v4488_v35 = vadd.f32 %v4486_v63, %v4476_v42  ;;  %v4494_v40 = vadd.f32 %v4492_v9, %v4482_v60  ;;  %v4505_v28 = vadd.f32 %v4503_v57, %v4487_v7  ;;  %v4518_v13 = vstv %s11125_s30  ;;  %v6734_v57 = vld [vmem:[%s13187_s3 + $0x68] sm:$0xff] }
 0x5dc   : > { %v4511_v31 = vadd.f32 %v4509_v5, %v4493_v24  ;;  %v13188_v60 = vmov 0.0  }
 0x5dd   : > { %v4506_v2 = vadd.f32 %v4504_v1, %v4488_v35  ;;  %v4512_v47 = vadd.f32 %v4510_v4, %v4494_v40  ;;  %v11143_v23 = vadd.f32 %v4514_v27, %v4505_v28 }
 0x5de   : > { %v11145_v18 = vadd.f32 %v4518_v13, %v4511_v31 }
 0x5df   : > { %v11147_v48 = vadd.f32 %v4514_v27, %v4506_v2  ;;  %v11149_v20 = vadd.f32 %v4518_v13, %v4512_v47  ;;  %v4521_v44 = vmul.f32 %v6723_v37, %v11143_v23  ;;  %v4529_v32 = vmul.f32 %v6724_v16, %v11143_v23  ;;  %v6733_v27 = vld [vmem:[%s13187_s3 + $0x60] sm:$0xff]  ;;  %v6735_v47 = vld [vmem:[%s13187_s3 + $0x30] sm:$0xff] }
 0x5e0   : > { %v4523_v6 = vmul.f32 %v6724_v16, %v11145_v18  ;;  %v4527_v59 = vmul.f32 %v6723_v37, %v11145_v18  ;;  %v4700_v14 = vmul.f32 %v6725_v43, %v11143_v23  ;;  %v4702_v21 = vmul.f32 %v6726_v25, %v11145_v18 }
 0x5e1   : > { %v4522_v51 = vmul.f32 %v6727_v52, %v11147_v48  ;;  %v4524_v55 = vmul.f32 %v6728_v11, %v11149_v20  ;;  %v4528_v45 = vmul.f32 %v6727_v52, %v11149_v20  ;;  %v4530_v0 = vmul.f32 %v6728_v11, %v11147_v48 }
 0x5e2   : > { %v4525_v61 = vsub.f32 %v4521_v44, %v4523_v6  ;;  %v4531_v39 = vadd.f32 %v4529_v32, %v4527_v59  ;;  %v4701_v34 = vmul.f32 %v6729_v8, %v11147_v48  ;;  %v4703_v17 = vmul.f32 %v6730_v56, %v11149_v20  ;;  %v6736_v44 = vld [vmem:[%s13187_s3 + $0x38] sm:$0xff] }
 0x5e3   : > { %v4526_v10 = vsub.f32 %v4522_v51, %v4524_v55  ;;  %v4532_v33 = vadd.f32 %v4530_v0, %v4528_v45  ;;  %v4704_v49 = vsub.f32 %v4700_v14, %v4702_v21  ;;  %v4706_v22 = vmul.f32 %v6725_v43, %v11145_v18  ;;  %v6737_v43 = vld [vmem:[%s13187_s3 + $0x70] sm:$0xff]  ;;  %v6717_v51 = vld [vmem:[#allocation16 + $0x28] sm:$0xff]  }
 0x5e4   : > { %v4642_v19 = vadd.f32 %v4531_v39, %v4525_v61  ;;  %v4705_v62 = vsub.f32 %v4701_v34, %v4703_v17  ;;  %v4707_v3 = vmul.f32 %v6729_v8, %v11149_v20  ;;  %v4708_v26 = vmul.f32 %v6726_v25, %v11143_v23  ;;  %v6738_v25 = vld [vmem:[%s13187_s3 + $0x78] sm:$0xff] }
 0x5e5   : > { %v4536_v15 = vpack.c.bf16 %v4526_v10, %v4525_v61  ;;  %v4589_v36 = vpack.c.bf16 %v4532_v33, %v4531_v39  ;;  %v4643_v29 = vadd.f32 %v4532_v33, %v4526_v10  ;;  %v4709_v54 = vmul.f32 %v6730_v56, %v11147_v48 }
 0x5e6   : > { %v4712_v46 = vpack.c.bf16 %v4705_v62, %v4704_v49  ;;  %v4710_v12 = vadd.f32 %v4708_v26, %v4706_v22  ;;  %v4846_v58 = vmul.f32 %v6731_v50, %v11143_v23  ;;  %v4847_v38 = vmul.f32 %v6732_v41, %v11147_v48  ;;  %v6719_v22 = vld [vmem:[#allocation17 + $0x20] sm:$0xff]  }
 0x5e7   : > { %6510 = vmatpush3.bf16.msra.mxu0 %v4536_v15  ;;  %6516 = vmatpush3.bf16.msra.mxu1 %v4589_v36  ;;  %v4644_v63 = vpack.c.bf16 %v4643_v29, %v4642_v19  ;;  %v4711_v9 = vadd.f32 %v4709_v54, %v4707_v3  ;;  %v4848_v42 = vmul.f32 %v6733_v27, %v11145_v18  ;;  %v6720_v19 = vld [vmem:[#allocation17 + $0x28] sm:$0xff]  }
 0x5e8   : > { %6521 = vmatprep.subr.bf16.mxu0 %v13188_v60  ;;  %6527 = vmatprep.subr.bf16.mxu1 %v13188_v60  ;;  %v4796_v7 = vadd.f32 %v4710_v12, %v4704_v49  ;;  %v4849_v24 = vmul.f32 %v6734_v57, %v11149_v20  ;;  %v4852_v1 = vmul.f32 %v6731_v50, %v11145_v18 }
 0x5e9   : > { %v4754_v5 = vpack.c.bf16 %v4711_v9, %v4710_v12  ;;  %v4797_v4 = vadd.f32 %v4711_v9, %v4705_v62  ;;  %v4850_v35 = vsub.f32 %v4846_v58, %v4848_v42  ;;  %v4853_v40 = vmul.f32 %v6732_v41, %v11149_v20 }
 0x5ea   : > { %6512 = vmatmul.mubr.msk.bf16.vlgmr.msra.gmra.mxu0 %vm493_vm0, %v11175_v53  ;;  %6518 = vmatmul.mubr.msk.bf16.vlgmr.msra.gmra.mxu1 %vm493_vm0, %v11177_v30  ;;  %v4851_v28 = vsub.f32 %v4847_v38, %v4849_v24  ;;  %v4854_v13 = vmul.f32 %v6733_v27, %v11143_v23  ;;  %v4855_v31 = vmul.f32 %v6734_v57, %v11147_v48 }
 0x5eb   : > { %6522 = vmatpush3.bf16.msra.mxu0 %v4644_v63  ;;  %6528 = vmatpush3.bf16.msra.mxu1 %v4712_v46  ;;  %v4798_v2 = vpack.c.bf16 %v4797_v4, %v4796_v7  ;;  %v4992_v37 = vmul.f32 %v6735_v47, %v11143_v23  ;;  %v4993_v16 = vmul.f32 %v6736_v44, %v11147_v48 }
 0x5ec   : > { %6523 = vmatprep.mubr.msk.bf16.mxu0 %vm7058_vm1, %v13188_v60  ;;  %6529 = vmatprep.mubr.msk.bf16.mxu1 %vm7058_vm1, %v13188_v60  ;;  %v4858_v32 = vpack.c.bf16 %v4851_v28, %v4850_v35  ;;  %v4856_v6 = vadd.f32 %v4854_v13, %v4852_v1  ;;  %v4857_v59 = vadd.f32 %v4855_v31, %v4853_v40 }
 0x5ed   : > { %6533 = vmatprep.subr.bf16.mxu0 %v13188_v60  ;;  %6539 = vmatprep.subr.bf16.mxu1 %v13188_v60  ;;  %v4994_v14 = vmul.f32 %v6737_v43, %v11145_v18  ;;  %v4995_v21 = vmul.f32 %v6738_v25, %v11149_v20  ;;  %v4998_v52 = vmul.f32 %v6735_v47, %v11145_v18 }
 0x5ee   : > { %v4900_v11 = vpack.c.bf16 %v4857_v59, %v4856_v6  ;;  %v4942_v55 = vadd.f32 %v4856_v6, %v4850_v35  ;;  %v4943_v45 = vadd.f32 %v4857_v59, %v4851_v28  ;;  %v4999_v0 = vmul.f32 %v6736_v44, %v11149_v20 }
 0x5ef   : > { %v4996_v61 = vsub.f32 %v4992_v37, %v4994_v14  ;;  %v4997_v39 = vsub.f32 %v4993_v16, %v4995_v21  ;;  %v5000_v8 = vmul.f32 %v6737_v43, %v11143_v23  ;;  %v5001_v34 = vmul.f32 %v6738_v25, %v11147_v48  ;;  %v6718_v48 = vld [vmem:[#allocation17 + $0x18] sm:$0xff]  }
 0x5f0   : > { %v4944_v56 = vpack.c.bf16 %v4943_v45, %v4942_v55 }
 0x5f1   : > { %v5004_v17 = vpack.c.bf16 %v4997_v39, %v4996_v61  ;;  %v5002_v10 = vadd.f32 %v5000_v8, %v4998_v52  ;;  %v5003_v33 = vadd.f32 %v5001_v34, %v4999_v0 }
 0x5f2   : > { %6524 = vmatmul.mubr.msk.bf16.vlgmr.msra.gmra.mxu0 %vm493_vm0, %v6717_v51  ;;  %6530 = vmatmul.mubr.msk.bf16.vlgmr.msra.gmra.mxu1 %vm493_vm0, %v11175_v53 }
 0x5f3   : > { %6534 = vmatpush3.bf16.msra.mxu0 %v4754_v5  ;;  %6540 = vmatpush3.bf16.msra.mxu1 %v4798_v2  ;;  %v5046_v18 = vpack.c.bf16 %v5003_v33, %v5002_v10  ;;  %v5088_v49 = vadd.f32 %v5002_v10, %v4996_v61  ;;  %v5089_v20 = vadd.f32 %v5003_v33, %v4997_v39 }
 0x5f4   : > { %6535 = vmatprep.mubr.msk.bf16.mxu0 %vm7058_vm1, %v13188_v60  ;;  %6541 = vmatprep.mubr.msk.bf16.mxu1 %vm7058_vm1, %v13188_v60 }
 0x5f5   : > { %6545 = vmatprep.subr.bf16.mxu0 %v13188_v60  ;;  %6551 = vmatprep.subr.bf16.mxu1 %v13188_v60  ;;  %v5090_v23 = vpack.c.bf16 %v5089_v20, %v5088_v49 }
 0x5fa   : > { %6536 = vmatmul.mubr.msk.bf16.vlgmr.msra.gmra.mxu0 %vm493_vm0, %v11177_v30  ;;  %6542 = vmatmul.mubr.msk.bf16.vlgmr.msra.gmra.mxu1 %vm493_vm0, %v6717_v51 }
 0x5fb   : > { %6546 = vmatpush3.bf16.msra.mxu0 %v4858_v32  ;;  %6552 = vmatpush3.bf16.msra.mxu1 %v4900_v11 }
 0x5fc   : > { %6547 = vmatprep.mubr.msk.bf16.mxu0 %vm7058_vm1, %v13188_v60  ;;  %6553 = vmatprep.mubr.msk.bf16.mxu1 %vm7058_vm1, %v13188_v60 }
 0x5fd   : > { %6557 = vmatprep.subr.bf16.mxu0 %v13188_v60  ;;  %6563 = vmatprep.subr.bf16.mxu1 %v13188_v60 }
 0x602   : > { %6548 = vmatmul.mubr.msk.bf16.vlgmr.msra.gmra.mxu0 %vm493_vm0, %v11175_v53  ;;  %6554 = vmatmul.mubr.msk.bf16.vlgmr.msra.gmra.mxu1 %vm493_vm0, %v11177_v30 }
 0x603   : > { %6558 = vmatpush3.bf16.msra.mxu0 %v4944_v56  ;;  %6564 = vmatpush3.bf16.msra.mxu1 %v5004_v17 }
 0x604   : > { %6559 = vmatprep.mubr.msk.bf16.mxu0 %vm7058_vm1, %v13188_v60  ;;  %6565 = vmatprep.mubr.msk.bf16.mxu1 %vm7058_vm1, %v13188_v60 }
 0x605   : > { %6569 = vmatprep.subr.bf16.mxu0 %v13188_v60  ;;  %6575 = vmatprep.subr.bf16.mxu1 %v13188_v60 }
 0x60a   : > { %6560 = vmatmul.mubr.msk.bf16.vlgmr.msra.gmra.mxu0 %vm493_vm0, %v6717_v51  ;;  %6566 = vmatmul.mubr.msk.bf16.vlgmr.msra.gmra.mxu1 %vm493_vm0, %v11175_v53 }
 0x60b   : > { %6570 = vmatpush3.bf16.msra.mxu0 %v5046_v18  ;;  %6576 = vmatpush3.bf16.msra.mxu1 %v5090_v23 }
 0x60c   : > { %6571 = vmatprep.mubr.msk.bf16.mxu0 %vm7058_vm1, %v13188_v60  ;;  %6577 = vmatprep.mubr.msk.bf16.mxu1 %vm7058_vm1, %v13188_v60 }
 0x60d   : > { %6581 = vmatprep.subr.bf16.mxu0 %v6718_v48  ;;  %6591 = vmatprep.subr.bf16.mxu1 %v6719_v22 }
 0x612   : > { %6572 = vmatmul.mubr.msk.bf16.vlgmr.msra.gmra.mxu0 %vm493_vm0, %v11177_v30  ;;  %6578 = vmatmul.mubr.msk.bf16.vlgmr.msra.gmra.mxu1 %vm493_vm0, %v6717_v51 }
 0x613   : > { %6582 = vmatpush3.bf16.msra.mxu0 %v6718_v48  ;;  %6592 = vmatpush3.bf16.msra.mxu1 %v6719_v22 }
 0x614   : > { %6601 = vmatprep.subr.bf16.mxu0 %v6720_v19 }
 0x6aa   : > { %v4579_v62 = vpop.f32.mrf.mxu0  ;;  %v4632_v3 = vpop.f32.mrf.mxu1 }
 0x6ab   : > { %v11253_v54 = vsub.f32 %v4579_v62, %v4632_v3 }
 0x6ac   : > { %v6513_v26 = vpop.f32.mrf.mxu0  ;;  %v6519_v15 = vpop.f32.mrf.mxu1 }
 0x6ae   : > { %v4582_v36 = vpop.f32.mrf.mxu0  ;;  %v4635_v29 = vpop.f32.mrf.mxu1 }
 0x6af   : > { %v11255_v53 = vsub.f32 %v4582_v36, %v4635_v29 }
 0x6b0   : > { %v6514_v30 = vpop.f32.mrf.mxu0  ;;  %v6520_v46 = vpop.f32.mrf.mxu1 }
 0x6b1   : > { %v5138_v12 = vpack.c.bf16 %v11255_v53, %v11253_v54 }
 0x6b2   : > { %v4687_v50 = vpop.f32.mrf.mxu0  ;;  %v4747_v58 = vpop.f32.mrf.mxu1 }
 0x6b3   : > { %6583 = vmatprep.mubr.msk.bf16.mxu0 %vm493_vm0, %v5138_v12  ;;  %v4696_v63 = vsub.f32 %v4687_v50, %v4579_v62 }
 0x6b4   : > { %v6525_v41 = vpop.f32.mrf.mxu0  ;;  %v6531_v38 = vpop.f32.mrf.mxu1 }
 0x6b5   : > { %v4698_v57 = vsub.f32 %v4696_v63, %v4632_v3 }
 0x6b6   : > { %v4690_v9 = vpop.f32.mrf.mxu0  ;;  %v4750_v27 = vpop.f32.mrf.mxu1 }
 0x6b7   : > { %v4697_v42 = vsub.f32 %v4690_v9, %v4582_v36  ;;  %v5318_v41 = vadd.f32 %v4698_v57, %v11253_v54 }
 0x6b8   : > { %v6526_v60 = vpop.f32.mrf.mxu0  ;;  %v6532_v7 = vpop.f32.mrf.mxu1 }
 0x6b9   : > { %v4699_v24 = vsub.f32 %v4697_v42, %v4635_v29 }
 0x6ba   : > { %v4789_v1 = vpop.f32.mrf.mxu0  ;;  %v4833_v5 = vpop.f32.mrf.mxu1 }
 0x6bb   : > { %v5228_v4 = vpack.c.bf16 %v4699_v24, %v4698_v57  ;;  %v4842_v28 = vsub.f32 %v4833_v5, %v4747_v58  ;;  %v4840_v2 = vsub.f32 %v4747_v58, %v4789_v1  ;;  %v5319_v29 = vadd.f32 %v4699_v24, %v11255_v53 }
 0x6bc   : > { %v6537_v35 = vpop.f32.mrf.mxu0  ;;  %v6543_v40 = vpop.f32.mrf.mxu1 }
 0x6bd   : > { %6593 = vmatprep.mubr.msk.bf16.mxu1 %vm493_vm0, %v5228_v4  ;;  %v4844_v32 = vsub.f32 %v4842_v28, %v4789_v1  ;;  %v5326_v60 = vpack.c.bf16 %v5319_v29, %v5318_v41  ;;  %v5440_v28 = vld [vmem:[%s13189_s9] sm:$0xff]  ;;  %v5454_v29 = vld [vmem:[%s13190_s18 + $0x30] sm:$0xff] }
 0x6be   : > { %v4792_v13 = vpop.f32.mrf.mxu0  ;;  %v4836_v31 = vpop.f32.mrf.mxu1  ;;  %vm5442_vm4 = vcmp.eq.f32.partialorder %v5440_v28, 0.0 }
 0x6bf   : > { %v4841_v47 = vsub.f32 %v4750_v27, %v4792_v13  ;;  %v4843_v37 = vsub.f32 %v4836_v31, %v4750_v27  ;;  %v5320_v1 = vadd.f32 %v4844_v32, %v4840_v2  ;;  %v5445_v31 = vstv %s5444_s5 }
 0x6c0   : > { %v6538_v44 = vpop.f32.mrf.mxu0  ;;  %v6544_v16 = vpop.f32.mrf.mxu1 }
 0x6c1   : > { %v5139_v6 = vpack.c.bf16 %v4841_v47, %v4840_v2  ;;  %v4845_v59 = vsub.f32 %v4843_v37, %v4792_v13  ;;  %v5450_v13 = vld [vmem:[%s13190_s18 + $0x10] sm:$0xff]  ;;  %v5448_v2 = vld [vmem:[%s13190_s18] sm:$0xff]  ;;  %v11278_v16 = vsel %vm5442_vm4, 0.0, %v5445_v31 }
 0x6c2   : > { %v4893_v43 = vpop.f32.mrf.mxu0  ;;  %v4935_v14 = vpop.f32.mrf.mxu1  ;;  %v6739_v37 = vld [vmem:[%s13191_s8 + $0x10] sm:$0xff] }
 0x6c3   : > { %v5229_v25 = vpack.c.bf16 %v4845_v59, %v4844_v32  ;;  %6584 = vmatmul.mubr.msk.bf16.vlgmr.msra.gmra.mxu0 %vm493_vm0, %v5139_v6  ;;  %v4986_v55 = vsub.f32 %v4893_v43, %v4935_v14  ;;  %v5321_v53 = vadd.f32 %v4845_v59, %v4841_v47  ;;  %v5441_v47 = vld [vmem:[%s13189_s9 + $0x8] sm:$0xff]  ;;  %v5458_v44 = vsub.f32 %v6739_v37, %v5450_v13  ;;  %v5451_v32 = vld [vmem:[%s13190_s18 + $0x18] sm:$0xff]  ;;  %v6740_v6 = vld [vmem:[%s13191_s8] sm:$0xff] }
 0x6c4   : > { %v6549_v21 = vpop.f32.mrf.mxu0  ;;  %v6555_v52 = vpop.f32.mrf.mxu1  ;;  %6602 = vmatpush3.bf16.msra.mxu0 %v6720_v19  ;;  %v5456_v59 = vsub.f32 %v6740_v6, %v5448_v2  ;;  %vm5443_vm5 = vcmp.eq.f32.partialorder %v5441_v47, 0.0  ;;  %v6748_v47 = vld [vmem:[%s13191_s8 + $0x40] sm:$0xff] }
 0x6c5   : > { %6594 = vmatmul.mubr.msk.bf16.vlgmr.msra.gmra.mxu1 %vm493_vm0, %v5229_v25  ;;  %v5327_v57 = vpack.c.bf16 %v5321_v53, %v5320_v1  ;;  %v6741_v25 = vld [vmem:[%s13191_s8 + $0x18] sm:$0xff]  ;;  %v11285_v52 = vsel %vm5443_vm5, 0.0, %v5445_v31  ;;  %v6143_v1 = vld [vmem:[%s13190_s18 + $0x40] sm:$0xff] }
 0x6c6   : > { %v4896_v51 = vpop.f32.mrf.mxu0  ;;  %v4938_v11 = vpop.f32.mrf.mxu1  ;;  %v5459_v21 = vsub.f32 %v6741_v25, %v5451_v32 }
 0x6c7   : > { %v4987_v45 = vsub.f32 %v4896_v51, %v4938_v11 }
 0x6c8   : > { %v6550_v0 = vpop.f32.mrf.mxu0  ;;  %v6556_v61 = vpop.f32.mrf.mxu1 }
 0x6c9   : > { %v5140_v39 = vpack.c.bf16 %v4987_v45, %v4986_v55  ;;  %v5467_v61 = vmul.f32 %v5459_v21, %v11285_v52 }
 0x6ca   : > { %v4979_v8 = vpop.f32.mrf.mxu0  ;;  %v5039_v34 = vpop.f32.mrf.mxu1 }
 0x6cb   : > { %6587 = vmatprep.mubr.msk.bf16.mxu0 %vm493_vm0, %v5140_v39  ;;  %v4988_v10 = vsub.f32 %v4979_v8, %v4893_v43  ;;  %v5449_v43 = vld [vmem:[%s13190_s18 + $0x8] sm:$0xff] }
 0x6cc   : > { %v6561_v56 = vpop.f32.mrf.mxu0  ;;  %v6567_v17 = vpop.f32.mrf.mxu1 }
 0x6cd   : > { %v4990_v48 = vsub.f32 %v4988_v10, %v4935_v14  ;;  %v5466_v14 = vmul.f32 %v5458_v44, %v11278_v16  ;;  %v6144_v44 = vld [vmem:[%s13190_s18 + $0x48] sm:$0xff] }
 0x6ce   : > { %v4982_v33 = vpop.f32.mrf.mxu0  ;;  %v5042_v18 = vpop.f32.mrf.mxu1 }
 0x6cf   : > { %v4989_v49 = vsub.f32 %v4982_v33, %v4896_v51  ;;  %v5322_v54 = vadd.f32 %v4990_v48, %v4986_v55  ;;  %v6742_v51 = vld [vmem:[%s13191_s8 + $0x8] sm:$0xff]  ;;  %v5464_v55 = vmul.f32 %v5456_v59, %v11278_v16  ;;  %v5474_v0 = vsub.f32 %v6739_v37, %v5466_v14  ;;  %v6749_v59 = vld [vmem:[%s13191_s8 + $0x58] sm:$0xff] }
 0x6d0   : > { %v6562_v20 = vpop.f32.mrf.mxu0  ;;  %v6568_v23 = vpop.f32.mrf.mxu1  ;;  %v5505_v37 = vsub.f32 %v6748_v47, %v6143_v1 }
 0x6d1   : > { %v4991_v22 = vsub.f32 %v4989_v49, %v4938_v11  ;;  %v5457_v11 = vsub.f32 %v6742_v51, %v5449_v43  ;;  %v5472_v56 = vsub.f32 %v6740_v6, %v5464_v55  ;;  %v5475_v20 = vsub.f32 %v6741_v25, %v5467_v61  ;;  %v6750_v61 = vld [vmem:[%s13191_s8 + $0x48] sm:$0xff] }
 0x6d2   : > { %v5081_v19 = vpop.f32.mrf.mxu0  ;;  %v5125_v62 = vpop.f32.mrf.mxu1 }
 0x6d3   : > { %v5230_v3 = vpack.c.bf16 %v4991_v22, %v4990_v48  ;;  %v5134_v36 = vsub.f32 %v5125_v62, %v5039_v34  ;;  %v5132_v12 = vsub.f32 %v5039_v34, %v5081_v19  ;;  %v5323_v24 = vadd.f32 %v4991_v22, %v4987_v45 }
 0x6d4   : > { %v6573_v26 = vpop.f32.mrf.mxu0  ;;  %v6579_v15 = vpop.f32.mrf.mxu1  ;;  %v5465_v17 = vmul.f32 %v5457_v11, %v11285_v52  ;;  %v6149_v11 = vld [vmem:[%s13190_s18 + $0x70] sm:$0xff] }
 0x6d5   : > { %6597 = vmatprep.mubr.msk.bf16.mxu1 %vm493_vm0, %v5230_v3  ;;  %v5136_v9 = vsub.f32 %v5134_v36, %v5081_v19  ;;  %v5328_v5 = vpack.c.bf16 %v5323_v24, %v5322_v54 }
 0x6d6   : > { %v5084_v30 = vpop.f32.mrf.mxu0  ;;  %v5128_v46 = vpop.f32.mrf.mxu1  ;;  %v5473_v19 = vsub.f32 %v6742_v51, %v5465_v17 }
 0x6d7   : > { %v5133_v50 = vsub.f32 %v5042_v18, %v5084_v30  ;;  %v5135_v58 = vsub.f32 %v5128_v46, %v5042_v18  ;;  %v5324_v35 = vadd.f32 %v5136_v9, %v5132_v12  ;;  %v6743_v46 = vld [vmem:[%s13191_s8 + $0x30] sm:$0xff] }
 0x6d8   : > { %v6574_v38 = vpop.f32.mrf.mxu0  ;;  %v6580_v63 = vpop.f32.mrf.mxu1 }
 0x6d9   : > { %v5141_v27 = vpack.c.bf16 %v5133_v50, %v5132_v12  ;;  %v5137_v42 = vsub.f32 %v5135_v58, %v5084_v30  ;;  %v5452_v30 = vld [vmem:[%s13190_s18 + $0x20] sm:$0xff]  ;;  %v5462_v12 = vsub.f32 %v6743_v46, %v5454_v29  ;;  %v5453_v38 = vld [vmem:[%s13190_s18 + $0x28] sm:$0xff] }
 0x6da   : > { %v6744_v58 = vld [vmem:[%s13191_s8 + $0x20] sm:$0xff] }
 0x6db   : > { %v5231_v7 = vpack.c.bf16 %v5137_v42, %v5136_v9  ;;  %6588 = vmatmul.mubr.msk.bf16.gmra.mxu0 %vm493_vm0, %v5141_v27  ;;  %v5325_v4 = vadd.f32 %v5137_v42, %v5133_v50  ;;  %v5455_v50 = vld [vmem:[%s13190_s18 + $0x38] sm:$0xff]  ;;  %v5460_v41 = vsub.f32 %v6744_v58, %v5452_v30  ;;  %v5470_v63 = vmul.f32 %v5462_v12, %v11278_v16  ;;  %v6145_v42 = vld [vmem:[%s13190_s18 + $0x50] sm:$0xff] }
 0x6dc   : > { %6603 = vmatprep.mubr.msk.bf16.mxu0 %vm493_vm0, %v5326_v60  ;;  %v6745_v9 = vld [vmem:[%s13191_s8 + $0x38] sm:$0xff] }
 0x6dd   : > { %6598 = vmatmul.mubr.msk.bf16.gmra.mxu1 %vm493_vm0, %v5231_v7  ;;  %v5329_v40 = vpack.c.bf16 %v5325_v4, %v5324_v35  ;;  %v5463_v27 = vsub.f32 %v6745_v9, %v5455_v50  ;;  %v5468_v60 = vmul.f32 %v5460_v41, %v11278_v16  ;;  %v6746_v7 = vld [vmem:[%s13191_s8 + $0x28] sm:$0xff]  ;;  %v5478_v54 = vsub.f32 %v6743_v46, %v5470_v63  ;;  %v6146_v35 = vld [vmem:[%s13190_s18 + $0x58] sm:$0xff] }
 0x6de   : > { %v5461_v53 = vsub.f32 %v6746_v7, %v5453_v38  ;;  %v5508_v43 = vsub.f32 %v6749_v59, %v6146_v35  ;;  %v6150_v38 = vld [vmem:[%s13190_s18 + $0x78] sm:$0xff] }
 0x6df   : > { %v5476_v31 = vsub.f32 %v6744_v58, %v5468_v60  ;;  %v6752_v58 = vld [vmem:[%s13191_s8 + $0x60] sm:$0xff] }
 0x6e0   : > { %v5469_v2 = vmul.f32 %v5461_v53, %v11285_v52  ;;  %v6148_v53 = vld [vmem:[%s13190_s18 + $0x68] sm:$0xff] }
 0x6e3   : > { %6604 = vmatmul.mubr.msk.bf16.vlgmr.msra.gmra.mxu0 %vm493_vm0, %v5327_v57  ;;  %v5471_v57 = vmul.f32 %v5463_v27, %v11285_v52 }
 0x6e4   : > { %6607 = vmatprep.mubr.msk.bf16.mxu0 %vm493_vm0, %v5328_v5  ;;  %v6747_v5 = vld [vmem:[%s13191_s8 + $0x50] sm:$0xff] }
 0x6e5   : > { %v5507_v4 = vsub.f32 %v6747_v5, %v6145_v42  ;;  %v5479_v21 = vsub.f32 %v6745_v9, %v5471_v57 }
 0x6e7   : > { %v5515_v51 = vmul.f32 %v5507_v4, %v11278_v16 }
 0x6e9   : > { %v5523_v30 = vsub.f32 %v6747_v5, %v5515_v51 }
 0x6eb   : > { %6608 = vmatmul.mubr.msk.bf16.gmra.mxu0 %vm493_vm0, %v5329_v40 }
 0x783   : > { %v11289_v45 = vpop.f32.mrf.mxu0 }
 0x785   : > { %v11292_v39 = vpop.f32.mrf.mxu1  ;;  %v11294_v8 = vpop.f32.mrf.mxu0 }
 0x786   : > { %v5418_v34 = vsub.f32 %v11289_v45, %v11292_v39 }
 0x787   : > { %v11299_v10 = vpop.f32.mrf.mxu1  ;;  %v11301_v33 = vpop.f32.mrf.mxu0 }
 0x788   : > { %v5482_v18 = vadd.f32 %v5474_v0, %v5418_v34  ;;  %v5416_v49 = vsub.f32 %v11294_v8, %v11299_v10  ;;  %v5506_v34 = vsub.f32 %v6750_v61, %v6144_v44 }
 0x789   : > { %v11305_v23 = vpop.f32.mrf.mxu1  ;;  %v11314_v62 = vpop.f32.mrf.mxu0 }
 0x78a   : > { %5490 = vst.msk [vmem:[%s11308_s15 + $0x10] sm:$0xff] %vm493_vm0, %v5482_v18  ;;  %v5480_v48 = vadd.f32 %v5472_v56, %v5416_v49  ;;  %v5419_v22 = vsub.f32 %v11301_v33, %v11305_v23  ;;  %v5477_v18 = vsub.f32 %v6746_v7, %v5469_v2  ;;  %v5513_v49 = vmul.f32 %v5505_v37, %v11278_v16 }
 0x78b   : > { %v11316_v3 = vpop.f32.mrf.mxu1  ;;  %v5514_v50 = vmul.f32 %v5506_v34, %v11285_v52 }
 0x78c   : > { %5488 = vst.msk [vmem:[%s11308_s15] sm:$0xff] %vm493_vm0, %v5480_v48  ;;  %v5483_v26 = vadd.f32 %v5475_v20, %v5419_v22  ;;  %v5417_v15 = vsub.f32 %v11314_v62, %v11316_v3  ;;  %v6147_v20 = vld [vmem:[%s13190_s18 + $0x60] sm:$0xff]  ;;  %v5521_v27 = vsub.f32 %v6748_v47, %v5513_v49  ;;  %v6754_v47 = vld [vmem:[%s13191_s8 + $0x68] sm:$0xff] }
 0x78d   : > { %v5509_v41 = vsub.f32 %v6752_v58, %v6147_v20  ;;  %v5522_v35 = vsub.f32 %v6750_v61, %v5514_v50  ;;  %v5510_v37 = vsub.f32 %v6754_v47, %v6148_v53 }
 0x78e   : > { %5491 = vst.msk [vmem:[%s11308_s15 + $0x18] sm:$0xff] %vm493_vm0, %v5483_v26  ;;  %v5481_v36 = vadd.f32 %v5473_v19, %v5417_v15  ;;  %v5516_v19 = vmul.f32 %v5508_v43, %v11285_v52  ;;  %v6751_v26 = vld [vmem:[%s13191_s8 + $0x70] sm:$0xff] }
 0x78f   : > { %v5511_v15 = vsub.f32 %v6751_v26, %v6149_v11  ;;  %v5518_v51 = vmul.f32 %v5510_v37, %v11285_v52 }
 0x790   : > { %5489 = vst.msk [vmem:[%s11308_s15 + $0x8] sm:$0xff] %vm493_vm0, %v5481_v36  ;;  %v5524_v60 = vsub.f32 %v6749_v59, %v5516_v19 }
 0x791   : > { %v5519_v7 = vmul.f32 %v5511_v15, %v11278_v16 }
 0x793   : > { %v5527_v44 = vsub.f32 %v6751_v26, %v5519_v7 }
 0x79b   : > { %v11337_v24 = vpop.f32.mrf.mxu0 }
 0x79d   : > { %v11343_v40 = vpop.f32.mrf.mxu0  ;;  %v11345_v28 = vpop.f32.mrf.mxu1 }
 0x79e   : > { %v5422_v13 = vsub.f32 %v11337_v24, %v11345_v28 }
 0x79f   : > { %v11352_v32 = vpop.f32.mrf.mxu0  ;;  %v11354_v6 = vpop.f32.mrf.mxu1 }
 0x7a0   : > { %v5486_v14 = vadd.f32 %v5478_v54, %v5422_v13  ;;  %v5420_v25 = vsub.f32 %v11343_v40, %v11354_v6 }
 0x7a1   : > { %v11361_v55 = vpop.f32.mrf.mxu0  ;;  %v11363_v0 = vpop.f32.mrf.mxu1 }
 0x7a2   : > { %5494 = vst.msk [vmem:[%s11308_s15 + $0x30] sm:$0xff] %vm493_vm0, %v5486_v14  ;;  %v5484_v56 = vadd.f32 %v5476_v31, %v5420_v25  ;;  %v5423_v17 = vsub.f32 %v11352_v32, %v11363_v0 }
 0x7a3   : > { %v6605_v48 = vpop.f32.mrf.mxu0  ;;  %v11372_v22 = vpop.f32.mrf.mxu1 }
 0x7a4   : > { %5492 = vst.msk [vmem:[%s11308_s15 + $0x20] sm:$0xff] %vm493_vm0, %v5484_v56  ;;  %v5487_v36 = vadd.f32 %v5479_v21, %v5423_v17  ;;  %v5426_v29 = vsub.f32 %v6605_v48, %v11289_v45  ;;  %v5421_v46 = vsub.f32 %v11361_v55, %v11372_v22  ;;  %v5526_v17 = vsub.f32 %v6754_v47, %v5518_v51 }
 0x7a5   : > { %v5385_v12 = vpop.f32.mrf.mxu0 }
 0x7a6   : > { %5495 = vst.msk [vmem:[%s11308_s15 + $0x38] sm:$0xff] %vm493_vm0, %v5487_v36  ;;  %v5434_v63 = vsub.f32 %v5426_v29, %v11292_v39  ;;  %v5485_v9 = vadd.f32 %v5477_v18, %v5421_v46  ;;  %v5424_v45 = vsub.f32 %v5385_v12, %v11294_v8  ;;  %v6753_v39 = vld [vmem:[%s13191_s8 + $0x78] sm:$0xff]  ;;  %v5517_v8 = vmul.f32 %v5509_v41, %v11278_v16 }
 0x7a7   : > { %v6606_v42 = vpop.f32.mrf.mxu0  ;;  %v5512_v5 = vsub.f32 %v6753_v39, %v6150_v38 }
 0x7a8   : > { %v5531_v1 = vadd.f32 %v5523_v30, %v5434_v63  ;;  %5493 = vst.msk [vmem:[%s11308_s15 + $0x28] sm:$0xff] %vm493_vm0, %v5485_v9  ;;  %v5432_v54 = vsub.f32 %v5424_v45, %v11299_v10  ;;  %v5427_v57 = vsub.f32 %v6606_v42, %v11301_v33  ;;  %v5525_v25 = vsub.f32 %v6752_v58, %v5517_v8 }
 0x7a9   : > { %v5388_v4 = vpop.f32.mrf.mxu0  ;;  %v5520_v43 = vmul.f32 %v5512_v5, %v11285_v52 }
 0x7aa   : > { %6153 = vst.msk [vmem:[%s11308_s15 + $0x50] sm:$0xff] %vm493_vm0, %v5531_v1  ;;  %v5529_v13 = vadd.f32 %v5521_v27, %v5432_v54  ;;  %v5435_v31 = vsub.f32 %v5427_v57, %v11305_v23  ;;  %v5425_v2 = vsub.f32 %v5388_v4, %v11314_v62 }
 0x7ab   : > { %v6609_v10 = vpop.f32.mrf.mxu0  ;;  %v5528_v34 = vsub.f32 %v6753_v39, %v5520_v43 }
 0x7ac   : > { %6151 = vst.msk [vmem:[%s11308_s15 + $0x40] sm:$0xff] %vm493_vm0, %v5529_v13  ;;  %v5532_v33 = vadd.f32 %v5524_v60, %v5435_v31  ;;  %v5433_v59 = vsub.f32 %v5425_v2, %v11316_v3  ;;  %v5430_v16 = vsub.f32 %v6609_v10, %v11337_v24 }
 0x7ad   : > { %v5401_v14 = vpop.f32.mrf.mxu0 }
 0x7ae   : > { %6154 = vst.msk [vmem:[%s11308_s15 + $0x58] sm:$0xff] %vm493_vm0, %v5532_v33  ;;  %v5530_v23 = vadd.f32 %v5522_v35, %v5433_v59  ;;  %v5438_v62 = vsub.f32 %v5430_v16, %v11345_v28  ;;  %v5428_v21 = vsub.f32 %v5401_v14, %v11343_v40 }
 0x7af   : > { %v6610_v3 = vpop.f32.mrf.mxu0 }
 0x7b0   : > { %6152 = vst.msk [vmem:[%s11308_s15 + $0x48] sm:$0xff] %vm493_vm0, %v5530_v23  ;;  %v5535_v24 = vadd.f32 %v5527_v44, %v5438_v62  ;;  %v5436_v11 = vsub.f32 %v5428_v21, %v11354_v6  ;;  %v5431_v61 = vsub.f32 %v6610_v3, %v11352_v32 }
 0x7b1   : > { %v5404_v56 = vpop.f32.mrf.mxu0 }
 0x7b2   : > { %6157 = vst.msk [vmem:[%s11308_s15 + $0x70] sm:$0xff] %vm493_vm0, %v5535_v24  ;;  %v5533_v28 = vadd.f32 %v5525_v25, %v5436_v11  ;;  %v5439_v40 = vsub.f32 %v5431_v61, %v11363_v0  ;;  %v5429_v52 = vsub.f32 %v5404_v56, %v11361_v55 }
 0x7b4   : > { %6155 = vst.msk [vmem:[%s11308_s15 + $0x60] sm:$0xff] %vm493_vm0, %v5533_v28  ;;  %v5536_v6 = vadd.f32 %v5528_v34, %v5439_v40  ;;  %v5437_v32 = vsub.f32 %v5429_v52, %v11372_v22 }
 0x7b6   : > { %6158 = vst.msk [vmem:[%s11308_s15 + $0x78] sm:$0xff] %vm493_vm0, %v5536_v6  ;;  %v5534_v55 = vadd.f32 %v5526_v17, %v5437_v32 }
 0x7b8   : > { %6156 = vst.msk [vmem:[%s11308_s15 + $0x68] sm:$0xff] %vm493_vm0, %v5534_v55 }
 0x7b9   : > { %6972 = shalt.err (!%p6969_p12)
}
 0x7ba   : > { %s6973_s25 = scalar_lea.hbm %s11427_s24, 2048  ;;  %s6977_s11 = scalar_lea.hbm %s13196_s27, 4096 }
 0x7bb   : > { %p6974_p7 = scmp.ne.s32.totalorder %s11427_s24, %s6973_s25  ;;  %p6978_p3 = scmp.lt.s32.totalorder %s11427_s24, %s13196_s27 }
 0x7bc   : > { %p6979_p13 = scmp.lt.s32.totalorder %s6977_s11, %s6973_s25 }
 0x7bd   : > { %p6975_p10 = pnand %p6974_p7, %p13197_p6 }
 0x7be   : > { %p6980_p4 = por %p6979_p13, %p6978_p3 }
 0x7bf   : > { %p6976_p0 = pneg %p6975_p10 }
 0x7c1   : > { %p6981_p5 = pnand %p6980_p4, %p6976_p0 }
 0x7c3   : > { %6984 = shalt.err (!%p6981_p5)
}
 0x7c4   : > { %s7060_s19 = smov 128   ;;  %s7061_s17 = smov 8  }
 0x7c5   : > { %6629 = dma.vmem_to_hbm [thread:$0]  (%p13197_p6), %s11429_s26, 2048, %s11427_s24, %s5547_s7, %s7060_s19, %s7060_s19, %s7061_s17  }
 0x7c6 PF: > { %s13198_s1 = sld [smem:[#allocation27_spill]] }
 0x7c7   : > { %s13199_s30 = sld [smem:[#allocation35_spill]] }
 0x7c8   : > { %s13200_s3 = sld [smem:[#allocation30_spill]] }
 0x7cc   : > { %s5575_s9 = sand.u32 1, %s13198_s1  }
 0x7cd   : > { %p13201_p11 = scmp.ne.s32.totalorder %s13199_s30, 0  ;;  %s5576_s18 = scalar_lea.sflag [#allocation10], %s5575_s9 }
 0x7ce   : > { %p13202_p1 = scmp.ge.s32.totalorder %s13200_s3, 2 }
 0x7d0   : > { %p6652_p8 = pnand %p13202_p1, %p13201_p11 }
 0x7d2   : > { %p6653_p2 = pneg %p6652_p8 }
 0x7d4   : > { %7024 = dma.done.wait (%p6653_p2), %s5576_s18, 2048  }
 0x7d5   : > { %7026 = vsyncadd (%p6653_p2), %s5576_s18, 4294965248  ;;  %s13203_s20 = sld [smem:[#allocation32_spill]] }
 0x7d6   : > { %s13204_s2 = sld [smem:[#allocation28_spill]] }
 0x7d7   : > { %s13205_s18 = sld [smem:[#allocation29_spill]] }
 0x7d8   : > { %s13206_s19 = sld [smem:[#allocation33_spill]] }
 0x7db   : > { %p47_p9 = scmp.ge.s32.totalorder %s13203_s20, 4  }
 0x7dd   :  { %49 = sbr.rel (!%p47_p9) target bundleno = 40 (0x28), region = 159 }
 0x7e2   :  { %5581 = vsyncpa [#allocation9], 1 }
 0x7e3   :  { %5583 = vsyncpa [#allocation9 + $0x1], 1 }
 0x7e4   :  { %5584 = vsyncpa [#allocation12], 1 }
 0x7e5   :  { %5586 = vsyncpa [#allocation12 + $0x1], 1 }
 0x7e6   :  { %5587 = vsyncpa [#allocation15], 1 }
 0x7e7   :  { %5589 = vsyncpa [#allocation15 + $0x1], 1 }
 0x7e8   :  { %5590 = vsyncpa [#allocation18], 1 }
 0x7e9   :  { %5591 = vsyncpa [#allocation10], 1 }
 0x7ea   :  { %5593 = vsyncpa [#allocation10 + $0x1], 1 }

</bundles_post_ra>
